<compile_context>
chip_gen: v7x
topology: tpu7x:2x2x1
jax: 0.10.0
libtpu: 0.0.40
codegen_flags: <defaults>
</compile_context>

<pallas_src>
import jax
import jax.numpy as jnp
from jax import lax
from jax.experimental import pallas as pl
from jax.experimental.pallas import tpu as pltpu


# ----------------------------- Pallas kernels ------------------------------ #
def _gemm_bias_relu_kernel(x_ref, w_ref, b_ref, o_ref):
    # bf16 x bf16 -> f32 accumulate on the MXU; bias + ReLU epilogue in f32.
    acc = jnp.dot(x_ref[...], w_ref[...], preferred_element_type=jnp.float32)
    o_ref[...] = jnp.maximum(acc + b_ref[...], 0.0).astype(o_ref.dtype)


def _conv3_fc_kernel(p_ref, wc_ref, bc_ref, w1_ref, b1_ref, w2_ref, b2_ref,
                     w3_ref, b3_ref, o_ref):
    """conv3 (16 per-pixel GEMMs) -> fc1 -> fc2 -> fc3, all VMEM-resident.

    p_ref : (16, TN, 576) bf16 conv3 im2col patches, pixel-major.
    w1_ref: (16, 128, 512) bf16 fc1 weight, one K-block per conv3 pixel.
    """
    n_pix = p_ref.shape[0]
    tn = p_ref.shape[1]
    acc = jnp.zeros((tn, w1_ref.shape[2]), jnp.float32)
    for p in range(n_pix):                         # unrolled; static slices only
        hp = jnp.dot(p_ref[p], wc_ref[...], preferred_element_type=jnp.float32)
        hp = jnp.maximum(hp + bc_ref[...], 0.0).astype(jnp.bfloat16)
        acc = acc + jnp.dot(hp, w1_ref[p], preferred_element_type=jnp.float32)
    h = jnp.maximum(acc + b1_ref[...], 0.0).astype(jnp.bfloat16)
    h = jnp.dot(h, w2_ref[...], preferred_element_type=jnp.float32)
    h = jnp.maximum(h + b2_ref[...], 0.0).astype(jnp.bfloat16)
    o_ref[...] = (jnp.dot(h, w3_ref[...], preferred_element_type=jnp.float32)
                  + b3_ref[...])


# ------------------------------ Pallas wrappers ----------------------------- #
def _pick_tile(m, cap=512):
    """Largest 128/8-aligned divisor of m that still gives >= 2 grid steps.

    Keeps tiles big (v5e/v6e: fewer grid steps) while guaranteeing a parallel
    grid of >= 2 when m allows it, so v7x can shard across both TensorCores.
    """
    for t in (512, 256, 128, 64, 32, 16, 8):
        if t <= cap and t <= m // 2 and m % t == 0:
            return t
    return m   # tiny / awkward M: one full (legal) block


def conv_gemm_bias_relu(patches, w_kc, b_1c):
    """(M,K) bf16 @ (K,C) bf16 + bias, ReLU.  Tiled over M, pipelined."""
    m, k = patches.shape
    k2, c = w_kc.shape
    assert k == k2
    tm = _pick_tile(m)
    flops = 2 * m * k * c
    bytes_acc = (m * k + k * c + m * c) * 2 + c * 4
    return pl.pallas_call(
        _gemm_bias_relu_kernel,
        out_shape=jax.ShapeDtypeStruct((m, c), jnp.bfloat16),
        grid=(m // tm,),
        in_specs=[
            pl.BlockSpec((tm, k), lambda i: (i, 0)),
            pl.BlockSpec((k, c), lambda i: (0, 0)),
            pl.BlockSpec((1, c), lambda i: (0, 0)),
        ],
        out_specs=pl.BlockSpec((tm, c), lambda i: (i, 0)),
        compiler_params=pltpu.CompilerParams(dimension_semantics=("parallel",)),
        cost_estimate=pl.CostEstimate(flops=flops, transcendentals=0,
                                      bytes_accessed=bytes_acc),
    )(patches, w_kc, b_1c)


def conv3_fc_head(x_nhwc, pp):
    """conv3 + fc1 + fc2 + fc3 fused in a single Pallas kernel.

    x_nhwc: conv2 output (N, 8, 8, 64) bf16.  Returns (N, 4) f32.
    """
    n = x_nhwc.shape[0]
    # Pixel-major patches: out layout "HWNC" -> (4, 4, N, 576), so the reshape
    # to (16, N, 576) is free (no runtime transpose).  Feature order stays
    # (c_in, kh, kw), matching the packed conv3 weight and fc1 permutation.
    patches = lax.conv_general_dilated_patches(
        x_nhwc, filter_shape=(3, 3), window_strides=(2, 2),
        padding=[(1, 1), (1, 1)],
        dimension_numbers=("NHWC", "HWIO", "HWNC"))
    ph, pw, _, kf = patches.shape
    patches = patches.reshape(ph * pw, n, kf)

    tn = _pick_tile(n, cap=128)
    flops = n * (2 * 16 * 576 * 128 + 2 * 2048 * 512
                 + 2 * 512 * 128 + 2 * 128 * 128)
    weight_elems = 576 * 128 + 16 * 128 * 512 + 512 * 128 + 128 * 128
    bytes_acc = ((16 * n * 576 + weight_elems) * 2
                 + n * 128 * 4 + (128 + 512 + 128 + 128) * 4)

    out = pl.pallas_call(
        _conv3_fc_kernel,
        out_shape=jax.ShapeDtypeStruct((n, 128), jnp.float32),
        grid=(n // tn,),
        in_specs=[
            pl.BlockSpec((ph * pw, tn, kf), lambda i: (0, i, 0)),
            pl.BlockSpec((576, 128), lambda i: (0, 0)),
            pl.BlockSpec((1, 128), lambda i: (0, 0)),
            pl.BlockSpec((16, 128, 512), lambda i: (0, 0, 0)),
            pl.BlockSpec((1, 512), lambda i: (0, 0)),
            pl.BlockSpec((512, 128), lambda i: (0, 0)),
            pl.BlockSpec((1, 128), lambda i: (0, 0)),
            pl.BlockSpec((128, 128), lambda i: (0, 0)),
            pl.BlockSpec((1, 128), lambda i: (0, 0)),
        ],
        out_specs=pl.BlockSpec((tn, 128), lambda i: (i, 0)),
        compiler_params=pltpu.CompilerParams(dimension_semantics=("parallel",)),
        cost_estimate=pl.CostEstimate(flops=flops, transcendentals=0,
                                      bytes_accessed=bytes_acc),
    )(patches, pp["c3_w"], pp["c3_b"], pp["fc1_w"], pp["fc1_b"],
      pp["fc2_w"], pp["fc2_b"], pp["fc3_w"], pp["fc3_b"])
    return out[:, :4]   # fc3 was zero-padded to 128 lanes for lane-dense stores


# ------------------------------ parameters --------------------------------- #
def init_params(key):
    ks = jax.random.split(key, 12)

    def w(k, shape, scale):
        return jax.random.normal(k, shape, jnp.float32) * scale

    return {
        "conv1_w": w(ks[0], (32, 12, 7, 7), 0.05),
        "conv1_b": w(ks[1], (32,), 0.05),
        "conv2_w": w(ks[2], (64, 32, 5, 5), 0.05),
        "conv2_b": w(ks[3], (64,), 0.05),
        "conv3_w": w(ks[4], (128, 64, 3, 3), 0.05),
        "conv3_b": w(ks[5], (128,), 0.05),
        # PyTorch nn.Linear stores (out_features, in_features)
        "fc1_w": w(ks[6], (512, 4 * 4 * 128), 0.02),
        "fc1_b": w(ks[7], (512,), 0.02),
        "fc2_w": w(ks[8], (128, 512), 0.02),
        "fc2_b": w(ks[9], (128,), 0.02),
        "fc3_w": w(ks[10], (4, 128), 0.02),
        "fc3_b": w(ks[11], (4,), 0.02),
    }


def pack_params(params):
    """One-time packing: transposes / reshapes / dtype casts hoisted out of fwd."""
    bf16, f32 = jnp.bfloat16, jnp.float32

    def conv_w(w_oihw):
        c_out = w_oihw.shape[0]
        # OIHW -> (I*KH*KW, O); row order (c_in, kh, kw) matches the
        # conv_general_dilated_patches feature ordering.
        return w_oihw.reshape(c_out, -1).T.astype(bf16)

    def bias(b):
        return b.reshape(1, -1).astype(f32)

    # fc1 is stored (512, 2048) against a torch NCHW (c, h, w)-ordered flatten.
    # Re-index to (pixel, c_in, out) = (16, 128, 512) so the fused kernel's
    # per-pixel conv3 outputs feed a K-blocked fc1 accumulation directly.
    w1 = params["fc1_w"].reshape(512, 128, 4, 4)                # (out, c, h, w)
    w1 = jnp.transpose(w1, (2, 3, 1, 0)).reshape(16, 128, 512)  # (p, c, out)

    # fc3: pad 4 -> 128 output lanes (zeros) for lane-dense final stores.
    w3 = jnp.pad(params["fc3_w"].T, ((0, 0), (0, 124)))         # (128, 128)
    b3 = jnp.pad(params["fc3_b"], (0, 124))                     # (128,)

    return {
        "c1_w": conv_w(params["conv1_w"]), "c1_b": bias(params["conv1_b"]),
        "c2_w": conv_w(params["conv2_w"]), "c2_b": bias(params["conv2_b"]),
        "c3_w": conv_w(params["conv3_w"]), "c3_b": bias(params["conv3_b"]),
        "fc1_w": w1.astype(bf16), "fc1_b": bias(params["fc1_b"]),
        "fc2_w": params["fc2_w"].T.astype(bf16), "fc2_b": bias(params["fc2_b"]),
        "fc3_w": w3.astype(bf16), "fc3_b": bias(b3),
    }


# -------------------------------- forward ----------------------------------- #
def dqn_forward(pp, x_nchw, batch_size):
    # Cast once to bf16; the NCHW->NHWC transpose is folded into the conv1
    # patch extraction (no separate XLA transpose / HBM round trip).
    x = x_nchw.astype(jnp.bfloat16)

    p1 = lax.conv_general_dilated_patches(
        x, filter_shape=(7, 7), window_strides=(4, 4),
        padding=[(2, 2), (2, 2)],
        dimension_numbers=("NCHW", "HWIO", "NHWC"))
    n, h1, w1, k1 = p1.shape
    y1 = conv_gemm_bias_relu(p1.reshape(n * h1 * w1, k1),
                             pp["c1_w"], pp["c1_b"])
    y1 = y1.reshape(n, h1, w1, -1)                       # (N,16,16,32) NHWC

    p2 = lax.conv_general_dilated_patches(
        y1, filter_shape=(5, 5), window_strides=(2, 2),
        padding=[(2, 2), (2, 2)],
        dimension_numbers=("NHWC", "HWIO", "NHWC"))
    _, h2, w2, k2 = p2.shape
    y2 = conv_gemm_bias_relu(p2.reshape(n * h2 * w2, k2),
                             pp["c2_w"], pp["c2_b"])
    y2 = y2.reshape(n, h2, w2, -1)                       # (N,8,8,64) NHWC

    q = conv3_fc_head(y2, pp)                            # (N, 4) f32
    if batch_size == 1:
        q = q.reshape(-1)                                # PyTorch: x.view(-1)
    return q


# --------------------------- pure-JAX reference ----------------------------- #
def dqn_forward_ref(params, x_nchw, batch_size):
    def conv(x, w, b, stride, pad):
        y = lax.conv_general_dilated(
            x, w, window_strides=(stride, stride),
            padding=[(pad, pad), (pad, pad)],
            dimension_numbers=("NCHW", "OIHW", "NCHW"),
            precision=lax.Precision.HIGHEST)
        return jnp.maximum(y + b[None, :, None, None], 0.0)

    def lin(x, w, b, relu):
        y = jnp.dot(x, w.T, precision=lax.Precision.HIGHEST) + b
        return jnp.maximum(y, 0.0) if relu else y

    x = conv(x_nchw, params["conv1_w"], params["conv1_b"], 4, 2)
    x = conv(x, params["conv2_w"], params["conv2_b"], 2, 2)
    x = conv(x, params["conv3_w"], params["conv3_b"], 2, 1)
    x = x.reshape(x.shape[0], -1)
    x = lin(x, params["fc1_w"], params["fc1_b"], True)
    x = lin(x, params["fc2_w"], params["fc2_b"], True)
    q = lin(x, params["fc3_w"], params["fc3_b"], False)
    if batch_size == 1:
        q = q.reshape(-1)
    return q


if __name__ == "__main__":
    key = jax.random.PRNGKey(0)
    pkey, xkey = jax.random.split(key)
    params = init_params(pkey)
    packed = pack_params(params)

    batch = 2
    # fc1 expects 4*4*128 features => 64x64 spatial input (Atari-style DQN)
    x = jax.random.normal(xkey, (batch, 12, 64, 64), jnp.float32)

    fwd = jax.jit(dqn_forward, static_argnums=2)

    q = jax.block_until_ready(fwd(packed, x, batch))
    assert q.shape == (batch, 4), q.shape
    q_ref = jax.block_until_ready(dqn_forward_ref(params, x, batch))
    err = float(jnp.max(jnp.abs(q - q_ref)))
    assert jnp.allclose(q, q_ref, rtol=2e-2, atol=2e-2), err  # bf16 MXU tolerance

    # single-sample branch (torch's x.view(-1))
    q1 = jax.block_until_ready(fwd(packed, x[:1], 1))
    q1_ref = jax.block_until_ready(dqn_forward_ref(params, x[:1], 1))
    assert q1.shape == (4,), q1.shape
    assert jnp.allclose(q1, q1_ref, rtol=2e-2, atol=2e-2)

    print("KERNEL_OK")
</pallas_src>

<mosaic_0001>
module attributes {stable_mosaic.version = 11 : i64} {
  func.func @_gemm_bias_relu_kernel(%arg0: i32, %arg1: memref<256x588xbf16, #tpu.memory_space<vmem>>, %arg2: memref<588x32xbf16, #tpu.memory_space<vmem>>, %arg3: memref<1x32xf32, #tpu.memory_space<vmem>>, %arg4: memref<256x32xbf16, #tpu.memory_space<vmem>>) attributes {dimension_semantics = [#tpu.dimension_semantics<parallel>], iteration_bounds = array<i64: 2>, scalar_prefetch = 0 : i64, scratch_operands = 0 : i64, tpu.core_type = #tpu.core_type<tc>, window_params = [{transform_indices = @transform_0, window_bounds = array<i64: 256, 588>}, {pipeline_mode = #tpu.pipeline_mode<synchronous>, transform_indices = @transform_1, window_bounds = array<i64: 588, 32>}, {pipeline_mode = #tpu.pipeline_mode<synchronous>, transform_indices = @transform_2, window_bounds = array<i64: 1, 32>}, {transform_indices = @transform_3, window_bounds = array<i64: 256, 32>}]} {
    %c0 = arith.constant 0 : index
    %c0_0 = arith.constant 0 : index
    %0 = vector.load %arg1[%c0, %c0_0] : memref<256x588xbf16, #tpu.memory_space<vmem>>, vector<256x588xbf16>
    %c0_1 = arith.constant 0 : index
    %c0_2 = arith.constant 0 : index
    %1 = vector.load %arg2[%c0_1, %c0_2] : memref<588x32xbf16, #tpu.memory_space<vmem>>, vector<588x32xbf16>
    %cst = arith.constant dense<0.000000e+00> : vector<256x32xf32>
    %2 = tpu.matmul %0, %1, %cst {dimension_numbers = #tpu.dot_dimension_numbers<[1], [0], [0], [1], [0, 0, 1, 1], [], []>} : vector<256x588xbf16>, vector<588x32xbf16>, vector<256x32xf32> -> vector<256x32xf32>
    %c0_3 = arith.constant 0 : index
    %c0_4 = arith.constant 0 : index
    %3 = vector.load %arg3[%c0_3, %c0_4] : memref<1x32xf32, #tpu.memory_space<vmem>>, vector<1x32xf32>
    %4 = vector.broadcast %3 : vector<1x32xf32> to vector<256x32xf32>
    %5 = arith.addf %2, %4 : vector<256x32xf32>
    %cst_5 = arith.constant 0.000000e+00 : f32
    %6 = vector.broadcast %cst_5 : f32 to vector<256x32xf32>
    %7 = arith.maximumf %5, %6 : vector<256x32xf32>
    %8 = arith.truncf %7 : vector<256x32xf32> to vector<256x32xbf16>
    %c0_6 = arith.constant 0 : index
    %c0_7 = arith.constant 0 : index
    %9 = vector.load %arg4[%c0_6, %c0_7] : memref<256x32xbf16, #tpu.memory_space<vmem>>, vector<256x32xbf16>
    tpu.vector_store %arg4[%c0_6, %c0_7], %8 {strides = array<i32>} : memref<256x32xbf16, #tpu.memory_space<vmem>>, vector<256x32xbf16>,
    return
  }
  func.func @transform_0(%arg0: i32) -> (i32, i32) {
    %c0_i32 = arith.constant 0 : i32
    %c0_i32_0 = arith.constant 0 : i32
    return %arg0, %c0_i32 : i32, i32
  }
  func.func @transform_1(%arg0: i32) -> (i32, i32) {
    %c0_i32 = arith.constant 0 : i32
    %c0_i32_0 = arith.constant 0 : i32
    %c0_i32_1 = arith.constant 0 : i32
    return %c0_i32, %c0_i32_0 : i32, i32
  }
  func.func @transform_2(%arg0: i32) -> (i32, i32) {
    %c0_i32 = arith.constant 0 : i32
    %c0_i32_0 = arith.constant 0 : i32
    %c0_i32_1 = arith.constant 0 : i32
    return %c0_i32, %c0_i32_0 : i32, i32
  }
  func.func @transform_3(%arg0: i32) -> (i32, i32) {
    %c0_i32 = arith.constant 0 : i32
    %c0_i32_0 = arith.constant 0 : i32
    return %arg0, %c0_i32 : i32, i32
  }
}

module attributes {stable_mosaic.version = 11 : i64} {
  func.func @_gemm_bias_relu_kernel(%arg0: i32, %arg1: memref<64x800xbf16, #tpu.memory_space<vmem>>, %arg2: memref<800x64xbf16, #tpu.memory_space<vmem>>, %arg3: memref<1x64xf32, #tpu.memory_space<vmem>>, %arg4: memref<64x64xbf16, #tpu.memory_space<vmem>>) attributes {dimension_semantics = [#tpu.dimension_semantics<parallel>], iteration_bounds = array<i64: 2>, scalar_prefetch = 0 : i64, scratch_operands = 0 : i64, tpu.core_type = #tpu.core_type<tc>, window_params = [{transform_indices = @transform_0, window_bounds = array<i64: 64, 800>}, {pipeline_mode = #tpu.pipeline_mode<synchronous>, transform_indices = @transform_1, window_bounds = array<i64: 800, 64>}, {pipeline_mode = #tpu.pipeline_mode<synchronous>, transform_indices = @transform_2, window_bounds = array<i64: 1, 64>}, {transform_indices = @transform_3, window_bounds = array<i64: 64, 64>}]} {
    %c0 = arith.constant 0 : index
    %c0_0 = arith.constant 0 : index
    %0 = vector.load %arg1[%c0, %c0_0] : memref<64x800xbf16, #tpu.memory_space<vmem>>, vector<64x800xbf16>
    %c0_1 = arith.constant 0 : index
    %c0_2 = arith.constant 0 : index
    %1 = vector.load %arg2[%c0_1, %c0_2] : memref<800x64xbf16, #tpu.memory_space<vmem>>, vector<800x64xbf16>
    %cst = arith.constant dense<0.000000e+00> : vector<64x64xf32>
    %2 = tpu.matmul %0, %1, %cst {dimension_numbers = #tpu.dot_dimension_numbers<[1], [0], [0], [1], [0, 0, 1, 1], [], []>} : vector<64x800xbf16>, vector<800x64xbf16>, vector<64x64xf32> -> vector<64x64xf32>
    %c0_3 = arith.constant 0 : index
    %c0_4 = arith.constant 0 : index
    %3 = vector.load %arg3[%c0_3, %c0_4] : memref<1x64xf32, #tpu.memory_space<vmem>>, vector<1x64xf32>
    %4 = vector.broadcast %3 : vector<1x64xf32> to vector<64x64xf32>
    %5 = arith.addf %2, %4 : vector<64x64xf32>
    %cst_5 = arith.constant 0.000000e+00 : f32
    %6 = vector.broadcast %cst_5 : f32 to vector<64x64xf32>
    %7 = arith.maximumf %5, %6 : vector<64x64xf32>
    %8 = arith.truncf %7 : vector<64x64xf32> to vector<64x64xbf16>
    %c0_6 = arith.constant 0 : index
    %c0_7 = arith.constant 0 : index
    %9 = vector.load %arg4[%c0_6, %c0_7] : memref<64x64xbf16, #tpu.memory_space<vmem>>, vector<64x64xbf16>
    tpu.vector_store %arg4[%c0_6, %c0_7], %8 {strides = array<i32>} : memref<64x64xbf16, #tpu.memory_space<vmem>>, vector<64x64xbf16>,
    return
  }
  func.func @transform_0(%arg0: i32) -> (i32, i32) {
    %c0_i32 = arith.constant 0 : i32
    %c0_i32_0 = arith.constant 0 : i32
    return %arg0, %c0_i32 : i32, i32
  }
  func.func @transform_1(%arg0: i32) -> (i32, i32) {
    %c0_i32 = arith.constant 0 : i32
    %c0_i32_0 = arith.constant 0 : i32
    %c0_i32_1 = arith.constant 0 : i32
    return %c0_i32, %c0_i32_0 : i32, i32
  }
  func.func @transform_2(%arg0: i32) -> (i32, i32) {
    %c0_i32 = arith.constant 0 : i32
    %c0_i32_0 = arith.constant 0 : i32
    %c0_i32_1 = arith.constant 0 : i32
    return %c0_i32, %c0_i32_0 : i32, i32
  }
  func.func @transform_3(%arg0: i32) -> (i32, i32) {
    %c0_i32 = arith.constant 0 : i32
    %c0_i32_0 = arith.constant 0 : i32
    return %arg0, %c0_i32 : i32, i32
  }
}

module attributes {stable_mosaic.version = 11 : i64} {
  func.func @_conv3_fc_kernel(%arg0: i32, %arg1: memref<16x2x576xbf16, #tpu.memory_space<vmem>>, %arg2: memref<576x128xbf16, #tpu.memory_space<vmem>>, %arg3: memref<1x128xf32, #tpu.memory_space<vmem>>, %arg4: memref<16x128x512xbf16, #tpu.memory_space<vmem>>, %arg5: memref<1x512xf32, #tpu.memory_space<vmem>>, %arg6: memref<512x128xbf16, #tpu.memory_space<vmem>>, %arg7: memref<1x128xf32, #tpu.memory_space<vmem>>, %arg8: memref<128x128xbf16, #tpu.memory_space<vmem>>, %arg9: memref<1x128xf32, #tpu.memory_space<vmem>>, %arg10: memref<2x128xf32, #tpu.memory_space<vmem>>) attributes {dimension_semantics = [#tpu.dimension_semantics<parallel>], iteration_bounds = array<i64: 1>, scalar_prefetch = 0 : i64, scratch_operands = 0 : i64, tpu.core_type = #tpu.core_type<tc>, window_params = [{transform_indices = @transform_0, window_bounds = array<i64: 16, 2, 576>}, {pipeline_mode = #tpu.pipeline_mode<synchronous>, transform_indices = @transform_1, window_bounds = array<i64: 576, 128>}, {pipeline_mode = #tpu.pipeline_mode<synchronous>, transform_indices = @transform_2, window_bounds = array<i64: 1, 128>}, {pipeline_mode = #tpu.pipeline_mode<synchronous>, transform_indices = @transform_3, window_bounds = array<i64: 16, 128, 512>}, {pipeline_mode = #tpu.pipeline_mode<synchronous>, transform_indices = @transform_4, window_bounds = array<i64: 1, 512>}, {pipeline_mode = #tpu.pipeline_mode<synchronous>, transform_indices = @transform_5, window_bounds = array<i64: 512, 128>}, {pipeline_mode = #tpu.pipeline_mode<synchronous>, transform_indices = @transform_6, window_bounds = array<i64: 1, 128>}, {pipeline_mode = #tpu.pipeline_mode<synchronous>, transform_indices = @transform_7, window_bounds = array<i64: 128, 128>}, {pipeline_mode = #tpu.pipeline_mode<synchronous>, transform_indices = @transform_8, window_bounds = array<i64: 1, 128>}, {transform_indices = @transform_9, window_bounds = array<i64: 2, 128>}]} {
    %cst = arith.constant 0.000000e+00 : f32
    %0 = vector.broadcast %cst : f32 to vector<2x512xf32>
    %c0 = arith.constant 0 : index
    %c0_0 = arith.constant 0 : index
    %c0_1 = arith.constant 0 : index
    %1 = vector.load %arg1[%c0, %c0_0, %c0_1] : memref<16x2x576xbf16, #tpu.memory_space<vmem>>, vector<1x2x576xbf16>
    %2 = vector.shape_cast %1 : vector<1x2x576xbf16> to vector<2x576xbf16>
    %c0_2 = arith.constant 0 : index
    %c0_3 = arith.constant 0 : index
    %3 = vector.load %arg2[%c0_2, %c0_3] : memref<576x128xbf16, #tpu.memory_space<vmem>>, vector<576x128xbf16>
    %cst_4 = arith.constant dense<0.000000e+00> : vector<2x128xf32>
    %4 = tpu.matmul %2, %3, %cst_4 {dimension_numbers = #tpu.dot_dimension_numbers<[1], [0], [0], [1], [0, 0, 1, 1], [], []>} : vector<2x576xbf16>, vector<576x128xbf16>, vector<2x128xf32> -> vector<2x128xf32>
    %c0_5 = arith.constant 0 : index
    %c0_6 = arith.constant 0 : index
    %5 = vector.load %arg3[%c0_5, %c0_6] : memref<1x128xf32, #tpu.memory_space<vmem>>, vector<1x128xf32>
    %6 = vector.broadcast %5 : vector<1x128xf32> to vector<2x128xf32>
    %7 = arith.addf %4, %6 : vector<2x128xf32>
    %cst_7 = arith.constant 0.000000e+00 : f32
    %8 = vector.broadcast %cst_7 : f32 to vector<2x128xf32>
    %9 = arith.maximumf %7, %8 : vector<2x128xf32>
    %10 = arith.truncf %9 : vector<2x128xf32> to vector<2x128xbf16>
    %c0_8 = arith.constant 0 : index
    %c0_9 = arith.constant 0 : index
    %c0_10 = arith.constant 0 : index
    %11 = vector.load %arg4[%c0_8, %c0_9, %c0_10] : memref<16x128x512xbf16, #tpu.memory_space<vmem>>, vector<1x128x512xbf16>
    %12 = vector.shape_cast %11 : vector<1x128x512xbf16> to vector<128x512xbf16>
    %cst_11 = arith.constant dense<0.000000e+00> : vector<2x512xf32>
    %13 = tpu.matmul %10, %12, %cst_11 {dimension_numbers = #tpu.dot_dimension_numbers<[1], [0], [0], [1], [0, 0, 1, 1], [], []>} : vector<2x128xbf16>, vector<128x512xbf16>, vector<2x512xf32> -> vector<2x512xf32>
    %14 = arith.addf %0, %13 : vector<2x512xf32>
    %c1 = arith.constant 1 : index
    %c0_12 = arith.constant 0 : index
    %c0_13 = arith.constant 0 : index
    %15 = vector.load %arg1[%c1, %c0_12, %c0_13] : memref<16x2x576xbf16, #tpu.memory_space<vmem>>, vector<1x2x576xbf16>
    %16 = vector.shape_cast %15 : vector<1x2x576xbf16> to vector<2x576xbf16>
    %c0_14 = arith.constant 0 : index
    %c0_15 = arith.constant 0 : index
    %17 = vector.load %arg2[%c0_14, %c0_15] : memref<576x128xbf16, #tpu.memory_space<vmem>>, vector<576x128xbf16>
    %cst_16 = arith.constant dense<0.000000e+00> : vector<2x128xf32>
    %18 = tpu.matmul %16, %17, %cst_16 {dimension_numbers = #tpu.dot_dimension_numbers<[1], [0], [0], [1], [0, 0, 1, 1], [], []>} : vector<2x576xbf16>, vector<576x128xbf16>, vector<2x128xf32> -> vector<2x128xf32>
    %c0_17 = arith.constant 0 : index
    %c0_18 = arith.constant 0 : index
    %19 = vector.load %arg3[%c0_17, %c0_18] : memref<1x128xf32, #tpu.memory_space<vmem>>, vector<1x128xf32>
    %20 = vector.broadcast %19 : vector<1x128xf32> to vector<2x128xf32>
    %21 = arith.addf %18, %20 : vector<2x128xf32>
    %cst_19 = arith.constant 0.000000e+00 : f32
    %22 = vector.broadcast %cst_19 : f32 to vector<2x128xf32>
    %23 = arith.maximumf %21, %22 : vector<2x128xf32>
    %24 = arith.truncf %23 : vector<2x128xf32> to vector<2x128xbf16>
    %c1_20 = arith.constant 1 : index
    %c0_21 = arith.constant 0 : index
    %c0_22 = arith.constant 0 : index
    %25 = vector.load %arg4[%c1_20, %c0_21, %c0_22] : memref<16x128x512xbf16, #tpu.memory_space<vmem>>, vector<1x128x512xbf16>
    %26 = vector.shape_cast %25 : vector<1x128x512xbf16> to vector<128x512xbf16>
    %cst_23 = arith.constant dense<0.000000e+00> : vector<2x512xf32>
    %27 = tpu.matmul %24, %26, %cst_23 {dimension_numbers = #tpu.dot_dimension_numbers<[1], [0], [0], [1], [0, 0, 1, 1], [], []>} : vector<2x128xbf16>, vector<128x512xbf16>, vector<2x512xf32> -> vector<2x512xf32>
    %28 = arith.addf %14, %27 : vector<2x512xf32>
    %c2 = arith.constant 2 : index
    %c0_24 = arith.constant 0 : index
    %c0_25 = arith.constant 0 : index
    %29 = vector.load %arg1[%c2, %c0_24, %c0_25] : memref<16x2x576xbf16, #tpu.memory_space<vmem>>, vector<1x2x576xbf16>
    %30 = vector.shape_cast %29 : vector<1x2x576xbf16> to vector<2x576xbf16>
    %c0_26 = arith.constant 0 : index
    %c0_27 = arith.constant 0 : index
    %31 = vector.load %arg2[%c0_26, %c0_27] : memref<576x128xbf16, #tpu.memory_space<vmem>>, vector<576x128xbf16>
    %cst_28 = arith.constant dense<0.000000e+00> : vector<2x128xf32>
    %32 = tpu.matmul %30, %31, %cst_28 {dimension_numbers = #tpu.dot_dimension_numbers<[1], [0], [0], [1], [0, 0, 1, 1], [], []>} : vector<2x576xbf16>, vector<576x128xbf16>, vector<2x128xf32> -> vector<2x128xf32>
    %c0_29 = arith.constant 0 : index
    %c0_30 = arith.constant 0 : index
    %33 = vector.load %arg3[%c0_29, %c0_30] : memref<1x128xf32, #tpu.memory_space<vmem>>, vector<1x128xf32>
    %34 = vector.broadcast %33 : vector<1x128xf32> to vector<2x128xf32>
    %35 = arith.addf %32, %34 : vector<2x128xf32>
    %cst_31 = arith.constant 0.000000e+00 : f32
    %36 = vector.broadcast %cst_31 : f32 to vector<2x128xf32>
    %37 = arith.maximumf %35, %36 : vector<2x128xf32>
    %38 = arith.truncf %37 : vector<2x128xf32> to vector<2x128xbf16>
    %c2_32 = arith.constant 2 : index
    %c0_33 = arith.constant 0 : index
    %c0_34 = arith.constant 0 : index
    %39 = vector.load %arg4[%c2_32, %c0_33, %c0_34] : memref<16x128x512xbf16, #tpu.memory_space<vmem>>, vector<1x128x512xbf16>
    %40 = vector.shape_cast %39 : vector<1x128x512xbf16> to vector<128x512xbf16>
    %cst_35 = arith.constant dense<0.000000e+00> : vector<2x512xf32>
    %41 = tpu.matmul %38, %40, %cst_35 {dimension_numbers = #tpu.dot_dimension_numbers<[1], [0], [0], [1], [0, 0, 1, 1], [], []>} : vector<2x128xbf16>, vector<128x512xbf16>, vector<2x512xf32> -> vector<2x512xf32>
    %42 = arith.addf %28, %41 : vector<2x512xf32>
    %c3 = arith.constant 3 : index
    %c0_36 = arith.constant 0 : index
    %c0_37 = arith.constant 0 : index
    %43 = vector.load %arg1[%c3, %c0_36, %c0_37] : memref<16x2x576xbf16, #tpu.memory_space<vmem>>, vector<1x2x576xbf16>
    %44 = vector.shape_cast %43 : vector<1x2x576xbf16> to vector<2x576xbf16>
    %c0_38 = arith.constant 0 : index
    %c0_39 = arith.constant 0 : index
    %45 = vector.load %arg2[%c0_38, %c0_39] : memref<576x128xbf16, #tpu.memory_space<vmem>>, vector<576x128xbf16>
    %cst_40 = arith.constant dense<0.000000e+00> : vector<2x128xf32>
    %46 = tpu.matmul %44, %45, %cst_40 {dimension_numbers = #tpu.dot_dimension_numbers<[1], [0], [0], [1], [0, 0, 1, 1], [], []>} : vector<2x576xbf16>, vector<576x128xbf16>, vector<2x128xf32> -> vector<2x128xf32>
    %c0_41 = arith.constant 0 : index
    %c0_42 = arith.constant 0 : index
    %47 = vector.load %arg3[%c0_41, %c0_42] : memref<1x128xf32, #tpu.memory_space<vmem>>, vector<1x128xf32>
    %48 = vector.broadcast %47 : vector<1x128xf32> to vector<2x128xf32>
    %49 = arith.addf %46, %48 : vector<2x128xf32>
    %cst_43 = arith.constant 0.000000e+00 : f32
    %50 = vector.broadcast %cst_43 : f32 to vector<2x128xf32>
    %51 = arith.maximumf %49, %50 : vector<2x128xf32>
    %52 = arith.truncf %51 : vector<2x128xf32> to vector<2x128xbf16>
    %c3_44 = arith.constant 3 : index
    %c0_45 = arith.constant 0 : index
    %c0_46 = arith.constant 0 : index
    %53 = vector.load %arg4[%c3_44, %c0_45, %c0_46] : memref<16x128x512xbf16, #tpu.memory_space<vmem>>, vector<1x128x512xbf16>
    %54 = vector.shape_cast %53 : vector<1x128x512xbf16> to vector<128x512xbf16>
    %cst_47 = arith.constant dense<0.000000e+00> : vector<2x512xf32>
    %55 = tpu.matmul %52, %54, %cst_47 {dimension_numbers = #tpu.dot_dimension_numbers<[1], [0], [0], [1], [0, 0, 1, 1], [], []>} : vector<2x128xbf16>, vector<128x512xbf16>, vector<2x512xf32> -> vector<2x512xf32>
    %56 = arith.addf %42, %55 : vector<2x512xf32>
    %c4 = arith.constant 4 : index
    %c0_48 = arith.constant 0 : index
    %c0_49 = arith.constant 0 : index
    %57 = vector.load %arg1[%c4, %c0_48, %c0_49] : memref<16x2x576xbf16, #tpu.memory_space<vmem>>, vector<1x2x576xbf16>
    %58 = vector.shape_cast %57 : vector<1x2x576xbf16> to vector<2x576xbf16>
    %c0_50 = arith.constant 0 : index
    %c0_51 = arith.constant 0 : index
    %59 = vector.load %arg2[%c0_50, %c0_51] : memref<576x128xbf16, #tpu.memory_space<vmem>>, vector<576x128xbf16>
    %cst_52 = arith.constant dense<0.000000e+00> : vector<2x128xf32>
    %60 = tpu.matmul %58, %59, %cst_52 {dimension_numbers = #tpu.dot_dimension_numbers<[1], [0], [0], [1], [0, 0, 1, 1], [], []>} : vector<2x576xbf16>, vector<576x128xbf16>, vector<2x128xf32> -> vector<2x128xf32>
    %c0_53 = arith.constant 0 : index
    %c0_54 = arith.constant 0 : index
    %61 = vector.load %arg3[%c0_53, %c0_54] : memref<1x128xf32, #tpu.memory_space<vmem>>, vector<1x128xf32>
    %62 = vector.broadcast %61 : vector<1x128xf32> to vector<2x128xf32>
    %63 = arith.addf %60, %62 : vector<2x128xf32>
    %cst_55 = arith.constant 0.000000e+00 : f32
    %64 = vector.broadcast %cst_55 : f32 to vector<2x128xf32>
    %65 = arith.maximumf %63, %64 : vector<2x128xf32>
    %66 = arith.truncf %65 : vector<2x128xf32> to vector<2x128xbf16>
    %c4_56 = arith.constant 4 : index
    %c0_57 = arith.constant 0 : index
    %c0_58 = arith.constant 0 : index
    %67 = vector.load %arg4[%c4_56, %c0_57, %c0_58] : memref<16x128x512xbf16, #tpu.memory_space<vmem>>, vector<1x128x512xbf16>
    %68 = vector.shape_cast %67 : vector<1x128x512xbf16> to vector<128x512xbf16>
    %cst_59 = arith.constant dense<0.000000e+00> : vector<2x512xf32>
    %69 = tpu.matmul %66, %68, %cst_59 {dimension_numbers = #tpu.dot_dimension_numbers<[1], [0], [0], [1], [0, 0, 1, 1], [], []>} : vector<2x128xbf16>, vector<128x512xbf16>, vector<2x512xf32> -> vector<2x512xf32>
    %70 = arith.addf %56, %69 : vector<2x512xf32>
    %c5 = arith.constant 5 : index
    %c0_60 = arith.constant 0 : index
    %c0_61 = arith.constant 0 : index
    %71 = vector.load %arg1[%c5, %c0_60, %c0_61] : memref<16x2x576xbf16, #tpu.memory_space<vmem>>, vector<1x2x576xbf16>
    %72 = vector.shape_cast %71 : vector<1x2x576xbf16> to vector<2x576xbf16>
    %c0_62 = arith.constant 0 : index
    %c0_63 = arith.constant 0 : index
    %73 = vector.load %arg2[%c0_62, %c0_63] : memref<576x128xbf16, #tpu.memory_space<vmem>>, vector<576x128xbf16>
    %cst_64 = arith.constant dense<0.000000e+00> : vector<2x128xf32>
    %74 = tpu.matmul %72, %73, %cst_64 {dimension_numbers = #tpu.dot_dimension_numbers<[1], [0], [0], [1], [0, 0, 1, 1], [], []>} : vector<2x576xbf16>, vector<576x128xbf16>, vector<2x128xf32> -> vector<2x128xf32>
    %c0_65 = arith.constant 0 : index
    %c0_66 = arith.constant 0 : index
    %75 = vector.load %arg3[%c0_65, %c0_66] : memref<1x128xf32, #tpu.memory_space<vmem>>, vector<1x128xf32>
    %76 = vector.broadcast %75 : vector<1x128xf32> to vector<2x128xf32>
    %77 = arith.addf %74, %76 : vector<2x128xf32>
    %cst_67 = arith.constant 0.000000e+00 : f32
    %78 = vector.broadcast %cst_67 : f32 to vector<2x128xf32>
    %79 = arith.maximumf %77, %78 : vector<2x128xf32>
    %80 = arith.truncf %79 : vector<2x128xf32> to vector<2x128xbf16>
    %c5_68 = arith.constant 5 : index
    %c0_69 = arith.constant 0 : index
    %c0_70 = arith.constant 0 : index
    %81 = vector.load %arg4[%c5_68, %c0_69, %c0_70] : memref<16x128x512xbf16, #tpu.memory_space<vmem>>, vector<1x128x512xbf16>
    %82 = vector.shape_cast %81 : vector<1x128x512xbf16> to vector<128x512xbf16>
    %cst_71 = arith.constant dense<0.000000e+00> : vector<2x512xf32>
    %83 = tpu.matmul %80, %82, %cst_71 {dimension_numbers = #tpu.dot_dimension_numbers<[1], [0], [0], [1], [0, 0, 1, 1], [], []>} : vector<2x128xbf16>, vector<128x512xbf16>, vector<2x512xf32> -> vector<2x512xf32>
    %84 = arith.addf %70, %83 : vector<2x512xf32>
    %c6 = arith.constant 6 : index
    %c0_72 = arith.constant 0 : index
    %c0_73 = arith.constant 0 : index
    %85 = vector.load %arg1[%c6, %c0_72, %c0_73] : memref<16x2x576xbf16, #tpu.memory_space<vmem>>, vector<1x2x576xbf16>
    %86 = vector.shape_cast %85 : vector<1x2x576xbf16> to vector<2x576xbf16>
    %c0_74 = arith.constant 0 : index
    %c0_75 = arith.constant 0 : index
    %87 = vector.load %arg2[%c0_74, %c0_75] : memref<576x128xbf16, #tpu.memory_space<vmem>>, vector<576x128xbf16>
    %cst_76 = arith.constant dense<0.000000e+00> : vector<2x128xf32>
    %88 = tpu.matmul %86, %87, %cst_76 {dimension_numbers = #tpu.dot_dimension_numbers<[1], [0], [0], [1], [0, 0, 1, 1], [], []>} : vector<2x576xbf16>, vector<576x128xbf16>, vector<2x128xf32> -> vector<2x128xf32>
    %c0_77 = arith.constant 0 : index
    %c0_78 = arith.constant 0 : index
    %89 = vector.load %arg3[%c0_77, %c0_78] : memref<1x128xf32, #tpu.memory_space<vmem>>, vector<1x128xf32>
    %90 = vector.broadcast %89 : vector<1x128xf32> to vector<2x128xf32>
    %91 = arith.addf %88, %90 : vector<2x128xf32>
    %cst_79 = arith.constant 0.000000e+00 : f32
    %92 = vector.broadcast %cst_79 : f32 to vector<2x128xf32>
    %93 = arith.maximumf %91, %92 : vector<2x128xf32>
    %94 = arith.truncf %93 : vector<2x128xf32> to vector<2x128xbf16>
    %c6_80 = arith.constant 6 : index
    %c0_81 = arith.constant 0 : index
    %c0_82 = arith.constant 0 : index
    %95 = vector.load %arg4[%c6_80, %c0_81, %c0_82] : memref<16x128x512xbf16, #tpu.memory_space<vmem>>, vector<1x128x512xbf16>
    %96 = vector.shape_cast %95 : vector<1x128x512xbf16> to vector<128x512xbf16>
    %cst_83 = arith.constant dense<0.000000e+00> : vector<2x512xf32>
    %97 = tpu.matmul %94, %96, %cst_83 {dimension_numbers = #tpu.dot_dimension_numbers<[1], [0], [0], [1], [0, 0, 1, 1], [], []>} : vector<2x128xbf16>, vector<128x512xbf16>, vector<2x512xf32> -> vector<2x512xf32>
    %98 = arith.addf %84, %97 : vector<2x512xf32>
    %c7 = arith.constant 7 : index
    %c0_84 = arith.constant 0 : index
    %c0_85 = arith.constant 0 : index
    %99 = vector.load %arg1[%c7, %c0_84, %c0_85] : memref<16x2x576xbf16, #tpu.memory_space<vmem>>, vector<1x2x576xbf16>
    %100 = vector.shape_cast %99 : vector<1x2x576xbf16> to vector<2x576xbf16>
    %c0_86 = arith.constant 0 : index
    %c0_87 = arith.constant 0 : index
    %101 = vector.load %arg2[%c0_86, %c0_87] : memref<576x128xbf16, #tpu.memory_space<vmem>>, vector<576x128xbf16>
    %cst_88 = arith.constant dense<0.000000e+00> : vector<2x128xf32>
    %102 = tpu.matmul %100, %101, %cst_88 {dimension_numbers = #tpu.dot_dimension_numbers<[1], [0], [0], [1], [0, 0, 1, 1], [], []>} : vector<2x576xbf16>, vector<576x128xbf16>, vector<2x128xf32> -> vector<2x128xf32>
    %c0_89 = arith.constant 0 : index
    %c0_90 = arith.constant 0 : index
    %103 = vector.load %arg3[%c0_89, %c0_90] : memref<1x128xf32, #tpu.memory_space<vmem>>, vector<1x128xf32>
    %104 = vector.broadcast %103 : vector<1x128xf32> to vector<2x128xf32>
    %105 = arith.addf %102, %104 : vector<2x128xf32>
    %cst_91 = arith.constant 0.000000e+00 : f32
    %106 = vector.broadcast %cst_91 : f32 to vector<2x128xf32>
    %107 = arith.maximumf %105, %106 : vector<2x128xf32>
    %108 = arith.truncf %107 : vector<2x128xf32> to vector<2x128xbf16>
    %c7_92 = arith.constant 7 : index
    %c0_93 = arith.constant 0 : index
    %c0_94 = arith.constant 0 : index
    %109 = vector.load %arg4[%c7_92, %c0_93, %c0_94] : memref<16x128x512xbf16, #tpu.memory_space<vmem>>, vector<1x128x512xbf16>
    %110 = vector.shape_cast %109 : vector<1x128x512xbf16> to vector<128x512xbf16>
    %cst_95 = arith.constant dense<0.000000e+00> : vector<2x512xf32>
    %111 = tpu.matmul %108, %110, %cst_95 {dimension_numbers = #tpu.dot_dimension_numbers<[1], [0], [0], [1], [0, 0, 1, 1], [], []>} : vector<2x128xbf16>, vector<128x512xbf16>, vector<2x512xf32> -> vector<2x512xf32>
    %112 = arith.addf %98, %111 : vector<2x512xf32>
    %c8 = arith.constant 8 : index
    %c0_96 = arith.constant 0 : index
    %c0_97 = arith.constant 0 : index
    %113 = vector.load %arg1[%c8, %c0_96, %c0_97] : memref<16x2x576xbf16, #tpu.memory_space<vmem>>, vector<1x2x576xbf16>
    %114 = vector.shape_cast %113 : vector<1x2x576xbf16> to vector<2x576xbf16>
    %c0_98 = arith.constant 0 : index
    %c0_99 = arith.constant 0 : index
    %115 = vector.load %arg2[%c0_98, %c0_99] : memref<576x128xbf16, #tpu.memory_space<vmem>>, vector<576x128xbf16>
    %cst_100 = arith.constant dense<0.000000e+00> : vector<2x128xf32>
    %116 = tpu.matmul %114, %115, %cst_100 {dimension_numbers = #tpu.dot_dimension_numbers<[1], [0], [0], [1], [0, 0, 1, 1], [], []>} : vector<2x576xbf16>, vector<576x128xbf16>, vector<2x128xf32> -> vector<2x128xf32>
    %c0_101 = arith.constant 0 : index
    %c0_102 = arith.constant 0 : index
    %117 = vector.load %arg3[%c0_101, %c0_102] : memref<1x128xf32, #tpu.memory_space<vmem>>, vector<1x128xf32>
    %118 = vector.broadcast %117 : vector<1x128xf32> to vector<2x128xf32>
    %119 = arith.addf %116, %118 : vector<2x128xf32>
    %cst_103 = arith.constant 0.000000e+00 : f32
    %120 = vector.broadcast %cst_103 : f32 to vector<2x128xf32>
    %121 = arith.maximumf %119, %120 : vector<2x128xf32>
    %122 = arith.truncf %121 : vector<2x128xf32> to vector<2x128xbf16>
    %c8_104 = arith.constant 8 : index
    %c0_105 = arith.constant 0 : index
    %c0_106 = arith.constant 0 : index
    %123 = vector.load %arg4[%c8_104, %c0_105, %c0_106] : memref<16x128x512xbf16, #tpu.memory_space<vmem>>, vector<1x128x512xbf16>
    %124 = vector.shape_cast %123 : vector<1x128x512xbf16> to vector<128x512xbf16>
    %cst_107 = arith.constant dense<0.000000e+00> : vector<2x512xf32>
    %125 = tpu.matmul %122, %124, %cst_107 {dimension_numbers = #tpu.dot_dimension_numbers<[1], [0], [0], [1], [0, 0, 1, 1], [], []>} : vector<2x128xbf16>, vector<128x512xbf16>, vector<2x512xf32> -> vector<2x512xf32>
    %126 = arith.addf %112, %125 : vector<2x512xf32>
    %c9 = arith.constant 9 : index
    %c0_108 = arith.constant 0 : index
    %c0_109 = arith.constant 0 : index
    %127 = vector.load %arg1[%c9, %c0_108, %c0_109] : memref<16x2x576xbf16, #tpu.memory_space<vmem>>, vector<1x2x576xbf16>
    %128 = vector.shape_cast %127 : vector<1x2x576xbf16> to vector<2x576xbf16>
    %c0_110 = arith.constant 0 : index
    %c0_111 = arith.constant 0 : index
    %129 = vector.load %arg2[%c0_110, %c0_111] : memref<576x128xbf16, #tpu.memory_space<vmem>>, vector<576x128xbf16>
    %cst_112 = arith.constant dense<0.000000e+00> : vector<2x128xf32>
    %130 = tpu.matmul %128, %129, %cst_112 {dimension_numbers = #tpu.dot_dimension_numbers<[1], [0], [0], [1], [0, 0, 1, 1], [], []>} : vector<2x576xbf16>, vector<576x128xbf16>, vector<2x128xf32> -> vector<2x128xf32>
    %c0_113 = arith.constant 0 : index
    %c0_114 = arith.constant 0 : index
    %131 = vector.load %arg3[%c0_113, %c0_114] : memref<1x128xf32, #tpu.memory_space<vmem>>, vector<1x128xf32>
    %132 = vector.broadcast %131 : vector<1x128xf32> to vector<2x128xf32>
    %133 = arith.addf %130, %132 : vector<2x128xf32>
    %cst_115 = arith.constant 0.000000e+00 : f32
    %134 = vector.broadcast %cst_115 : f32 to vector<2x128xf32>
    %135 = arith.maximumf %133, %134 : vector<2x128xf32>
    %136 = arith.truncf %135 : vector<2x128xf32> to vector<2x128xbf16>
    %c9_116 = arith.constant 9 : index
    %c0_117 = arith.constant 0 : index
    %c0_118 = arith.constant 0 : index
    %137 = vector.load %arg4[%c9_116, %c0_117, %c0_118] : memref<16x128x512xbf16, #tpu.memory_space<vmem>>, vector<1x128x512xbf16>
    %138 = vector.shape_cast %137 : vector<1x128x512xbf16> to vector<128x512xbf16>
    %cst_119 = arith.constant dense<0.000000e+00> : vector<2x512xf32>
    %139 = tpu.matmul %136, %138, %cst_119 {dimension_numbers = #tpu.dot_dimension_numbers<[1], [0], [0], [1], [0, 0, 1, 1], [], []>} : vector<2x128xbf16>, vector<128x512xbf16>, vector<2x512xf32> -> vector<2x512xf32>
    %140 = arith.addf %126, %139 : vector<2x512xf32>
    %c10 = arith.constant 10 : index
    %c0_120 = arith.constant 0 : index
    %c0_121 = arith.constant 0 : index
    %141 = vector.load %arg1[%c10, %c0_120, %c0_121] : memref<16x2x576xbf16, #tpu.memory_space<vmem>>, vector<1x2x576xbf16>
    %142 = vector.shape_cast %141 : vector<1x2x576xbf16> to vector<2x576xbf16>
    %c0_122 = arith.constant 0 : index
    %c0_123 = arith.constant 0 : index
    %143 = vector.load %arg2[%c0_122, %c0_123] : memref<576x128xbf16, #tpu.memory_space<vmem>>, vector<576x128xbf16>
    %cst_124 = arith.constant dense<0.000000e+00> : vector<2x128xf32>
    %144 = tpu.matmul %142, %143, %cst_124 {dimension_numbers = #tpu.dot_dimension_numbers<[1], [0], [0], [1], [0, 0, 1, 1], [], []>} : vector<2x576xbf16>, vector<576x128xbf16>, vector<2x128xf32> -> vector<2x128xf32>
    %c0_125 = arith.constant 0 : index
    %c0_126 = arith.constant 0 : index
    %145 = vector.load %arg3[%c0_125, %c0_126] : memref<1x128xf32, #tpu.memory_space<vmem>>, vector<1x128xf32>
    %146 = vector.broadcast %145 : vector<1x128xf32> to vector<2x128xf32>
    %147 = arith.addf %144, %146 : vector<2x128xf32>
    %cst_127 = arith.constant 0.000000e+00 : f32
    %148 = vector.broadcast %cst_127 : f32 to vector<2x128xf32>
    %149 = arith.maximumf %147, %148 : vector<2x128xf32>
    %150 = arith.truncf %149 : vector<2x128xf32> to vector<2x128xbf16>
    %c10_128 = arith.constant 10 : index
    %c0_129 = arith.constant 0 : index
    %c0_130 = arith.constant 0 : index
    %151 = vector.load %arg4[%c10_128, %c0_129, %c0_130] : memref<16x128x512xbf16, #tpu.memory_space<vmem>>, vector<1x128x512xbf16>
    %152 = vector.shape_cast %151 : vector<1x128x512xbf16> to vector<128x512xbf16>
    %cst_131 = arith.constant dense<0.000000e+00> : vector<2x512xf32>
    %153 = tpu.matmul %150, %152, %cst_131 {dimension_numbers = #tpu.dot_dimension_numbers<[1], [0], [0], [1], [0, 0, 1, 1], [], []>} : vector<2x128xbf16>, vector<128x512xbf16>, vector<2x512xf32> -> vector<2x512xf32>
    %154 = arith.addf %140, %153 : vector<2x512xf32>
    %c11 = arith.constant 11 : index
    %c0_132 = arith.constant 0 : index
    %c0_133 = arith.constant 0 : index
    %155 = vector.load %arg1[%c11, %c0_132, %c0_133] : memref<16x2x576xbf16, #tpu.memory_space<vmem>>, vector<1x2x576xbf16>
    %156 = vector.shape_cast %155 : vector<1x2x576xbf16> to vector<2x576xbf16>
    %c0_134 = arith.constant 0 : index
    %c0_135 = arith.constant 0 : index
    %157 = vector.load %arg2[%c0_134, %c0_135] : memref<576x128xbf16, #tpu.memory_space<vmem>>, vector<576x128xbf16>
    %cst_136 = arith.constant dense<0.000000e+00> : vector<2x128xf32>
    %158 = tpu.matmul %156, %157, %cst_136 {dimension_numbers = #tpu.dot_dimension_numbers<[1], [0], [0], [1], [0, 0, 1, 1], [], []>} : vector<2x576xbf16>, vector<576x128xbf16>, vector<2x128xf32> -> vector<2x128xf32>
    %c0_137 = arith.constant 0 : index
    %c0_138 = arith.constant 0 : index
    %159 = vector.load %arg3[%c0_137, %c0_138] : memref<1x128xf32, #tpu.memory_space<vmem>>, vector<1x128xf32>
    %160 = vector.broadcast %159 : vector<1x128xf32> to vector<2x128xf32>
    %161 = arith.addf %158, %160 : vector<2x128xf32>
    %cst_139 = arith.constant 0.000000e+00 : f32
    %162 = vector.broadcast %cst_139 : f32 to vector<2x128xf32>
    %163 = arith.maximumf %161, %162 : vector<2x128xf32>
    %164 = arith.truncf %163 : vector<2x128xf32> to vector<2x128xbf16>
    %c11_140 = arith.constant 11 : index
    %c0_141 = arith.constant 0 : index
    %c0_142 = arith.constant 0 : index
    %165 = vector.load %arg4[%c11_140, %c0_141, %c0_142] : memref<16x128x512xbf16, #tpu.memory_space<vmem>>, vector<1x128x512xbf16>
    %166 = vector.shape_cast %165 : vector<1x128x512xbf16> to vector<128x512xbf16>
    %cst_143 = arith.constant dense<0.000000e+00> : vector<2x512xf32>
    %167 = tpu.matmul %164, %166, %cst_143 {dimension_numbers = #tpu.dot_dimension_numbers<[1], [0], [0], [1], [0, 0, 1, 1], [], []>} : vector<2x128xbf16>, vector<128x512xbf16>, vector<2x512xf32> -> vector<2x512xf32>
    %168 = arith.addf %154, %167 : vector<2x512xf32>
    %c12 = arith.constant 12 : index
    %c0_144 = arith.constant 0 : index
    %c0_145 = arith.constant 0 : index
    %169 = vector.load %arg1[%c12, %c0_144, %c0_145] : memref<16x2x576xbf16, #tpu.memory_space<vmem>>, vector<1x2x576xbf16>
    %170 = vector.shape_cast %169 : vector<1x2x576xbf16> to vector<2x576xbf16>
    %c0_146 = arith.constant 0 : index
    %c0_147 = arith.constant 0 : index
    %171 = vector.load %arg2[%c0_146, %c0_147] : memref<576x128xbf16, #tpu.memory_space<vmem>>, vector<576x128xbf16>
    %cst_148 = arith.constant dense<0.000000e+00> : vector<2x128xf32>
    %172 = tpu.matmul %170, %171, %cst_148 {dimension_numbers = #tpu.dot_dimension_numbers<[1], [0], [0], [1], [0, 0, 1, 1], [], []>} : vector<2x576xbf16>, vector<576x128xbf16>, vector<2x128xf32> -> vector<2x128xf32>
    %c0_149 = arith.constant 0 : index
    %c0_150 = arith.constant 0 : index
    %173 = vector.load %arg3[%c0_149, %c0_150] : memref<1x128xf32, #tpu.memory_space<vmem>>, vector<1x128xf32>
    %174 = vector.broadcast %173 : vector<1x128xf32> to vector<2x128xf32>
    %175 = arith.addf %172, %174 : vector<2x128xf32>
    %cst_151 = arith.constant 0.000000e+00 : f32
    %176 = vector.broadcast %cst_151 : f32 to vector<2x128xf32>
    %177 = arith.maximumf %175, %176 : vector<2x128xf32>
    %178 = arith.truncf %177 : vector<2x128xf32> to vector<2x128xbf16>
    %c12_152 = arith.constant 12 : index
    %c0_153 = arith.constant 0 : index
    %c0_154 = arith.constant 0 : index
    %179 = vector.load %arg4[%c12_152, %c0_153, %c0_154] : memref<16x128x512xbf16, #tpu.memory_space<vmem>>, vector<1x128x512xbf16>
    %180 = vector.shape_cast %179 : vector<1x128x512xbf16> to vector<128x512xbf16>
    %cst_155 = arith.constant dense<0.000000e+00> : vector<2x512xf32>
    %181 = tpu.matmul %178, %180, %cst_155 {dimension_numbers = #tpu.dot_dimension_numbers<[1], [0], [0], [1], [0, 0, 1, 1], [], []>} : vector<2x128xbf16>, vector<128x512xbf16>, vector<2x512xf32> -> vector<2x512xf32>
    %182 = arith.addf %168, %181 : vector<2x512xf32>
    %c13 = arith.constant 13 : index
    %c0_156 = arith.constant 0 : index
    %c0_157 = arith.constant 0 : index
    %183 = vector.load %arg1[%c13, %c0_156, %c0_157] : memref<16x2x576xbf16, #tpu.memory_space<vmem>>, vector<1x2x576xbf16>
    %184 = vector.shape_cast %183 : vector<1x2x576xbf16> to vector<2x576xbf16>
    %c0_158 = arith.constant 0 : index
    %c0_159 = arith.constant 0 : index
    %185 = vector.load %arg2[%c0_158, %c0_159] : memref<576x128xbf16, #tpu.memory_space<vmem>>, vector<576x128xbf16>
    %cst_160 = arith.constant dense<0.000000e+00> : vector<2x128xf32>
    %186 = tpu.matmul %184, %185, %cst_160 {dimension_numbers = #tpu.dot_dimension_numbers<[1], [0], [0], [1], [0, 0, 1, 1], [], []>} : vector<2x576xbf16>, vector<576x128xbf16>, vector<2x128xf32> -> vector<2x128xf32>
    %c0_161 = arith.constant 0 : index
    %c0_162 = arith.constant 0 : index
    %187 = vector.load %arg3[%c0_161, %c0_162] : memref<1x128xf32, #tpu.memory_space<vmem>>, vector<1x128xf32>
    %188 = vector.broadcast %187 : vector<1x128xf32> to vector<2x128xf32>
    %189 = arith.addf %186, %188 : vector<2x128xf32>
    %cst_163 = arith.constant 0.000000e+00 : f32
    %190 = vector.broadcast %cst_163 : f32 to vector<2x128xf32>
    %191 = arith.maximumf %189, %190 : vector<2x128xf32>
    %192 = arith.truncf %191 : vector<2x128xf32> to vector<2x128xbf16>
    %c13_164 = arith.constant 13 : index
    %c0_165 = arith.constant 0 : index
    %c0_166 = arith.constant 0 : index
    %193 = vector.load %arg4[%c13_164, %c0_165, %c0_166] : memref<16x128x512xbf16, #tpu.memory_space<vmem>>, vector<1x128x512xbf16>
    %194 = vector.shape_cast %193 : vector<1x128x512xbf16> to vector<128x512xbf16>
    %cst_167 = arith.constant dense<0.000000e+00> : vector<2x512xf32>
    %195 = tpu.matmul %192, %194, %cst_167 {dimension_numbers = #tpu.dot_dimension_numbers<[1], [0], [0], [1], [0, 0, 1, 1], [], []>} : vector<2x128xbf16>, vector<128x512xbf16>, vector<2x512xf32> -> vector<2x512xf32>
    %196 = arith.addf %182, %195 : vector<2x512xf32>
    %c14 = arith.constant 14 : index
    %c0_168 = arith.constant 0 : index
    %c0_169 = arith.constant 0 : index
    %197 = vector.load %arg1[%c14, %c0_168, %c0_169] : memref<16x2x576xbf16, #tpu.memory_space<vmem>>, vector<1x2x576xbf16>
    %198 = vector.shape_cast %197 : vector<1x2x576xbf16> to vector<2x576xbf16>
    %c0_170 = arith.constant 0 : index
    %c0_171 = arith.constant 0 : index
    %199 = vector.load %arg2[%c0_170, %c0_171] : memref<576x128xbf16, #tpu.memory_space<vmem>>, vector<576x128xbf16>
    %cst_172 = arith.constant dense<0.000000e+00> : vector<2x128xf32>
    %200 = tpu.matmul %198, %199, %cst_172 {dimension_numbers = #tpu.dot_dimension_numbers<[1], [0], [0], [1], [0, 0, 1, 1], [], []>} : vector<2x576xbf16>, vector<576x128xbf16>, vector<2x128xf32> -> vector<2x128xf32>
    %c0_173 = arith.constant 0 : index
    %c0_174 = arith.constant 0 : index
    %201 = vector.load %arg3[%c0_173, %c0_174] : memref<1x128xf32, #tpu.memory_space<vmem>>, vector<1x128xf32>
    %202 = vector.broadcast %201 : vector<1x128xf32> to vector<2x128xf32>
    %203 = arith.addf %200, %202 : vector<2x128xf32>
    %cst_175 = arith.constant 0.000000e+00 : f32
    %204 = vector.broadcast %cst_175 : f32 to vector<2x128xf32>
    %205 = arith.maximumf %203, %204 : vector<2x128xf32>
    %206 = arith.truncf %205 : vector<2x128xf32> to vector<2x128xbf16>
    %c14_176 = arith.constant 14 : index
    %c0_177 = arith.constant 0 : index
    %c0_178 = arith.constant 0 : index
    %207 = vector.load %arg4[%c14_176, %c0_177, %c0_178] : memref<16x128x512xbf16, #tpu.memory_space<vmem>>, vector<1x128x512xbf16>
    %208 = vector.shape_cast %207 : vector<1x128x512xbf16> to vector<128x512xbf16>
    %cst_179 = arith.constant dense<0.000000e+00> : vector<2x512xf32>
    %209 = tpu.matmul %206, %208, %cst_179 {dimension_numbers = #tpu.dot_dimension_numbers<[1], [0], [0], [1], [0, 0, 1, 1], [], []>} : vector<2x128xbf16>, vector<128x512xbf16>, vector<2x512xf32> -> vector<2x512xf32>
    %210 = arith.addf %196, %209 : vector<2x512xf32>
    %c15 = arith.constant 15 : index
    %c0_180 = arith.constant 0 : index
    %c0_181 = arith.constant 0 : index
    %211 = vector.load %arg1[%c15, %c0_180, %c0_181] : memref<16x2x576xbf16, #tpu.memory_space<vmem>>, vector<1x2x576xbf16>
    %212 = vector.shape_cast %211 : vector<1x2x576xbf16> to vector<2x576xbf16>
    %c0_182 = arith.constant 0 : index
    %c0_183 = arith.constant 0 : index
    %213 = vector.load %arg2[%c0_182, %c0_183] : memref<576x128xbf16, #tpu.memory_space<vmem>>, vector<576x128xbf16>
    %cst_184 = arith.constant dense<0.000000e+00> : vector<2x128xf32>
    %214 = tpu.matmul %212, %213, %cst_184 {dimension_numbers = #tpu.dot_dimension_numbers<[1], [0], [0], [1], [0, 0, 1, 1], [], []>} : vector<2x576xbf16>, vector<576x128xbf16>, vector<2x128xf32> -> vector<2x128xf32>
    %c0_185 = arith.constant 0 : index
    %c0_186 = arith.constant 0 : index
    %215 = vector.load %arg3[%c0_185, %c0_186] : memref<1x128xf32, #tpu.memory_space<vmem>>, vector<1x128xf32>
    %216 = vector.broadcast %215 : vector<1x128xf32> to vector<2x128xf32>
    %217 = arith.addf %214, %216 : vector<2x128xf32>
    %cst_187 = arith.constant 0.000000e+00 : f32
    %218 = vector.broadcast %cst_187 : f32 to vector<2x128xf32>
    %219 = arith.maximumf %217, %218 : vector<2x128xf32>
    %220 = arith.truncf %219 : vector<2x128xf32> to vector<2x128xbf16>
    %c15_188 = arith.constant 15 : index
    %c0_189 = arith.constant 0 : index
    %c0_190 = arith.constant 0 : index
    %221 = vector.load %arg4[%c15_188, %c0_189, %c0_190] : memref<16x128x512xbf16, #tpu.memory_space<vmem>>, vector<1x128x512xbf16>
    %222 = vector.shape_cast %221 : vector<1x128x512xbf16> to vector<128x512xbf16>
    %cst_191 = arith.constant dense<0.000000e+00> : vector<2x512xf32>
    %223 = tpu.matmul %220, %222, %cst_191 {dimension_numbers = #tpu.dot_dimension_numbers<[1], [0], [0], [1], [0, 0, 1, 1], [], []>} : vector<2x128xbf16>, vector<128x512xbf16>, vector<2x512xf32> -> vector<2x512xf32>
    %224 = arith.addf %210, %223 : vector<2x512xf32>
    %c0_192 = arith.constant 0 : index
    %c0_193 = arith.constant 0 : index
    %225 = vector.load %arg5[%c0_192, %c0_193] : memref<1x512xf32, #tpu.memory_space<vmem>>, vector<1x512xf32>
    %226 = vector.broadcast %225 : vector<1x512xf32> to vector<2x512xf32>
    %227 = arith.addf %224, %226 : vector<2x512xf32>
    %cst_194 = arith.constant 0.000000e+00 : f32
    %228 = vector.broadcast %cst_194 : f32 to vector<2x512xf32>
    %229 = arith.maximumf %227, %228 : vector<2x512xf32>
    %230 = arith.truncf %229 : vector<2x512xf32> to vector<2x512xbf16>
    %c0_195 = arith.constant 0 : index
    %c0_196 = arith.constant 0 : index
    %231 = vector.load %arg6[%c0_195, %c0_196] : memref<512x128xbf16, #tpu.memory_space<vmem>>, vector<512x128xbf16>
    %cst_197 = arith.constant dense<0.000000e+00> : vector<2x128xf32>
    %232 = tpu.matmul %230, %231, %cst_197 {dimension_numbers = #tpu.dot_dimension_numbers<[1], [0], [0], [1], [0, 0, 1, 1], [], []>} : vector<2x512xbf16>, vector<512x128xbf16>, vector<2x128xf32> -> vector<2x128xf32>
    %c0_198 = arith.constant 0 : index
    %c0_199 = arith.constant 0 : index
    %233 = vector.load %arg7[%c0_198, %c0_199] : memref<1x128xf32, #tpu.memory_space<vmem>>, vector<1x128xf32>
    %234 = vector.broadcast %233 : vector<1x128xf32> to vector<2x128xf32>
    %235 = arith.addf %232, %234 : vector<2x128xf32>
    %cst_200 = arith.constant 0.000000e+00 : f32
    %236 = vector.broadcast %cst_200 : f32 to vector<2x128xf32>
    %237 = arith.maximumf %235, %236 : vector<2x128xf32>
    %238 = arith.truncf %237 : vector<2x128xf32> to vector<2x128xbf16>
    %c0_201 = arith.constant 0 : index
    %c0_202 = arith.constant 0 : index
    %239 = vector.load %arg8[%c0_201, %c0_202] : memref<128x128xbf16, #tpu.memory_space<vmem>>, vector<128x128xbf16>
    %cst_203 = arith.constant dense<0.000000e+00> : vector<2x128xf32>
    %240 = tpu.matmul %238, %239, %cst_203 {dimension_numbers = #tpu.dot_dimension_numbers<[1], [0], [0], [1], [0, 0, 1, 1], [], []>} : vector<2x128xbf16>, vector<128x128xbf16>, vector<2x128xf32> -> vector<2x128xf32>
    %c0_204 = arith.constant 0 : index
    %c0_205 = arith.constant 0 : index
    %241 = vector.load %arg9[%c0_204, %c0_205] : memref<1x128xf32, #tpu.memory_space<vmem>>, vector<1x128xf32>
    %242 = vector.broadcast %241 : vector<1x128xf32> to vector<2x128xf32>
    %243 = arith.addf %240, %242 : vector<2x128xf32>
    %c0_206 = arith.constant 0 : index
    %c0_207 = arith.constant 0 : index
    %244 = vector.load %arg10[%c0_206, %c0_207] : memref<2x128xf32, #tpu.memory_space<vmem>>, vector<2x128xf32>
    tpu.vector_store %arg10[%c0_206, %c0_207], %243 {strides = array<i32>} : memref<2x128xf32, #tpu.memory_space<vmem>>, vector<2x128xf32>,
    return
  }
  func.func @transform_0(%arg0: i32) -> (i32, i32, i32) {
    %c0_i32 = arith.constant 0 : i32
    %c0_i32_0 = arith.constant 0 : i32
    %c0_i32_1 = arith.constant 0 : i32
    return %c0_i32, %arg0, %c0_i32_0 : i32, i32, i32
  }
  func.func @transform_1(%arg0: i32) -> (i32, i32) {
    %c0_i32 = arith.constant 0 : i32
    %c0_i32_0 = arith.constant 0 : i32
    %c0_i32_1 = arith.constant 0 : i32
    return %c0_i32, %c0_i32_0 : i32, i32
  }
  func.func @transform_2(%arg0: i32) -> (i32, i32) {
    %c0_i32 = arith.constant 0 : i32
    %c0_i32_0 = arith.constant 0 : i32
    %c0_i32_1 = arith.constant 0 : i32
    return %c0_i32, %c0_i32_0 : i32, i32
  }
  func.func @transform_3(%arg0: i32) -> (i32, i32, i32) {
    %c0_i32 = arith.constant 0 : i32
    %c0_i32_0 = arith.constant 0 : i32
    %c0_i32_1 = arith.constant 0 : i32
    %c0_i32_2 = arith.constant 0 : i32
    return %c0_i32, %c0_i32_0, %c0_i32_1 : i32, i32, i32
  }
  func.func @transform_4(%arg0: i32) -> (i32, i32) {
    %c0_i32 = arith.constant 0 : i32
    %c0_i32_0 = arith.constant 0 : i32
    %c0_i32_1 = arith.constant 0 : i32
    return %c0_i32, %c0_i32_0 : i32, i32
  }
  func.func @transform_5(%arg0: i32) -> (i32, i32) {
    %c0_i32 = arith.constant 0 : i32
    %c0_i32_0 = arith.constant 0 : i32
    %c0_i32_1 = arith.constant 0 : i32
    return %c0_i32, %c0_i32_0 : i32, i32
  }
  func.func @transform_6(%arg0: i32) -> (i32, i32) {
    %c0_i32 = arith.constant 0 : i32
    %c0_i32_0 = arith.constant 0 : i32
    %c0_i32_1 = arith.constant 0 : i32
    return %c0_i32, %c0_i32_0 : i32, i32
  }
  func.func @transform_7(%arg0: i32) -> (i32, i32) {
    %c0_i32 = arith.constant 0 : i32
    %c0_i32_0 = arith.constant 0 : i32
    %c0_i32_1 = arith.constant 0 : i32
    return %c0_i32, %c0_i32_0 : i32, i32
  }
  func.func @transform_8(%arg0: i32) -> (i32, i32) {
    %c0_i32 = arith.constant 0 : i32
    %c0_i32_0 = arith.constant 0 : i32
    %c0_i32_1 = arith.constant 0 : i32
    return %c0_i32, %c0_i32_0 : i32, i32
  }
  func.func @transform_9(%arg0: i32) -> (i32, i32) {
    %c0_i32 = arith.constant 0 : i32
    %c0_i32_0 = arith.constant 0 : i32
    return %arg0, %c0_i32 : i32, i32
  }
}

</mosaic_0001>

<bundles_post_ra>
// kernel: dqn_forward.3
= control target key start
LH: loop header
LB: loop body
LE: loop exit
PB: predicated region body
PF: predicated region fallthrough
CT: control target
= control target key end

     0   :  { %s2460_s12 = smov 0   ;;  %s2904_s0 = inlined_call_operand.vmem [shape: bf16[512,588], index: 0, kind: input, shape index: {}]   ;;  %s2905_s1 = inlined_call_operand.vmem [shape: bf16[588,32], index: 1, kind: input, shape index: {}]   ;;  %s2906_s2 = inlined_call_operand.vmem [shape: f32[1,32], index: 2, kind: input, shape index: {}]   ;;  %s2907_s3 = inlined_call_operand.vmem [shape: bf16[512,32], index: 3, kind: output, shape index: {}]  }
   0x1 LB: > { %s1761_s13 = sadd.s32 4294967295, %s2438_s12   ;;  %p1765_p0 = scmp.ge.s32.totalorder %s2438_s12, 1  ;;  %s2438_s12 = sphi %s2460_s12, %s13_s12  }
   0x2   : > { %p139_p1 = scmp.lt.s32.totalorder %s2438_s12, 3 }
   0x4   : > { %p140_p2 = pnand %p1765_p0, %p139_p1 }
   0x5   : > { %v2283_v0 = vld [vmem:[%s2905_s1 + $0x40] sm:$0xff] (!%p140_p2)   ;;  %s1766_s16 = sshll.u32 (!%p140_p2), %s1761_s13, 5  ;;  %v2285_v2 = vld [vmem:[%s2905_s1 + $0x48] sm:$0xff] (!%p140_p2)   ;;  %v2287_v4 = vld [vmem:[%s2905_s1 + $0x50] sm:$0xff] (!%p140_p2)   ;;  %vm1025_vm0 = vcmask (!%p140_p2), 1045504   ;;  %vm976_vm1 = vcmask (!%p140_p2), 621568  }
   0x6   : > { %143 = sbr.rel (%p140_p2) target bundleno = 416 (0x1a0), region = 32  ;;  %v2284_v1 = vld [vmem:[%s2905_s1] sm:$0xff] (!%p140_p2)   ;;  %1970 = vmatprep.subr.bf16.mxu0 (!%p140_p2), %v2283_v0  ;;  %2257 = vmatprep.subr.bf16.mxu1 (!%p140_p2), %v2283_v0  ;;  %p165_p3 = scmp.lt.s32.totalorder (!%p140_p2), %s1766_s16, 63  ;;  %v2286_v3 = vld [vmem:[%s2905_s1 + $0x8] sm:$0xff] (!%p140_p2)   ;;  %v2288_v5 = vld [vmem:[%s2905_s1 + $0x10] sm:$0xff] (!%p140_p2)   ;;  %vm1672_vm2 = vcmask (!%p140_p2), 257024  }
   0x7   : > { %1971 = vmatpush3.bf16.msra.mxu0 (!%p140_p2), %v2284_v1  ;;  %2265 = vmatpush3.bf16.msra.mxu1 (!%p140_p2), %v2284_v1  ;;  %v2289_v6 = vld [vmem:[%s2905_s1 + $0x58] sm:$0xff] (!%p140_p2)   ;;  %v2291_v8 = vld [vmem:[%s2905_s1 + $0x60] sm:$0xff] (!%p140_p2)   ;;  %v2293_v10 = vld [vmem:[%s2905_s1 + $0x68] sm:$0xff] (!%p140_p2)  }
   0x8   : > { %1972 = vmatprep.subr.bf16.mxu0 (!%p140_p2), %v2285_v2  ;;  %2258 = vmatprep.subr.bf16.mxu1 (!%p140_p2), %v2285_v2  ;;  %v2290_v7 = vld [vmem:[%s2905_s1 + $0x18] sm:$0xff] (!%p140_p2)   ;;  %v2292_v9 = vld [vmem:[%s2905_s1 + $0x20] sm:$0xff] (!%p140_p2)   ;;  %v2294_v13 = vld [vmem:[%s2905_s1 + $0x28] sm:$0xff] (!%p140_p2)  }
   0x9   : > { %v2295_v14 = vld [vmem:[%s2905_s1 + $0x70] sm:$0xff] (!%p140_p2)   ;;  %v2297_v16 = vld [vmem:[%s2905_s1 + $0x78] sm:$0xff] (!%p140_p2)   ;;  %v2305_v18 = vld [vmem:[%s2905_s1 + $0xc0] sm:$0xff] (!%p140_p2)  }
   0xa   : > { %v2296_v15 = vld [vmem:[%s2905_s1 + $0x30] sm:$0xff] (!%p140_p2)   ;;  %v2298_v17 = vld [vmem:[%s2905_s1 + $0x38] sm:$0xff] (!%p140_p2)   ;;  %v2308_v19 = vld [vmem:[%s2905_s1 + $0x100] sm:$0xff] (!%p140_p2)  }
   0xb   : > { %1973 = vmatpush3.bf16.msra.mxu0 (!%p140_p2), %v2286_v3  ;;  %2266 = vmatpush3.bf16.msra.mxu1 (!%p140_p2), %v2286_v3  ;;  %v2306_v22 = vld [vmem:[%s2905_s1 + $0x80] sm:$0xff] (!%p140_p2)   ;;  %v2307_v23 = vld [vmem:[%s2905_s1 + $0xc8] sm:$0xff] (!%p140_p2)   ;;  %v2316_v28 = vld [vmem:[%s2905_s1 + $0xd0] sm:$0xff] (!%p140_p2)  }
   0xc   : > { %1974 = vmatprep.subr.bf16.mxu0 (!%p140_p2), %v2287_v4  ;;  %2259 = vmatprep.subr.bf16.mxu1 (!%p140_p2), %v2287_v4  ;;  %v2309_v26 = vld [vmem:[%s2905_s1 + $0x88] sm:$0xff] (!%p140_p2)   ;;  %v2317_v30 = vld [vmem:[%s2905_s1 + $0x90] sm:$0xff] (!%p140_p2)   ;;  %v2318_v31 = vld [vmem:[%s2905_s1 + $0xd8] sm:$0xff] (!%p140_p2)  }
   0xd   : > { %s2909_s16 = smov (!%p165_p3, %s1766_s16), 63  ;;  %v2337_v34 = vld [vmem:[%s2905_s1 + $0x108] sm:$0xff]   ;;  %v2319_v35 = vld [vmem:[%s2905_s1 + $0x98] sm:$0xff]   ;;  %v2326_v37 = vld [vmem:[%s2905_s1 + $0xe0] sm:$0xff]  }
   0xe   : > { %s2274_s29 = smul.u32 20, %s2909_s16  ;;  %v2327_v39 = vld [vmem:[%s2905_s1 + $0xa0] sm:$0xff]   ;;  %v2328_v40 = vld [vmem:[%s2905_s1 + $0xe8] sm:$0xff]   ;;  %v2353_v43 = vld [vmem:[%s2905_s1 + $0x110] sm:$0xff]   ;;  %s1769_s21 = sshll.u32 %s2909_s16, 2 }
   0xf   : > { %1975 = vmatpush3.bf16.msra.mxu0 %v2288_v5  ;;  %2267 = vmatpush3.bf16.msra.mxu1 %v2288_v5  ;;  %v2329_v44 = vld [vmem:[%s2905_s1 + $0xa8] sm:$0xff]   ;;  %v2336_v45 = vld [vmem:[%s2905_s1 + $0xf0] sm:$0xff]   ;;  %v2339_v49 = vld [vmem:[%s2905_s1 + $0xf8] sm:$0xff]   ;;  %s2776_s23 = scalar_lea.vmem %s2907_s3, %s1769_s21 }
  0x10   : > { %1976 = vmatprep.subr.bf16.mxu0 %v2289_v6  ;;  %2260 = vmatprep.subr.bf16.mxu1 %v2289_v6  ;;  %s2501_s9 = scalar_lea.vmem %s2904_s0, %s2274_s29  ;;  %v2338_v48 = vld [vmem:[%s2905_s1 + $0xb0] sm:$0xff]   ;;  %v2366_v52 = vld [vmem:[%s2905_s1 + $0x118] sm:$0xff]   ;;  %v2385_v58 = vld [vmem:[%s2905_s1 + $0x120] sm:$0x3f]  }
  0x11   : > { %v2301_v11 = vld [vmem:[%s2501_s9 + $0x4] ss:$20 sps:$4 sm:$0xff]   ;;  %v2299_v20 = vld [vmem:[%s2501_s9] ss:$20 sps:$4 sm:$0xff]   ;;  %v2314_v27 = vld [vmem:[%s2501_s9 + $0x28] ss:$20 sps:$4 sm:$0xff]  }
  0x12   : > { %v2304_v12 = vld [vmem:[%s2501_s9 + $0x1e4] ss:$20 sps:$4 sm:$0xff]   ;;  %1061 = vmatprep.mubr.bf16.mxu0 %v2301_v11  ;;  %v2302_v21 = vld [vmem:[%s2501_s9 + $0x1e0] ss:$20 sps:$4 sm:$0xff]   ;;  %v2315_v29 = vld [vmem:[%s2501_s9 + $0x208] ss:$20 sps:$4 sm:$0xff]  }
  0x13   : > { %1977 = vmatpush3.bf16.msra.mxu0 %v2290_v7  ;;  %2268 = vmatpush3.bf16.msra.mxu1 %v2290_v7  ;;  %v2310_v24 = vld [vmem:[%s2501_s9 + $0x2c] ss:$20 sps:$4 sm:$0xff]   ;;  %v2320_v32 = vld [vmem:[%s2501_s9 + $0x54] ss:$20 sps:$4 sm:$0xff]   ;;  %v2324_v36 = vld [vmem:[%s2501_s9 + $0x50] ss:$20 sps:$4 sm:$0xff]  }
  0x14   : > { %1978 = vmatprep.subr.bf16.mxu0 %v2291_v8  ;;  %2261 = vmatprep.subr.bf16.mxu1 %v2291_v8  ;;  %v2312_v25 = vld [vmem:[%s2501_s9 + $0x20c] ss:$20 sps:$4 sm:$0xff]   ;;  %v2322_v33 = vld [vmem:[%s2501_s9 + $0x234] ss:$20 sps:$4 sm:$0xff]   ;;  %v2325_v38 = vld [vmem:[%s2501_s9 + $0x230] ss:$20 sps:$4 sm:$0xff]  }
  0x15   : > { %1157 = vmatprep.mubr.bf16.mxu1 %v2304_v12  ;;  %v2330_v41 = vld [vmem:[%s2501_s9 + $0x7c] ss:$20 sps:$4 sm:$0xff]   ;;  %v2334_v46 = vld [vmem:[%s2501_s9 + $0x78] ss:$20 sps:$4 sm:$0xff]   ;;  %v2346_v55 = vld [vmem:[%s2501_s9 + $0xa0] ss:$20 sps:$4 sm:$0xff]  }
  0x16   : > { %v2332_v42 = vld [vmem:[%s2501_s9 + $0x25c] ss:$20 sps:$4 sm:$0xff]   ;;  %v2335_v47 = vld [vmem:[%s2501_s9 + $0x258] ss:$20 sps:$4 sm:$0xff]   ;;  %v2349_v57 = vld [vmem:[%s2501_s9 + $0x34] ss:$20 sps:$4 sm:$0xff]  }
  0x17   : > { %1979 = vmatpush3.bf16.msra.mxu0 %v2292_v9  ;;  %2269 = vmatpush3.bf16.msra.mxu1 %v2292_v9  ;;  %v2341_v50 = vld [vmem:[%s2501_s9 + $0xa4] ss:$20 sps:$4 sm:$0xff]   ;;  %v2345_v51 = vld [vmem:[%s2501_s9 + $0xc] ss:$20 sps:$4 sm:$0xff]   ;;  %v2343_v54 = vld [vmem:[%s2501_s9 + $0x8] ss:$20 sps:$4 sm:$0xff]  }
  0x18   : > { %1980 = vmatprep.subr.bf16.mxu0 %v2293_v10  ;;  %2262 = vmatprep.subr.bf16.mxu1 %v2293_v10  ;;  %v2340_v53 = vld [vmem:[%s2905_s1 + $0xb8] sm:$0xff]   ;;  %v2347_v56 = vld [vmem:[%s2501_s9 + $0xcc] ss:$20 sps:$4 sm:$0xff]   ;;  %v1027_v59 = vsel %vm1025_vm0, %v2385_v58, 0  ;;  %v2352_v61 = vld [vmem:[%s2501_s9 + $0x30] ss:$20 sps:$4 sm:$0xff]  }
  0x19   : > { %v2351_v60 = vld [vmem:[%s2501_s9 + $0xc8] ss:$20 sps:$4 sm:$0xff]   ;;  %v2358_v0 = vld [vmem:[%s2501_s9 + $0xf0] ss:$20 sps:$4 sm:$0xff]   ;;  %v2359_v1 = vld [vmem:[%s2501_s9 + $0x58] ss:$20 sps:$4 sm:$0xff]  }
  0x1a   : > { %v2354_v62 = vld [vmem:[%s2501_s9 + $0xf4] ss:$20 sps:$4 sm:$0xff]   ;;  %v2356_v63 = vld [vmem:[%s2501_s9 + $0x5c] ss:$20 sps:$4 sm:$0xff]   ;;  %v2362_v3 = vld [vmem:[%s2501_s9 + $0x84] ss:$20 sps:$4 sm:$0xff]  }
  0x1b   : > { %1981 = vmatpush3.bf16.msra.mxu0 %v2294_v13  ;;  %2270 = vmatpush3.bf16.msra.mxu1 %v2294_v13  ;;  %v2360_v2 = vld [vmem:[%s2501_s9 + $0x11c] ss:$20 sps:$4 sm:$0xff]   ;;  %v2364_v4 = vld [vmem:[%s2501_s9 + $0x118] ss:$20 sps:$4 sm:$0xff]   ;;  %v2365_v5 = vld [vmem:[%s2501_s9 + $0x80] ss:$20 sps:$4 sm:$0xff]  }
  0x1c   : > { %1982 = vmatprep.subr.bf16.mxu0 %v2295_v14  ;;  %2263 = vmatprep.subr.bf16.mxu1 %v2295_v14  ;;  %v2367_v6 = vld [vmem:[%s2501_s9 + $0x144] ss:$20 sps:$4 sm:$0xff]   ;;  %v2369_v7 = vld [vmem:[%s2501_s9 + $0xac] ss:$20 sps:$4 sm:$0xff]   ;;  %v2372_v9 = vld [vmem:[%s2501_s9 + $0xa8] ss:$20 sps:$4 sm:$0xff]  }
  0x1d   : > { %v2371_v8 = vld [vmem:[%s2501_s9 + $0x140] ss:$20 sps:$4 sm:$0xff]   ;;  %v2377_v12 = vld [vmem:[%s2501_s9 + $0x168] ss:$20 sps:$4 sm:$0xff]   ;;  %v2378_v13 = vld [vmem:[%s2501_s9 + $0xd0] ss:$20 sps:$4 sm:$0xff]  }
  0x1e   : > { %v2373_v10 = vld [vmem:[%s2501_s9 + $0x16c] ss:$20 sps:$4 sm:$0xff]   ;;  %v2375_v11 = vld [vmem:[%s2501_s9 + $0xd4] ss:$20 sps:$4 sm:$0xff]  }
  0x1f   : > { %1983 = vmatpush3.bf16.msra.mxu0 %v2296_v15  ;;  %2271 = vmatpush3.bf16.msra.mxu1 %v2296_v15  ;;  %v2379_v14 = vld [vmem:[%s2501_s9 + $0x194] ss:$20 sps:$4 sm:$0xff]   ;;  %v2381_v15 = vld [vmem:[%s2501_s9 + $0xfc] ss:$20 sps:$4 sm:$0xff]  }
  0x20   : > { %1984 = vmatprep.subr.bf16.mxu0 %v2297_v16  ;;  %2264 = vmatprep.subr.bf16.mxu1 %v2297_v16  ;;  %v2383_v16 = vld [vmem:[%s2501_s9 + $0x190] ss:$20 sps:$4 sm:$0xff]  }
  0x23   : > { %1985 = vmatpush3.bf16.msra.mxu0 %v2298_v17  ;;  %2272 = vmatpush3.bf16.msra.mxu1 %v2298_v17  ;;  %v2384_v17 = vld [vmem:[%s2501_s9 + $0xf8] ss:$20 sps:$4 sm:$0xff]  }
  0x24   : > { %2082 = vmatprep.subr.bf16.mxu1 %v2305_v18  ;;  %2215 = vmatprep.subr.bf16.mxu0 %v2308_v19  ;;  %v2386_v18 = vld [vmem:[%s2501_s9 + $0x1bc] ss:$20 sps:$4 sm:$0xff]  }
  0x26   : > { %1062 = vmatmul.mubr.bf16.vlgmr.msra.gmra.mrb[0].mxu0 %v2299_v20  ;;  %1158 = vmatmul.mubr.bf16.vlgmr.msra.gmra.mrb[0].mxu1 %v2302_v21  ;;  %v2390_v20 = vld [vmem:[%s2501_s9 + $0x1b8] ss:$20 sps:$4 sm:$0xff]   ;;  %v2391_v21 = vld [vmem:[%s2501_s9 + $0x120] ss:$20 sps:$4 sm:$0xff]  }
  0x27   : > { %2083 = vmatpush3.bf16.msra.mxu1 %v2306_v22  ;;  %2216 = vmatpush3.bf16.msra.mxu0 %v2308_v19  ;;  %v2388_v19 = vld [vmem:[%s2501_s9 + $0x124] ss:$20 sps:$4 sm:$0xff]   ;;  %v2392_v22 = vld [vmem:[%s2501_s9 + $0x14c] ss:$20 sps:$4 sm:$0xff]  }
  0x28   : > { %2084 = vmatprep.subr.bf16.mxu1 %v2307_v23  ;;  %1069 = vmatprep.mubr.bf16.mxu0 %v2310_v24  ;;  %v2394_v23 = vld [vmem:[%s2501_s9 + $0x10] ss:$20 sps:$4 sm:$0xff]   ;;  %v2395_v24 = vld [vmem:[%s2501_s9 + $0x148] ss:$20 sps:$4 sm:$0xff]  }
  0x29   : > { %1165 = vmatprep.mubr.bf16.mxu1 %v2312_v25  ;;  %2217 = vmatprep.subr.bf16.mxu0 %v2337_v34  ;;  %v2396_v25 = vld [vmem:[%s2501_s9 + $0x38] ss:$20 sps:$4 sm:$0xff]  }
  0x2b   : > { %2085 = vmatpush3.bf16.msra.mxu1 %v2309_v26  ;;  %2218 = vmatpush3.bf16.msra.mxu0 %v2337_v34  ;;  %v2397_v26 = vld [vmem:[%s2501_s9 + $0x174] ss:$20 sps:$4 sm:$0xff]   ;;  %v2407_v34 = vld [vmem:[%s2501_s9 + $0x1c4] ss:$20 sps:$4 sm:$0xff]  }
  0x2c   : > { %2086 = vmatprep.subr.bf16.mxu1 %v2316_v28  ;;  %2219 = vmatprep.subr.bf16.mxu0 %v2353_v43  ;;  %v2400_v28 = vld [vmem:[%s2501_s9 + $0x170] ss:$20 sps:$4 sm:$0xff]  }
  0x2e   : > { %1070 = vmatmul.mubr.bf16.gmra.mrb[4].mxu0 %v2314_v27  ;;  %1166 = vmatmul.mubr.bf16.gmra.mrb[4].mxu1 %v2315_v29  ;;  %v2399_v27 = vld [vmem:[%s2501_s9 + $0x60] ss:$20 sps:$4 sm:$0xff]   ;;  %v2401_v29 = vld [vmem:[%s2501_s9 + $0x88] ss:$20 sps:$4 sm:$0xff]  }
  0x2f   : > { %2087 = vmatpush3.bf16.msra.mxu1 %v2317_v30  ;;  %1077 = vmatprep.mubr.bf16.mxu0 %v2320_v32  ;;  %v2402_v30 = vld [vmem:[%s2501_s9 + $0x19c] ss:$20 sps:$4 sm:$0xff]   ;;  %v2405_v32 = vld [vmem:[%s2501_s9 + $0x198] ss:$20 sps:$4 sm:$0xff]  }
  0x30   : > { %2088 = vmatprep.subr.bf16.mxu1 %v2318_v31  ;;  %1173 = vmatprep.mubr.bf16.mxu1 %v2322_v33  ;;  %v2404_v31 = vld [vmem:[%s2501_s9 + $0xb0] ss:$20 sps:$4 sm:$0xff]   ;;  %v2406_v33 = vld [vmem:[%s2501_s9 + $0xd8] ss:$20 sps:$4 sm:$0xff]  }
  0x31   : > { %2220 = vmatpush3.bf16.msra.mxu0 %v2353_v43  ;;  %v2419_v43 = vld [vmem:[%s2501_s9 + $0x1a0] ss:$20 sps:$4 sm:$0xff]  }
  0x32   : > { %2221 = vmatprep.subr.bf16.mxu0 %v2366_v52 }
  0x33   : > { %2089 = vmatpush3.bf16.msra.mxu1 %v2319_v35  ;;  %v2409_v35 = vld [vmem:[%s2501_s9 + $0x100] ss:$20 sps:$4 sm:$0xff]  }
  0x34   : > { %2090 = vmatprep.subr.bf16.mxu1 %v2326_v37  ;;  %v2411_v37 = vld [vmem:[%s2501_s9 + $0x128] ss:$20 sps:$4 sm:$0xff]  }
  0x35   : > { %2222 = vmatpush3.bf16.msra.mxu0 %v2366_v52  ;;  %v2430_v52 = vld [vmem:[%s2501_s9 + $0x260] ss:$20 sps:$4 sm:$0xff]  }
  0x36   : > { %1078 = vmatmul.mubr.bf16.gmra.mrb[8].mxu0 %v2324_v36  ;;  %1174 = vmatmul.mubr.bf16.gmra.mrb[8].mxu1 %v2325_v38  ;;  %v2410_v36 = vld [vmem:[%s2501_s9 + $0x1c0] ss:$20 sps:$4 sm:$0xff]  }
  0x37   : > { %2091 = vmatpush3.bf16.msra.mxu1 %v2327_v39  ;;  %1085 = vmatprep.mubr.bf16.mxu0 %v2330_v41  ;;  %v2412_v38 = vld [vmem:[%s2501_s9 + $0x1ec] ss:$20 sps:$4 sm:$0xff]   ;;  %v2414_v39 = vld [vmem:[%s2501_s9 + $0x150] ss:$20 sps:$4 sm:$0xff]  }
  0x38   : > { %2092 = vmatprep.subr.bf16.mxu1 %v2328_v40  ;;  %1181 = vmatprep.mubr.bf16.mxu1 %v2332_v42  ;;  %v2415_v40 = vld [vmem:[%s2501_s9 + $0x1e8] ss:$20 sps:$4 sm:$0xff]   ;;  %v2416_v41 = vld [vmem:[%s2501_s9 + $0x178] ss:$20 sps:$4 sm:$0xff]  }
  0x39   : > { %2273 = vmatprep.subr.msk.bf16.mxu0 %vm1025_vm0, %v2385_v58  ;;  %v2417_v42 = vld [vmem:[%s2501_s9 + $0x214] ss:$20 sps:$4 sm:$0xff]  }
  0x3a   : > { %2224 = vmatpush3.bf16.msra.mxu0 %v1027_v59 }
  0x3b   : > { %2093 = vmatpush3.bf16.msra.mxu1 %v2329_v44  ;;  %v2420_v44 = vld [vmem:[%s2501_s9 + $0x210] ss:$20 sps:$4 sm:$0xff]  }
  0x3c   : > { %2094 = vmatprep.subr.bf16.mxu1 %v2336_v45  ;;  %v2421_v45 = vld [vmem:[%s2501_s9 + $0x1c8] ss:$20 sps:$4 sm:$0xff]  }
  0x3e   : > { %1086 = vmatmul.mubr.bf16.gmra.mrb[12].mxu0 %v2334_v46  ;;  %1182 = vmatmul.mubr.bf16.gmra.mrb[12].mxu1 %v2335_v47  ;;  %v2422_v46 = vld [vmem:[%s2501_s9 + $0x23c] ss:$20 sps:$4 sm:$0xff]  }
  0x3f   : > { %2095 = vmatpush3.bf16.msra.mxu1 %v2338_v48  ;;  %1093 = vmatprep.mubr.bf16.mxu0 %v2341_v50  ;;  %v2424_v47 = vld [vmem:[%s2501_s9 + $0x1f0] ss:$20 sps:$4 sm:$0xff]   ;;  %v2425_v48 = vld [vmem:[%s2501_s9 + $0x238] ss:$20 sps:$4 sm:$0xff]  }
  0x40   : > { %2096 = vmatprep.subr.bf16.mxu1 %v2339_v49  ;;  %1222 = vmatprep.mubr.bf16.mxu1 %v2345_v51  ;;  %v2426_v49 = vld [vmem:[%s2501_s9 + $0x218] ss:$20 sps:$4 sm:$0xff]   ;;  %v2429_v51 = vld [vmem:[%s2501_s9 + $0x240] ss:$20 sps:$4 sm:$0xff]  }
  0x41   : > { %v2427_v50 = vld [vmem:[%s2501_s9 + $0x264] ss:$20 sps:$4 sm:$0xff]  }
  0x43   : > { %2097 = vmatpush3.bf16.msra.mxu1 %v2340_v53  ;;  %v2431_v53 = vld [vmem:[%s2501_s9 + $0x268] ss:$20 sps:$4 sm:$0xff]  }
  0x46   : > { %1094 = vmatmul.mubr.bf16.gmra.mrb[16].mxu0 %v2346_v55  ;;  %1223 = vmatmul.mubr.bf16.vlgmr.msra.gmra.mrb[16].mxu1 %v2343_v54 }
  0x47   : > { %1101 = vmatprep.mubr.bf16.mxu0 %v2347_v56  ;;  %1230 = vmatprep.mubr.bf16.mxu1 %v2349_v57 }
  0x4e   : > { %1102 = vmatmul.mubr.bf16.gmra.mrb[20].mxu0 %v2351_v60  ;;  %1231 = vmatmul.mubr.bf16.gmra.mrb[20].mxu1 %v2352_v61 }
  0x4f   : > { %1109 = vmatprep.mubr.bf16.mxu0 %v2354_v62  ;;  %1238 = vmatprep.mubr.bf16.mxu1 %v2356_v63 }
  0x56   : > { %1110 = vmatmul.mubr.bf16.gmra.mrb[24].mxu0 %v2358_v0  ;;  %1239 = vmatmul.mubr.bf16.gmra.mrb[24].mxu1 %v2359_v1 }
  0x57   : > { %1117 = vmatprep.mubr.bf16.mxu0 %v2360_v2  ;;  %1246 = vmatprep.mubr.bf16.mxu1 %v2362_v3 }
  0x5e   : > { %1118 = vmatmul.mubr.bf16.gmra.mrb[28].mxu0 %v2364_v4  ;;  %1247 = vmatmul.mubr.bf16.gmra.mrb[28].mxu1 %v2365_v5 }
  0x5f   : > { %1125 = vmatprep.mubr.bf16.mxu0 %v2367_v6  ;;  %1254 = vmatprep.mubr.bf16.mxu1 %v2369_v7 }
  0x66   : > { %1126 = vmatmul.mubr.bf16.gmra.mrb[32].mxu0 %v2371_v8  ;;  %1255 = vmatmul.mubr.bf16.gmra.mrb[32].mxu1 %v2372_v9 }
  0x67   : > { %1133 = vmatprep.mubr.bf16.mxu0 %v2373_v10  ;;  %1262 = vmatprep.mubr.bf16.mxu1 %v2375_v11 }
  0x6e   : > { %1134 = vmatmul.mubr.bf16.gmra.mrb[36].mxu0 %v2377_v12  ;;  %1263 = vmatmul.mubr.bf16.gmra.mrb[36].mxu1 %v2378_v13 }
  0x6f   : > { %1141 = vmatprep.mubr.bf16.mxu0 %v2379_v14  ;;  %1270 = vmatprep.mubr.bf16.mxu1 %v2381_v15 }
  0x76   : > { %1142 = vmatmul.mubr.bf16.gmra.mrb[40].mxu0 %v2383_v16  ;;  %1271 = vmatmul.mubr.bf16.gmra.mrb[40].mxu1 %v2384_v17 }
  0x77   : > { %1149 = vmatprep.mubr.bf16.mxu0 %v2386_v18  ;;  %1278 = vmatprep.mubr.bf16.mxu1 %v2388_v19 }
  0x7e   : > { %1150 = vmatmul.mubr.bf16.gmra.mrb[44].mxu0 %v2390_v20  ;;  %1279 = vmatmul.mubr.bf16.gmra.mrb[44].mxu1 %v2391_v21 }
  0x7f   : > { %1286 = vmatprep.mubr.bf16.mxu1 %v2392_v22  ;;  %2225 = vmatprep.mubr.msk.bf16.mxu0 %vm976_vm1, %v2394_v23 }
  0x86   : > { %1287 = vmatmul.mubr.bf16.gmra.mrb[48].mxu1 %v2395_v24  ;;  %2226 = vmatmul.mubr.msk.bf16.vlgmr.msra.gmra.mrb[48].mxu0 %vm976_vm1, %v2396_v25 }
  0x87   : > { %1294 = vmatprep.mubr.bf16.mxu1 %v2397_v26  ;;  %2229 = vmatprep.mubr.msk.bf16.mxu0 %vm976_vm1, %v2399_v27 }
  0x8e   : > { %1295 = vmatmul.mubr.bf16.gmra.mrb[52].mxu1 %v2400_v28  ;;  %2230 = vmatmul.mubr.msk.bf16.gmra.mrb[52].mxu0 %vm976_vm1, %v2401_v29 }
  0x8f   : > { %1302 = vmatprep.mubr.bf16.mxu1 %v2402_v30  ;;  %2233 = vmatprep.mubr.msk.bf16.mxu0 %vm976_vm1, %v2404_v31 }
  0x96   : > { %1303 = vmatmul.mubr.bf16.gmra.mrb[56].mxu1 %v2405_v32  ;;  %2234 = vmatmul.mubr.msk.bf16.gmra.mrb[56].mxu0 %vm976_vm1, %v2406_v33 }
  0x97   : > { %1310 = vmatprep.mubr.bf16.mxu1 %v2407_v34  ;;  %2237 = vmatprep.mubr.msk.bf16.mxu0 %vm976_vm1, %v2409_v35 }
  0x9e   : > { %1311 = vmatmul.mubr.bf16.gmra.mrb[60].mxu1 %v2410_v36  ;;  %2238 = vmatmul.mubr.msk.bf16.gmra.mrb[60].mxu0 %vm976_vm1, %v2411_v37 }
  0x9f   : > { %1318 = vmatprep.mubr.bf16.mxu1 %v2412_v38  ;;  %2241 = vmatprep.mubr.msk.bf16.mxu0 %vm976_vm1, %v2414_v39 }
  0xa6   : > { %1319 = vmatmul.mubr.bf16.gmra.mrb[64].mxu1 %v2415_v40  ;;  %2242 = vmatmul.mubr.msk.bf16.gmra.mrb[64].mxu0 %vm976_vm1, %v2416_v41  ;;  %v2702_v40 = vld [vmem:[%s2906_s2] ss:$0 sm:$0xff] }
  0xa7   : > { %1326 = vmatprep.mubr.bf16.mxu1 %v2417_v42  ;;  %2245 = vmatprep.mubr.msk.bf16.mxu0 %vm976_vm1, %v2419_v43 }
  0xae   : > { %1327 = vmatmul.mubr.bf16.gmra.mrb[68].mxu1 %v2420_v44  ;;  %2246 = vmatmul.mubr.msk.bf16.gmra.mrb[68].mxu0 %vm976_vm1, %v2421_v45 }
  0xaf   : > { %1334 = vmatprep.mubr.bf16.mxu1 %v2422_v46  ;;  %2249 = vmatprep.mubr.msk.bf16.mxu0 %vm976_vm1, %v2424_v47 }
  0xb6   : > { %1335 = vmatmul.mubr.bf16.gmra.mrb[72].mxu1 %v2425_v48  ;;  %2250 = vmatmul.mubr.msk.bf16.gmra.mrb[72].mxu0 %vm976_vm1, %v2426_v49 }
  0xb7   : > { %1342 = vmatprep.mubr.bf16.mxu1 %v2427_v50  ;;  %2253 = vmatprep.mubr.msk.bf16.mxu0 %vm976_vm1, %v2429_v51 }
  0xbe   : > { %1343 = vmatmul.mubr.bf16.gmra.mrb[76].mxu1 %v2430_v52  ;;  %2254 = vmatmul.mubr.msk.bf16.gmra.mrb[76].mxu0 %vm976_vm1, %v2431_v53 }
  0xf9   : > { %v2058_v54 = vpop.f32.mrb[0].mxu1  ;;  %v1986_v55 = vpop.f32.mrb[0].mxu0 }
  0xfa   : > { %v2059_v56 = vpop.f32.mrb[1].mxu1  ;;  %v1987_v57 = vpop.f32.mrb[1].mxu0 }
  0xfb   : > { %v2683_v58 = vadd.f32 %v2059_v56, %v2058_v54  ;;  %v2061_v59 = vpop.f32.mrb[2].mxu1  ;;  %v1988_v60 = vadd.f32 %v1987_v57, %v1986_v55  ;;  %v1989_v61 = vpop.f32.mrb[2].mxu0 }
  0xfc   : > { %v2062_v62 = vpop.f32.mrb[3].mxu1  ;;  %v1990_v63 = vpop.f32.mrb[3].mxu0 }
  0xfd   : > { %v2685_v0 = vadd.f32 %v2062_v62, %v2061_v59  ;;  %v1991_v1 = vadd.f32 %v1990_v63, %v1989_v61  ;;  %v1064_v43 = vadd.f32 %v1988_v60, %v2702_v40 }
  0xff   : > { %v1067_v50 = vadd.f32 %v1991_v1, %v2702_v40 }
 0x101   : > { %v2064_v2 = vpop.f32.mrb[4].mxu1  ;;  %v1992_v3 = vpop.f32.mrb[4].mxu0 }
 0x102   : > { %v2065_v4 = vpop.f32.mrb[5].mxu1  ;;  %v1993_v5 = vpop.f32.mrb[5].mxu0 }
 0x103   : > { %v2687_v6 = vadd.f32 %v2065_v4, %v2064_v2  ;;  %v2067_v7 = vpop.f32.mrb[6].mxu1  ;;  %v1994_v8 = vadd.f32 %v1993_v5, %v1992_v3  ;;  %v1995_v9 = vpop.f32.mrb[6].mxu0 }
 0x104   : > { %v2068_v10 = vpop.f32.mrb[7].mxu1  ;;  %v1996_v11 = vpop.f32.mrb[7].mxu0 }
 0x105   : > { %v2689_v12 = vadd.f32 %v2068_v10, %v2067_v7  ;;  %v1997_v13 = vadd.f32 %v1996_v11, %v1995_v9  ;;  %v1072_v60 = vadd.f32 %v1994_v8, %v2702_v40 }
 0x107   : > { %v1075_v1 = vadd.f32 %v1997_v13, %v2702_v40 }
 0x109   : > { %v2070_v14 = vpop.f32.mrb[8].mxu1  ;;  %v1998_v15 = vpop.f32.mrb[8].mxu0 }
 0x10a   : > { %v2071_v16 = vpop.f32.mrb[9].mxu1  ;;  %v1999_v17 = vpop.f32.mrb[9].mxu0 }
 0x10b   : > { %v2691_v18 = vadd.f32 %v2071_v16, %v2070_v14  ;;  %v2073_v19 = vpop.f32.mrb[10].mxu1  ;;  %v2000_v20 = vadd.f32 %v1999_v17, %v1998_v15  ;;  %v2001_v21 = vpop.f32.mrb[10].mxu0 }
 0x10c   : > { %v2074_v22 = vpop.f32.mrb[11].mxu1  ;;  %v2002_v23 = vpop.f32.mrb[11].mxu0 }
 0x10d   : > { %v2693_v24 = vadd.f32 %v2074_v22, %v2073_v19  ;;  %v2003_v25 = vadd.f32 %v2002_v23, %v2001_v21  ;;  %v1080_v8 = vadd.f32 %v2000_v20, %v2702_v40 }
 0x10f   : > { %v1083_v13 = vadd.f32 %v2003_v25, %v2702_v40 }
 0x111   : > { %v2076_v26 = vpop.f32.mrb[12].mxu1  ;;  %v2004_v27 = vpop.f32.mrb[12].mxu0 }
 0x112   : > { %v2077_v28 = vpop.f32.mrb[13].mxu1  ;;  %v2005_v29 = vpop.f32.mrb[13].mxu0 }
 0x113   : > { %v2695_v30 = vadd.f32 %v2077_v28, %v2076_v26  ;;  %v2079_v31 = vpop.f32.mrb[14].mxu1  ;;  %v2006_v32 = vadd.f32 %v2005_v29, %v2004_v27  ;;  %v2007_v33 = vpop.f32.mrb[14].mxu0 }
 0x114   : > { %v2080_v34 = vpop.f32.mrb[15].mxu1  ;;  %v2008_v35 = vpop.f32.mrb[15].mxu0 }
 0x115   : > { %v2697_v36 = vadd.f32 %v2080_v34, %v2079_v31  ;;  %v2009_v37 = vadd.f32 %v2008_v35, %v2007_v33  ;;  %v1088_v20 = vadd.f32 %v2006_v32, %v2702_v40 }
 0x117   : > { %v1091_v25 = vadd.f32 %v2009_v37, %v2702_v40 }
 0x119   : > { %v2098_v38 = vpop.f32.mrb[16].mxu1  ;;  %v2010_v39 = vpop.f32.mrb[16].mxu0 }
 0x11a   : > { %v2099_v41 = vpop.f32.mrb[17].mxu1  ;;  %v2011_v42 = vpop.f32.mrb[17].mxu0 }
 0x11b   : > { %v2100_v44 = vadd.f32 %v2099_v41, %v2098_v38  ;;  %v2101_v45 = vpop.f32.mrb[18].mxu1  ;;  %v2012_v46 = vadd.f32 %v2011_v42, %v2010_v39  ;;  %v2013_v47 = vpop.f32.mrb[18].mxu0 }
 0x11c   : > { %v2102_v48 = vpop.f32.mrb[19].mxu1  ;;  %v2014_v49 = vpop.f32.mrb[19].mxu0 }
 0x11d   : > { %v2103_v51 = vadd.f32 %v2102_v48, %v2101_v45  ;;  %v2015_v52 = vadd.f32 %v2014_v49, %v2013_v47  ;;  %v2706_v53 = vadd.f32 %v2100_v44, %v1064_v43  ;;  %v1096_v32 = vadd.f32 %v2012_v46, %v2702_v40 }
 0x11f   : > { %v2708_v54 = vadd.f32 %v2103_v51, %v1067_v50  ;;  %v1099_v37 = vadd.f32 %v2015_v52, %v2702_v40 }
 0x121   : > { %v2104_v55 = vpop.f32.mrb[20].mxu1  ;;  %v2016_v56 = vpop.f32.mrb[20].mxu0 }
 0x122   : > { %v2105_v57 = vpop.f32.mrb[21].mxu1  ;;  %v2017_v59 = vpop.f32.mrb[21].mxu0 }
 0x123   : > { %v2106_v61 = vadd.f32 %v2105_v57, %v2104_v55  ;;  %v2107_v62 = vpop.f32.mrb[22].mxu1  ;;  %v2018_v63 = vadd.f32 %v2017_v59, %v2016_v56  ;;  %v2019_v2 = vpop.f32.mrb[22].mxu0 }
 0x124   : > { %v2108_v3 = vpop.f32.mrb[23].mxu1  ;;  %v2020_v4 = vpop.f32.mrb[23].mxu0 }
 0x125   : > { %v2109_v5 = vadd.f32 %v2108_v3, %v2107_v62  ;;  %v2021_v7 = vadd.f32 %v2020_v4, %v2019_v2  ;;  %v2712_v9 = vadd.f32 %v2106_v61, %v1072_v60  ;;  %v1104_v46 = vadd.f32 %v2018_v63, %v2702_v40 }
 0x127   : > { %v2714_v10 = vadd.f32 %v2109_v5, %v1075_v1  ;;  %v1107_v52 = vadd.f32 %v2021_v7, %v2702_v40 }
 0x129   : > { %v2110_v11 = vpop.f32.mrb[24].mxu1  ;;  %v2022_v14 = vpop.f32.mrb[24].mxu0 }
 0x12a   : > { %v2111_v15 = vpop.f32.mrb[25].mxu1  ;;  %v2023_v16 = vpop.f32.mrb[25].mxu0 }
 0x12b   : > { %v2112_v17 = vadd.f32 %v2111_v15, %v2110_v11  ;;  %v2113_v19 = vpop.f32.mrb[26].mxu1  ;;  %v2024_v21 = vadd.f32 %v2023_v16, %v2022_v14  ;;  %v2025_v22 = vpop.f32.mrb[26].mxu0 }
 0x12c   : > { %v2114_v23 = vpop.f32.mrb[27].mxu1  ;;  %v2026_v26 = vpop.f32.mrb[27].mxu0 }
 0x12d   : > { %v2115_v27 = vadd.f32 %v2114_v23, %v2113_v19  ;;  %v2027_v28 = vadd.f32 %v2026_v26, %v2025_v22  ;;  %v2718_v29 = vadd.f32 %v2112_v17, %v1080_v8 }
 0x12f   : > { %v2720_v31 = vadd.f32 %v2115_v27, %v1083_v13 }
 0x131   : > { %v2116_v33 = vpop.f32.mrb[28].mxu1  ;;  %v2028_v34 = vpop.f32.mrb[28].mxu0 }
 0x132   : > { %v2117_v35 = vpop.f32.mrb[29].mxu1  ;;  %v2029_v38 = vpop.f32.mrb[29].mxu0 }
 0x133   : > { %v2118_v39 = vadd.f32 %v2117_v35, %v2116_v33  ;;  %v2119_v41 = vpop.f32.mrb[30].mxu1  ;;  %v2030_v42 = vadd.f32 %v2029_v38, %v2028_v34  ;;  %v2031_v43 = vpop.f32.mrb[30].mxu0 }
 0x134   : > { %v2120_v44 = vpop.f32.mrb[31].mxu1  ;;  %v2032_v45 = vpop.f32.mrb[31].mxu0 }
 0x135   : > { %v2121_v47 = vadd.f32 %v2120_v44, %v2119_v41  ;;  %v2033_v48 = vadd.f32 %v2032_v45, %v2031_v43  ;;  %v2724_v49 = vadd.f32 %v2118_v39, %v1088_v20  ;;  %v1112_v41 = vadd.f32 %v2024_v21, %v2702_v40 }
 0x137   : > { %v2726_v50 = vadd.f32 %v2121_v47, %v1091_v25 }
 0x139   : > { %v2122_v51 = vpop.f32.mrb[32].mxu1  ;;  %v2034_v55 = vpop.f32.mrb[32].mxu0 }
 0x13a   : > { %v2123_v56 = vpop.f32.mrb[33].mxu1  ;;  %v2035_v57 = vpop.f32.mrb[33].mxu0 }
 0x13b   : > { %v2124_v59 = vadd.f32 %v2123_v56, %v2122_v51  ;;  %v2125_v60 = vpop.f32.mrb[34].mxu1  ;;  %v2729_v61 = vadd.f32 %v2035_v57, %v2034_v55  ;;  %v2037_v62 = vpop.f32.mrb[34].mxu0  ;;  %v1115_v51 = vadd.f32 %v2027_v28, %v2702_v40 }
 0x13c   : > { %v2126_v2 = vpop.f32.mrb[35].mxu1  ;;  %v2038_v3 = vpop.f32.mrb[35].mxu0 }
 0x13d   : > { %v2127_v4 = vadd.f32 %v2126_v2, %v2125_v60  ;;  %v2039_v1 = vadd.f32 %v2038_v3, %v2037_v62  ;;  %v2732_v5 = vadd.f32 %v2124_v59, %v1096_v32  ;;  %v1120_v2 = vadd.f32 %v2030_v42, %v2702_v40 }
 0x13f   : > { %v2734_v11 = vadd.f32 %v2127_v4, %v1099_v37 }
 0x141   : > { %v2128_v14 = vpop.f32.mrb[36].mxu1  ;;  %v2040_v15 = vpop.f32.mrb[36].mxu0 }
 0x142   : > { %v2129_v16 = vpop.f32.mrb[37].mxu1  ;;  %v2041_v8 = vpop.f32.mrb[37].mxu0 }
 0x143   : > { %v2130_v17 = vadd.f32 %v2129_v16, %v2128_v14  ;;  %v2131_v19 = vpop.f32.mrb[38].mxu1  ;;  %v2737_v22 = vadd.f32 %v2041_v8, %v2040_v15  ;;  %v2043_v23 = vpop.f32.mrb[38].mxu0  ;;  %v1123_v16 = vadd.f32 %v2033_v48, %v2702_v40 }
 0x144   : > { %v2132_v26 = vpop.f32.mrb[39].mxu1  ;;  %v2044_v13 = vpop.f32.mrb[39].mxu0 }
 0x145   : > { %v2133_v27 = vadd.f32 %v2132_v26, %v2131_v19  ;;  %v2740_v33 = vadd.f32 %v2044_v13, %v2043_v23  ;;  %v2742_v34 = vadd.f32 %v2130_v17, %v1104_v46 }
 0x147   : > { %v2744_v35 = vadd.f32 %v2133_v27, %v1107_v52  ;;  %v1128_v27 = vadd.f32 %v2729_v61, %v2702_v40 }
 0x149   : > { %v2134_v38 = vpop.f32.mrb[40].mxu1  ;;  %v2046_v20 = vpop.f32.mrb[40].mxu0 }
 0x14a   : > { %v2135_v39 = vpop.f32.mrb[41].mxu1  ;;  %v2047_v63 = vpop.f32.mrb[41].mxu0 }
 0x14b   : > { %v2136_v43 = vadd.f32 %v2135_v39, %v2134_v38  ;;  %v2137_v44 = vpop.f32.mrb[42].mxu1  ;;  %v2747_v45 = vadd.f32 %v2047_v63, %v2046_v20  ;;  %v2049_v25 = vpop.f32.mrb[42].mxu0  ;;  %v1131_v63 = vadd.f32 %v2039_v1, %v2702_v40 }
 0x14c   : > { %v2138_v47 = vpop.f32.mrb[43].mxu1  ;;  %v2050_v7 = vpop.f32.mrb[43].mxu0 }
 0x14d   : > { %v2139_v55 = vadd.f32 %v2138_v47, %v2137_v44  ;;  %v2750_v56 = vadd.f32 %v2050_v7, %v2049_v25  ;;  %v2752_v57 = vadd.f32 %v2136_v43, %v1112_v41 }
 0x14f   : > { %v2754_v32 = vadd.f32 %v2139_v55, %v1115_v51 }
 0x151   : > { %v2140_v59 = vpop.f32.mrb[44].mxu1  ;;  %v2052_v60 = vpop.f32.mrb[44].mxu0 }
 0x152   : > { %v2141_v62 = vpop.f32.mrb[45].mxu1  ;;  %v2053_v21 = vpop.f32.mrb[45].mxu0 }
 0x153   : > { %v2142_v3 = vadd.f32 %v2141_v62, %v2140_v59  ;;  %v2143_v37 = vpop.f32.mrb[46].mxu1  ;;  %v2757_v4 = vadd.f32 %v2053_v21, %v2052_v60  ;;  %v2055_v14 = vpop.f32.mrb[46].mxu0 }
 0x154   : > { %v2144_v28 = vpop.f32.mrb[47].mxu1  ;;  %v2056_v15 = vpop.f32.mrb[47].mxu0 }
 0x155   : > { %v2145_v8 = vadd.f32 %v2144_v28, %v2143_v37  ;;  %v2760_v46 = vadd.f32 %v2056_v15, %v2055_v14  ;;  %v2762_v17 = vadd.f32 %v2142_v3, %v1120_v2  ;;  %v1136_v37 = vadd.f32 %v2737_v22, %v2702_v40 }
 0x157   : > { %v2764_v19 = vadd.f32 %v2145_v8, %v1123_v16  ;;  %v1139_v8 = vadd.f32 %v2740_v33, %v2702_v40 }
 0x159   : > { %v2146_v23 = vpop.f32.mrb[48].mxu1  ;;  %v2227_v26 = vpop.f32.mrb[48].mxu0 }
 0x15a   : > { %v1394_v42 = vadd.f32 %v2227_v26, %v2712_v9  ;;  %v2147_v13 = vpop.f32.mrb[49].mxu1  ;;  %v1385_v52 = vpop.f32.mrb[49].mxu0 }
 0x15b   : > { %v2148_v38 = vadd.f32 %v2147_v13, %v2146_v23  ;;  %v1386_v48 = vadd.f32 %v1385_v52, %v2706_v53  ;;  %v2149_v20 = vpop.f32.mrb[50].mxu1  ;;  %v2228_v39 = vpop.f32.mrb[50].mxu0 }
 0x15c   : > { %v1514_v41 = vmax.f32 %v1394_v42, 0.0  ;;  %v1397_v43 = vadd.f32 %v2228_v39, %v2714_v10  ;;  %v2150_v44 = vpop.f32.mrb[51].mxu1  ;;  %v1388_v25 = vpop.f32.mrb[51].mxu0 }
 0x15d   : > { %v1512_v9 = vmax.f32 %v1386_v48, 0.0  ;;  %v2151_v53 = vadd.f32 %v2150_v44, %v2149_v20  ;;  %v1389_v61 = vadd.f32 %v1388_v25, %v2708_v54  ;;  %v2779_v47 = vadd.f32 %v2148_v38, %v1128_v27 }
 0x15e   : > { %v1940_v1 = vpack.c.bf16 %v1514_v41, %v1514_v41  ;;  %v1515_v7 = vmax.f32 %v1397_v43, 0.0  ;;  %v1144_v25 = vadd.f32 %v2747_v45, %v2702_v40 }
 0x15f   : > { %v1938_v10 = vpack.c.bf16 %v1512_v9, %v1512_v9  ;;  %v1513_v51 = vmax.f32 %v1389_v61, 0.0  ;;  %v2781_v55 = vadd.f32 %v2151_v53, %v1131_v63 }
 0x160   : > { %1675 = vst.msk [vmem:[%s2776_s23 + $0x8] sm:$0xf] %vm1672_vm2, %v1940_v1  ;;  %v1941_v59 = vpack.c.bf16 %v1515_v7, %v1515_v7  ;;  %v1147_v7 = vadd.f32 %v2750_v56, %v2702_v40 }
 0x161   : > { %1673 = vst.msk [vmem:[%s2776_s23] sm:$0xf] %vm1672_vm2, %v1938_v10  ;;  %v1939_v60 = vpack.c.bf16 %v1513_v51, %v1513_v51  ;;  %v2152_v62 = vpop.f32.mrb[52].mxu1  ;;  %v2231_v21 = vpop.f32.mrb[52].mxu0 }
 0x162   : > { %1676 = vst.msk [vmem:[%s2776_s23 + $0xc] sm:$0xf] %vm1672_vm2, %v1941_v59  ;;  %v1410_v54 = vadd.f32 %v2231_v21, %v2724_v49  ;;  %v2153_v2 = vpop.f32.mrb[53].mxu1  ;;  %v1401_v3 = vpop.f32.mrb[53].mxu0 }
 0x163   : > { %1674 = vst.msk [vmem:[%s2776_s23 + $0x4] sm:$0xf] %vm1672_vm2, %v1939_v60  ;;  %v2154_v14 = vadd.f32 %v2153_v2, %v2152_v62  ;;  %v1402_v28 = vadd.f32 %v1401_v3, %v2718_v29  ;;  %v2155_v15 = vpop.f32.mrb[54].mxu1  ;;  %v2232_v16 = vpop.f32.mrb[54].mxu0 }
 0x164   : > { %v1518_v23 = vmax.f32 %v1410_v54, 0.0  ;;  %v1413_v49 = vadd.f32 %v2232_v16, %v2726_v50  ;;  %v2156_v26 = vpop.f32.mrb[55].mxu1  ;;  %v1404_v42 = vpop.f32.mrb[55].mxu0 }
 0x165   : > { %v1516_v13 = vmax.f32 %v1402_v28, 0.0  ;;  %v2157_v22 = vadd.f32 %v2156_v26, %v2155_v15  ;;  %v1405_v52 = vadd.f32 %v1404_v42, %v2720_v31  ;;  %v2799_v27 = vadd.f32 %v2154_v14, %v1136_v37 }
 0x166   : > { %v1944_v29 = vpack.c.bf16 %v1518_v23, %v1518_v23  ;;  %v1519_v38 = vmax.f32 %v1413_v49, 0.0 }
 0x167   : > { %v1942_v48 = vpack.c.bf16 %v1516_v13, %v1516_v13  ;;  %v1517_v20 = vmax.f32 %v1405_v52, 0.0  ;;  %v2801_v39 = vadd.f32 %v2157_v22, %v1139_v8  ;;  %v1152_v8 = vadd.f32 %v2757_v4, %v2702_v40 }
 0x168   : > { %1679 = vst.msk [vmem:[%s2776_s23 + $0x18] sm:$0xf] %vm1672_vm2, %v1944_v29  ;;  %v1945_v33 = vpack.c.bf16 %v1519_v38, %v1519_v38  ;;  %v1155_v13 = vadd.f32 %v2760_v46, %v2702_v40 }
 0x169   : > { %1677 = vst.msk [vmem:[%s2776_s23 + $0x10] sm:$0xf] %vm1672_vm2, %v1942_v48  ;;  %v1943_v50 = vpack.c.bf16 %v1517_v20, %v1517_v20  ;;  %v2158_v63 = vpop.f32.mrb[56].mxu1  ;;  %v2235_v41 = vpop.f32.mrb[56].mxu0 }
 0x16a   : > { %1680 = vst.msk [vmem:[%s2776_s23 + $0x1c] sm:$0xf] %vm1672_vm2, %v1945_v33  ;;  %v1426_v31 = vadd.f32 %v2235_v41, %v2742_v34  ;;  %v2159_v43 = vpop.f32.mrb[57].mxu1  ;;  %v1417_v44 = vpop.f32.mrb[57].mxu0 }
 0x16b   : > { %1678 = vst.msk [vmem:[%s2776_s23 + $0x14] sm:$0xf] %vm1672_vm2, %v1943_v50  ;;  %v2160_v9 = vadd.f32 %v2159_v43, %v2158_v63  ;;  %v1418_v53 = vadd.f32 %v1417_v44, %v2732_v5  ;;  %v2161_v61 = vpop.f32.mrb[58].mxu1  ;;  %v2236_v1 = vpop.f32.mrb[58].mxu0 }
 0x16c   : > { %v1522_v10 = vmax.f32 %v1426_v31, 0.0  ;;  %v1429_v34 = vadd.f32 %v2236_v1, %v2744_v35  ;;  %v2162_v51 = vpop.f32.mrb[59].mxu1  ;;  %v1420_v59 = vpop.f32.mrb[59].mxu0 }
 0x16d   : > { %v1520_v60 = vmax.f32 %v1418_v53, 0.0  ;;  %v2163_v45 = vadd.f32 %v2162_v51, %v2161_v61  ;;  %v1421_v62 = vadd.f32 %v1420_v59, %v2734_v11  ;;  %v2819_v21 = vadd.f32 %v2160_v9, %v1144_v25 }
 0x16e   : > { %v1948_v5 = vpack.c.bf16 %v1522_v10, %v1522_v10  ;;  %v1523_v54 = vmax.f32 %v1429_v34, 0.0  ;;  %v1160_v9 = vadd.f32 %v2683_v58, %v2702_v40  ;;  %v1163_v10 = vadd.f32 %v2685_v0, %v2702_v40 }
 0x16f   : > { %v1946_v2 = vpack.c.bf16 %v1520_v60, %v1520_v60  ;;  %v1521_v3 = vmax.f32 %v1421_v62, 0.0  ;;  %v2821_v37 = vadd.f32 %v2163_v45, %v1147_v7 }
 0x170   : > { %1683 = vst.msk [vmem:[%s2776_s23 + $0x28] sm:$0xf] %vm1672_vm2, %v1948_v5  ;;  %v1949_v56 = vpack.c.bf16 %v1523_v54, %v1523_v54 }
 0x171   : > { %1681 = vst.msk [vmem:[%s2776_s23 + $0x20] sm:$0xf] %vm1672_vm2, %v1946_v2  ;;  %v1947_v35 = vpack.c.bf16 %v1521_v3, %v1521_v3  ;;  %v2164_v14 = vpop.f32.mrb[60].mxu1  ;;  %v2239_v28 = vpop.f32.mrb[60].mxu0 }
 0x172   : > { %1684 = vst.msk [vmem:[%s2776_s23 + $0x2c] sm:$0xf] %vm1672_vm2, %v1949_v56  ;;  %v1442_v11 = vadd.f32 %v2239_v28, %v2762_v17  ;;  %v2165_v15 = vpop.f32.mrb[61].mxu1  ;;  %v1433_v16 = vpop.f32.mrb[61].mxu0 }
 0x173   : > { %1682 = vst.msk [vmem:[%s2776_s23 + $0x24] sm:$0xf] %vm1672_vm2, %v1947_v35  ;;  %v2166_v23 = vadd.f32 %v2165_v15, %v2164_v14  ;;  %v1434_v49 = vadd.f32 %v1433_v16, %v2752_v57  ;;  %v2167_v26 = vpop.f32.mrb[62].mxu1  ;;  %v2240_v42 = vpop.f32.mrb[62].mxu0 }
 0x174   : > { %v1526_v22 = vmax.f32 %v1442_v11, 0.0  ;;  %v1445_v17 = vadd.f32 %v2240_v42, %v2764_v19  ;;  %v2168_v52 = vpop.f32.mrb[63].mxu1  ;;  %v1436_v29 = vpop.f32.mrb[63].mxu0  ;;  %v1168_v11 = vadd.f32 %v2687_v6, %v2702_v40 }
 0x175   : > { %v1524_v38 = vmax.f32 %v1434_v49, 0.0  ;;  %v2169_v4 = vadd.f32 %v2168_v52, %v2167_v26  ;;  %v1437_v48 = vadd.f32 %v1436_v29, %v2754_v32  ;;  %v1313_v20 = vadd.f32 %v2166_v23, %v1152_v8 }
 0x176   : > { %v1952_v33 = vpack.c.bf16 %v1526_v22, %v1526_v22  ;;  %v1527_v57 = vmax.f32 %v1445_v17, 0.0  ;;  %v1171_v49 = vadd.f32 %v2689_v12, %v2702_v40 }
 0x177   : > { %v1950_v50 = vpack.c.bf16 %v1524_v38, %v1524_v38  ;;  %v1525_v63 = vmax.f32 %v1437_v48, 0.0  ;;  %v1316_v41 = vadd.f32 %v2169_v4, %v1155_v13 }
 0x178   : > { %1687 = vst.msk [vmem:[%s2776_s23 + $0x38] sm:$0xf] %vm1672_vm2, %v1952_v33  ;;  %v1953_v46 = vpack.c.bf16 %v1527_v57, %v1527_v57 }
 0x179   : > { %1685 = vst.msk [vmem:[%s2776_s23 + $0x30] sm:$0xf] %vm1672_vm2, %v1950_v50  ;;  %v1951_v19 = vpack.c.bf16 %v1525_v63, %v1525_v63  ;;  %v2170_v31 = vpop.f32.mrb[64].mxu1  ;;  %v2243_v43 = vpop.f32.mrb[64].mxu0 }
 0x17a   : > { %1688 = vst.msk [vmem:[%s2776_s23 + $0x3c] sm:$0xf] %vm1672_vm2, %v1953_v46  ;;  %v1458_v44 = vadd.f32 %v2243_v43, %v2799_v27  ;;  %v2171_v32 = vpop.f32.mrb[65].mxu1  ;;  %v1449_v25 = vpop.f32.mrb[65].mxu0  ;;  %v1176_v46 = vadd.f32 %v2691_v18, %v2702_v40 }
 0x17b   : > { %1686 = vst.msk [vmem:[%s2776_s23 + $0x34] sm:$0xf] %vm1672_vm2, %v1951_v19  ;;  %v2172_v53 = vadd.f32 %v2171_v32, %v2170_v31  ;;  %v1450_v61 = vadd.f32 %v1449_v25, %v2779_v47  ;;  %v2173_v1 = vpop.f32.mrb[66].mxu1  ;;  %v2244_v7 = vpop.f32.mrb[66].mxu0  ;;  %v1179_v32 = vadd.f32 %v2693_v24, %v2702_v40 }
 0x17c   : > { %v1530_v34 = vmax.f32 %v1458_v44, 0.0  ;;  %v1461_v27 = vadd.f32 %v2244_v7, %v2801_v39  ;;  %v2174_v51 = vpop.f32.mrb[67].mxu1  ;;  %v1452_v59 = vpop.f32.mrb[67].mxu0 }
 0x17d   : > { %v1528_v60 = vmax.f32 %v1450_v61, 0.0  ;;  %v2175_v58 = vadd.f32 %v2174_v51, %v2173_v1  ;;  %v1453_v45 = vadd.f32 %v1452_v59, %v2781_v55  ;;  %v1321_v62 = vadd.f32 %v2172_v53, %v1160_v9 }
 0x17e   : > { %v1956_v5 = vpack.c.bf16 %v1530_v34, %v1530_v34  ;;  %v1531_v47 = vmax.f32 %v1461_v27, 0.0 }
 0x17f   : > { %v1954_v54 = vpack.c.bf16 %v1528_v60, %v1528_v60  ;;  %v1529_v2 = vmax.f32 %v1453_v45, 0.0  ;;  %v1324_v3 = vadd.f32 %v2175_v58, %v1163_v10 }
 0x180   : > { %1691 = vst.msk [vmem:[%s2776_s23 + $0x48] sm:$0xf] %vm1672_vm2, %v1956_v5  ;;  %v1957_v0 = vpack.c.bf16 %v1531_v47, %v1531_v47 }
 0x181   : > { %1689 = vst.msk [vmem:[%s2776_s23 + $0x40] sm:$0xf] %vm1672_vm2, %v1954_v54  ;;  %v1955_v39 = vpack.c.bf16 %v1529_v2, %v1529_v2  ;;  %v2176_v56 = vpop.f32.mrb[68].mxu1  ;;  %v2247_v35 = vpop.f32.mrb[68].mxu0  ;;  %v1184_v54 = vadd.f32 %v2695_v30, %v2702_v40 }
 0x182   : > { %1692 = vst.msk [vmem:[%s2776_s23 + $0x4c] sm:$0xf] %vm1672_vm2, %v1957_v0  ;;  %v1474_v14 = vadd.f32 %v2247_v35, %v1313_v20  ;;  %v2177_v28 = vpop.f32.mrb[69].mxu1  ;;  %v1465_v55 = vpop.f32.mrb[69].mxu0 }
 0x183   : > { %1690 = vst.msk [vmem:[%s2776_s23 + $0x44] sm:$0xf] %vm1672_vm2, %v1955_v39  ;;  %v2178_v15 = vadd.f32 %v2177_v28, %v2176_v56  ;;  %v1466_v16 = vadd.f32 %v1465_v55, %v2819_v21  ;;  %v2179_v8 = vpop.f32.mrb[70].mxu1  ;;  %v2248_v23 = vpop.f32.mrb[70].mxu0  ;;  %v1187_v56 = vadd.f32 %v2697_v36, %v2702_v40 }
 0x184   : > { %v1534_v26 = vmax.f32 %v1474_v14, 0.0  ;;  %v1477_v42 = vadd.f32 %v2248_v23, %v1316_v41  ;;  %v2180_v13 = vpop.f32.mrb[71].mxu1  ;;  %v1468_v22 = vpop.f32.mrb[71].mxu0 }
 0x185   : > { %v1532_v17 = vmax.f32 %v1466_v16, 0.0  ;;  %v2181_v52 = vadd.f32 %v2180_v13, %v2179_v8  ;;  %v1469_v6 = vadd.f32 %v1468_v22, %v2821_v37  ;;  %v1329_v29 = vadd.f32 %v2178_v15, %v1168_v11 }
 0x186   : > { %v1960_v38 = vpack.c.bf16 %v1534_v26, %v1534_v26  ;;  %v1535_v21 = vmax.f32 %v1477_v42, 0.0 }
 0x187   : > { %v1958_v4 = vpack.c.bf16 %v1532_v17, %v1532_v17  ;;  %v1533_v48 = vmax.f32 %v1469_v6, 0.0  ;;  %v1332_v20 = vadd.f32 %v2181_v52, %v1171_v49 }
 0x188   : > { %1695 = vst.msk [vmem:[%s2776_s23 + $0x58] sm:$0xf] %vm1672_vm2, %v1960_v38  ;;  %v1961_v12 = vpack.c.bf16 %v1535_v21, %v1535_v21 }
 0x189   : > { %1693 = vst.msk [vmem:[%s2776_s23 + $0x50] sm:$0xf] %vm1672_vm2, %v1958_v4  ;;  %v1959_v33 = vpack.c.bf16 %v1533_v48, %v1533_v48  ;;  %v2182_v57 = vpop.f32.mrb[72].mxu1  ;;  %v2251_v50 = vpop.f32.mrb[72].mxu0 }
 0x18a   : > { %1696 = vst.msk [vmem:[%s2776_s23 + $0x5c] sm:$0xf] %vm1672_vm2, %v1961_v12  ;;  %v1490_v63 = vadd.f32 %v2251_v50, %v1329_v29  ;;  %v2183_v41 = vpop.f32.mrb[73].mxu1  ;;  %v1481_v37 = vpop.f32.mrb[73].mxu0 }
 0x18b   : > { %1694 = vst.msk [vmem:[%s2776_s23 + $0x54] sm:$0xf] %vm1672_vm2, %v1959_v33  ;;  %v2184_v19 = vadd.f32 %v2183_v41, %v2182_v57  ;;  %v1482_v31 = vadd.f32 %v1481_v37, %v1321_v62  ;;  %v2185_v43 = vpop.f32.mrb[74].mxu1  ;;  %v2252_v44 = vpop.f32.mrb[74].mxu0 }
 0x18c   : > { %v1538_v25 = vmax.f32 %v1490_v63, 0.0  ;;  %v1493_v9 = vadd.f32 %v2252_v44, %v1332_v20  ;;  %v2186_v53 = vpop.f32.mrb[75].mxu1  ;;  %v1484_v61 = vpop.f32.mrb[75].mxu0 }
 0x18d   : > { %v1536_v1 = vmax.f32 %v1482_v31, 0.0  ;;  %v2187_v7 = vadd.f32 %v2186_v53, %v2185_v43  ;;  %v1485_v10 = vadd.f32 %v1484_v61, %v1324_v3  ;;  %v1337_v18 = vadd.f32 %v2184_v19, %v1176_v46 }
 0x18e   : > { %v1964_v34 = vpack.c.bf16 %v1538_v25, %v1538_v25  ;;  %v1539_v27 = vmax.f32 %v1493_v9, 0.0 }
 0x18f   : > { %v1962_v51 = vpack.c.bf16 %v1536_v1, %v1536_v1  ;;  %v1537_v59 = vmax.f32 %v1485_v10, 0.0  ;;  %v1340_v60 = vadd.f32 %v2187_v7, %v1179_v32 }
 0x190   : > { %1699 = vst.msk [vmem:[%s2776_s23 + $0x68] sm:$0xf] %vm1672_vm2, %v1964_v34  ;;  %v1965_v58 = vpack.c.bf16 %v1539_v27, %v1539_v27 }
 0x191   : > { %1697 = vst.msk [vmem:[%s2776_s23 + $0x60] sm:$0xf] %vm1672_vm2, %v1962_v51  ;;  %v1963_v24 = vpack.c.bf16 %v1537_v59, %v1537_v59  ;;  %v2188_v45 = vpop.f32.mrb[76].mxu1  ;;  %v2255_v62 = vpop.f32.mrb[76].mxu0 }
 0x192   : > { %1700 = vst.msk [vmem:[%s2776_s23 + $0x6c] sm:$0xf] %vm1672_vm2, %v1965_v58  ;;  %v2189_v5 = vpop.f32.mrb[77].mxu1  ;;  %v1497_v47 = vpop.f32.mrb[77].mxu0 }
 0x193   : > { %1698 = vst.msk [vmem:[%s2776_s23 + $0x64] sm:$0xf] %vm1672_vm2, %v1963_v24  ;;  %v2190_v2 = vadd.f32 %v2189_v5, %v2188_v45  ;;  %v1498_v3 = vadd.f32 %v1497_v47, %v1337_v18  ;;  %v2191_v0 = vpop.f32.mrb[78].mxu1  ;;  %v2256_v39 = vpop.f32.mrb[78].mxu0 }
 0x194   : > { %v2192_v35 = vpop.f32.mrb[79].mxu1  ;;  %v1500_v14 = vpop.f32.mrb[79].mxu0 }
 0x195   : > { %v1345_v28 = vadd.f32 %v2190_v2, %v1184_v54  ;;  %v1540_v55 = vmax.f32 %v1498_v3, 0.0  ;;  %v2193_v11 = vadd.f32 %v2192_v35, %v2191_v0  ;;  %v1501_v15 = vadd.f32 %v1500_v14, %v1340_v60 }
 0x197   : > { %v1506_v30 = vadd.f32 %v2255_v62, %v1345_v28  ;;  %v1966_v16 = vpack.c.bf16 %v1540_v55, %v1540_v55  ;;  %v1348_v8 = vadd.f32 %v2193_v11, %v1187_v56  ;;  %v1541_v23 = vmax.f32 %v1501_v15, 0.0 }
 0x199   : > { %v1542_v49 = vmax.f32 %v1506_v30, 0.0  ;;  %1701 = vst.msk [vmem:[%s2776_s23 + $0x70] sm:$0xf] %vm1672_vm2, %v1966_v16  ;;  %v1509_v26 = vadd.f32 %v2256_v39, %v1348_v8  ;;  %v1967_v42 = vpack.c.bf16 %v1541_v23, %v1541_v23 }
 0x19b   : > { %v1968_v13 = vpack.c.bf16 %v1542_v49, %v1542_v49  ;;  %v1543_v36 = vmax.f32 %v1509_v26, 0.0  ;;  %1702 = vst.msk [vmem:[%s2776_s23 + $0x74] sm:$0xf] %vm1672_vm2, %v1967_v42 }
 0x19d   : > { %1703 = vst.msk [vmem:[%s2776_s23 + $0x78] sm:$0xf] %vm1672_vm2, %v1968_v13  ;;  %v1969_v40 = vpack.c.bf16 %v1543_v36, %v1543_v36 }
 0x19f   : > { %1704 = vst.msk [vmem:[%s2776_s23 + $0x7c] sm:$0xf] %vm1672_vm2, %v1969_v40 }
 0x1a0 PF: > { %s13_s12 = sadd.s32 1, %s2438_s12  }
 0x1a1   : > { %p10_p4 = scmp.ge.s32.totalorder %s13_s12, 4  }
 0x1a3   :  { %12 = sbr.rel (!%p10_p4) target bundleno = 1 (0x1), region = 62 }

// kernel: dqn_forward.4
= control target key start
LH: loop header
LB: loop body
LE: loop exit
PB: predicated region body
PF: predicated region fallthrough
CT: control target
= control target key end

     0   :  { %s1526_s12 = smov 0   ;;  %s1766_s0 = inlined_call_operand.vmem [shape: bf16[128,800], index: 0, kind: input, shape index: {}]   ;;  %s1767_s1 = inlined_call_operand.vmem [shape: bf16[800,64], index: 1, kind: input, shape index: {}]   ;;  %s1768_s2 = inlined_call_operand.vmem [shape: f32[1,64], index: 2, kind: input, shape index: {}]   ;;  %s1769_s3 = inlined_call_operand.vmem [shape: bf16[128,64], index: 3, kind: output, shape index: {}]  }
   0x1 LB: > { %s1135_s13 = sadd.s32 4294967295, %s1504_s12   ;;  %p1139_p0 = scmp.ge.s32.totalorder %s1504_s12, 1  ;;  %s1504_s12 = sphi %s1526_s12, %s13_s12  }
   0x2   : > { %p139_p1 = scmp.lt.s32.totalorder %s1504_s12, 3 }
   0x4   : > { %p140_p2 = pnand %p1139_p0, %p139_p1 }
   0x5   : > { %v1408_v0 = vld [vmem:[%s1767_s1 + $0x40] sm:$0xff] (!%p140_p2)   ;;  %v1412_v4 = vld [vmem:[%s1767_s1 + $0x48] sm:$0xff] (!%p140_p2)   ;;  %v1416_v8 = vld [vmem:[%s1767_s1 + $0x50] sm:$0xff] (!%p140_p2)   ;;  %s1140_s19 = sshll.u32 (!%p140_p2), %s1135_s13, 3  ;;  %vm757_vm0 = vcmask (!%p140_p2), 261120   ;;  %vm1070_vm1 = vcmask (!%p140_p2), 519168  }
   0x6   : > { %143 = sbr.rel (%p140_p2) target bundleno = 314 (0x13a), region = 32  ;;  %v1409_v1 = vld [vmem:[%s1767_s1 + $0xc0] sm:$0xff] (!%p140_p2)   ;;  %1245 = vmatprep.subr.bf16.mxu0 (!%p140_p2), %v1408_v0  ;;  %v1413_v5 = vld [vmem:[%s1767_s1 + $0xc8] sm:$0xff] (!%p140_p2)   ;;  %v1417_v9 = vld [vmem:[%s1767_s1 + $0xd0] sm:$0xff] (!%p140_p2)   ;;  %p165_p3 = scmp.lt.s32.totalorder (!%p140_p2), %s1140_s19, 15 }
   0x7   : > { %v1410_v2 = vld [vmem:[%s1767_s1] sm:$0xff] (!%p140_p2)   ;;  %1285 = vmatprep.subr.bf16.mxu1 (!%p140_p2), %v1409_v1  ;;  %v1414_v6 = vld [vmem:[%s1767_s1 + $0x8] sm:$0xff] (!%p140_p2)   ;;  %v1418_v10 = vld [vmem:[%s1767_s1 + $0x10] sm:$0xff] (!%p140_p2)  }
   0x8   : > { %v1411_v3 = vld [vmem:[%s1767_s1 + $0x80] sm:$0xff] (!%p140_p2)   ;;  %1246 = vmatpush3.bf16.msra.mxu0 (!%p140_p2), %v1410_v2  ;;  %v1415_v7 = vld [vmem:[%s1767_s1 + $0x88] sm:$0xff] (!%p140_p2)   ;;  %v1419_v11 = vld [vmem:[%s1767_s1 + $0x90] sm:$0xff] (!%p140_p2)  }
   0x9   : > { %1286 = vmatpush3.bf16.msra.mxu1 (!%p140_p2), %v1411_v3  ;;  %1247 = vmatprep.subr.bf16.mxu0 (!%p140_p2), %v1412_v4  ;;  %v1420_v12 = vld [vmem:[%s1767_s1 + $0x58] sm:$0xff] (!%p140_p2)   ;;  %v1424_v16 = vld [vmem:[%s1767_s1 + $0x60] sm:$0xff] (!%p140_p2)   ;;  %v1428_v20 = vld [vmem:[%s1767_s1 + $0x68] sm:$0xff] (!%p140_p2)  }
   0xa   : > { %1287 = vmatprep.subr.bf16.mxu1 (!%p140_p2), %v1413_v5  ;;  %v1421_v13 = vld [vmem:[%s1767_s1 + $0xd8] sm:$0xff] (!%p140_p2)   ;;  %v1425_v17 = vld [vmem:[%s1767_s1 + $0xe0] sm:$0xff] (!%p140_p2)   ;;  %v1429_v21 = vld [vmem:[%s1767_s1 + $0xe8] sm:$0xff] (!%p140_p2)  }
   0xb   : > { %v1422_v14 = vld [vmem:[%s1767_s1 + $0x18] sm:$0xff] (!%p140_p2)   ;;  %v1426_v18 = vld [vmem:[%s1767_s1 + $0x20] sm:$0xff] (!%p140_p2)   ;;  %v1430_v22 = vld [vmem:[%s1767_s1 + $0x28] sm:$0xff] (!%p140_p2)  }
   0xc   : > { %1248 = vmatpush3.bf16.msra.mxu0 (!%p140_p2), %v1414_v6  ;;  %v1423_v15 = vld [vmem:[%s1767_s1 + $0x98] sm:$0xff] (!%p140_p2)   ;;  %v1427_v19 = vld [vmem:[%s1767_s1 + $0xa0] sm:$0xff] (!%p140_p2)   ;;  %v1431_v23 = vld [vmem:[%s1767_s1 + $0xa8] sm:$0xff] (!%p140_p2)  }
   0xd   : > { %1288 = vmatpush3.bf16.msra.mxu1 %v1415_v7  ;;  %1249 = vmatprep.subr.bf16.mxu0 %v1416_v8  ;;  %s1771_s19 = smov (!%p165_p3, %s1140_s19), 15  ;;  %v1432_v24 = vld [vmem:[%s1767_s1 + $0x70] sm:$0xff]   ;;  %v1436_v28 = vld [vmem:[%s1767_s1 + $0x78] sm:$0xff]   ;;  %v1446_v36 = vld [vmem:[%s1767_s1 + $0x140] sm:$0xff]  }
   0xe   : > { %1289 = vmatprep.subr.bf16.mxu1 %v1417_v9  ;;  %v1433_v25 = vld [vmem:[%s1767_s1 + $0xf0] sm:$0xff]   ;;  %s1399_s16 = smul.u32 28, %s1771_s19  ;;  %v1437_v29 = vld [vmem:[%s1767_s1 + $0xf8] sm:$0xff]   ;;  %v1447_v37 = vld [vmem:[%s1767_s1 + $0x100] sm:$0xff]  }
   0xf   : > { %v1434_v26 = vld [vmem:[%s1767_s1 + $0x30] sm:$0xff]   ;;  %v1438_v30 = vld [vmem:[%s1767_s1 + $0x38] sm:$0xff]   ;;  %v1448_v38 = vld [vmem:[%s1767_s1 + $0x148] sm:$0xff]  }
  0x10   : > { %1250 = vmatpush3.bf16.msra.mxu0 %v1418_v10  ;;  %v1435_v27 = vld [vmem:[%s1767_s1 + $0xb0] sm:$0xff]   ;;  %s1632_s13 = scalar_lea.vmem %s1766_s0, %s1399_s16  ;;  %v1439_v31 = vld [vmem:[%s1767_s1 + $0xb8] sm:$0xff]   ;;  %v1449_v39 = vld [vmem:[%s1767_s1 + $0x108] sm:$0xff]  }
  0x11   : > { %1290 = vmatpush3.bf16.msra.mxu1 %v1419_v11  ;;  %1251 = vmatprep.subr.bf16.mxu0 %v1420_v12  ;;  %v1440_v32 = vld [vmem:[%s1632_s13] ss:$28 sps:$4 sm:$0xff]   ;;  %v1443_v34 = vld [vmem:[%s1632_s13 + $0x8] ss:$28 sps:$4 sm:$0xff]   ;;  %v1454_v42 = vld [vmem:[%s1632_s13 + $0x38] ss:$28 sps:$4 sm:$0xff]  }
  0x12   : > { %1291 = vmatprep.subr.bf16.mxu1 %v1421_v13  ;;  %v1442_v33 = vld [vmem:[%s1632_s13 + $0x4] ss:$28 sps:$4 sm:$0xff]   ;;  %v1445_v35 = vld [vmem:[%s1632_s13 + $0xc] ss:$28 sps:$4 sm:$0xff]   ;;  %v1450_v40 = vld [vmem:[%s1632_s13 + $0x3c] ss:$28 sps:$4 sm:$0xff]  }
  0x13   : > { %802 = vmatprep.mubr.bf16.mxu0 %v1442_v33  ;;  %867 = vmatprep.mubr.bf16.mxu1 %v1445_v35  ;;  %v1452_v41 = vld [vmem:[%s1632_s13 + $0x44] ss:$28 sps:$4 sm:$0xff]   ;;  %v1456_v44 = vld [vmem:[%s1767_s1 + $0x150] sm:$0xff]   ;;  %v1458_v46 = vld [vmem:[%s1767_s1 + $0x158] sm:$0xff]  }
  0x14   : > { %1252 = vmatpush3.bf16.msra.mxu0 %v1422_v14  ;;  %v1455_v43 = vld [vmem:[%s1632_s13 + $0x40] ss:$28 sps:$4 sm:$0xff]   ;;  %v1457_v45 = vld [vmem:[%s1767_s1 + $0x110] sm:$0xff]   ;;  %v1468_v54 = vld [vmem:[%s1767_s1 + $0x168] sm:$0xff]  }
  0x15   : > { %1292 = vmatpush3.bf16.msra.mxu1 %v1423_v15  ;;  %1253 = vmatprep.subr.bf16.mxu0 %v1424_v16  ;;  %v1459_v47 = vld [vmem:[%s1767_s1 + $0x118] sm:$0xff]   ;;  %v1460_v48 = vld [vmem:[%s1632_s13 + $0x74] ss:$28 sps:$4 sm:$0xff]   ;;  %v1466_v51 = vld [vmem:[%s1767_s1 + $0x160] sm:$0xff]  }
  0x16   : > { %1293 = vmatprep.subr.bf16.mxu1 %v1425_v17  ;;  %v1462_v49 = vld [vmem:[%s1632_s13 + $0x7c] ss:$28 sps:$4 sm:$0xff]   ;;  %v1464_v50 = vld [vmem:[%s1632_s13 + $0x70] ss:$28 sps:$4 sm:$0xff]   ;;  %v1467_v53 = vld [vmem:[%s1767_s1 + $0x120] sm:$0xff]  }
  0x17   : > { %v1465_v52 = vld [vmem:[%s1632_s13 + $0x78] ss:$28 sps:$4 sm:$0xff]   ;;  %v1470_v55 = vld [vmem:[%s1632_s13 + $0xac] ss:$28 sps:$4 sm:$0xff]   ;;  %v1486_v2 = vld [vmem:[%s1767_s1 + $0x180] sm:$0xff]  }
  0x18   : > { %1254 = vmatpush3.bf16.msra.mxu0 %v1426_v18  ;;  %v1472_v56 = vld [vmem:[%s1632_s13 + $0xb4] ss:$28 sps:$4 sm:$0xff]   ;;  %v1469_v57 = vld [vmem:[%s1767_s1 + $0x128] sm:$0xff]   ;;  %v1478_v62 = vld [vmem:[%s1767_s1 + $0x178] sm:$0xff]  }
  0x19   : > { %1294 = vmatpush3.bf16.msra.mxu1 %v1427_v19  ;;  %1255 = vmatprep.subr.bf16.mxu0 %v1428_v20  ;;  %v1476_v58 = vld [vmem:[%s1767_s1 + $0x170] sm:$0xff]   ;;  %v1474_v59 = vld [vmem:[%s1632_s13 + $0xa8] ss:$28 sps:$4 sm:$0xff]   ;;  %v1485_v0 = vld [vmem:[%s1632_s13 + $0xbc] ss:$28 sps:$4 sm:$0xff]  }
  0x1a   : > { %1295 = vmatprep.subr.bf16.mxu1 %v1429_v21  ;;  %v1475_v60 = vld [vmem:[%s1632_s13 + $0xb0] ss:$28 sps:$4 sm:$0xff]   ;;  %v1479_v1 = vld [vmem:[%s1767_s1 + $0x138] sm:$0xff]   ;;  %v1491_v8 = vld [vmem:[%s1632_s13 + $0x48] ss:$28 sps:$4 sm:$0xff]  }
  0x1b   : > { %v1477_v61 = vld [vmem:[%s1767_s1 + $0x130] sm:$0xff]   ;;  %v1488_v5 = vld [vmem:[%s1632_s13 + $0x4c] ss:$28 sps:$4 sm:$0xff]   ;;  %v1493_v10 = vld [vmem:[%s1632_s13 + $0x84] ss:$28 sps:$4 sm:$0xff]  }
  0x1c   : > { %1256 = vmatpush3.bf16.msra.mxu0 %v1430_v22  ;;  %v1482_v63 = vld [vmem:[%s1632_s13 + $0x14] ss:$28 sps:$4 sm:$0xff]   ;;  %v1487_v7 = vld [vmem:[%s1767_s1 + $0x188] sm:$0xff]   ;;  %v1496_v12 = vld [vmem:[%s1632_s13 + $0x80] ss:$28 sps:$4 sm:$0xff]  }
  0x1d   : > { %1296 = vmatpush3.bf16.msra.mxu1 %v1431_v23  ;;  %1257 = vmatprep.subr.bf16.mxu0 %v1432_v24  ;;  %v1480_v3 = vld [vmem:[%s1632_s13 + $0x10] ss:$28 sps:$4 sm:$0xff]   ;;  %v1483_v4 = vld [vmem:[%s1632_s13 + $0xb8] ss:$28 sps:$4 sm:$0xff]   ;;  %v1495_v11 = vld [vmem:[%s1632_s13 + $0x88] ss:$28 sps:$4 sm:$0xff]  }
  0x1e   : > { %1297 = vmatprep.subr.bf16.mxu1 %v1433_v25  ;;  %v1490_v6 = vld [vmem:[%s1632_s13 + $0x18] ss:$28 sps:$4 sm:$0xff]   ;;  %v1492_v9 = vld [vmem:[%s1632_s13 + $0x50] ss:$28 sps:$4 sm:$0xff]   ;;  %v1497_v13 = vld [vmem:[%s1632_s13 + $0xc0] ss:$28 sps:$4 sm:$0xff]  }
  0x1f   : > { %v1144_v15 = vld [vmem:[%s1768_s2] ss:$0 sm:$0xff]  ;;  %s1143_s13 = sshll.u32 %s1771_s19, 2 }
  0x20   : > { %1258 = vmatpush3.bf16.msra.mxu0 %v1434_v26  ;;  %s1742_s24 = scalar_lea.vmem %s1769_s3, %s1143_s13 }
  0x21   : > { %1298 = vmatpush3.bf16.msra.mxu1 %v1435_v27  ;;  %1259 = vmatprep.subr.bf16.mxu0 %v1436_v28 }
  0x22   : > { %1299 = vmatprep.subr.bf16.mxu1 %v1437_v29 }
  0x24   : > { %1260 = vmatpush3.bf16.msra.mxu0 %v1438_v30 }
  0x25   : > { %1300 = vmatpush3.bf16.msra.mxu1 %v1439_v31  ;;  %1325 = vmatprep.subr.bf16.mxu0 %v1446_v36 }
  0x26   : > { %1383 = vmatprep.subr.bf16.mxu1 %v1446_v36 }
  0x27   : > { %803 = vmatmul.mubr.bf16.vlgmr.msra.gmra.mrb[0].mxu0 %v1440_v32 }
  0x28   : > { %868 = vmatmul.mubr.bf16.vlgmr.msra.gmra.mrb[0].mxu1 %v1443_v34  ;;  %1326 = vmatpush3.bf16.msra.mxu0 %v1447_v37 }
  0x29   : > { %1391 = vmatpush3.bf16.msra.mxu1 %v1447_v37  ;;  %1327 = vmatprep.subr.bf16.mxu0 %v1448_v38 }
  0x2a   : > { %1384 = vmatprep.subr.bf16.mxu1 %v1448_v38  ;;  %810 = vmatprep.mubr.bf16.mxu0 %v1450_v40 }
  0x2b   : > { %875 = vmatprep.mubr.bf16.mxu1 %v1452_v41 }
  0x2c   : > { %1328 = vmatpush3.bf16.msra.mxu0 %v1449_v39 }
  0x2d   : > { %1392 = vmatpush3.bf16.msra.mxu1 %v1449_v39  ;;  %1329 = vmatprep.subr.bf16.mxu0 %v1456_v44 }
  0x2e   : > { %1385 = vmatprep.subr.bf16.mxu1 %v1456_v44 }
  0x2f   : > { %811 = vmatmul.mubr.bf16.gmra.mrb[4].mxu0 %v1454_v42 }
  0x30   : > { %876 = vmatmul.mubr.bf16.gmra.mrb[4].mxu1 %v1455_v43  ;;  %1330 = vmatpush3.bf16.msra.mxu0 %v1457_v45 }
  0x31   : > { %1393 = vmatpush3.bf16.msra.mxu1 %v1457_v45  ;;  %1331 = vmatprep.subr.bf16.mxu0 %v1458_v46 }
  0x32   : > { %1386 = vmatprep.subr.bf16.mxu1 %v1458_v46  ;;  %818 = vmatprep.mubr.bf16.mxu0 %v1460_v48 }
  0x33   : > { %883 = vmatprep.mubr.bf16.mxu1 %v1462_v49 }
  0x34   : > { %1332 = vmatpush3.bf16.msra.mxu0 %v1459_v47 }
  0x35   : > { %1394 = vmatpush3.bf16.msra.mxu1 %v1459_v47  ;;  %1333 = vmatprep.subr.bf16.mxu0 %v1466_v51 }
  0x36   : > { %1387 = vmatprep.subr.bf16.mxu1 %v1466_v51 }
  0x37   : > { %819 = vmatmul.mubr.bf16.gmra.mrb[8].mxu0 %v1464_v50 }
  0x38   : > { %884 = vmatmul.mubr.bf16.gmra.mrb[8].mxu1 %v1465_v52  ;;  %1334 = vmatpush3.bf16.msra.mxu0 %v1467_v53 }
  0x39   : > { %826 = vmatprep.mubr.bf16.mxu0 %v1470_v55  ;;  %1395 = vmatpush3.bf16.msra.mxu1 %v1467_v53 }
  0x3a   : > { %1335 = vmatprep.subr.bf16.mxu0 %v1468_v54  ;;  %1388 = vmatprep.subr.bf16.mxu1 %v1468_v54 }
  0x3b   : > { %891 = vmatprep.mubr.bf16.mxu1 %v1472_v56 }
  0x3c   : > { %1336 = vmatpush3.bf16.msra.mxu0 %v1469_v57 }
  0x3d   : > { %1396 = vmatpush3.bf16.msra.mxu1 %v1469_v57  ;;  %1337 = vmatprep.subr.bf16.mxu0 %v1476_v58 }
  0x3e   : > { %1389 = vmatprep.subr.bf16.mxu1 %v1476_v58 }
  0x3f   : > { %827 = vmatmul.mubr.bf16.gmra.mrb[12].mxu0 %v1474_v59 }
  0x40   : > { %892 = vmatmul.mubr.bf16.gmra.mrb[12].mxu1 %v1475_v60  ;;  %932 = vmatprep.mubr.bf16.mxu0 %v1482_v63 }
  0x41   : > { %1338 = vmatpush3.bf16.msra.mxu0 %v1477_v61  ;;  %1397 = vmatpush3.bf16.msra.mxu1 %v1477_v61 }
  0x42   : > { %1339 = vmatprep.subr.bf16.mxu0 %v1478_v62  ;;  %1390 = vmatprep.subr.bf16.mxu1 %v1478_v62 }
  0x43   : > { %956 = vmatprep.mubr.bf16.mxu1 %v1485_v0 }
  0x45   : > { %1340 = vmatpush3.bf16.msra.mxu0 %v1479_v1  ;;  %1398 = vmatpush3.bf16.msra.mxu1 %v1479_v1 }
  0x46   : > { %1371 = vmatprep.subr.bf16.mxu1 %v1486_v2 }
  0x48   : > { %933 = vmatmul.mubr.bf16.vlgmr.msra.gmra.mrb[16].mxu0 %v1480_v3  ;;  %957 = vmatmul.mubr.bf16.vlgmr.msra.gmra.mrb[16].mxu1 %v1483_v4 }
  0x49   : > { %940 = vmatprep.mubr.bf16.mxu0 %v1488_v5  ;;  %1372 = vmatpush3.bf16.msra.mxu1 %v1486_v2 }
  0x4a   : > { %1375 = vmatprep.mubr.msk.bf16.mxu1 %vm757_vm0, %v1490_v6  ;;  %1373 = vmatprep.subr.bf16.mxu1 %v1487_v7 }
  0x4d   : > { %1374 = vmatpush3.bf16.msra.mxu1 %v1487_v7 }
  0x50   : > { %941 = vmatmul.mubr.bf16.gmra.mrb[20].mxu0 %v1491_v8  ;;  %1376 = vmatmul.mubr.msk.bf16.vlgmr.msra.gmra.mrb[20].mxu1 %vm757_vm0, %v1492_v9 }
  0x51   : > { %948 = vmatprep.mubr.bf16.mxu0 %v1493_v10  ;;  %1379 = vmatprep.mubr.msk.bf16.mxu1 %vm757_vm0, %v1495_v11 }
  0x58   : > { %949 = vmatmul.mubr.bf16.gmra.mrb[24].mxu0 %v1496_v12  ;;  %1380 = vmatmul.mubr.msk.bf16.gmra.mrb[24].mxu1 %vm757_vm0, %v1497_v13 }
  0xfa   : > { %v1261_v14 = vpop.f32.mrb[0].mxu0 }
  0xfb   : > { %v1262_v16 = vpop.f32.mrb[1].mxu0  ;;  %v1301_v17 = vpop.f32.mrb[0].mxu1 }
  0xfc   : > { %v1263_v18 = vadd.f32 %v1262_v16, %v1261_v14  ;;  %v1264_v19 = vpop.f32.mrb[2].mxu0  ;;  %v1302_v20 = vpop.f32.mrb[1].mxu1 }
  0xfd   : > { %v1265_v21 = vpop.f32.mrb[3].mxu0  ;;  %v1303_v22 = vadd.f32 %v1302_v20, %v1301_v17  ;;  %v1304_v23 = vpop.f32.mrb[2].mxu1 }
  0xfe   : > { %v805_v24 = vadd.f32 %v1263_v18, %v1144_v15  ;;  %v1266_v25 = vadd.f32 %v1265_v21, %v1264_v19  ;;  %v1305_v26 = vpop.f32.mrb[3].mxu1 }
  0xff   : > { %v1306_v27 = vadd.f32 %v1305_v26, %v1304_v23 }
 0x100   : > { %v808_v28 = vadd.f32 %v1266_v25, %v1144_v15  ;;  %v870_v29 = vadd.f32 %v1303_v22, %v805_v24 }
 0x102   : > { %v1729_v30 = vadd.f32 %v1306_v27, %v808_v28  ;;  %v1267_v31 = vpop.f32.mrb[4].mxu0 }
 0x103   : > { %v1268_v32 = vpop.f32.mrb[5].mxu0  ;;  %v1307_v33 = vpop.f32.mrb[4].mxu1 }
 0x104   : > { %v1269_v34 = vadd.f32 %v1268_v32, %v1267_v31  ;;  %v1270_v35 = vpop.f32.mrb[6].mxu0  ;;  %v1308_v36 = vpop.f32.mrb[5].mxu1 }
 0x105   : > { %v1271_v37 = vpop.f32.mrb[7].mxu0  ;;  %v1309_v38 = vadd.f32 %v1308_v36, %v1307_v33  ;;  %v1310_v39 = vpop.f32.mrb[6].mxu1 }
 0x106   : > { %v813_v40 = vadd.f32 %v1269_v34, %v1144_v15  ;;  %v1272_v41 = vadd.f32 %v1271_v37, %v1270_v35  ;;  %v1311_v42 = vpop.f32.mrb[7].mxu1 }
 0x107   : > { %v1312_v43 = vadd.f32 %v1311_v42, %v1310_v39 }
 0x108   : > { %v816_v44 = vadd.f32 %v1272_v41, %v1144_v15  ;;  %v878_v45 = vadd.f32 %v1309_v38, %v813_v40 }
 0x10a   : > { %v1731_v46 = vadd.f32 %v1312_v43, %v816_v44  ;;  %v1273_v47 = vpop.f32.mrb[8].mxu0 }
 0x10b   : > { %v1274_v48 = vpop.f32.mrb[9].mxu0  ;;  %v1313_v49 = vpop.f32.mrb[8].mxu1 }
 0x10c   : > { %v1275_v50 = vadd.f32 %v1274_v48, %v1273_v47  ;;  %v1276_v51 = vpop.f32.mrb[10].mxu0  ;;  %v1314_v52 = vpop.f32.mrb[9].mxu1 }
 0x10d   : > { %v1277_v53 = vpop.f32.mrb[11].mxu0  ;;  %v1315_v54 = vadd.f32 %v1314_v52, %v1313_v49  ;;  %v1316_v55 = vpop.f32.mrb[10].mxu1 }
 0x10e   : > { %v821_v56 = vadd.f32 %v1275_v50, %v1144_v15  ;;  %v1278_v57 = vadd.f32 %v1277_v53, %v1276_v51  ;;  %v1317_v58 = vpop.f32.mrb[11].mxu1 }
 0x10f   : > { %v1318_v59 = vadd.f32 %v1317_v58, %v1316_v55 }
 0x110   : > { %v824_v60 = vadd.f32 %v1278_v57, %v1144_v15  ;;  %v1733_v61 = vadd.f32 %v1315_v54, %v821_v56 }
 0x112   : > { %v1735_v62 = vadd.f32 %v1318_v59, %v824_v60  ;;  %v1279_v63 = vpop.f32.mrb[12].mxu0 }
 0x113   : > { %v1280_v0 = vpop.f32.mrb[13].mxu0  ;;  %v1319_v1 = vpop.f32.mrb[12].mxu1 }
 0x114   : > { %v1281_v2 = vadd.f32 %v1280_v0, %v1279_v63  ;;  %v1282_v3 = vpop.f32.mrb[14].mxu0  ;;  %v1320_v4 = vpop.f32.mrb[13].mxu1 }
 0x115   : > { %v1283_v5 = vpop.f32.mrb[15].mxu0  ;;  %v1321_v6 = vadd.f32 %v1320_v4, %v1319_v1  ;;  %v1322_v7 = vpop.f32.mrb[14].mxu1 }
 0x116   : > { %v829_v8 = vadd.f32 %v1281_v2, %v1144_v15  ;;  %v1284_v9 = vadd.f32 %v1283_v5, %v1282_v3  ;;  %v1323_v10 = vpop.f32.mrb[15].mxu1 }
 0x117   : > { %v1324_v11 = vadd.f32 %v1323_v10, %v1322_v7 }
 0x118   : > { %v832_v12 = vadd.f32 %v1284_v9, %v1144_v15  ;;  %v894_v13 = vadd.f32 %v1321_v6, %v829_v8 }
 0x11a   : > { %v897_v14 = vadd.f32 %v1324_v11, %v832_v12 }
 0x11b   : > { %v1341_v16 = vpop.f32.mrb[16].mxu0  ;;  %v1359_v17 = vpop.f32.mrb[16].mxu1 }
 0x11c   : > { %v1342_v18 = vpop.f32.mrb[17].mxu0  ;;  %v1360_v20 = vpop.f32.mrb[17].mxu1 }
 0x11d   : > { %v1343_v19 = vadd.f32 %v1342_v18, %v1341_v16  ;;  %v1344_v21 = vpop.f32.mrb[18].mxu0  ;;  %v1361_v22 = vadd.f32 %v1360_v20, %v1359_v17  ;;  %v1362_v23 = vpop.f32.mrb[18].mxu1 }
 0x11e   : > { %v1345_v24 = vpop.f32.mrb[19].mxu0  ;;  %v1363_v26 = vpop.f32.mrb[19].mxu1 }
 0x11f   : > { %v1346_v25 = vadd.f32 %v1345_v24, %v1344_v21  ;;  %v935_v27 = vadd.f32 %v1343_v19, %v870_v29  ;;  %v1364_v28 = vadd.f32 %v1363_v26, %v1362_v23  ;;  %v959_v31 = vadd.f32 %v1361_v22, %v894_v13 }
 0x121   : > { %v938_v32 = vadd.f32 %v1346_v25, %v1729_v30  ;;  %v962_v15 = vadd.f32 %v1364_v28, %v897_v14 }
 0x123   : > { %v1347_v33 = vpop.f32.mrb[20].mxu0  ;;  %v1377_v34 = vpop.f32.mrb[20].mxu1 }
 0x124   : > { %v1348_v35 = vpop.f32.mrb[21].mxu0  ;;  %v999_v37 = vpop.f32.mrb[21].mxu1 }
 0x125   : > { %v1349_v36 = vadd.f32 %v1348_v35, %v1347_v33  ;;  %v1350_v38 = vpop.f32.mrb[22].mxu0  ;;  %v1000_v39 = vadd.f32 %v999_v37, %v935_v27  ;;  %v1378_v40 = vpop.f32.mrb[22].mxu1 }
 0x126   : > { %v1351_v41 = vpop.f32.mrb[23].mxu0  ;;  %v1002_v44 = vpop.f32.mrb[23].mxu1 }
 0x127   : > { %v943_v42 = vadd.f32 %v1349_v36, %v878_v45  ;;  %v1352_v43 = vadd.f32 %v1351_v41, %v1350_v38  ;;  %v1030_v47 = vmax.f32 %v1000_v39, 0.0  ;;  %v1003_v29 = vadd.f32 %v1002_v44, %v938_v32 }
 0x129   : > { %v1008_v30 = vadd.f32 %v1377_v34, %v943_v42  ;;  %v946_v48 = vadd.f32 %v1352_v43, %v1731_v46  ;;  %v1237_v49 = vpack.c.bf16 %v1030_v47, %v1030_v47  ;;  %v1031_v50 = vmax.f32 %v1003_v29, 0.0 }
 0x12b   : > { %v1032_v51 = vmax.f32 %v1008_v30, 0.0  ;;  %v1011_v45 = vadd.f32 %v1378_v40, %v946_v48  ;;  %v1353_v52 = vpop.f32.mrb[24].mxu0  ;;  %1071 = vst.msk [vmem:[%s1742_s24] sm:$0xf] %vm1070_vm1, %v1237_v49  ;;  %v1238_v53 = vpack.c.bf16 %v1031_v50, %v1031_v50  ;;  %v1381_v54 = vpop.f32.mrb[24].mxu1 }
 0x12c   : > { %v1354_v55 = vpop.f32.mrb[25].mxu0  ;;  %v1024_v58 = vadd.f32 %v1381_v54, %v959_v31  ;;  %v1015_v60 = vpop.f32.mrb[25].mxu1 }
 0x12d   : > { %v1239_v56 = vpack.c.bf16 %v1032_v51, %v1032_v51  ;;  %v1033_v57 = vmax.f32 %v1011_v45, 0.0  ;;  %v1355_v59 = vadd.f32 %v1354_v55, %v1353_v52  ;;  %v1356_v63 = vpop.f32.mrb[26].mxu0  ;;  %1072 = vst.msk [vmem:[%s1742_s24 + $0x4] sm:$0xf] %vm1070_vm1, %v1238_v53  ;;  %v1382_v46 = vpop.f32.mrb[26].mxu1 }
 0x12e   : > { %v1357_v0 = vpop.f32.mrb[27].mxu0  ;;  %v1036_v2 = vmax.f32 %v1024_v58, 0.0  ;;  %v1027_v4 = vadd.f32 %v1382_v46, %v962_v15  ;;  %v1018_v5 = vpop.f32.mrb[27].mxu1 }
 0x12f   : > { %1073 = vst.msk [vmem:[%s1742_s24 + $0x8] sm:$0xf] %vm1070_vm1, %v1239_v56  ;;  %v1240_v1 = vpack.c.bf16 %v1033_v57, %v1033_v57  ;;  %v951_v3 = vadd.f32 %v1355_v59, %v1733_v61  ;;  %v1358_v6 = vadd.f32 %v1357_v0, %v1356_v63 }
 0x130   : > { %v1243_v7 = vpack.c.bf16 %v1036_v2, %v1036_v2  ;;  %v1037_v9 = vmax.f32 %v1027_v4, 0.0 }
 0x131   : > { %1074 = vst.msk [vmem:[%s1742_s24 + $0xc] sm:$0xf] %vm1070_vm1, %v1240_v1  ;;  %v1016_v8 = vadd.f32 %v1015_v60, %v951_v3  ;;  %v954_v10 = vadd.f32 %v1358_v6, %v1735_v62 }
 0x132   : > { %1077 = vst.msk [vmem:[%s1742_s24 + $0x18] sm:$0xf] %vm1070_vm1, %v1243_v7  ;;  %v1244_v12 = vpack.c.bf16 %v1037_v9, %v1037_v9 }
 0x133   : > { %v1034_v11 = vmax.f32 %v1016_v8, 0.0  ;;  %v1019_v13 = vadd.f32 %v1018_v5, %v954_v10 }
 0x134   : > { %1078 = vst.msk [vmem:[%s1742_s24 + $0x1c] sm:$0xf] %vm1070_vm1, %v1244_v12 }
 0x135   : > { %v1241_v14 = vpack.c.bf16 %v1034_v11, %v1034_v11  ;;  %v1035_v61 = vmax.f32 %v1019_v13, 0.0 }
 0x137   : > { %1075 = vst.msk [vmem:[%s1742_s24 + $0x10] sm:$0xf] %vm1070_vm1, %v1241_v14  ;;  %v1242_v16 = vpack.c.bf16 %v1035_v61, %v1035_v61 }
 0x139   : > { %1076 = vst.msk [vmem:[%s1742_s24 + $0x14] sm:$0xf] %vm1070_vm1, %v1242_v16 }
 0x13a PF: > { %s13_s12 = sadd.s32 1, %s1504_s12  }
 0x13b   : > { %p10_p4 = scmp.ge.s32.totalorder %s13_s12, 4  }
 0x13d   :  { %12 = sbr.rel (!%p10_p4) target bundleno = 1 (0x1), region = 62 }

// kernel: dqn_forward.5
= control target key start
LH: loop header
LB: loop body
LE: loop exit
PB: predicated region body
PF: predicated region fallthrough
CT: control target
= control target key end

     0   :  { %v119_v30 = vlaneseq  ;;  %v11212_v33 = vmov 1966171168   ;;  %v11213_v36 = vmov 0.0   ;;  %vm11214_vm0 = vmmov 0   ;;  %s14951_s0 = inlined_call_operand.vmem [shape: bf16[16,2,576], index: 0, kind: input, shape index: {}]   ;;  %s14952_s1 = inlined_call_operand.vmem [shape: bf16[576,128], index: 1, kind: input, shape index: {}]   ;;  %s14953_s2 = inlined_call_operand.vmem [shape: f32[1,128], index: 2, kind: input, shape index: {}]   ;;  %s14954_s3 = inlined_call_operand.vmem [shape: bf16[16,128,512], index: 3, kind: input, shape index: {}]   ;;  %s14955_s4 = inlined_call_operand.vmem [shape: f32[1,512], index: 4, kind: input, shape index: {}]   ;;  %s14956_s5 = inlined_call_operand.vmem [shape: bf16[512,128], index: 5, kind: input, shape index: {}]   ;;  %s14957_s6 = inlined_call_operand.vmem [shape: f32[1,128], index: 6, kind: input, shape index: {}]   ;;  %s14958_s7 = inlined_call_operand.vmem [shape: bf16[128,128], index: 7, kind: input, shape index: {}]   ;;  %s14959_s8 = inlined_call_operand.vmem [shape: f32[1,128], index: 8, kind: input, shape index: {}]   ;;  %s14960_s9 = inlined_call_operand.hbm [shape: f32[2,128], index: 9, kind: output, shape index: {}]  }
   0x1   :  { %v11270_v0 = vld [vmem:[%s14952_s1 + $0x40] sm:$0xff]   ;;  %v11293_v4 = vld [vmem:[%s14952_s1 + $0x48] sm:$0xff]   ;;  %v11317_v8 = vld [vmem:[%s14952_s1 + $0x50] sm:$0xff]   ;;  %v117_v34 = vunpack.c.l.s4 %v11212_v33  ;;  %vm374_vm1 = vcmask 523264   ;;  %v11215_v33 = vmov 0  }
   0x2   :  { %v11275_v1 = vld [vmem:[%s14952_s1 + $0xc0] sm:$0xff]   ;;  %9127 = vmatprep.subr.bf16.mxu0 %v11270_v0  ;;  %v11299_v5 = vld [vmem:[%s14952_s1 + $0xc8] sm:$0xff]   ;;  %v11323_v9 = vld [vmem:[%s14952_s1 + $0xd0] sm:$0xff]   ;;  %v11459_v35 = vshrl.u32 %v119_v30, 7 }
   0x3   :  { %v11281_v2 = vld [vmem:[%s14952_s1] sm:$0xff]   ;;  %9149 = vmatprep.subr.bf16.mxu1 %v11275_v1  ;;  %v11305_v6 = vld [vmem:[%s14952_s1 + $0x8] sm:$0xff]   ;;  %v11329_v10 = vld [vmem:[%s14952_s1 + $0x10] sm:$0xff]   ;;  %v118_v37 = vunpack.c.0.s8 %v117_v34 }
   0x4   :  { %v11287_v3 = vld [vmem:[%s14952_s1 + $0x80] sm:$0xff]   ;;  %9128 = vmatpush3.bf16.msra.mxu0 %v11281_v2  ;;  %v11311_v7 = vld [vmem:[%s14952_s1 + $0x88] sm:$0xff]   ;;  %v11335_v11 = vld [vmem:[%s14952_s1 + $0x90] sm:$0xff]  }
   0x5   :  { %9150 = vmatpush3.bf16.msra.mxu1 %v11287_v3  ;;  %9129 = vmatprep.subr.bf16.mxu0 %v11293_v4  ;;  %v11341_v12 = vld [vmem:[%s14952_s1 + $0x58] sm:$0xff]   ;;  %v11365_v16 = vld [vmem:[%s14952_s1 + $0x60] sm:$0xff]   ;;  %v11389_v20 = vld [vmem:[%s14952_s1 + $0x68] sm:$0xff]   ;;  %v11472_v40 = vsub.s32 %v118_v37, %v11459_v35 }
   0x6   :  { %9151 = vmatprep.subr.bf16.mxu1 %v11299_v5  ;;  %v11347_v13 = vld [vmem:[%s14952_s1 + $0xd8] sm:$0xff]   ;;  %v11371_v17 = vld [vmem:[%s14952_s1 + $0xe0] sm:$0xff]   ;;  %v11395_v21 = vld [vmem:[%s14952_s1 + $0xe8] sm:$0xff]  }
   0x7   :  { %v11353_v14 = vld [vmem:[%s14952_s1 + $0x18] sm:$0xff]   ;;  %v11377_v18 = vld [vmem:[%s14952_s1 + $0x20] sm:$0xff]   ;;  %v11401_v22 = vld [vmem:[%s14952_s1 + $0x28] sm:$0xff]  }
   0x8   :  { %9130 = vmatpush3.bf16.msra.mxu0 %v11305_v6  ;;  %v11359_v15 = vld [vmem:[%s14952_s1 + $0x98] sm:$0xff]   ;;  %v11383_v19 = vld [vmem:[%s14952_s1 + $0xa0] sm:$0xff]   ;;  %v11407_v23 = vld [vmem:[%s14952_s1 + $0xa8] sm:$0xff]  }
   0x9   :  { %9152 = vmatpush3.bf16.msra.mxu1 %v11311_v7  ;;  %9131 = vmatprep.subr.bf16.mxu0 %v11317_v8  ;;  %v11413_v24 = vld [vmem:[%s14952_s1 + $0x70] sm:$0xff]   ;;  %v11437_v28 = vld [vmem:[%s14952_s1 + $0x78] sm:$0xff]   ;;  %v34_v38 = vld [vmem:[%s14951_s0] sm:$0x1f] }
   0xa   :  { %9153 = vmatprep.subr.bf16.mxu1 %v11323_v9  ;;  %v11419_v25 = vld [vmem:[%s14952_s1 + $0xf0] sm:$0xff]   ;;  %v11443_v29 = vld [vmem:[%s14952_s1 + $0xf8] sm:$0xff]   ;;  %v11469_v39 = vld [vmem:[%s14951_s0 + $0x5] sm:$0x1f]  ;;  %v122_v41 = vrot.slane %v34_v38, %v11472_v40  ;;  %v115_v54 = vcombine.high %v34_v38, %v34_v38 }
   0xb   :  { %v11425_v26 = vld [vmem:[%s14952_s1 + $0x30] sm:$0xff]   ;;  %v11449_v31 = vld [vmem:[%s14952_s1 + $0x38] sm:$0xff]   ;;  %v542_v42 = vrot.slane %v11469_v39, %v11472_v40  ;;  %v11482_v47 = vld [vmem:[%s14952_s1 + $0x100] sm:$0xff]   ;;  %v535_v60 = vcombine.high %v11469_v39, %v11469_v39 }
   0xc   :  { %9132 = vmatpush3.bf16.msra.mxu0 %v11329_v10  ;;  %v11431_v27 = vld [vmem:[%s14952_s1 + $0xb0] sm:$0xff]   ;;  %v11455_v32 = vld [vmem:[%s14952_s1 + $0xb8] sm:$0xff]   ;;  %v130_v43 = vcombine.high %v122_v41, %v122_v41  ;;  %v137_v44 = vrot.slane %v122_v41, %v11472_v40  ;;  %v10215_v52 = vld [vmem:[%s14952_s1 + $0x108] sm:$0xff]   ;;  %v129_v56 = vrot.slane %v115_v54, %v11472_v40 }
   0xd   :  { %9154 = vmatpush3.bf16.msra.mxu1 %v11335_v11  ;;  %9133 = vmatprep.subr.bf16.mxu0 %v11341_v12  ;;  %v550_v45 = vcombine.high %v542_v42, %v542_v42  ;;  %v10216_v53 = vld [vmem:[%s14952_s1 + $0x110] sm:$0xff]   ;;  %v10217_v55 = vld [vmem:[%s14952_s1 + $0x118] sm:$0xff]   ;;  %v557_v58 = vrot.slane %v542_v42, %v11472_v40  ;;  %v549_v61 = vrot.slane %v535_v60, %v11472_v40 }
   0xe   :  { %9155 = vmatprep.subr.bf16.mxu1 %v11347_v13  ;;  %v151_v46 = vrot.slane %v130_v43, %v11472_v40  ;;  %v152_v49 = vcombine.high %v137_v44, %v137_v44  ;;  %v144_v57 = vrot.slane %v129_v56, %v11472_v40  ;;  %v10219_v63 = vld [vmem:[%s14954_s3 + $0x100] ss:$16 sps:$4 sm:$0xff]   ;;  %v10264_v30 = vld [vmem:[%s14954_s3 + $0x1e8] ss:$16 sps:$4 sm:$0xff]  }
   0xf   :  { %v571_v48 = vrot.slane %v550_v45, %v11472_v40  ;;  %v572_v59 = vcombine.high %v557_v58, %v557_v58  ;;  %v564_v62 = vrot.slane %v549_v61, %v11472_v40 }
  0x10   :  { %9134 = vmatpush3.bf16.msra.mxu0 %v11353_v14  ;;  %410 = vmatprep.mubr.bf16.mxu0 %v151_v46  ;;  %v153_v50 = vcombine.high %v151_v46, %v151_v46 }
  0x11   :  { %9156 = vmatpush3.bf16.msra.mxu1 %v11359_v15  ;;  %9135 = vmatprep.subr.bf16.mxu0 %v11365_v16  ;;  %v573_v51 = vcombine.high %v571_v48, %v571_v48 }
  0x12   :  { %9157 = vmatprep.subr.bf16.mxu1 %v11371_v17  ;;  %450 = vmatprep.mubr.bf16.mxu1 %v153_v50 }
  0x14   :  { %9136 = vmatpush3.bf16.msra.mxu0 %v11377_v18 }
  0x15   :  { %9158 = vmatpush3.bf16.msra.mxu1 %v11383_v19  ;;  %9137 = vmatprep.subr.bf16.mxu0 %v11389_v20 }
  0x16   :  { %9159 = vmatprep.subr.bf16.mxu1 %v11395_v21 }
  0x18   :  { %9138 = vmatpush3.bf16.msra.mxu0 %v11401_v22 }
  0x19   :  { %9160 = vmatpush3.bf16.msra.mxu1 %v11407_v23  ;;  %9139 = vmatprep.subr.bf16.mxu0 %v11413_v24 }
  0x1a   :  { %9161 = vmatprep.subr.bf16.mxu1 %v11419_v25 }
  0x1c   :  { %9140 = vmatpush3.bf16.msra.mxu0 %v11425_v26 }
  0x1d   :  { %9162 = vmatpush3.bf16.msra.mxu1 %v11431_v27  ;;  %9141 = vmatprep.subr.bf16.mxu0 %v11437_v28 }
  0x1e   :  { %9163 = vmatprep.subr.bf16.mxu1 %v11443_v29 }
  0x20   :  { %9142 = vmatpush3.bf16.msra.mxu0 %v11449_v31 }
  0x21   :  { %9164 = vmatpush3.bf16.msra.mxu1 %v11455_v32  ;;  %9198 = vmatprep.subr.bf16.mxu0 %v11275_v1  ;;  %v10222_v1 = vld [vmem:[%s14954_s3 + $0x108] ss:$16 sps:$4 sm:$0xff]  }
  0x22   :  { %9964 = vmatprep.subr.bf16.mxu1 %v11213_v36 }
  0x23   :  { %411 = vmatmul.mubr.bf16.vlgmr.msra.gmra.mrb[0].mxu0 %v137_v44 }
  0x24   :  { %9199 = vmatpush3.bf16.msra.mxu0 %v11287_v3  ;;  %451 = vmatmul.mubr.bf16.vlgmr.msra.gmra.mrb[0].mxu1 %v152_v49  ;;  %v10227_v3 = vld [vmem:[%s14954_s3 + $0x124] ss:$16 sps:$4 sm:$0xff]  }
  0x25   :  { %9200 = vmatprep.subr.bf16.mxu0 %v11299_v5  ;;  %9965 = vmatpush3.bf16.msra.mxu1 %v11482_v47  ;;  %v10230_v5 = vld [vmem:[%s14954_s3 + $0x12c] ss:$16 sps:$4 sm:$0xff]  }
  0x26   :  { %9972 = vmatprep.mubr.msk.bf16.mxu1 %vm11214_vm0, %v11213_v36  ;;  %9966 = vmatprep.subr.bf16.mxu1 %v11213_v36 }
  0x27   :  { %653 = vmatprep.mubr.bf16.mxu0 %v573_v51 }
  0x28   :  { %9201 = vmatpush3.bf16.msra.mxu0 %v11311_v7  ;;  %v10233_v7 = vld [vmem:[%s14954_s3 + $0x144] ss:$16 sps:$4 sm:$0xff]  }
  0x29   :  { %9202 = vmatprep.subr.bf16.mxu0 %v11323_v9  ;;  %9967 = vmatpush3.bf16.msra.mxu1 %v10215_v52  ;;  %v10231_v9 = vld [vmem:[%s14954_s3 + $0x140] ss:$16 sps:$4 sm:$0xff]  }
  0x2a   :  { %9968 = vmatprep.subr.bf16.mxu1 %v11213_v36 }
  0x2c   :  { %9203 = vmatpush3.bf16.msra.mxu0 %v11335_v11  ;;  %v10239_v11 = vld [vmem:[%s14954_s3 + $0x164] ss:$16 sps:$4 sm:$0xff]  }
  0x2d   :  { %9204 = vmatprep.subr.bf16.mxu0 %v11347_v13  ;;  %9969 = vmatpush3.bf16.msra.mxu1 %v10216_v53  ;;  %v10237_v13 = vld [vmem:[%s14954_s3 + $0x160] ss:$16 sps:$4 sm:$0xff]  }
  0x2e   :  { %9970 = vmatprep.subr.bf16.mxu1 %v11213_v36 }
  0x30   :  { %9205 = vmatpush3.bf16.msra.mxu0 %v11359_v15  ;;  %v10243_v15 = vld [vmem:[%s14954_s3 + $0x180] ss:$16 sps:$4 sm:$0xff]  }
  0x31   :  { %9206 = vmatprep.subr.bf16.mxu0 %v11371_v17  ;;  %9971 = vmatpush3.bf16.msra.mxu1 %v10217_v55  ;;  %v10246_v17 = vld [vmem:[%s14954_s3 + $0x188] ss:$16 sps:$4 sm:$0xff]  }
  0x32   :  { %9176 = vmatprep.subr.bf16.mxu1 %v11270_v0  ;;  %v10221_v0 = vld [vmem:[%s14954_s3 + $0x104] ss:$16 sps:$4 sm:$0xff]  }
  0x34   :  { %9207 = vmatpush3.bf16.msra.mxu0 %v11383_v19  ;;  %9973 = vmatmul.mubr.msk.bf16.vlgmr.msra.gmra.mrb[4].mxu1 %vm374_vm1, %v144_v57  ;;  %v10251_v19 = vld [vmem:[%s14954_s3 + $0x1a4] ss:$16 sps:$4 sm:$0xff]  }
  0x35   :  { %9208 = vmatprep.subr.bf16.mxu0 %v11395_v21  ;;  %9177 = vmatpush3.bf16.msra.mxu1 %v11281_v2  ;;  %v10224_v2 = vld [vmem:[%s14954_s3 + $0x10c] ss:$16 sps:$4 sm:$0xff]  }
  0x36   :  { %613 = vmatprep.mubr.bf16.mxu1 %v571_v48  ;;  %9178 = vmatprep.subr.bf16.mxu1 %v11293_v4  ;;  %v10225_v4 = vld [vmem:[%s14954_s3 + $0x120] ss:$16 sps:$4 sm:$0xff]   ;;  %v10254_v21 = vld [vmem:[%s14954_s3 + $0x1ac] ss:$16 sps:$4 sm:$0xff]  }
  0x38   :  { %9209 = vmatpush3.bf16.msra.mxu0 %v11407_v23  ;;  %v10257_v23 = vld [vmem:[%s14954_s3 + $0x1c4] ss:$16 sps:$4 sm:$0xff]  }
  0x39   :  { %9210 = vmatprep.subr.bf16.mxu0 %v11419_v25  ;;  %9179 = vmatpush3.bf16.msra.mxu1 %v11305_v6  ;;  %v10228_v6 = vld [vmem:[%s14954_s3 + $0x128] ss:$16 sps:$4 sm:$0xff]   ;;  %v10255_v25 = vld [vmem:[%s14954_s3 + $0x1c0] ss:$16 sps:$4 sm:$0xff]  }
  0x3a   :  { %9180 = vmatprep.subr.bf16.mxu1 %v11317_v8  ;;  %v10236_v8 = vld [vmem:[%s14954_s3 + $0x14c] ss:$16 sps:$4 sm:$0xff]  }
  0x3c   :  { %9211 = vmatpush3.bf16.msra.mxu0 %v11431_v27  ;;  %v10263_v27 = vld [vmem:[%s14954_s3 + $0x1e4] ss:$16 sps:$4 sm:$0xff]  }
  0x3d   :  { %9212 = vmatprep.subr.bf16.mxu0 %v11443_v29  ;;  %9181 = vmatpush3.bf16.msra.mxu1 %v11329_v10  ;;  %v10234_v10 = vld [vmem:[%s14954_s3 + $0x148] ss:$16 sps:$4 sm:$0xff]   ;;  %v10261_v29 = vld [vmem:[%s14954_s3 + $0x1e0] ss:$16 sps:$4 sm:$0xff]  }
  0x3e   :  { %9182 = vmatprep.subr.bf16.mxu1 %v11341_v12  ;;  %v10242_v12 = vld [vmem:[%s14954_s3 + $0x16c] ss:$16 sps:$4 sm:$0xff]  }
  0x40   :  { %9213 = vmatpush3.bf16.msra.mxu0 %v11455_v32  ;;  %v10272_v32 = vld [vmem:[%s14954_s3 + $0xc] ss:$16 sps:$4 sm:$0xff]  }
  0x41   :  { %9183 = vmatpush3.bf16.msra.mxu1 %v11353_v14  ;;  %896 = vmatprep.subr.bf16.mxu0 %v10221_v0  ;;  %v10240_v14 = vld [vmem:[%s14954_s3 + $0x168] ss:$16 sps:$4 sm:$0xff]  }
  0x42   :  { %9184 = vmatprep.subr.bf16.mxu1 %v11365_v16  ;;  %v10245_v16 = vld [vmem:[%s14954_s3 + $0x184] ss:$16 sps:$4 sm:$0xff]  }
  0x43   :  { %654 = vmatmul.mubr.bf16.vlgmr.msra.gmra.mrb[4].mxu0 %v572_v59 }
  0x44   :  { %897 = vmatpush1.bf16.msra.mxu0 %v10219_v63  ;;  %928 = vmatprep.mubr.bf16.mxu0 %v11215_v33 }
  0x45   :  { %9185 = vmatpush3.bf16.msra.mxu1 %v11377_v18  ;;  %898 = vmatprep.subr.bf16.mxu0 %v10227_v3  ;;  %v10248_v18 = vld [vmem:[%s14954_s3 + $0x18c] ss:$16 sps:$4 sm:$0xff]  }
  0x46   :  { %9186 = vmatprep.subr.bf16.mxu1 %v11389_v20  ;;  %v10249_v20 = vld [vmem:[%s14954_s3 + $0x1a0] ss:$16 sps:$4 sm:$0xff]  }
  0x48   :  { %899 = vmatpush1.bf16.msra.mxu0 %v10225_v4 }
  0x49   :  { %9187 = vmatpush3.bf16.msra.mxu1 %v11401_v22  ;;  %900 = vmatprep.subr.bf16.mxu0 %v10233_v7  ;;  %v10252_v22 = vld [vmem:[%s14954_s3 + $0x1a8] ss:$16 sps:$4 sm:$0xff]  }
  0x4a   :  { %9188 = vmatprep.subr.bf16.mxu1 %v11413_v24  ;;  %v10260_v24 = vld [vmem:[%s14954_s3 + $0x1cc] ss:$16 sps:$4 sm:$0xff]  }
  0x4c   :  { %901 = vmatpush1.bf16.msra.mxu0 %v10231_v9 }
  0x4d   :  { %9189 = vmatpush3.bf16.msra.mxu1 %v11425_v26  ;;  %902 = vmatprep.subr.bf16.mxu0 %v10239_v11  ;;  %v10258_v26 = vld [vmem:[%s14954_s3 + $0x1c8] ss:$16 sps:$4 sm:$0xff]  }
  0x4e   :  { %9190 = vmatprep.subr.bf16.mxu1 %v11437_v28  ;;  %v10266_v28 = vld [vmem:[%s14954_s3 + $0x1ec] ss:$16 sps:$4 sm:$0xff]  }
  0x50   :  { %903 = vmatpush1.bf16.msra.mxu0 %v10237_v13 }
  0x51   :  { %9191 = vmatpush3.bf16.msra.mxu1 %v11449_v31  ;;  %904 = vmatprep.subr.bf16.mxu0 %v10245_v16  ;;  %v10269_v31 = vld [vmem:[%s14954_s3 + $0x4] ss:$16 sps:$4 sm:$0xff]  }
  0x52   :  { %9976 = vmatprep.subr.bf16.mxu1 %v11213_v36 }
  0x54   :  { %614 = vmatmul.mubr.bf16.vlgmr.msra.gmra.mrb[8].mxu1 %v557_v58  ;;  %905 = vmatpush1.bf16.msra.mxu0 %v10243_v15 }
  0x55   :  { %9977 = vmatpush3.bf16.msra.mxu1 %v11482_v47  ;;  %9984 = vmatprep.mubr.msk.bf16.mxu1 %vm11214_vm0, %v11213_v36 }
  0x56   :  { %9978 = vmatprep.subr.bf16.mxu1 %v11213_v36  ;;  %906 = vmatprep.subr.bf16.mxu0 %v10251_v19 }
  0x58   :  { %907 = vmatpush1.bf16.msra.mxu0 %v10249_v20 }
  0x59   :  { %9979 = vmatpush3.bf16.msra.mxu1 %v10215_v52  ;;  %908 = vmatprep.subr.bf16.mxu0 %v10257_v23 }
  0x5a   :  { %9980 = vmatprep.subr.bf16.mxu1 %v11213_v36 }
  0x5c   :  { %909 = vmatpush1.bf16.msra.mxu0 %v10255_v25 }
  0x5d   :  { %9981 = vmatpush3.bf16.msra.mxu1 %v10216_v53  ;;  %910 = vmatprep.subr.bf16.mxu0 %v10263_v27 }
  0x5e   :  { %9982 = vmatprep.subr.bf16.mxu1 %v11213_v36 }
  0x60   :  { %911 = vmatpush1.bf16.msra.mxu0 %v10261_v29 }
  0x61   :  { %9983 = vmatpush3.bf16.msra.mxu1 %v10217_v55  ;;  %1138 = vmatprep.subr.bf16.mxu0 %v10269_v31 }
  0x62   :  { %937 = vmatprep.subr.bf16.mxu1 %v10224_v2 }
  0x64   :  { %9985 = vmatmul.mubr.msk.bf16.vlgmr.msra.gmra.mrb[12].mxu1 %vm374_vm1, %v564_v62 }
  0x65   :  { %938 = vmatpush1.bf16.msra.mxu1 %v10222_v1  ;;  %969 = vmatprep.mubr.bf16.mxu1 %v11215_v33 }
  0x66   :  { %939 = vmatprep.subr.bf16.mxu1 %v10230_v5 }
  0x69   :  { %940 = vmatpush1.bf16.msra.mxu1 %v10228_v6 }
  0x6a   :  { %941 = vmatprep.subr.bf16.mxu1 %v10236_v8 }
  0x6d   :  { %942 = vmatpush1.bf16.msra.mxu1 %v10234_v10 }
  0x6e   :  { %943 = vmatprep.subr.bf16.mxu1 %v10242_v12 }
  0x71   :  { %944 = vmatpush1.bf16.msra.mxu1 %v10240_v14 }
  0x72   :  { %945 = vmatprep.subr.bf16.mxu1 %v10248_v18 }
  0x75   :  { %946 = vmatpush1.bf16.msra.mxu1 %v10246_v17 }
  0x76   :  { %947 = vmatprep.subr.bf16.mxu1 %v10254_v21 }
  0x79   :  { %948 = vmatpush1.bf16.msra.mxu1 %v10252_v22 }
  0x7a   :  { %949 = vmatprep.subr.bf16.mxu1 %v10260_v24 }
  0x7d   :  { %950 = vmatpush1.bf16.msra.mxu1 %v10258_v26 }
  0x7e   :  { %951 = vmatprep.subr.bf16.mxu1 %v10266_v28 }
  0x81   :  { %952 = vmatpush1.bf16.msra.mxu1 %v10264_v30 }
  0x82   :  { %1179 = vmatprep.subr.bf16.mxu1 %v10272_v32 }
  0x83   :  { %14 = vsyncpa [#allocation3], 0  ;;  %v11654_v37 = vld [vmem:[%s14953_s2] ss:$0 sm:$0xff]  ;;  %v10270_v10 = vld [vmem:[%s14954_s3 + $0x8] ss:$16 sps:$4 sm:$0xff]  }
  0x84   :  { %v10267_v9 = vld [vmem:[%s14954_s3] ss:$16 sps:$4 sm:$0xff]   ;;  %v10275_v12 = vld [vmem:[%s14954_s3 + $0x24] ss:$16 sps:$4 sm:$0xff]   ;;  %v10278_v13 = vld [vmem:[%s14954_s3 + $0x2c] ss:$16 sps:$4 sm:$0xff]  }
  0x85   :  { %v10273_v14 = vld [vmem:[%s14954_s3 + $0x20] ss:$16 sps:$4 sm:$0xff]   ;;  %v10276_v15 = vld [vmem:[%s14954_s3 + $0x28] ss:$16 sps:$4 sm:$0xff]   ;;  %v10281_v16 = vld [vmem:[%s14954_s3 + $0x44] ss:$16 sps:$4 sm:$0xff]  }
  0x86   :  { %v10284_v17 = vld [vmem:[%s14954_s3 + $0x4c] ss:$16 sps:$4 sm:$0xff]   ;;  %v10279_v18 = vld [vmem:[%s14954_s3 + $0x40] ss:$16 sps:$4 sm:$0xff]   ;;  %v10282_v19 = vld [vmem:[%s14954_s3 + $0x48] ss:$16 sps:$4 sm:$0xff]  }
  0x87   :  { %v10287_v20 = vld [vmem:[%s14954_s3 + $0x64] ss:$16 sps:$4 sm:$0xff]   ;;  %v10290_v21 = vld [vmem:[%s14954_s3 + $0x6c] ss:$16 sps:$4 sm:$0xff]   ;;  %v10285_v22 = vld [vmem:[%s14954_s3 + $0x60] ss:$16 sps:$4 sm:$0xff]  }
  0x88   :  { %v10288_v23 = vld [vmem:[%s14954_s3 + $0x68] ss:$16 sps:$4 sm:$0xff]   ;;  %v10293_v24 = vld [vmem:[%s14954_s3 + $0x84] ss:$16 sps:$4 sm:$0xff]   ;;  %v10296_v25 = vld [vmem:[%s14954_s3 + $0x8c] ss:$16 sps:$4 sm:$0xff]  }
  0x89   :  { %v10291_v26 = vld [vmem:[%s14954_s3 + $0x80] ss:$16 sps:$4 sm:$0xff]   ;;  %v10294_v27 = vld [vmem:[%s14954_s3 + $0x88] ss:$16 sps:$4 sm:$0xff]   ;;  %v10299_v28 = vld [vmem:[%s14954_s3 + $0xa4] ss:$16 sps:$4 sm:$0xff]  }
  0x8a   :  { %v10302_v29 = vld [vmem:[%s14954_s3 + $0xac] ss:$16 sps:$4 sm:$0xff]   ;;  %v10297_v31 = vld [vmem:[%s14954_s3 + $0xa0] ss:$16 sps:$4 sm:$0xff]   ;;  %v10300_v32 = vld [vmem:[%s14954_s3 + $0xa8] ss:$16 sps:$4 sm:$0xff]  }
  0x8b   :  { %v11725_v30 = vld [vmem:[%s14951_s0 + $0xa] sm:$0x1f]  ;;  %s11216_s11 = smov [#allocation2]  }
  0xf6   :  { %v9143_v34 = vpop.f32.mrb[0].mxu0 }
  0xf7   :  { %v9144_v38 = vpop.f32.mrb[1].mxu0  ;;  %v9165_v39 = vpop.f32.mrb[0].mxu1 }
  0xf8   :  { %v9145_v41 = vadd.f32 %v9144_v38, %v9143_v34  ;;  %v9146_v42 = vpop.f32.mrb[2].mxu0  ;;  %v9166_v43 = vpop.f32.mrb[1].mxu1  ;;  %v10305_v34 = vld [vmem:[%s14954_s3 + $0xc4] ss:$16 sps:$4 sm:$0xff]   ;;  %v10308_v38 = vld [vmem:[%s14954_s3 + $0xcc] ss:$16 sps:$4 sm:$0xff]  }
  0xf9   :  { %v9147_v44 = vpop.f32.mrb[3].mxu0  ;;  %v9167_v46 = vadd.f32 %v9166_v43, %v9165_v39  ;;  %v9168_v47 = vpop.f32.mrb[2].mxu1  ;;  %v11741_v39 = vrot.slane %v11725_v30, %v11472_v40  ;;  %v10306_v42 = vld [vmem:[%s14954_s3 + $0xc8] ss:$16 sps:$4 sm:$0xff]   ;;  %v10311_v43 = vld [vmem:[%s14954_s3 + $0xe4] ss:$16 sps:$4 sm:$0xff]  }
  0xfa   :  { %v413_v45 = vadd.f32 %v9145_v41, %v11654_v37  ;;  %v9169_v48 = vpop.f32.mrb[3].mxu1  ;;  %v10303_v41 = vld [vmem:[%s14954_s3 + $0xc0] ss:$16 sps:$4 sm:$0xff]   ;;  %v10314_v44 = vld [vmem:[%s14954_s3 + $0xec] ss:$16 sps:$4 sm:$0xff]  }
  0xfb   :  { %v10312_v47 = vld [vmem:[%s14954_s3 + $0xe8] ss:$16 sps:$4 sm:$0xff]  }
  0xfc   :  { %v453_v49 = vadd.f32 %v9167_v46, %v413_v45  ;;  %v1238_v45 = vcombine.high %v11741_v39, %v11741_v39  ;;  %v10309_v46 = vld [vmem:[%s14954_s3 + $0xe0] ss:$16 sps:$4 sm:$0xff]  }
 0x107   :  { %v492_v50 = vpop.f32.mrb[4].mxu1 }
 0x108   :  { %v11657_v51 = vadd.f32 %v492_v50, %v453_v49  ;;  %v9974_v52 = vpop.f32.mrb[5].mxu1  ;;  %v1259_v49 = vrot.slane %v1238_v45, %v11472_v40  ;;  %v10331_v45 = vld [vmem:[%s14954_s3 + $0x248] ss:$16 sps:$4 sm:$0xff]  }
 0x109   :  { %v495_v53 = vpop.f32.mrb[6].mxu1  ;;  %v11768_v52 = vld [vmem:[%s14952_s1 + $0x40] sm:$0xff]  }
 0x10a   :  { %v9975_v54 = vpop.f32.mrb[7].mxu1  ;;  %v498_v48 = vmax.f32 %v11657_v51, 0.0  ;;  %v11774_v53 = vld [vmem:[%s14952_s1 + $0xc0] sm:$0xff]   ;;  %v1261_v51 = vcombine.high %v1259_v49, %v1259_v49 }
 0x10b   :  { %v11780_v54 = vld [vmem:[%s14952_s1] sm:$0xff]  }
 0x10c   :  { %v499_v50 = vpack.c.bf16 %v498_v48, %v498_v48  ;;  %v10339_v48 = vld [vmem:[%s14954_s3 + $0x26c] ss:$16 sps:$4 sm:$0xff]  }
 0x116   :  { %v9214_v55 = vpop.f32.mrb[4].mxu0 }
 0x117   :  { %v9215_v56 = vpop.f32.mrb[5].mxu0 }
 0x118   :  { %v9216_v57 = vadd.f32 %v9215_v56, %v9214_v55  ;;  %v9217_v58 = vpop.f32.mrb[6].mxu0  ;;  %v11786_v55 = vld [vmem:[%s14952_s1 + $0x80] sm:$0xff]   ;;  %v11792_v56 = vld [vmem:[%s14952_s1 + $0x48] sm:$0xff]  }
 0x119   :  { %v9218_v59 = vpop.f32.mrb[7].mxu0  ;;  %v11804_v58 = vld [vmem:[%s14952_s1 + $0x8] sm:$0xff]  }
 0x11a   :  { %v11810_v59 = vld [vmem:[%s14952_s1 + $0x88] sm:$0xff]  }
 0x127   :  { %v9192_v60 = vpop.f32.mrb[8].mxu1 }
 0x128   :  { %v9193_v61 = vpop.f32.mrb[9].mxu1 }
 0x129   :  { %v9194_v62 = vadd.f32 %v9193_v61, %v9192_v60  ;;  %v9195_v63 = vpop.f32.mrb[10].mxu1  ;;  %v11816_v60 = vld [vmem:[%s14952_s1 + $0x50] sm:$0xff]  }
 0x12a   :  { %v9196_v0 = vpop.f32.mrb[11].mxu1  ;;  %v11822_v61 = vld [vmem:[%s14952_s1 + $0xd0] sm:$0xff]  }
 0x12b   :  { %v616_v1 = vadd.f32 %v9194_v62, %v11654_v37  ;;  %v11828_v62 = vld [vmem:[%s14952_s1 + $0x10] sm:$0xff]   ;;  %v11840_v0 = vld [vmem:[%s14952_s1 + $0x58] sm:$0xff]  }
 0x12c   :  { %v11834_v63 = vld [vmem:[%s14952_s1 + $0x90] sm:$0xff]  }
 0x12d   :  { %v656_v2 = vadd.f32 %v9216_v57, %v616_v1  ;;  %v11798_v57 = vld [vmem:[%s14952_s1 + $0xc8] sm:$0xff]   ;;  %v11846_v1 = vld [vmem:[%s14952_s1 + $0xd8] sm:$0xff]  }
 0x137   :  { %v695_v3 = vpop.f32.mrb[12].mxu1 }
 0x138   :  { %v696_v4 = vadd.f32 %v695_v3, %v656_v2  ;;  %v9986_v5 = vpop.f32.mrb[13].mxu1  ;;  %v11852_v2 = vld [vmem:[%s14952_s1 + $0x18] sm:$0xff]  }
 0x139   :  { %v698_v6 = vpop.f32.mrb[14].mxu1  ;;  %v11858_v3 = vld [vmem:[%s14952_s1 + $0x98] sm:$0xff]   ;;  %v11870_v5 = vld [vmem:[%s14952_s1 + $0xe0] sm:$0xff]  }
 0x13a   :  { %v701_v7 = vmax.f32 %v696_v4, 0.0  ;;  %v9987_v8 = vpop.f32.mrb[15].mxu1  ;;  %v11864_v4 = vld [vmem:[%s14952_s1 + $0x60] sm:$0xff]  }
 0x13b   :  { %v11876_v6 = vld [vmem:[%s14952_s1 + $0x20] sm:$0xff]   ;;  %v11888_v8 = vld [vmem:[%s14952_s1 + $0x68] sm:$0xff]  }
 0x13c   :  { %v702_v11 = vpack.c.bf16 %v701_v7, %v701_v7  ;;  %v11882_v7 = vld [vmem:[%s14952_s1 + $0xa0] sm:$0xff]  }
 0x13e   :  { %929 = vmatmul.mubr.bf16.vlgmr.msra.gmra.mrb[8].mxu0 %v702_v11  ;;  %970 = vmatmul.mubr.bf16.vlgmr.msra.gmra.mrb[16].mxu1 %v702_v11  ;;  %v11906_v11 = vld [vmem:[%s14952_s1 + $0xa8] sm:$0xff]  }
 0x13f   :  { %1139 = vmatpush1.bf16.msra.mxu0 %v10267_v9  ;;  %1180 = vmatpush1.bf16.msra.mxu1 %v10270_v10  ;;  %v11894_v9 = vld [vmem:[%s14952_s1 + $0xe8] sm:$0xff]  }
 0x140   :  { %1140 = vmatprep.subr.bf16.mxu0 %v10275_v12  ;;  %1181 = vmatprep.subr.bf16.mxu1 %v10278_v13  ;;  %v11900_v10 = vld [vmem:[%s14952_s1 + $0x28] sm:$0xff]   ;;  %v11912_v12 = vld [vmem:[%s14952_s1 + $0x70] sm:$0xff]  }
 0x141   :  { %1170 = vmatprep.mubr.bf16.mxu0 %v11215_v33  ;;  %1211 = vmatprep.mubr.bf16.mxu1 %v11215_v33  ;;  %v11918_v13 = vld [vmem:[%s14952_s1 + $0xf0] sm:$0xff]  }
 0x143   :  { %1141 = vmatpush1.bf16.msra.mxu0 %v10273_v14  ;;  %1182 = vmatpush1.bf16.msra.mxu1 %v10276_v15  ;;  %v1245_v14 = vrot.slane %v11741_v39, %v11472_v40  ;;  %v11926_v15 = vld [vmem:[%s14952_s1 + $0x30] sm:$0xff]  }
 0x144   :  { %1142 = vmatprep.subr.bf16.mxu0 %v10281_v16  ;;  %1183 = vmatprep.subr.bf16.mxu1 %v10284_v17  ;;  %v11932_v16 = vld [vmem:[%s14952_s1 + $0xb0] sm:$0xff]   ;;  %v11938_v17 = vld [vmem:[%s14952_s1 + $0x78] sm:$0xff]  }
 0x145   :  { %v10322_v39 = vld [vmem:[%s14954_s3 + $0x220] ss:$16 sps:$4 sm:$0xff]  }
 0x147   :  { %1143 = vmatpush1.bf16.msra.mxu0 %v10279_v18  ;;  %1184 = vmatpush1.bf16.msra.mxu1 %v10282_v19  ;;  %v11944_v18 = vld [vmem:[%s14952_s1 + $0xf8] sm:$0xff]   ;;  %v1260_v19 = vcombine.high %v1245_v14, %v1245_v14 }
 0x148   :  { %1144 = vmatprep.subr.bf16.mxu0 %v10287_v20  ;;  %1185 = vmatprep.subr.bf16.mxu1 %v10290_v21  ;;  %v11950_v20 = vld [vmem:[%s14952_s1 + $0x38] sm:$0xff]  }
 0x149   :  { %v11956_v21 = vld [vmem:[%s14952_s1 + $0xb8] sm:$0xff]  }
 0x14b   :  { %1145 = vmatpush1.bf16.msra.mxu0 %v10285_v22  ;;  %1186 = vmatpush1.bf16.msra.mxu1 %v10288_v23  ;;  %v11963_v22 = vld [vmem:[%s14952_s1 + $0x100] sm:$0xff]   ;;  %v1223_v23 = vcombine.high %v11725_v30, %v11725_v30 }
 0x14c   :  { %1146 = vmatprep.subr.bf16.mxu0 %v10293_v24  ;;  %1187 = vmatprep.subr.bf16.mxu1 %v10296_v25  ;;  %v11975_v24 = vld [vmem:[%s14952_s1 + $0x108] sm:$0xff]   ;;  %v10318_v30 = vld [vmem:[%s14954_s3 + $0x204] ss:$16 sps:$4 sm:$0xff]  }
 0x14d   :  { %v1237_v25 = vrot.slane %v1223_v23, %v11472_v40  ;;  %v10348_v23 = vld [vmem:[%s14954_s3 + $0x2a4] ss:$16 sps:$4 sm:$0xff]  }
 0x14f   :  { %1147 = vmatpush1.bf16.msra.mxu0 %v10291_v26  ;;  %1188 = vmatpush1.bf16.msra.mxu1 %v10294_v27  ;;  %v11983_v26 = vld [vmem:[%s14952_s1 + $0x110] sm:$0xff]   ;;  %v1252_v27 = vrot.slane %v1237_v25, %v11472_v40  ;;  %v10351_v25 = vld [vmem:[%s14954_s3 + $0x2ac] ss:$16 sps:$4 sm:$0xff]  }
 0x150   :  { %1148 = vmatprep.subr.bf16.mxu0 %v10299_v28  ;;  %1189 = vmatprep.subr.bf16.mxu1 %v10302_v29  ;;  %v11991_v28 = vld [vmem:[%s14952_s1 + $0x118] sm:$0xff]   ;;  %v10316_v29 = vld [vmem:[%s14954_s3 + $0x200] ss:$16 sps:$4 sm:$0xff]  }
 0x153   :  { %1149 = vmatpush1.bf16.msra.mxu0 %v10297_v31  ;;  %1190 = vmatpush1.bf16.msra.mxu1 %v10300_v32  ;;  %v10319_v31 = vld [vmem:[%s14954_s3 + $0x208] ss:$16 sps:$4 sm:$0xff]   ;;  %v10321_v32 = vld [vmem:[%s14954_s3 + $0x20c] ss:$16 sps:$4 sm:$0xff]  }
 0x154   :  { %1150 = vmatprep.subr.bf16.mxu0 %v10305_v34  ;;  %1191 = vmatprep.subr.bf16.mxu1 %v10308_v38  ;;  %v10324_v34 = vld [vmem:[%s14954_s3 + $0x224] ss:$16 sps:$4 sm:$0xff]   ;;  %v10327_v38 = vld [vmem:[%s14954_s3 + $0x22c] ss:$16 sps:$4 sm:$0xff]  }
 0x157   :  { %1151 = vmatpush1.bf16.msra.mxu0 %v10303_v41  ;;  %1192 = vmatpush1.bf16.msra.mxu1 %v10306_v42  ;;  %v10325_v41 = vld [vmem:[%s14954_s3 + $0x228] ss:$16 sps:$4 sm:$0xff]   ;;  %v10330_v42 = vld [vmem:[%s14954_s3 + $0x244] ss:$16 sps:$4 sm:$0xff]  }
 0x158   :  { %1152 = vmatprep.subr.bf16.mxu0 %v10311_v43  ;;  %1193 = vmatprep.subr.bf16.mxu1 %v10314_v44  ;;  %v10333_v43 = vld [vmem:[%s14954_s3 + $0x24c] ss:$16 sps:$4 sm:$0xff]   ;;  %v10328_v44 = vld [vmem:[%s14954_s3 + $0x240] ss:$16 sps:$4 sm:$0xff]  }
 0x15b   :  { %1153 = vmatpush1.bf16.msra.mxu0 %v10309_v46  ;;  %1194 = vmatpush1.bf16.msra.mxu1 %v10312_v47  ;;  %v10336_v46 = vld [vmem:[%s14954_s3 + $0x264] ss:$16 sps:$4 sm:$0xff]   ;;  %v10334_v47 = vld [vmem:[%s14954_s3 + $0x260] ss:$16 sps:$4 sm:$0xff]  }
 0x15c   :  { %9225 = vmatprep.subr.bf16.mxu0 %v11768_v52  ;;  %9247 = vmatprep.subr.bf16.mxu1 %v11774_v53 }
 0x15e   :  { %1171 = vmatmul.mubr.bf16.vlgmr.msra.gmra.mrb[12].mxu0 %v499_v50  ;;  %1212 = vmatmul.mubr.bf16.vlgmr.msra.gmra.mrb[20].mxu1 %v499_v50  ;;  %v10340_v50 = vld [vmem:[%s14954_s3 + $0x280] ss:$16 sps:$4 sm:$0xff]  }
 0x15f   :  { %9226 = vmatpush3.bf16.msra.mxu0 %v11780_v54  ;;  %9248 = vmatpush3.bf16.msra.mxu1 %v11786_v55 }
 0x160   :  { %9227 = vmatprep.subr.bf16.mxu0 %v11792_v56  ;;  %9249 = vmatprep.subr.bf16.mxu1 %v11798_v57 }
 0x161   :  { %1301 = vmatprep.mubr.bf16.mxu0 %v1259_v49  ;;  %1341 = vmatprep.mubr.bf16.mxu1 %v1261_v51  ;;  %v10337_v49 = vld [vmem:[%s14954_s3 + $0x268] ss:$16 sps:$4 sm:$0xff]   ;;  %v10342_v51 = vld [vmem:[%s14954_s3 + $0x284] ss:$16 sps:$4 sm:$0xff]  }
 0x163   :  { %9228 = vmatpush3.bf16.msra.mxu0 %v11804_v58  ;;  %9250 = vmatpush3.bf16.msra.mxu1 %v11810_v59 }
 0x164   :  { %9229 = vmatprep.subr.bf16.mxu0 %v11816_v60  ;;  %9251 = vmatprep.subr.bf16.mxu1 %v11822_v61 }
 0x167   :  { %9230 = vmatpush3.bf16.msra.mxu0 %v11828_v62  ;;  %9252 = vmatpush3.bf16.msra.mxu1 %v11834_v63 }
 0x168   :  { %9231 = vmatprep.subr.bf16.mxu0 %v11840_v0  ;;  %9253 = vmatprep.subr.bf16.mxu1 %v11846_v1 }
 0x16b   :  { %9232 = vmatpush3.bf16.msra.mxu0 %v11852_v2  ;;  %9254 = vmatpush3.bf16.msra.mxu1 %v11858_v3 }
 0x16c   :  { %9233 = vmatprep.subr.bf16.mxu0 %v11864_v4  ;;  %9255 = vmatprep.subr.bf16.mxu1 %v11870_v5 }
 0x16f   :  { %9234 = vmatpush3.bf16.msra.mxu0 %v11876_v6  ;;  %9256 = vmatpush3.bf16.msra.mxu1 %v11882_v7 }
 0x170   :  { %9235 = vmatprep.subr.bf16.mxu0 %v11888_v8  ;;  %9257 = vmatprep.subr.bf16.mxu1 %v11894_v9 }
 0x173   :  { %9236 = vmatpush3.bf16.msra.mxu0 %v11900_v10  ;;  %9258 = vmatpush3.bf16.msra.mxu1 %v11906_v11 }
 0x174   :  { %9237 = vmatprep.subr.bf16.mxu0 %v11912_v12  ;;  %9259 = vmatprep.subr.bf16.mxu1 %v11918_v13 }
 0x177   :  { %9238 = vmatpush3.bf16.msra.mxu0 %v11926_v15  ;;  %9260 = vmatpush3.bf16.msra.mxu1 %v11932_v16 }
 0x178   :  { %9239 = vmatprep.subr.bf16.mxu0 %v11938_v17  ;;  %9261 = vmatprep.subr.bf16.mxu1 %v11944_v18 }
 0x17b   :  { %9240 = vmatpush3.bf16.msra.mxu0 %v11950_v20  ;;  %9262 = vmatpush3.bf16.msra.mxu1 %v11956_v21 }
 0x17c   :  { %9988 = vmatprep.subr.bf16.mxu0 %v11213_v36  ;;  %1584 = vmatprep.subr.bf16.mxu1 %v10318_v30  ;;  %v10354_v30 = vld [vmem:[%s14954_s3 + $0x2c4] ss:$16 sps:$4 sm:$0xff]  }
 0x17e   :  { %1302 = vmatmul.mubr.bf16.vlgmr.msra.gmra.mrb[16].mxu0 %v1245_v14  ;;  %1342 = vmatmul.mubr.bf16.vlgmr.msra.gmra.mrb[24].mxu1 %v1260_v19  ;;  %v10343_v14 = vld [vmem:[%s14954_s3 + $0x288] ss:$16 sps:$4 sm:$0xff]   ;;  %v10345_v19 = vld [vmem:[%s14954_s3 + $0x28c] ss:$16 sps:$4 sm:$0xff]  }
 0x17f   :  { %9989 = vmatpush3.bf16.msra.mxu0 %v11963_v22  ;;  %9996 = vmatprep.mubr.msk.bf16.mxu0 %vm11214_vm0, %v11213_v36 }
 0x180   :  { %9990 = vmatprep.subr.bf16.mxu0 %v11213_v36  ;;  %1616 = vmatprep.mubr.bf16.mxu1 %v11215_v33 }
 0x181   :  { %1585 = vmatpush1.bf16.msra.mxu1 %v10316_v29  ;;  %v10349_v29 = vld [vmem:[%s14954_s3 + $0x2a8] ss:$16 sps:$4 sm:$0xff]  }
 0x182   :  { %1586 = vmatprep.subr.bf16.mxu1 %v10324_v34  ;;  %v10355_v34 = vld [vmem:[%s14954_s3 + $0x2c8] ss:$16 sps:$4 sm:$0xff]  }
 0x183   :  { %9991 = vmatpush3.bf16.msra.mxu0 %v11975_v24 }
 0x184   :  { %9992 = vmatprep.subr.bf16.mxu0 %v11213_v36 }
 0x185   :  { %1587 = vmatpush1.bf16.msra.mxu1 %v10322_v39  ;;  %v10358_v39 = vld [vmem:[%s14954_s3 + $0x2e0] ss:$16 sps:$4 sm:$0xff]  }
 0x186   :  { %1588 = vmatprep.subr.bf16.mxu1 %v10330_v42  ;;  %v10361_v42 = vld [vmem:[%s14954_s3 + $0x2e8] ss:$16 sps:$4 sm:$0xff]  }
 0x187   :  { %9993 = vmatpush3.bf16.msra.mxu0 %v11983_v26 }
 0x188   :  { %9994 = vmatprep.subr.bf16.mxu0 %v11213_v36 }
 0x189   :  { %1589 = vmatpush1.bf16.msra.mxu1 %v10328_v44 }
 0x18a   :  { %1590 = vmatprep.subr.bf16.mxu1 %v10336_v46 }
 0x18b   :  { %9995 = vmatpush3.bf16.msra.mxu0 %v11991_v28 }
 0x18c   :  { %1625 = vmatprep.subr.bf16.mxu0 %v10321_v32  ;;  %v10352_v32 = vld [vmem:[%s14954_s3 + $0x2c0] ss:$16 sps:$4 sm:$0xff]  }
 0x18d   :  { %1591 = vmatpush1.bf16.msra.mxu1 %v10334_v47 }
 0x18e   :  { %9997 = vmatmul.mubr.msk.bf16.vlgmr.msra.gmra.mrb[20].mxu0 %vm374_vm1, %v1252_v27  ;;  %1592 = vmatprep.subr.bf16.mxu1 %v10342_v51  ;;  %v10346_v27 = vld [vmem:[%s14954_s3 + $0x2a0] ss:$16 sps:$4 sm:$0xff]  }
 0x18f   :  { %1657 = vmatprep.mubr.bf16.mxu0 %v11215_v33  ;;  %1626 = vmatpush1.bf16.msra.mxu0 %v10319_v31  ;;  %v10357_v31 = vld [vmem:[%s14954_s3 + $0x2cc] ss:$16 sps:$4 sm:$0xff]  }
 0x190   :  { %1627 = vmatprep.subr.bf16.mxu0 %v10327_v38  ;;  %v10360_v38 = vld [vmem:[%s14954_s3 + $0x2e4] ss:$16 sps:$4 sm:$0xff]  }
 0x191   :  { %1593 = vmatpush1.bf16.msra.mxu1 %v10340_v50 }
 0x192   :  { %1594 = vmatprep.subr.bf16.mxu1 %v10348_v23 }
 0x193   :  { %1628 = vmatpush1.bf16.msra.mxu0 %v10325_v41  ;;  %v10363_v41 = vld [vmem:[%s14954_s3 + $0x2ec] ss:$16 sps:$4 sm:$0xff]  }
 0x194   :  { %1629 = vmatprep.subr.bf16.mxu0 %v10333_v43 }
 0x195   :  { %1595 = vmatpush1.bf16.msra.mxu1 %v10346_v27 }
 0x196   :  { %1596 = vmatprep.subr.bf16.mxu1 %v10354_v30 }
 0x197   :  { %1630 = vmatpush1.bf16.msra.mxu0 %v10331_v45 }
 0x198   :  { %1631 = vmatprep.subr.bf16.mxu0 %v10339_v48 }
 0x199   :  { %1597 = vmatpush1.bf16.msra.mxu1 %v10352_v32 }
 0x19a   :  { %1598 = vmatprep.subr.bf16.mxu1 %v10360_v38 }
 0x19b   :  { %1632 = vmatpush1.bf16.msra.mxu0 %v10337_v49 }
 0x19c   :  { %1633 = vmatprep.subr.bf16.mxu0 %v10345_v19 }
 0x19d   :  { %1599 = vmatpush1.bf16.msra.mxu1 %v10358_v39 }
 0x19e   :  { %9274 = vmatprep.subr.bf16.mxu1 %v11768_v52 }
 0x19f   :  { %1634 = vmatpush1.bf16.msra.mxu0 %v10343_v14 }
 0x1a0   :  { %1635 = vmatprep.subr.bf16.mxu0 %v10351_v25 }
 0x1a3   :  { %1636 = vmatpush1.bf16.msra.mxu0 %v10349_v29 }
 0x1a4   :  { %1637 = vmatprep.subr.bf16.mxu0 %v10357_v31 }
 0x1a7   :  { %1638 = vmatpush1.bf16.msra.mxu0 %v10355_v34 }
 0x1a8   :  { %1639 = vmatprep.subr.bf16.mxu0 %v10363_v41 }
 0x1ab   :  { %1640 = vmatpush1.bf16.msra.mxu0 %v10361_v42 }
 0x1ac   :  { %9296 = vmatprep.subr.bf16.mxu0 %v11774_v53 }
 0x211   :  { %v930_v43 = vpop.f32.mrb[8].mxu0  ;;  %v971_v44 = vpop.f32.mrb[16].mxu1 }
 0x212   :  { %v932_v45 = vpop.f32.mrb[9].mxu0  ;;  %v973_v46 = vpop.f32.mrb[17].mxu1 }
 0x213   :  { %v934_v47 = vpop.f32.mrb[10].mxu0  ;;  %v975_v48 = vpop.f32.mrb[18].mxu1 }
 0x214   :  { %v935_v49 = vpop.f32.mrb[11].mxu0  ;;  %v976_v50 = vpop.f32.mrb[19].mxu1 }
 0x231   :  { %v1172_v51 = vpop.f32.mrb[12].mxu0  ;;  %v1213_v14 = vpop.f32.mrb[20].mxu1 }
 0x232   :  { %v12094_v19 = vadd.f32 %v1172_v51, %v930_v43  ;;  %v12096_v23 = vadd.f32 %v1213_v14, %v971_v44  ;;  %v1174_v25 = vpop.f32.mrb[13].mxu0  ;;  %v1215_v27 = vpop.f32.mrb[21].mxu1 }
 0x233   :  { %v12098_v29 = vadd.f32 %v1174_v25, %v932_v45  ;;  %v12100_v30 = vadd.f32 %v1215_v27, %v973_v46  ;;  %v1176_v31 = vpop.f32.mrb[14].mxu0  ;;  %v1217_v32 = vpop.f32.mrb[22].mxu1  ;;  %v8227_v46 = vld [vmem:[%s14951_s0 + $0xf] sm:$0x1f] }
 0x234   :  { %v1177_v34 = vpop.f32.mrb[15].mxu0  ;;  %v1218_v38 = vpop.f32.mrb[23].mxu1  ;;  %v1680_v25 = vrot.slane %v8227_v46, %v11472_v40 }
 0x236   :  { %v1688_v27 = vcombine.high %v1680_v25, %v1680_v25 }
 0x251   :  { %v9241_v39 = vpop.f32.mrb[16].mxu0  ;;  %v9263_v41 = vpop.f32.mrb[24].mxu1 }
 0x252   :  { %v9242_v42 = vpop.f32.mrb[17].mxu0  ;;  %v9264_v47 = vpop.f32.mrb[25].mxu1 }
 0x253   :  { %v9243_v48 = vadd.f32 %v9242_v42, %v9241_v39  ;;  %v9244_v49 = vpop.f32.mrb[18].mxu0  ;;  %v9265_v43 = vadd.f32 %v9264_v47, %v9263_v41  ;;  %v9266_v50 = vpop.f32.mrb[26].mxu1  ;;  %v1709_v39 = vrot.slane %v1688_v27, %v11472_v40  ;;  %v10373_v27 = vld [vmem:[%s14954_s3 + $0x324] ss:$16 sps:$4 sm:$0xff]  }
 0x254   :  { %v9245_v44 = vpop.f32.mrb[19].mxu0  ;;  %v9267_v51 = vpop.f32.mrb[27].mxu1  ;;  %v1673_v50 = vcombine.high %v8227_v46, %v8227_v46  ;;  %v10368_v46 = vld [vmem:[%s14954_s3 + $0x308] ss:$16 sps:$4 sm:$0xff]  }
 0x255   :  { %v1304_v14 = vadd.f32 %v9243_v48, %v11654_v37  ;;  %v1711_v49 = vcombine.high %v1709_v39, %v1709_v39  ;;  %v1695_v48 = vrot.slane %v1680_v25, %v11472_v40  ;;  %v10370_v25 = vld [vmem:[%s14954_s3 + $0x30c] ss:$16 sps:$4 sm:$0xff]  }
 0x256   :  { %v1687_v44 = vrot.slane %v1673_v50, %v11472_v40  ;;  %v10389_v50 = vld [vmem:[%s14954_s3 + $0x380] ss:$16 sps:$4 sm:$0xff]  }
 0x257   :  { %v1344_v45 = vadd.f32 %v9265_v43, %v1304_v14  ;;  %v1710_v43 = vcombine.high %v1695_v48, %v1695_v48  ;;  %v10365_v14 = vld [vmem:[%s14954_s3 + $0x300] ss:$16 sps:$4 sm:$0xff]  }
 0x258   :  { %v1702_v51 = vrot.slane %v1687_v44, %v11472_v40  ;;  %v10391_v44 = vld [vmem:[%s14954_s3 + $0x384] ss:$16 sps:$4 sm:$0xff]  }
 0x261   :  { %v1383_v31 = vpop.f32.mrb[20].mxu0 }
 0x262   :  { %v1384_v32 = vadd.f32 %v1383_v31, %v1344_v45  ;;  %v9998_v34 = vpop.f32.mrb[21].mxu0  ;;  %v10367_v45 = vld [vmem:[%s14954_s3 + $0x304] ss:$16 sps:$4 sm:$0xff]   ;;  %v10376_v31 = vld [vmem:[%s14954_s3 + $0x32c] ss:$16 sps:$4 sm:$0xff]  }
 0x263   :  { %v1386_v38 = vpop.f32.mrb[22].mxu0  ;;  %v10374_v34 = vld [vmem:[%s14954_s3 + $0x328] ss:$16 sps:$4 sm:$0xff]  }
 0x264   :  { %v1389_v41 = vmax.f32 %v1384_v32, 0.0  ;;  %v9999_v42 = vpop.f32.mrb[23].mxu0  ;;  %v10371_v32 = vld [vmem:[%s14954_s3 + $0x320] ss:$16 sps:$4 sm:$0xff]   ;;  %v10379_v38 = vld [vmem:[%s14954_s3 + $0x344] ss:$16 sps:$4 sm:$0xff]  }
 0x265   :  { %v10380_v42 = vld [vmem:[%s14954_s3 + $0x348] ss:$16 sps:$4 sm:$0xff]  }
 0x266   :  { %v1390_v47 = vpack.c.bf16 %v1389_v41, %v1389_v41  ;;  %v10377_v41 = vld [vmem:[%s14954_s3 + $0x340] ss:$16 sps:$4 sm:$0xff]  }
 0x268   :  { %1617 = vmatmul.mubr.bf16.vlgmr.msra.gmra.mrb[28].mxu1 %v1390_v47  ;;  %1658 = vmatmul.mubr.bf16.vlgmr.msra.gmra.mrb[24].mxu0 %v1390_v47  ;;  %v10385_v47 = vld [vmem:[%s14954_s3 + $0x364] ss:$16 sps:$4 sm:$0xff]  }
 0x269   :  { %9275 = vmatpush3.bf16.msra.mxu1 %v11780_v54  ;;  %9297 = vmatpush3.bf16.msra.mxu0 %v11786_v55 }
 0x26a   :  { %9276 = vmatprep.subr.bf16.mxu1 %v11792_v56  ;;  %9298 = vmatprep.subr.bf16.mxu0 %v11798_v57 }
 0x26b   :  { %1751 = vmatprep.mubr.bf16.mxu1 %v1709_v39  ;;  %1791 = vmatprep.mubr.bf16.mxu0 %v1711_v49  ;;  %v10382_v39 = vld [vmem:[%s14954_s3 + $0x34c] ss:$16 sps:$4 sm:$0xff]   ;;  %v10383_v49 = vld [vmem:[%s14954_s3 + $0x360] ss:$16 sps:$4 sm:$0xff]  }
 0x26d   :  { %9277 = vmatpush3.bf16.msra.mxu1 %v11804_v58  ;;  %9299 = vmatpush3.bf16.msra.mxu0 %v11810_v59 }
 0x26e   :  { %9278 = vmatprep.subr.bf16.mxu1 %v11816_v60  ;;  %9300 = vmatprep.subr.bf16.mxu0 %v11822_v61 }
 0x271   :  { %9279 = vmatpush3.bf16.msra.mxu1 %v11828_v62  ;;  %9301 = vmatpush3.bf16.msra.mxu0 %v11834_v63 }
 0x272   :  { %9280 = vmatprep.subr.bf16.mxu1 %v11840_v0  ;;  %9302 = vmatprep.subr.bf16.mxu0 %v11846_v1 }
 0x275   :  { %9281 = vmatpush3.bf16.msra.mxu1 %v11852_v2  ;;  %9303 = vmatpush3.bf16.msra.mxu0 %v11858_v3 }
 0x276   :  { %9282 = vmatprep.subr.bf16.mxu1 %v11864_v4  ;;  %9304 = vmatprep.subr.bf16.mxu0 %v11870_v5 }
 0x279   :  { %9283 = vmatpush3.bf16.msra.mxu1 %v11876_v6  ;;  %9305 = vmatpush3.bf16.msra.mxu0 %v11882_v7 }
 0x27a   :  { %9284 = vmatprep.subr.bf16.mxu1 %v11888_v8  ;;  %9306 = vmatprep.subr.bf16.mxu0 %v11894_v9 }
 0x27d   :  { %9285 = vmatpush3.bf16.msra.mxu1 %v11900_v10  ;;  %9307 = vmatpush3.bf16.msra.mxu0 %v11906_v11 }
 0x27e   :  { %9286 = vmatprep.subr.bf16.mxu1 %v11912_v12  ;;  %9308 = vmatprep.subr.bf16.mxu0 %v11918_v13 }
 0x281   :  { %9287 = vmatpush3.bf16.msra.mxu1 %v11926_v15  ;;  %9309 = vmatpush3.bf16.msra.mxu0 %v11932_v16 }
 0x282   :  { %9288 = vmatprep.subr.bf16.mxu1 %v11938_v17  ;;  %9310 = vmatprep.subr.bf16.mxu0 %v11944_v18 }
 0x285   :  { %9289 = vmatpush3.bf16.msra.mxu1 %v11950_v20  ;;  %9311 = vmatpush3.bf16.msra.mxu0 %v11956_v21 }
 0x286   :  { %10000 = vmatprep.subr.bf16.mxu1 %v11213_v36  ;;  %2034 = vmatprep.subr.bf16.mxu0 %v10367_v45  ;;  %v10397_v45 = vld [vmem:[%s14954_s3 + $0x3a4] ss:$16 sps:$4 sm:$0xff]  }
 0x288   :  { %1752 = vmatmul.mubr.bf16.vlgmr.msra.gmra.mrb[32].mxu1 %v1695_v48  ;;  %1792 = vmatmul.mubr.bf16.vlgmr.msra.gmra.mrb[28].mxu0 %v1710_v43  ;;  %v10388_v48 = vld [vmem:[%s14954_s3 + $0x36c] ss:$16 sps:$4 sm:$0xff]   ;;  %v10386_v43 = vld [vmem:[%s14954_s3 + $0x368] ss:$16 sps:$4 sm:$0xff]  }
 0x289   :  { %10001 = vmatpush3.bf16.msra.mxu1 %v11963_v22  ;;  %10008 = vmatprep.mubr.msk.bf16.mxu1 %vm11214_vm0, %v11213_v36 }
 0x28a   :  { %10002 = vmatprep.subr.bf16.mxu1 %v11213_v36  ;;  %2066 = vmatprep.mubr.bf16.mxu0 %v11215_v33 }
 0x28b   :  { %2035 = vmatpush1.bf16.msra.mxu0 %v10365_v14  ;;  %v10394_v14 = vld [vmem:[%s14954_s3 + $0x38c] ss:$16 sps:$4 sm:$0xff]  }
 0x28c   :  { %2036 = vmatprep.subr.bf16.mxu0 %v10373_v27  ;;  %v10398_v27 = vld [vmem:[%s14954_s3 + $0x3a8] ss:$16 sps:$4 sm:$0xff]  }
 0x28d   :  { %10003 = vmatpush3.bf16.msra.mxu1 %v11975_v24 }
 0x28e   :  { %10004 = vmatprep.subr.bf16.mxu1 %v11213_v36 }
 0x28f   :  { %2037 = vmatpush1.bf16.msra.mxu0 %v10371_v32  ;;  %v10406_v32 = vld [vmem:[%s14954_s3 + $0x3cc] ss:$16 sps:$4 sm:$0xff]  }
 0x290   :  { %2038 = vmatprep.subr.bf16.mxu0 %v10379_v38  ;;  %v10404_v38 = vld [vmem:[%s14954_s3 + $0x3c8] ss:$16 sps:$4 sm:$0xff]  }
 0x291   :  { %10005 = vmatpush3.bf16.msra.mxu1 %v11983_v26 }
 0x292   :  { %10006 = vmatprep.subr.bf16.mxu1 %v11213_v36 }
 0x293   :  { %2039 = vmatpush1.bf16.msra.mxu0 %v10377_v41  ;;  %v10407_v41 = vld [vmem:[%s14954_s3 + $0x3e0] ss:$16 sps:$4 sm:$0xff]  }
 0x294   :  { %2040 = vmatprep.subr.bf16.mxu0 %v10385_v47  ;;  %v10410_v47 = vld [vmem:[%s14954_s3 + $0x3e8] ss:$16 sps:$4 sm:$0xff]  }
 0x295   :  { %10007 = vmatpush3.bf16.msra.mxu1 %v11991_v28 }
 0x296   :  { %2075 = vmatprep.subr.bf16.mxu1 %v10370_v25  ;;  %v10395_v25 = vld [vmem:[%s14954_s3 + $0x3a0] ss:$16 sps:$4 sm:$0xff]  }
 0x297   :  { %2041 = vmatpush1.bf16.msra.mxu0 %v10383_v49 }
 0x298   :  { %10009 = vmatmul.mubr.msk.bf16.vlgmr.msra.gmra.mrb[36].mxu1 %vm374_vm1, %v1702_v51  ;;  %v10392_v51 = vld [vmem:[%s14954_s3 + $0x388] ss:$16 sps:$4 sm:$0xff]   ;;  %2042 = vmatprep.subr.bf16.mxu0 %v10391_v44 }
 0x299   :  { %2107 = vmatprep.mubr.bf16.mxu1 %v11215_v33  ;;  %2076 = vmatpush1.bf16.msra.mxu1 %v10368_v46  ;;  %v10400_v46 = vld [vmem:[%s14954_s3 + $0x3ac] ss:$16 sps:$4 sm:$0xff]  }
 0x29a   :  { %2077 = vmatprep.subr.bf16.mxu1 %v10376_v31  ;;  %v10403_v31 = vld [vmem:[%s14954_s3 + $0x3c4] ss:$16 sps:$4 sm:$0xff]  }
 0x29b   :  { %2043 = vmatpush1.bf16.msra.mxu0 %v10389_v50 }
 0x29c   :  { %2044 = vmatprep.subr.bf16.mxu0 %v10397_v45 }
 0x29d   :  { %2078 = vmatpush1.bf16.msra.mxu1 %v10374_v34  ;;  %v10401_v34 = vld [vmem:[%s14954_s3 + $0x3c0] ss:$16 sps:$4 sm:$0xff]  }
 0x29e   :  { %2079 = vmatprep.subr.bf16.mxu1 %v10382_v39  ;;  %v10409_v39 = vld [vmem:[%s14954_s3 + $0x3e4] ss:$16 sps:$4 sm:$0xff]  }
 0x29f   :  { %2045 = vmatpush1.bf16.msra.mxu0 %v10395_v25 }
 0x2a0   :  { %2046 = vmatprep.subr.bf16.mxu0 %v10403_v31 }
 0x2a1   :  { %2080 = vmatpush1.bf16.msra.mxu1 %v10380_v42  ;;  %v10412_v42 = vld [vmem:[%s14954_s3 + $0x3ec] ss:$16 sps:$4 sm:$0xff]  }
 0x2a2   :  { %2081 = vmatprep.subr.bf16.mxu1 %v10388_v48 }
 0x2a3   :  { %2047 = vmatpush1.bf16.msra.mxu0 %v10401_v34 }
 0x2a4   :  { %2048 = vmatprep.subr.bf16.mxu0 %v10409_v39 }
 0x2a5   :  { %2082 = vmatpush1.bf16.msra.mxu1 %v10386_v43 }
 0x2a6   :  { %2083 = vmatprep.subr.bf16.mxu1 %v10394_v14 }
 0x2a7   :  { %2049 = vmatpush1.bf16.msra.mxu0 %v10407_v41 }
 0x2a8   :  { %9323 = vmatprep.subr.bf16.mxu0 %v11768_v52 }
 0x2a9   :  { %2084 = vmatpush1.bf16.msra.mxu1 %v10392_v51 }
 0x2aa   :  { %2085 = vmatprep.subr.bf16.mxu1 %v10400_v46 }
 0x2ad   :  { %2086 = vmatpush1.bf16.msra.mxu1 %v10398_v27 }
 0x2ae   :  { %2087 = vmatprep.subr.bf16.mxu1 %v10406_v32 }
 0x2b1   :  { %2088 = vmatpush1.bf16.msra.mxu1 %v10404_v38 }
 0x2b2   :  { %2089 = vmatprep.subr.bf16.mxu1 %v10412_v42 }
 0x2b5   :  { %2090 = vmatpush1.bf16.msra.mxu1 %v10410_v47 }
 0x2b6   :  { %9345 = vmatprep.subr.bf16.mxu1 %v11774_v53 }
 0x33b   :  { %v1618_v49 = vpop.f32.mrb[28].mxu1  ;;  %v1659_v48 = vpop.f32.mrb[24].mxu0 }
 0x33c   :  { %v12253_v43 = vadd.f32 %v1618_v49, %v12094_v19  ;;  %v12256_v50 = vadd.f32 %v1659_v48, %v12096_v23  ;;  %v1620_v44 = vpop.f32.mrb[29].mxu1  ;;  %v1661_v51 = vpop.f32.mrb[25].mxu0 }
 0x33d   :  { %v12259_v14 = vadd.f32 %v1620_v44, %v12098_v29  ;;  %v12262_v45 = vadd.f32 %v1661_v51, %v12100_v30  ;;  %v1622_v46 = vpop.f32.mrb[30].mxu1  ;;  %v1663_v25 = vpop.f32.mrb[26].mxu0  ;;  %v8293_v30 = vld [vmem:[%s14951_s0 + $0x14] sm:$0x1f] }
 0x33e   :  { %v1623_v27 = vpop.f32.mrb[31].mxu1  ;;  %v1664_v31 = vpop.f32.mrb[27].mxu0  ;;  %v2130_v44 = vrot.slane %v8293_v30, %v11472_v40 }
 0x340   :  { %v2138_v51 = vcombine.high %v2130_v44, %v2130_v44 }
 0x35b   :  { %v9290_v32 = vpop.f32.mrb[32].mxu1  ;;  %v9312_v34 = vpop.f32.mrb[28].mxu0 }
 0x35c   :  { %v9291_v38 = vpop.f32.mrb[33].mxu1  ;;  %v9313_v19 = vpop.f32.mrb[29].mxu0 }
 0x35d   :  { %v9292_v39 = vadd.f32 %v9291_v38, %v9290_v32  ;;  %v9293_v41 = vpop.f32.mrb[34].mxu1  ;;  %v9314_v23 = vadd.f32 %v9313_v19, %v9312_v34  ;;  %v9315_v42 = vpop.f32.mrb[30].mxu0  ;;  %v2159_v32 = vrot.slane %v2138_v51, %v11472_v40  ;;  %v10425_v51 = vld [vmem:[%s14954_s3 + $0x42c] ss:$16 sps:$4 sm:$0xff]  }
 0x35e   :  { %v9294_v47 = vpop.f32.mrb[35].mxu1  ;;  %v9316_v49 = vpop.f32.mrb[31].mxu0 }
 0x35f   :  { %v1754_v29 = vadd.f32 %v9292_v39, %v11654_v37  ;;  %v2161_v41 = vcombine.high %v2159_v32, %v2159_v32  ;;  %v2145_v37 = vrot.slane %v2130_v44, %v11472_v40  ;;  %v10414_v49 = vld [vmem:[%s14954_s3 + $0x400] ss:$16 sps:$4 sm:$0xff]   ;;  %v10422_v44 = vld [vmem:[%s14954_s3 + $0x424] ss:$16 sps:$4 sm:$0xff]  }
 0x361   :  { %v1794_v48 = vadd.f32 %v9314_v23, %v1754_v29  ;;  %v2160_v39 = vcombine.high %v2145_v37, %v2145_v37  ;;  %v2123_v23 = vcombine.high %v8293_v30, %v8293_v30  ;;  %v10416_v29 = vld [vmem:[%s14954_s3 + $0x404] ss:$16 sps:$4 sm:$0xff]   ;;  %v10419_v30 = vld [vmem:[%s14954_s3 + $0x40c] ss:$16 sps:$4 sm:$0xff]  }
 0x363   :  { %v2137_v42 = vrot.slane %v2123_v23, %v11472_v40  ;;  %v10440_v23 = vld [vmem:[%s14954_s3 + $0x484] ss:$16 sps:$4 sm:$0xff]  }
 0x365   :  { %v2152_v47 = vrot.slane %v2137_v42, %v11472_v40  ;;  %v10441_v42 = vld [vmem:[%s14954_s3 + $0x488] ss:$16 sps:$4 sm:$0xff]  }
 0x36b   :  { %v1833_v46 = vpop.f32.mrb[36].mxu1 }
 0x36c   :  { %v1834_v25 = vadd.f32 %v1833_v46, %v1794_v48  ;;  %v10010_v27 = vpop.f32.mrb[37].mxu1  ;;  %v10417_v48 = vld [vmem:[%s14954_s3 + $0x408] ss:$16 sps:$4 sm:$0xff]   ;;  %v10420_v46 = vld [vmem:[%s14954_s3 + $0x420] ss:$16 sps:$4 sm:$0xff]  }
 0x36d   :  { %v1836_v31 = vpop.f32.mrb[38].mxu1  ;;  %v10428_v27 = vld [vmem:[%s14954_s3 + $0x444] ss:$16 sps:$4 sm:$0xff]  }
 0x36e   :  { %v1839_v34 = vmax.f32 %v1834_v25, 0.0  ;;  %v10011_v38 = vpop.f32.mrb[39].mxu1  ;;  %v10423_v25 = vld [vmem:[%s14954_s3 + $0x428] ss:$16 sps:$4 sm:$0xff]   ;;  %v10431_v31 = vld [vmem:[%s14954_s3 + $0x44c] ss:$16 sps:$4 sm:$0xff]  }
 0x36f   :  { %v10434_v38 = vld [vmem:[%s14954_s3 + $0x464] ss:$16 sps:$4 sm:$0xff]  }
 0x370   :  { %v1840_v19 = vpack.c.bf16 %v1839_v34, %v1839_v34  ;;  %v10429_v34 = vld [vmem:[%s14954_s3 + $0x448] ss:$16 sps:$4 sm:$0xff]  }
 0x372   :  { %2067 = vmatmul.mubr.bf16.vlgmr.msra.gmra.mrb[32].mxu0 %v1840_v19  ;;  %2108 = vmatmul.mubr.bf16.vlgmr.msra.gmra.mrb[40].mxu1 %v1840_v19  ;;  %v10432_v19 = vld [vmem:[%s14954_s3 + $0x460] ss:$16 sps:$4 sm:$0xff]  }
 0x373   :  { %9324 = vmatpush3.bf16.msra.mxu0 %v11780_v54  ;;  %9346 = vmatpush3.bf16.msra.mxu1 %v11786_v55 }
 0x374   :  { %9325 = vmatprep.subr.bf16.mxu0 %v11792_v56  ;;  %9347 = vmatprep.subr.bf16.mxu1 %v11798_v57 }
 0x375   :  { %2201 = vmatprep.mubr.bf16.mxu0 %v2159_v32  ;;  %2241 = vmatprep.mubr.bf16.mxu1 %v2161_v41  ;;  %v10426_v32 = vld [vmem:[%s14954_s3 + $0x440] ss:$16 sps:$4 sm:$0xff]   ;;  %v10437_v41 = vld [vmem:[%s14954_s3 + $0x46c] ss:$16 sps:$4 sm:$0xff]  }
 0x377   :  { %9326 = vmatpush3.bf16.msra.mxu0 %v11804_v58  ;;  %9348 = vmatpush3.bf16.msra.mxu1 %v11810_v59 }
 0x378   :  { %9327 = vmatprep.subr.bf16.mxu0 %v11816_v60  ;;  %9349 = vmatprep.subr.bf16.mxu1 %v11822_v61 }
 0x37b   :  { %9328 = vmatpush3.bf16.msra.mxu0 %v11828_v62  ;;  %9350 = vmatpush3.bf16.msra.mxu1 %v11834_v63 }
 0x37c   :  { %9329 = vmatprep.subr.bf16.mxu0 %v11840_v0  ;;  %9351 = vmatprep.subr.bf16.mxu1 %v11846_v1 }
 0x37f   :  { %9330 = vmatpush3.bf16.msra.mxu0 %v11852_v2  ;;  %9352 = vmatpush3.bf16.msra.mxu1 %v11858_v3 }
 0x380   :  { %9331 = vmatprep.subr.bf16.mxu0 %v11864_v4  ;;  %9353 = vmatprep.subr.bf16.mxu1 %v11870_v5 }
 0x383   :  { %9332 = vmatpush3.bf16.msra.mxu0 %v11876_v6  ;;  %9354 = vmatpush3.bf16.msra.mxu1 %v11882_v7 }
 0x384   :  { %9333 = vmatprep.subr.bf16.mxu0 %v11888_v8  ;;  %9355 = vmatprep.subr.bf16.mxu1 %v11894_v9 }
 0x387   :  { %9334 = vmatpush3.bf16.msra.mxu0 %v11900_v10  ;;  %9356 = vmatpush3.bf16.msra.mxu1 %v11906_v11 }
 0x388   :  { %9335 = vmatprep.subr.bf16.mxu0 %v11912_v12  ;;  %9357 = vmatprep.subr.bf16.mxu1 %v11918_v13 }
 0x38b   :  { %9336 = vmatpush3.bf16.msra.mxu0 %v11926_v15  ;;  %9358 = vmatpush3.bf16.msra.mxu1 %v11932_v16 }
 0x38c   :  { %9337 = vmatprep.subr.bf16.mxu0 %v11938_v17  ;;  %9359 = vmatprep.subr.bf16.mxu1 %v11944_v18 }
 0x38f   :  { %9338 = vmatpush3.bf16.msra.mxu0 %v11950_v20  ;;  %9360 = vmatpush3.bf16.msra.mxu1 %v11956_v21 }
 0x390   :  { %10012 = vmatprep.subr.bf16.mxu0 %v11213_v36  ;;  %2484 = vmatprep.subr.bf16.mxu1 %v10416_v29  ;;  %v10449_v29 = vld [vmem:[%s14954_s3 + $0x4ac] ss:$16 sps:$4 sm:$0xff]  }
 0x392   :  { %2202 = vmatmul.mubr.bf16.vlgmr.msra.gmra.mrb[36].mxu0 %v2145_v37  ;;  %2242 = vmatmul.mubr.bf16.vlgmr.msra.gmra.mrb[44].mxu1 %v2160_v39  ;;  %v10435_v37 = vld [vmem:[%s14954_s3 + $0x468] ss:$16 sps:$4 sm:$0xff]   ;;  %v10438_v39 = vld [vmem:[%s14954_s3 + $0x480] ss:$16 sps:$4 sm:$0xff]  }
 0x393   :  { %10013 = vmatpush3.bf16.msra.mxu0 %v11963_v22  ;;  %10020 = vmatprep.mubr.msk.bf16.mxu0 %vm11214_vm0, %v11213_v36 }
 0x394   :  { %10014 = vmatprep.subr.bf16.mxu0 %v11213_v36  ;;  %2516 = vmatprep.mubr.bf16.mxu1 %v11215_v33 }
 0x395   :  { %2485 = vmatpush1.bf16.msra.mxu1 %v10414_v49  ;;  %v10446_v49 = vld [vmem:[%s14954_s3 + $0x4a4] ss:$16 sps:$4 sm:$0xff]  }
 0x396   :  { %2486 = vmatprep.subr.bf16.mxu1 %v10422_v44  ;;  %v10452_v44 = vld [vmem:[%s14954_s3 + $0x4c4] ss:$16 sps:$4 sm:$0xff]  }
 0x397   :  { %10015 = vmatpush3.bf16.msra.mxu0 %v11975_v24 }
 0x398   :  { %10016 = vmatprep.subr.bf16.mxu0 %v11213_v36 }
 0x399   :  { %2487 = vmatpush1.bf16.msra.mxu1 %v10420_v46  ;;  %v10450_v46 = vld [vmem:[%s14954_s3 + $0x4c0] ss:$16 sps:$4 sm:$0xff]  }
 0x39a   :  { %2488 = vmatprep.subr.bf16.mxu1 %v10428_v27  ;;  %v10458_v27 = vld [vmem:[%s14954_s3 + $0x4e4] ss:$16 sps:$4 sm:$0xff]  }
 0x39b   :  { %10017 = vmatpush3.bf16.msra.mxu0 %v11983_v26 }
 0x39c   :  { %10018 = vmatprep.subr.bf16.mxu0 %v11213_v36 }
 0x39d   :  { %2489 = vmatpush1.bf16.msra.mxu1 %v10426_v32  ;;  %v10461_v32 = vld [vmem:[%s14954_s3 + $0x4ec] ss:$16 sps:$4 sm:$0xff]  }
 0x39e   :  { %2490 = vmatprep.subr.bf16.mxu1 %v10434_v38 }
 0x39f   :  { %10019 = vmatpush3.bf16.msra.mxu0 %v11991_v28 }
 0x3a0   :  { %2525 = vmatprep.subr.bf16.mxu0 %v10419_v30  ;;  %v10447_v30 = vld [vmem:[%s14954_s3 + $0x4a8] ss:$16 sps:$4 sm:$0xff]  }
 0x3a1   :  { %2491 = vmatpush1.bf16.msra.mxu1 %v10432_v19 }
 0x3a2   :  { %10021 = vmatmul.mubr.msk.bf16.vlgmr.msra.gmra.mrb[40].mxu0 %vm374_vm1, %v2152_v47  ;;  %v10443_v47 = vld [vmem:[%s14954_s3 + $0x48c] ss:$16 sps:$4 sm:$0xff]   ;;  %2492 = vmatprep.subr.bf16.mxu1 %v10440_v23 }
 0x3a3   :  { %2557 = vmatprep.mubr.bf16.mxu0 %v11215_v33  ;;  %2526 = vmatpush1.bf16.msra.mxu0 %v10417_v48  ;;  %v10444_v48 = vld [vmem:[%s14954_s3 + $0x4a0] ss:$16 sps:$4 sm:$0xff]  }
 0x3a4   :  { %2527 = vmatprep.subr.bf16.mxu0 %v10425_v51  ;;  %v10455_v51 = vld [vmem:[%s14954_s3 + $0x4cc] ss:$16 sps:$4 sm:$0xff]  }
 0x3a5   :  { %2493 = vmatpush1.bf16.msra.mxu1 %v10438_v39 }
 0x3a6   :  { %2494 = vmatprep.subr.bf16.mxu1 %v10446_v49 }
 0x3a7   :  { %2528 = vmatpush1.bf16.msra.mxu0 %v10423_v25  ;;  %v10453_v25 = vld [vmem:[%s14954_s3 + $0x4c8] ss:$16 sps:$4 sm:$0xff]  }
 0x3a8   :  { %2529 = vmatprep.subr.bf16.mxu0 %v10431_v31  ;;  %v10456_v31 = vld [vmem:[%s14954_s3 + $0x4e0] ss:$16 sps:$4 sm:$0xff]  }
 0x3a9   :  { %2495 = vmatpush1.bf16.msra.mxu1 %v10444_v48 }
 0x3aa   :  { %2496 = vmatprep.subr.bf16.mxu1 %v10452_v44 }
 0x3ab   :  { %2530 = vmatpush1.bf16.msra.mxu0 %v10429_v34  ;;  %v10459_v34 = vld [vmem:[%s14954_s3 + $0x4e8] ss:$16 sps:$4 sm:$0xff]  }
 0x3ac   :  { %2531 = vmatprep.subr.bf16.mxu0 %v10437_v41 }
 0x3ad   :  { %2497 = vmatpush1.bf16.msra.mxu1 %v10450_v46 }
 0x3ae   :  { %2498 = vmatprep.subr.bf16.mxu1 %v10458_v27 }
 0x3af   :  { %2532 = vmatpush1.bf16.msra.mxu0 %v10435_v37 }
 0x3b0   :  { %2533 = vmatprep.subr.bf16.mxu0 %v10443_v47 }
 0x3b1   :  { %2499 = vmatpush1.bf16.msra.mxu1 %v10456_v31 }
 0x3b2   :  { %9372 = vmatprep.subr.bf16.mxu1 %v11768_v52 }
 0x3b3   :  { %2534 = vmatpush1.bf16.msra.mxu0 %v10441_v42 }
 0x3b4   :  { %2535 = vmatprep.subr.bf16.mxu0 %v10449_v29 }
 0x3b7   :  { %2536 = vmatpush1.bf16.msra.mxu0 %v10447_v30 }
 0x3b8   :  { %2537 = vmatprep.subr.bf16.mxu0 %v10455_v51 }
 0x3bb   :  { %2538 = vmatpush1.bf16.msra.mxu0 %v10453_v25 }
 0x3bc   :  { %2539 = vmatprep.subr.bf16.mxu0 %v10461_v32 }
 0x3bf   :  { %2540 = vmatpush1.bf16.msra.mxu0 %v10459_v34  ;;  %v8359_v34 = vld [vmem:[%s14951_s0 + $0x19] sm:$0x1f] }
 0x3c0   :  { %9394 = vmatprep.subr.bf16.mxu0 %v11774_v53 }
 0x445   :  { %v2068_v38 = vpop.f32.mrb[32].mxu0  ;;  %v2109_v19 = vpop.f32.mrb[40].mxu1 }
 0x446   :  { %v12415_v41 = vadd.f32 %v2068_v38, %v12253_v43  ;;  %v12418_v37 = vadd.f32 %v2109_v19, %v12256_v50  ;;  %v2070_v39 = vpop.f32.mrb[33].mxu0  ;;  %v2111_v23 = vpop.f32.mrb[41].mxu1  ;;  %v2580_v38 = vrot.slane %v8359_v34, %v11472_v40 }
 0x447   :  { %v12421_v42 = vadd.f32 %v2070_v39, %v12259_v14  ;;  %v12424_v47 = vadd.f32 %v2111_v23, %v12262_v45  ;;  %v2072_v49 = vpop.f32.mrb[34].mxu0  ;;  %v2113_v52 = vpop.f32.mrb[42].mxu1  ;;  %v12429_v14 = vld [vmem:[%s14953_s2] ss:$0 sm:$0xff] }
 0x448   :  { %v2073_v29 = vpop.f32.mrb[35].mxu0  ;;  %v2114_v53 = vpop.f32.mrb[43].mxu1  ;;  %v2588_v19 = vcombine.high %v2580_v38, %v2580_v38 }
 0x44a   :  { %v2609_v29 = vrot.slane %v2588_v19, %v11472_v40 }
 0x465   :  { %v9339_v48 = vpop.f32.mrb[36].mxu0  ;;  %v9361_v30 = vpop.f32.mrb[44].mxu1 }
 0x466   :  { %v9340_v44 = vpop.f32.mrb[37].mxu0  ;;  %v9362_v43 = vpop.f32.mrb[45].mxu1 }
 0x467   :  { %v9341_v51 = vadd.f32 %v9340_v44, %v9339_v48  ;;  %v9342_v46 = vpop.f32.mrb[38].mxu0  ;;  %v9363_v50 = vadd.f32 %v9362_v43, %v9361_v30  ;;  %v9364_v25 = vpop.f32.mrb[46].mxu1  ;;  %v2611_v44 = vcombine.high %v2609_v29, %v2609_v29  ;;  %v10505_v43 = vld [vmem:[%s14954_s3 + $0x5e0] ss:$16 sps:$4 sm:$0xff]  }
 0x468   :  { %v9343_v27 = vpop.f32.mrb[39].mxu0  ;;  %v9365_v31 = vpop.f32.mrb[47].mxu1  ;;  %v10508_v46 = vld [vmem:[%s14954_s3 + $0x5e8] ss:$16 sps:$4 sm:$0xff]   ;;  %v12588_v25 = vld [vmem:[%s14952_s1 + $0xc0] sm:$0xff]  }
 0x469   :  { %v2204_v45 = vadd.f32 %v12429_v14, %v9341_v51  ;;  %v10510_v51 = vld [vmem:[%s14954_s3 + $0x5ec] ss:$16 sps:$4 sm:$0xff]  }
 0x46b   :  { %v2244_v32 = vadd.f32 %v9363_v50, %v2204_v45  ;;  %v12582_v50 = vld [vmem:[%s14952_s1 + $0x40] sm:$0xff]  }
 0x475   :  { %v2283_v39 = vpop.f32.mrb[40].mxu0 }
 0x476   :  { %v2284_v23 = vadd.f32 %v2283_v39, %v2244_v32  ;;  %v10022_v49 = vpop.f32.mrb[41].mxu0 }
 0x477   :  { %v2286_v52 = vpop.f32.mrb[42].mxu0 }
 0x478   :  { %v2289_v53 = vmax.f32 %v2284_v23, 0.0  ;;  %v10023_v48 = vpop.f32.mrb[43].mxu0 }
 0x47a   :  { %v2290_v30 = vpack.c.bf16 %v2289_v53, %v2289_v53 }
 0x47c   :  { %2517 = vmatmul.mubr.bf16.vlgmr.msra.gmra.mrb[48].mxu1 %v2290_v30  ;;  %2558 = vmatmul.mubr.bf16.vlgmr.msra.gmra.mrb[44].mxu0 %v2290_v30 }
 0x47d   :  { %9373 = vmatpush3.bf16.msra.mxu1 %v11780_v54  ;;  %9395 = vmatpush3.bf16.msra.mxu0 %v11786_v55  ;;  %v2595_v54 = vrot.slane %v2580_v38, %v11472_v40 }
 0x47e   :  { %9374 = vmatprep.subr.bf16.mxu1 %v11792_v56  ;;  %9396 = vmatprep.subr.bf16.mxu0 %v11798_v57  ;;  %v2573_v56 = vcombine.high %v8359_v34, %v8359_v34 }
 0x47f   :  { %2651 = vmatprep.mubr.bf16.mxu1 %v2609_v29  ;;  %2691 = vmatprep.mubr.bf16.mxu0 %v2611_v44  ;;  %v2610_v55 = vcombine.high %v2595_v54, %v2595_v54 }
 0x480   :  { %v2587_v57 = vrot.slane %v2573_v56, %v11472_v40 }
 0x481   :  { %9375 = vmatpush3.bf16.msra.mxu1 %v11804_v58  ;;  %9397 = vmatpush3.bf16.msra.mxu0 %v11810_v59  ;;  %v10463_v59 = vld [vmem:[%s14954_s3 + $0x500] ss:$16 sps:$4 sm:$0xff]  }
 0x482   :  { %9376 = vmatprep.subr.bf16.mxu1 %v11816_v60  ;;  %9398 = vmatprep.subr.bf16.mxu0 %v11822_v61  ;;  %v2602_v58 = vrot.slane %v2587_v57, %v11472_v40  ;;  %v10465_v60 = vld [vmem:[%s14954_s3 + $0x504] ss:$16 sps:$4 sm:$0xff]   ;;  %v10466_v61 = vld [vmem:[%s14954_s3 + $0x508] ss:$16 sps:$4 sm:$0xff]  }
 0x485   :  { %9377 = vmatpush3.bf16.msra.mxu1 %v11828_v62  ;;  %9399 = vmatpush3.bf16.msra.mxu0 %v11834_v63  ;;  %v10468_v62 = vld [vmem:[%s14954_s3 + $0x50c] ss:$16 sps:$4 sm:$0xff]   ;;  %v10471_v63 = vld [vmem:[%s14954_s3 + $0x524] ss:$16 sps:$4 sm:$0xff]  }
 0x486   :  { %9378 = vmatprep.subr.bf16.mxu1 %v11840_v0  ;;  %9400 = vmatprep.subr.bf16.mxu0 %v11846_v1  ;;  %v10474_v0 = vld [vmem:[%s14954_s3 + $0x52c] ss:$16 sps:$4 sm:$0xff]   ;;  %v10469_v1 = vld [vmem:[%s14954_s3 + $0x520] ss:$16 sps:$4 sm:$0xff]  }
 0x489   :  { %9379 = vmatpush3.bf16.msra.mxu1 %v11852_v2  ;;  %9401 = vmatpush3.bf16.msra.mxu0 %v11858_v3  ;;  %v10472_v2 = vld [vmem:[%s14954_s3 + $0x528] ss:$16 sps:$4 sm:$0xff]   ;;  %v10477_v3 = vld [vmem:[%s14954_s3 + $0x544] ss:$16 sps:$4 sm:$0xff]  }
 0x48a   :  { %9380 = vmatprep.subr.bf16.mxu1 %v11864_v4  ;;  %9402 = vmatprep.subr.bf16.mxu0 %v11870_v5  ;;  %v10480_v4 = vld [vmem:[%s14954_s3 + $0x54c] ss:$16 sps:$4 sm:$0xff]   ;;  %v10475_v5 = vld [vmem:[%s14954_s3 + $0x540] ss:$16 sps:$4 sm:$0xff]  }
 0x48d   :  { %9381 = vmatpush3.bf16.msra.mxu1 %v11876_v6  ;;  %9403 = vmatpush3.bf16.msra.mxu0 %v11882_v7  ;;  %v10478_v6 = vld [vmem:[%s14954_s3 + $0x548] ss:$16 sps:$4 sm:$0xff]   ;;  %v10483_v7 = vld [vmem:[%s14954_s3 + $0x564] ss:$16 sps:$4 sm:$0xff]  }
 0x48e   :  { %9382 = vmatprep.subr.bf16.mxu1 %v11888_v8  ;;  %9404 = vmatprep.subr.bf16.mxu0 %v11894_v9  ;;  %v10481_v8 = vld [vmem:[%s14954_s3 + $0x560] ss:$16 sps:$4 sm:$0xff]   ;;  %v10486_v9 = vld [vmem:[%s14954_s3 + $0x56c] ss:$16 sps:$4 sm:$0xff]  }
 0x491   :  { %9383 = vmatpush3.bf16.msra.mxu1 %v11900_v10  ;;  %9405 = vmatpush3.bf16.msra.mxu0 %v11906_v11  ;;  %v10484_v10 = vld [vmem:[%s14954_s3 + $0x568] ss:$16 sps:$4 sm:$0xff]   ;;  %v10487_v11 = vld [vmem:[%s14954_s3 + $0x580] ss:$16 sps:$4 sm:$0xff]  }
 0x492   :  { %9384 = vmatprep.subr.bf16.mxu1 %v11912_v12  ;;  %9406 = vmatprep.subr.bf16.mxu0 %v11918_v13  ;;  %v10489_v12 = vld [vmem:[%s14954_s3 + $0x584] ss:$16 sps:$4 sm:$0xff]   ;;  %v10490_v13 = vld [vmem:[%s14954_s3 + $0x588] ss:$16 sps:$4 sm:$0xff]  }
 0x495   :  { %9385 = vmatpush3.bf16.msra.mxu1 %v11926_v15  ;;  %9407 = vmatpush3.bf16.msra.mxu0 %v11932_v16  ;;  %v10492_v15 = vld [vmem:[%s14954_s3 + $0x58c] ss:$16 sps:$4 sm:$0xff]   ;;  %v10495_v16 = vld [vmem:[%s14954_s3 + $0x5a4] ss:$16 sps:$4 sm:$0xff]  }
 0x496   :  { %9386 = vmatprep.subr.bf16.mxu1 %v11938_v17  ;;  %9408 = vmatprep.subr.bf16.mxu0 %v11944_v18  ;;  %v10498_v17 = vld [vmem:[%s14954_s3 + $0x5ac] ss:$16 sps:$4 sm:$0xff]   ;;  %v10493_v18 = vld [vmem:[%s14954_s3 + $0x5a0] ss:$16 sps:$4 sm:$0xff]  }
 0x499   :  { %9387 = vmatpush3.bf16.msra.mxu1 %v11950_v20  ;;  %9409 = vmatpush3.bf16.msra.mxu0 %v11956_v21  ;;  %v10496_v20 = vld [vmem:[%s14954_s3 + $0x5a8] ss:$16 sps:$4 sm:$0xff]   ;;  %v10501_v21 = vld [vmem:[%s14954_s3 + $0x5c4] ss:$16 sps:$4 sm:$0xff]  }
 0x49a   :  { %10024 = vmatprep.subr.bf16.mxu1 %v11213_v36  ;;  %2934 = vmatprep.subr.bf16.mxu0 %v10465_v60 }
 0x49c   :  { %2652 = vmatmul.mubr.bf16.vlgmr.msra.gmra.mrb[52].mxu1 %v2595_v54  ;;  %2692 = vmatmul.mubr.bf16.vlgmr.msra.gmra.mrb[48].mxu0 %v2610_v55 }
 0x49d   :  { %10025 = vmatpush3.bf16.msra.mxu1 %v11963_v22  ;;  %10032 = vmatprep.mubr.msk.bf16.mxu1 %vm11214_vm0, %v11213_v36  ;;  %v10504_v22 = vld [vmem:[%s14954_s3 + $0x5cc] ss:$16 sps:$4 sm:$0xff]  }
 0x49e   :  { %10026 = vmatprep.subr.bf16.mxu1 %v11213_v36  ;;  %2966 = vmatprep.mubr.bf16.mxu0 %v11215_v33 }
 0x49f   :  { %2935 = vmatpush1.bf16.msra.mxu0 %v10463_v59 }
 0x4a0   :  { %2936 = vmatprep.subr.bf16.mxu0 %v10471_v63 }
 0x4a1   :  { %10027 = vmatpush3.bf16.msra.mxu1 %v11975_v24  ;;  %v10499_v24 = vld [vmem:[%s14954_s3 + $0x5c0] ss:$16 sps:$4 sm:$0xff]  }
 0x4a2   :  { %10028 = vmatprep.subr.bf16.mxu1 %v11213_v36 }
 0x4a3   :  { %2937 = vmatpush1.bf16.msra.mxu0 %v10469_v1 }
 0x4a4   :  { %2938 = vmatprep.subr.bf16.mxu0 %v10477_v3 }
 0x4a5   :  { %10029 = vmatpush3.bf16.msra.mxu1 %v11983_v26  ;;  %v10502_v26 = vld [vmem:[%s14954_s3 + $0x5c8] ss:$16 sps:$4 sm:$0xff]  }
 0x4a6   :  { %10030 = vmatprep.subr.bf16.mxu1 %v11213_v36 }
 0x4a7   :  { %2939 = vmatpush1.bf16.msra.mxu0 %v10475_v5 }
 0x4a8   :  { %2940 = vmatprep.subr.bf16.mxu0 %v10483_v7  ;;  %v12625_v7 = vld [vmem:[%s14952_s1 + $0x80] sm:$0xff]  }
 0x4a9   :  { %10031 = vmatpush3.bf16.msra.mxu1 %v11991_v28  ;;  %v10507_v28 = vld [vmem:[%s14954_s3 + $0x5e4] ss:$16 sps:$4 sm:$0xff]  }
 0x4aa   :  { %2975 = vmatprep.subr.bf16.mxu1 %v10468_v62 }
 0x4ab   :  { %2941 = vmatpush1.bf16.msra.mxu0 %v10481_v8  ;;  %v12631_v8 = vld [vmem:[%s14952_s1 + $0x48] sm:$0xff]  }
 0x4ac   :  { %10033 = vmatmul.mubr.msk.bf16.vlgmr.msra.gmra.mrb[56].mxu1 %vm374_vm1, %v2602_v58  ;;  %2942 = vmatprep.subr.bf16.mxu0 %v10489_v12  ;;  %v12655_v12 = vld [vmem:[%s14952_s1 + $0x50] sm:$0xff]  }
 0x4ad   :  { %3007 = vmatprep.mubr.bf16.mxu1 %v11215_v33  ;;  %2976 = vmatpush1.bf16.msra.mxu1 %v10466_v61 }
 0x4ae   :  { %2977 = vmatprep.subr.bf16.mxu1 %v10474_v0 }
 0x4af   :  { %2943 = vmatpush1.bf16.msra.mxu0 %v10487_v11  ;;  %v12649_v11 = vld [vmem:[%s14952_s1 + $0x88] sm:$0xff]  }
 0x4b0   :  { %2944 = vmatprep.subr.bf16.mxu0 %v10495_v16  ;;  %v12673_v16 = vld [vmem:[%s14952_s1 + $0x90] sm:$0xff]  }
 0x4b1   :  { %2978 = vmatpush1.bf16.msra.mxu1 %v10472_v2 }
 0x4b2   :  { %2979 = vmatprep.subr.bf16.mxu1 %v10480_v4 }
 0x4b3   :  { %2945 = vmatpush1.bf16.msra.mxu0 %v10493_v18  ;;  %v12685_v18 = vld [vmem:[%s14952_s1 + $0xd8] sm:$0xff]  }
 0x4b4   :  { %2946 = vmatprep.subr.bf16.mxu0 %v10501_v21  ;;  %v12697_v21 = vld [vmem:[%s14952_s1 + $0x98] sm:$0xff]  }
 0x4b5   :  { %2980 = vmatpush1.bf16.msra.mxu1 %v10478_v6  ;;  %v12619_v6 = vld [vmem:[%s14952_s1] sm:$0xff]  }
 0x4b6   :  { %2981 = vmatprep.subr.bf16.mxu1 %v10486_v9  ;;  %v12637_v9 = vld [vmem:[%s14952_s1 + $0xc8] sm:$0xff]  }
 0x4b7   :  { %2947 = vmatpush1.bf16.msra.mxu0 %v10499_v24  ;;  %v12709_v24 = vld [vmem:[%s14952_s1 + $0xe0] sm:$0xff]  }
 0x4b8   :  { %2948 = vmatprep.subr.bf16.mxu0 %v10507_v28  ;;  %v12721_v28 = vld [vmem:[%s14952_s1 + $0xa0] sm:$0xff]  }
 0x4b9   :  { %2982 = vmatpush1.bf16.msra.mxu1 %v10484_v10  ;;  %v12643_v10 = vld [vmem:[%s14952_s1 + $0x8] sm:$0xff]  }
 0x4ba   :  { %2983 = vmatprep.subr.bf16.mxu1 %v10492_v15  ;;  %v12667_v15 = vld [vmem:[%s14952_s1 + $0x10] sm:$0xff]  }
 0x4bb   :  { %2949 = vmatpush1.bf16.msra.mxu0 %v10505_v43  ;;  %v12727_v43 = vld [vmem:[%s14952_s1 + $0x68] sm:$0xff]  }
 0x4bc   :  { %9421 = vmatprep.subr.bf16.mxu0 %v12582_v50 }
 0x4bd   :  { %2984 = vmatpush1.bf16.msra.mxu1 %v10490_v13  ;;  %v12661_v13 = vld [vmem:[%s14952_s1 + $0xd0] sm:$0xff]  }
 0x4be   :  { %2985 = vmatprep.subr.bf16.mxu1 %v10498_v17  ;;  %v12679_v17 = vld [vmem:[%s14952_s1 + $0x58] sm:$0xff]  }
 0x4c1   :  { %2986 = vmatpush1.bf16.msra.mxu1 %v10496_v20  ;;  %v12691_v20 = vld [vmem:[%s14952_s1 + $0x18] sm:$0xff]  }
 0x4c2   :  { %2987 = vmatprep.subr.bf16.mxu1 %v10504_v22  ;;  %v12703_v22 = vld [vmem:[%s14952_s1 + $0x60] sm:$0xff]  }
 0x4c5   :  { %2988 = vmatpush1.bf16.msra.mxu1 %v10502_v26  ;;  %v12715_v26 = vld [vmem:[%s14952_s1 + $0x20] sm:$0xff]  }
 0x4c6   :  { %2989 = vmatprep.subr.bf16.mxu1 %v10510_v51  ;;  %v12733_v51 = vld [vmem:[%s14952_s1 + $0xe8] sm:$0xff]  }
 0x4c9   :  { %2990 = vmatpush1.bf16.msra.mxu1 %v10508_v46  ;;  %v12739_v46 = vld [vmem:[%s14952_s1 + $0x28] sm:$0xff]  }
 0x4ca   :  { %9443 = vmatprep.subr.bf16.mxu1 %v12588_v25 }
 0x54f   :  { %v2518_v27 = vpop.f32.mrb[48].mxu1  ;;  %v2559_v31 = vpop.f32.mrb[44].mxu0 }
 0x550   :  { %v12592_v45 = vadd.f32 %v2518_v27, %v12415_v41  ;;  %v12595_v32 = vadd.f32 %v2559_v31, %v12418_v37  ;;  %v2520_v34 = vpop.f32.mrb[49].mxu1  ;;  %v2561_v38 = vpop.f32.mrb[45].mxu0  ;;  %v12745_v27 = vld [vmem:[%s14952_s1 + $0xa8] sm:$0xff]   ;;  %v12751_v31 = vld [vmem:[%s14952_s1 + $0x70] sm:$0xff]  }
 0x551   :  { %v12598_v19 = vadd.f32 %v2520_v34, %v12421_v42  ;;  %v12601_v39 = vadd.f32 %v2561_v38, %v12424_v47  ;;  %v2522_v23 = vpop.f32.mrb[50].mxu1  ;;  %v2563_v49 = vpop.f32.mrb[46].mxu0  ;;  %v12607_v47 = vld [vmem:[%s14951_s0 + $0x1e] sm:$0x1f]  ;;  %v12757_v34 = vld [vmem:[%s14952_s1 + $0xf0] sm:$0xff]  }
 0x552   :  { %v2523_v52 = vpop.f32.mrb[51].mxu1  ;;  %v2564_v29 = vpop.f32.mrb[47].mxu0  ;;  %v12611_v59 = vrot.slane %v12607_v47, %v11472_v40  ;;  %v12765_v23 = vld [vmem:[%s14952_s1 + $0x30] sm:$0xff]  }
 0x553   :  { %v12771_v49 = vld [vmem:[%s14952_s1 + $0xb0] sm:$0xff]   ;;  %v12777_v52 = vld [vmem:[%s14952_s1 + $0x78] sm:$0xff]  }
 0x554   :  { %v3038_v60 = vcombine.high %v12611_v59, %v12611_v59  ;;  %v3045_v38 = vrot.slane %v12611_v59, %v11472_v40  ;;  %v12783_v29 = vld [vmem:[%s14952_s1 + $0xf8] sm:$0xff]  }
 0x555   :  { %v10517_v59 = vld [vmem:[%s14954_s3 + $0x60c] ss:$16 sps:$4 sm:$0xff]  }
 0x556   :  { %v3059_v1 = vrot.slane %v3038_v60, %v11472_v40  ;;  %v10520_v60 = vld [vmem:[%s14954_s3 + $0x624] ss:$16 sps:$4 sm:$0xff]  }
 0x558   :  { %v3061_v5 = vcombine.high %v3059_v1, %v3059_v1 }
 0x56f   :  { %v9388_v53 = vpop.f32.mrb[52].mxu1  ;;  %v9410_v48 = vpop.f32.mrb[48].mxu0 }
 0x570   :  { %v9389_v30 = vpop.f32.mrb[53].mxu1  ;;  %v9411_v41 = vpop.f32.mrb[49].mxu0 }
 0x571   :  { %v9390_v44 = vadd.f32 %v9389_v30, %v9388_v53  ;;  %v9391_v54 = vpop.f32.mrb[54].mxu1  ;;  %v9412_v37 = vadd.f32 %v9411_v41, %v9410_v48  ;;  %v9413_v55 = vpop.f32.mrb[50].mxu0  ;;  %v3060_v53 = vcombine.high %v3045_v38, %v3045_v38  ;;  %v12789_v48 = vld [vmem:[%s14952_s1 + $0x38] sm:$0xff]   ;;  %v12802_v41 = vld [vmem:[%s14952_s1 + $0x100] sm:$0xff]  }
 0x572   :  { %v9392_v56 = vpop.f32.mrb[55].mxu1  ;;  %v9414_v57 = vpop.f32.mrb[51].mxu0  ;;  %v12795_v30 = vld [vmem:[%s14952_s1 + $0xb8] sm:$0xff]   ;;  %v12814_v54 = vld [vmem:[%s14952_s1 + $0x108] sm:$0xff]   ;;  %v12822_v55 = vld [vmem:[%s14952_s1 + $0x110] sm:$0xff]  }
 0x573   :  { %v2654_v42 = vadd.f32 %v12429_v14, %v9390_v44  ;;  %v3023_v44 = vcombine.high %v12607_v47, %v12607_v47  ;;  %v12830_v57 = vld [vmem:[%s14952_s1 + $0x118] sm:$0xff]  }
 0x574   :  { %v10515_v47 = vld [vmem:[%s14954_s3 + $0x608] ss:$16 sps:$4 sm:$0xff]  }
 0x575   :  { %v2694_v58 = vadd.f32 %v9412_v37, %v2654_v42  ;;  %v3037_v37 = vrot.slane %v3023_v44, %v11472_v40  ;;  %v10512_v42 = vld [vmem:[%s14954_s3 + $0x600] ss:$16 sps:$4 sm:$0xff]  }
 0x576   :  { %v10536_v44 = vld [vmem:[%s14954_s3 + $0x680] ss:$16 sps:$4 sm:$0xff]  }
 0x577   :  { %v3052_v56 = vrot.slane %v3037_v37, %v11472_v40  ;;  %v10538_v37 = vld [vmem:[%s14954_s3 + $0x684] ss:$16 sps:$4 sm:$0xff]  }
 0x57f   :  { %v2733_v61 = vpop.f32.mrb[56].mxu1 }
 0x580   :  { %v2734_v62 = vadd.f32 %v2733_v61, %v2694_v58  ;;  %v10034_v63 = vpop.f32.mrb[57].mxu1  ;;  %v10514_v58 = vld [vmem:[%s14954_s3 + $0x604] ss:$16 sps:$4 sm:$0xff]   ;;  %v10523_v61 = vld [vmem:[%s14954_s3 + $0x62c] ss:$16 sps:$4 sm:$0xff]  }
 0x581   :  { %v2736_v0 = vpop.f32.mrb[58].mxu1  ;;  %v10521_v63 = vld [vmem:[%s14954_s3 + $0x628] ss:$16 sps:$4 sm:$0xff]  }
 0x582   :  { %v2739_v2 = vmax.f32 %v2734_v62, 0.0  ;;  %v10035_v3 = vpop.f32.mrb[59].mxu1  ;;  %v10518_v62 = vld [vmem:[%s14954_s3 + $0x620] ss:$16 sps:$4 sm:$0xff]   ;;  %v10526_v0 = vld [vmem:[%s14954_s3 + $0x644] ss:$16 sps:$4 sm:$0xff]  }
 0x583   :  { %v10527_v3 = vld [vmem:[%s14954_s3 + $0x648] ss:$16 sps:$4 sm:$0xff]  }
 0x584   :  { %v2740_v4 = vpack.c.bf16 %v2739_v2, %v2739_v2  ;;  %v10524_v2 = vld [vmem:[%s14954_s3 + $0x640] ss:$16 sps:$4 sm:$0xff]  }
 0x586   :  { %2967 = vmatmul.mubr.bf16.vlgmr.msra.gmra.mrb[52].mxu0 %v2740_v4  ;;  %3008 = vmatmul.mubr.bf16.vlgmr.msra.gmra.mrb[60].mxu1 %v2740_v4  ;;  %v10532_v4 = vld [vmem:[%s14954_s3 + $0x664] ss:$16 sps:$4 sm:$0xff]  }
 0x587   :  { %9422 = vmatpush3.bf16.msra.mxu0 %v12619_v6  ;;  %9444 = vmatpush3.bf16.msra.mxu1 %v12625_v7 }
 0x588   :  { %9423 = vmatprep.subr.bf16.mxu0 %v12631_v8  ;;  %9445 = vmatprep.subr.bf16.mxu1 %v12637_v9 }
 0x589   :  { %3101 = vmatprep.mubr.bf16.mxu0 %v3059_v1  ;;  %3141 = vmatprep.mubr.bf16.mxu1 %v3061_v5  ;;  %v10529_v1 = vld [vmem:[%s14954_s3 + $0x64c] ss:$16 sps:$4 sm:$0xff]   ;;  %v10530_v5 = vld [vmem:[%s14954_s3 + $0x660] ss:$16 sps:$4 sm:$0xff]  }
 0x58b   :  { %9424 = vmatpush3.bf16.msra.mxu0 %v12643_v10  ;;  %9446 = vmatpush3.bf16.msra.mxu1 %v12649_v11 }
 0x58c   :  { %9425 = vmatprep.subr.bf16.mxu0 %v12655_v12  ;;  %9447 = vmatprep.subr.bf16.mxu1 %v12661_v13 }
 0x58f   :  { %9426 = vmatpush3.bf16.msra.mxu0 %v12667_v15  ;;  %9448 = vmatpush3.bf16.msra.mxu1 %v12673_v16 }
 0x590   :  { %9427 = vmatprep.subr.bf16.mxu0 %v12679_v17  ;;  %9449 = vmatprep.subr.bf16.mxu1 %v12685_v18 }
 0x593   :  { %9428 = vmatpush3.bf16.msra.mxu0 %v12691_v20  ;;  %9450 = vmatpush3.bf16.msra.mxu1 %v12697_v21 }
 0x594   :  { %9429 = vmatprep.subr.bf16.mxu0 %v12703_v22  ;;  %9451 = vmatprep.subr.bf16.mxu1 %v12709_v24 }
 0x597   :  { %9430 = vmatpush3.bf16.msra.mxu0 %v12715_v26  ;;  %9452 = vmatpush3.bf16.msra.mxu1 %v12721_v28 }
 0x598   :  { %9431 = vmatprep.subr.bf16.mxu0 %v12727_v43  ;;  %9453 = vmatprep.subr.bf16.mxu1 %v12733_v51 }
 0x59b   :  { %9432 = vmatpush3.bf16.msra.mxu0 %v12739_v46  ;;  %9454 = vmatpush3.bf16.msra.mxu1 %v12745_v27 }
 0x59c   :  { %9433 = vmatprep.subr.bf16.mxu0 %v12751_v31  ;;  %9455 = vmatprep.subr.bf16.mxu1 %v12757_v34 }
 0x59f   :  { %9434 = vmatpush3.bf16.msra.mxu0 %v12765_v23  ;;  %9456 = vmatpush3.bf16.msra.mxu1 %v12771_v49 }
 0x5a0   :  { %9435 = vmatprep.subr.bf16.mxu0 %v12777_v52  ;;  %9457 = vmatprep.subr.bf16.mxu1 %v12783_v29 }
 0x5a3   :  { %9436 = vmatpush3.bf16.msra.mxu0 %v12789_v48  ;;  %9458 = vmatpush3.bf16.msra.mxu1 %v12795_v30 }
 0x5a4   :  { %10036 = vmatprep.subr.bf16.mxu0 %v11213_v36  ;;  %3384 = vmatprep.subr.bf16.mxu1 %v10514_v58  ;;  %v10544_v58 = vld [vmem:[%s14954_s3 + $0x6a4] ss:$16 sps:$4 sm:$0xff]  }
 0x5a6   :  { %3102 = vmatmul.mubr.bf16.vlgmr.msra.gmra.mrb[56].mxu0 %v3045_v38  ;;  %3142 = vmatmul.mubr.bf16.vlgmr.msra.gmra.mrb[64].mxu1 %v3060_v53  ;;  %v10535_v38 = vld [vmem:[%s14954_s3 + $0x66c] ss:$16 sps:$4 sm:$0xff]   ;;  %v10533_v53 = vld [vmem:[%s14954_s3 + $0x668] ss:$16 sps:$4 sm:$0xff]  }
 0x5a7   :  { %10037 = vmatpush3.bf16.msra.mxu0 %v12802_v41  ;;  %10044 = vmatprep.mubr.msk.bf16.mxu0 %vm11214_vm0, %v11213_v36 }
 0x5a8   :  { %10038 = vmatprep.subr.bf16.mxu0 %v11213_v36  ;;  %3416 = vmatprep.mubr.bf16.mxu1 %v11215_v33 }
 0x5a9   :  { %3385 = vmatpush1.bf16.msra.mxu1 %v10512_v42  ;;  %v10541_v42 = vld [vmem:[%s14954_s3 + $0x68c] ss:$16 sps:$4 sm:$0xff]  }
 0x5aa   :  { %3386 = vmatprep.subr.bf16.mxu1 %v10520_v60  ;;  %v10545_v60 = vld [vmem:[%s14954_s3 + $0x6a8] ss:$16 sps:$4 sm:$0xff]  }
 0x5ab   :  { %10039 = vmatpush3.bf16.msra.mxu0 %v12814_v54 }
 0x5ac   :  { %10040 = vmatprep.subr.bf16.mxu0 %v11213_v36 }
 0x5ad   :  { %3387 = vmatpush1.bf16.msra.mxu1 %v10518_v62  ;;  %v10553_v62 = vld [vmem:[%s14954_s3 + $0x6cc] ss:$16 sps:$4 sm:$0xff]  }
 0x5ae   :  { %3388 = vmatprep.subr.bf16.mxu1 %v10526_v0  ;;  %v10551_v0 = vld [vmem:[%s14954_s3 + $0x6c8] ss:$16 sps:$4 sm:$0xff]  }
 0x5af   :  { %10041 = vmatpush3.bf16.msra.mxu0 %v12822_v55 }
 0x5b0   :  { %10042 = vmatprep.subr.bf16.mxu0 %v11213_v36 }
 0x5b1   :  { %3389 = vmatpush1.bf16.msra.mxu1 %v10524_v2  ;;  %v10554_v2 = vld [vmem:[%s14954_s3 + $0x6e0] ss:$16 sps:$4 sm:$0xff]  }
 0x5b2   :  { %3390 = vmatprep.subr.bf16.mxu1 %v10532_v4  ;;  %v10557_v4 = vld [vmem:[%s14954_s3 + $0x6e8] ss:$16 sps:$4 sm:$0xff]  }
 0x5b3   :  { %10043 = vmatpush3.bf16.msra.mxu0 %v12830_v57 }
 0x5b4   :  { %3425 = vmatprep.subr.bf16.mxu0 %v10517_v59  ;;  %v10542_v59 = vld [vmem:[%s14954_s3 + $0x6a0] ss:$16 sps:$4 sm:$0xff]  }
 0x5b5   :  { %3391 = vmatpush1.bf16.msra.mxu1 %v10530_v5 }
 0x5b6   :  { %10045 = vmatmul.mubr.msk.bf16.vlgmr.msra.gmra.mrb[60].mxu0 %vm374_vm1, %v3052_v56  ;;  %v10539_v56 = vld [vmem:[%s14954_s3 + $0x688] ss:$16 sps:$4 sm:$0xff]   ;;  %3392 = vmatprep.subr.bf16.mxu1 %v10538_v37 }
 0x5b7   :  { %3457 = vmatprep.mubr.bf16.mxu0 %v11215_v33  ;;  %3426 = vmatpush1.bf16.msra.mxu0 %v10515_v47  ;;  %v10547_v47 = vld [vmem:[%s14954_s3 + $0x6ac] ss:$16 sps:$4 sm:$0xff]  }
 0x5b8   :  { %3427 = vmatprep.subr.bf16.mxu0 %v10523_v61  ;;  %v10550_v61 = vld [vmem:[%s14954_s3 + $0x6c4] ss:$16 sps:$4 sm:$0xff]  }
 0x5b9   :  { %3393 = vmatpush1.bf16.msra.mxu1 %v10536_v44 }
 0x5ba   :  { %3394 = vmatprep.subr.bf16.mxu1 %v10544_v58 }
 0x5bb   :  { %3428 = vmatpush1.bf16.msra.mxu0 %v10521_v63  ;;  %v10548_v63 = vld [vmem:[%s14954_s3 + $0x6c0] ss:$16 sps:$4 sm:$0xff]  }
 0x5bc   :  { %3429 = vmatprep.subr.bf16.mxu0 %v10529_v1  ;;  %v10556_v1 = vld [vmem:[%s14954_s3 + $0x6e4] ss:$16 sps:$4 sm:$0xff]  }
 0x5bd   :  { %3395 = vmatpush1.bf16.msra.mxu1 %v10542_v59 }
 0x5be   :  { %3396 = vmatprep.subr.bf16.mxu1 %v10550_v61 }
 0x5bf   :  { %3430 = vmatpush1.bf16.msra.mxu0 %v10527_v3  ;;  %v10559_v3 = vld [vmem:[%s14954_s3 + $0x6ec] ss:$16 sps:$4 sm:$0xff]  }
 0x5c0   :  { %3431 = vmatprep.subr.bf16.mxu0 %v10535_v38 }
 0x5c1   :  { %3397 = vmatpush1.bf16.msra.mxu1 %v10548_v63 }
 0x5c2   :  { %3398 = vmatprep.subr.bf16.mxu1 %v10556_v1 }
 0x5c3   :  { %3432 = vmatpush1.bf16.msra.mxu0 %v10533_v53 }
 0x5c4   :  { %3433 = vmatprep.subr.bf16.mxu0 %v10541_v42 }
 0x5c5   :  { %3399 = vmatpush1.bf16.msra.mxu1 %v10554_v2 }
 0x5c6   :  { %9470 = vmatprep.subr.bf16.mxu1 %v12582_v50 }
 0x5c7   :  { %3434 = vmatpush1.bf16.msra.mxu0 %v10539_v56 }
 0x5c8   :  { %3435 = vmatprep.subr.bf16.mxu0 %v10547_v47 }
 0x5cb   :  { %3436 = vmatpush1.bf16.msra.mxu0 %v10545_v60 }
 0x5cc   :  { %3437 = vmatprep.subr.bf16.mxu0 %v10553_v62 }
 0x5cf   :  { %3438 = vmatpush1.bf16.msra.mxu0 %v10551_v0 }
 0x5d0   :  { %3439 = vmatprep.subr.bf16.mxu0 %v10559_v3 }
 0x5d3   :  { %3440 = vmatpush1.bf16.msra.mxu0 %v10557_v4 }
 0x5d4   :  { %9492 = vmatprep.subr.bf16.mxu0 %v12588_v25 }
 0x659   :  { %v2968_v5 = vpop.f32.mrb[52].mxu0  ;;  %v3009_v38 = vpop.f32.mrb[60].mxu1 }
 0x65a   :  { %v12934_v53 = vadd.f32 %v2968_v5, %v12592_v45  ;;  %v12937_v44 = vadd.f32 %v3009_v38, %v12595_v32  ;;  %v2970_v37 = vpop.f32.mrb[53].mxu0  ;;  %v3011_v56 = vpop.f32.mrb[61].mxu1 }
 0x65b   :  { %v12940_v42 = vadd.f32 %v2970_v37, %v12598_v19  ;;  %v12943_v58 = vadd.f32 %v3011_v56, %v12601_v39  ;;  %v2972_v47 = vpop.f32.mrb[54].mxu0  ;;  %v3013_v59 = vpop.f32.mrb[62].mxu1  ;;  %v8491_v39 = vld [vmem:[%s14951_s0 + $0x23] sm:$0x1f] }
 0x65c   :  { %v2973_v60 = vpop.f32.mrb[55].mxu0  ;;  %v3014_v61 = vpop.f32.mrb[63].mxu1  ;;  %v3480_v37 = vrot.slane %v8491_v39, %v11472_v40 }
 0x65e   :  { %v3488_v56 = vcombine.high %v3480_v37, %v3480_v37 }
 0x679   :  { %v9437_v62 = vpop.f32.mrb[56].mxu0  ;;  %v9459_v63 = vpop.f32.mrb[64].mxu1 }
 0x67a   :  { %v9438_v0 = vpop.f32.mrb[57].mxu0  ;;  %v9460_v45 = vpop.f32.mrb[65].mxu1 }
 0x67b   :  { %v9439_v1 = vadd.f32 %v9438_v0, %v9437_v62  ;;  %v9440_v2 = vpop.f32.mrb[58].mxu0  ;;  %v9461_v32 = vadd.f32 %v9460_v45, %v9459_v63  ;;  %v9462_v3 = vpop.f32.mrb[66].mxu1  ;;  %v3509_v62 = vrot.slane %v3488_v56, %v11472_v40  ;;  %v10569_v56 = vld [vmem:[%s14954_s3 + $0x724] ss:$16 sps:$4 sm:$0xff]  }
 0x67c   :  { %v9441_v4 = vpop.f32.mrb[59].mxu0  ;;  %v9463_v5 = vpop.f32.mrb[67].mxu1  ;;  %v3473_v3 = vcombine.high %v8491_v39, %v8491_v39  ;;  %v10564_v39 = vld [vmem:[%s14954_s3 + $0x708] ss:$16 sps:$4 sm:$0xff]  }
 0x67d   :  { %v3104_v19 = vadd.f32 %v12429_v14, %v9439_v1  ;;  %v3511_v2 = vcombine.high %v3509_v62, %v3509_v62  ;;  %v3495_v1 = vrot.slane %v3480_v37, %v11472_v40  ;;  %v10566_v37 = vld [vmem:[%s14954_s3 + $0x70c] ss:$16 sps:$4 sm:$0xff]  }
 0x67e   :  { %v3487_v4 = vrot.slane %v3473_v3, %v11472_v40  ;;  %v10585_v3 = vld [vmem:[%s14954_s3 + $0x780] ss:$16 sps:$4 sm:$0xff]  }
 0x67f   :  { %v3144_v38 = vadd.f32 %v9461_v32, %v3104_v19  ;;  %v3510_v32 = vcombine.high %v3495_v1, %v3495_v1  ;;  %v10561_v19 = vld [vmem:[%s14954_s3 + $0x700] ss:$16 sps:$4 sm:$0xff]  }
 0x680   :  { %v3502_v5 = vrot.slane %v3487_v4, %v11472_v40  ;;  %v10587_v4 = vld [vmem:[%s14954_s3 + $0x784] ss:$16 sps:$4 sm:$0xff]  }
 0x689   :  { %v3183_v47 = vpop.f32.mrb[60].mxu0 }
 0x68a   :  { %v3184_v59 = vadd.f32 %v3183_v47, %v3144_v38  ;;  %v10046_v60 = vpop.f32.mrb[61].mxu0  ;;  %v10563_v38 = vld [vmem:[%s14954_s3 + $0x704] ss:$16 sps:$4 sm:$0xff]   ;;  %v10572_v47 = vld [vmem:[%s14954_s3 + $0x72c] ss:$16 sps:$4 sm:$0xff]  }
 0x68b   :  { %v3186_v61 = vpop.f32.mrb[62].mxu0  ;;  %v10570_v60 = vld [vmem:[%s14954_s3 + $0x728] ss:$16 sps:$4 sm:$0xff]  }
 0x68c   :  { %v3189_v63 = vmax.f32 %v3184_v59, 0.0  ;;  %v10047_v0 = vpop.f32.mrb[63].mxu0  ;;  %v10567_v59 = vld [vmem:[%s14954_s3 + $0x720] ss:$16 sps:$4 sm:$0xff]   ;;  %v10575_v61 = vld [vmem:[%s14954_s3 + $0x744] ss:$16 sps:$4 sm:$0xff]  }
 0x68d   :  { %v10576_v0 = vld [vmem:[%s14954_s3 + $0x748] ss:$16 sps:$4 sm:$0xff]  }
 0x68e   :  { %v3190_v45 = vpack.c.bf16 %v3189_v63, %v3189_v63  ;;  %v10573_v63 = vld [vmem:[%s14954_s3 + $0x740] ss:$16 sps:$4 sm:$0xff]  }
 0x690   :  { %3417 = vmatmul.mubr.bf16.vlgmr.msra.gmra.mrb[68].mxu1 %v3190_v45  ;;  %3458 = vmatmul.mubr.bf16.vlgmr.msra.gmra.mrb[64].mxu0 %v3190_v45  ;;  %v10581_v45 = vld [vmem:[%s14954_s3 + $0x764] ss:$16 sps:$4 sm:$0xff]  }
 0x691   :  { %9471 = vmatpush3.bf16.msra.mxu1 %v12619_v6  ;;  %9493 = vmatpush3.bf16.msra.mxu0 %v12625_v7 }
 0x692   :  { %9472 = vmatprep.subr.bf16.mxu1 %v12631_v8  ;;  %9494 = vmatprep.subr.bf16.mxu0 %v12637_v9 }
 0x693   :  { %3551 = vmatprep.mubr.bf16.mxu1 %v3509_v62  ;;  %3591 = vmatprep.mubr.bf16.mxu0 %v3511_v2  ;;  %v10578_v62 = vld [vmem:[%s14954_s3 + $0x74c] ss:$16 sps:$4 sm:$0xff]   ;;  %v10579_v2 = vld [vmem:[%s14954_s3 + $0x760] ss:$16 sps:$4 sm:$0xff]  }
 0x695   :  { %9473 = vmatpush3.bf16.msra.mxu1 %v12643_v10  ;;  %9495 = vmatpush3.bf16.msra.mxu0 %v12649_v11 }
 0x696   :  { %9474 = vmatprep.subr.bf16.mxu1 %v12655_v12  ;;  %9496 = vmatprep.subr.bf16.mxu0 %v12661_v13 }
 0x699   :  { %9475 = vmatpush3.bf16.msra.mxu1 %v12667_v15  ;;  %9497 = vmatpush3.bf16.msra.mxu0 %v12673_v16 }
 0x69a   :  { %9476 = vmatprep.subr.bf16.mxu1 %v12679_v17  ;;  %9498 = vmatprep.subr.bf16.mxu0 %v12685_v18 }
 0x69d   :  { %9477 = vmatpush3.bf16.msra.mxu1 %v12691_v20  ;;  %9499 = vmatpush3.bf16.msra.mxu0 %v12697_v21 }
 0x69e   :  { %9478 = vmatprep.subr.bf16.mxu1 %v12703_v22  ;;  %9500 = vmatprep.subr.bf16.mxu0 %v12709_v24 }
 0x6a1   :  { %9479 = vmatpush3.bf16.msra.mxu1 %v12715_v26  ;;  %9501 = vmatpush3.bf16.msra.mxu0 %v12721_v28 }
 0x6a2   :  { %9480 = vmatprep.subr.bf16.mxu1 %v12727_v43  ;;  %9502 = vmatprep.subr.bf16.mxu0 %v12733_v51 }
 0x6a5   :  { %9481 = vmatpush3.bf16.msra.mxu1 %v12739_v46  ;;  %9503 = vmatpush3.bf16.msra.mxu0 %v12745_v27 }
 0x6a6   :  { %9482 = vmatprep.subr.bf16.mxu1 %v12751_v31  ;;  %9504 = vmatprep.subr.bf16.mxu0 %v12757_v34 }
 0x6a9   :  { %9483 = vmatpush3.bf16.msra.mxu1 %v12765_v23  ;;  %9505 = vmatpush3.bf16.msra.mxu0 %v12771_v49 }
 0x6aa   :  { %9484 = vmatprep.subr.bf16.mxu1 %v12777_v52  ;;  %9506 = vmatprep.subr.bf16.mxu0 %v12783_v29 }
 0x6ad   :  { %9485 = vmatpush3.bf16.msra.mxu1 %v12789_v48  ;;  %9507 = vmatpush3.bf16.msra.mxu0 %v12795_v30 }
 0x6ae   :  { %10048 = vmatprep.subr.bf16.mxu1 %v11213_v36  ;;  %3834 = vmatprep.subr.bf16.mxu0 %v10563_v38  ;;  %v10593_v38 = vld [vmem:[%s14954_s3 + $0x7a4] ss:$16 sps:$4 sm:$0xff]  }
 0x6b0   :  { %3552 = vmatmul.mubr.bf16.vlgmr.msra.gmra.mrb[72].mxu1 %v3495_v1  ;;  %3592 = vmatmul.mubr.bf16.vlgmr.msra.gmra.mrb[68].mxu0 %v3510_v32  ;;  %v10584_v1 = vld [vmem:[%s14954_s3 + $0x76c] ss:$16 sps:$4 sm:$0xff]   ;;  %v10582_v32 = vld [vmem:[%s14954_s3 + $0x768] ss:$16 sps:$4 sm:$0xff]  }
 0x6b1   :  { %10049 = vmatpush3.bf16.msra.mxu1 %v12802_v41  ;;  %10056 = vmatprep.mubr.msk.bf16.mxu1 %vm11214_vm0, %v11213_v36 }
 0x6b2   :  { %10050 = vmatprep.subr.bf16.mxu1 %v11213_v36  ;;  %3866 = vmatprep.mubr.bf16.mxu0 %v11215_v33 }
 0x6b3   :  { %3835 = vmatpush1.bf16.msra.mxu0 %v10561_v19  ;;  %v10590_v19 = vld [vmem:[%s14954_s3 + $0x78c] ss:$16 sps:$4 sm:$0xff]  }
 0x6b4   :  { %3836 = vmatprep.subr.bf16.mxu0 %v10569_v56  ;;  %v10594_v56 = vld [vmem:[%s14954_s3 + $0x7a8] ss:$16 sps:$4 sm:$0xff]  }
 0x6b5   :  { %10051 = vmatpush3.bf16.msra.mxu1 %v12814_v54 }
 0x6b6   :  { %10052 = vmatprep.subr.bf16.mxu1 %v11213_v36 }
 0x6b7   :  { %3837 = vmatpush1.bf16.msra.mxu0 %v10567_v59  ;;  %v10602_v59 = vld [vmem:[%s14954_s3 + $0x7cc] ss:$16 sps:$4 sm:$0xff]  }
 0x6b8   :  { %3838 = vmatprep.subr.bf16.mxu0 %v10575_v61  ;;  %v10600_v61 = vld [vmem:[%s14954_s3 + $0x7c8] ss:$16 sps:$4 sm:$0xff]  }
 0x6b9   :  { %10053 = vmatpush3.bf16.msra.mxu1 %v12822_v55 }
 0x6ba   :  { %10054 = vmatprep.subr.bf16.mxu1 %v11213_v36 }
 0x6bb   :  { %3839 = vmatpush1.bf16.msra.mxu0 %v10573_v63  ;;  %v10603_v63 = vld [vmem:[%s14954_s3 + $0x7e0] ss:$16 sps:$4 sm:$0xff]  }
 0x6bc   :  { %3840 = vmatprep.subr.bf16.mxu0 %v10581_v45  ;;  %v10606_v45 = vld [vmem:[%s14954_s3 + $0x7e8] ss:$16 sps:$4 sm:$0xff]  }
 0x6bd   :  { %10055 = vmatpush3.bf16.msra.mxu1 %v12830_v57 }
 0x6be   :  { %3875 = vmatprep.subr.bf16.mxu1 %v10566_v37  ;;  %v10591_v37 = vld [vmem:[%s14954_s3 + $0x7a0] ss:$16 sps:$4 sm:$0xff]  }
 0x6bf   :  { %3841 = vmatpush1.bf16.msra.mxu0 %v10579_v2 }
 0x6c0   :  { %10057 = vmatmul.mubr.msk.bf16.vlgmr.msra.gmra.mrb[76].mxu1 %vm374_vm1, %v3502_v5  ;;  %v10588_v5 = vld [vmem:[%s14954_s3 + $0x788] ss:$16 sps:$4 sm:$0xff]   ;;  %3842 = vmatprep.subr.bf16.mxu0 %v10587_v4 }
 0x6c1   :  { %3907 = vmatprep.mubr.bf16.mxu1 %v11215_v33  ;;  %3876 = vmatpush1.bf16.msra.mxu1 %v10564_v39  ;;  %v10596_v39 = vld [vmem:[%s14954_s3 + $0x7ac] ss:$16 sps:$4 sm:$0xff]  }
 0x6c2   :  { %3877 = vmatprep.subr.bf16.mxu1 %v10572_v47  ;;  %v10599_v47 = vld [vmem:[%s14954_s3 + $0x7c4] ss:$16 sps:$4 sm:$0xff]  }
 0x6c3   :  { %3843 = vmatpush1.bf16.msra.mxu0 %v10585_v3 }
 0x6c4   :  { %3844 = vmatprep.subr.bf16.mxu0 %v10593_v38 }
 0x6c5   :  { %3878 = vmatpush1.bf16.msra.mxu1 %v10570_v60  ;;  %v10597_v60 = vld [vmem:[%s14954_s3 + $0x7c0] ss:$16 sps:$4 sm:$0xff]  }
 0x6c6   :  { %3879 = vmatprep.subr.bf16.mxu1 %v10578_v62  ;;  %v10605_v62 = vld [vmem:[%s14954_s3 + $0x7e4] ss:$16 sps:$4 sm:$0xff]  }
 0x6c7   :  { %3845 = vmatpush1.bf16.msra.mxu0 %v10591_v37 }
 0x6c8   :  { %3846 = vmatprep.subr.bf16.mxu0 %v10599_v47 }
 0x6c9   :  { %3880 = vmatpush1.bf16.msra.mxu1 %v10576_v0  ;;  %v10608_v0 = vld [vmem:[%s14954_s3 + $0x7ec] ss:$16 sps:$4 sm:$0xff]  }
 0x6ca   :  { %3881 = vmatprep.subr.bf16.mxu1 %v10584_v1 }
 0x6cb   :  { %3847 = vmatpush1.bf16.msra.mxu0 %v10597_v60 }
 0x6cc   :  { %3848 = vmatprep.subr.bf16.mxu0 %v10605_v62 }
 0x6cd   :  { %3882 = vmatpush1.bf16.msra.mxu1 %v10582_v32 }
 0x6ce   :  { %3883 = vmatprep.subr.bf16.mxu1 %v10590_v19 }
 0x6cf   :  { %3849 = vmatpush1.bf16.msra.mxu0 %v10603_v63 }
 0x6d0   :  { %9519 = vmatprep.subr.bf16.mxu0 %v12582_v50 }
 0x6d1   :  { %3884 = vmatpush1.bf16.msra.mxu1 %v10588_v5 }
 0x6d2   :  { %3885 = vmatprep.subr.bf16.mxu1 %v10596_v39 }
 0x6d5   :  { %3886 = vmatpush1.bf16.msra.mxu1 %v10594_v56 }
 0x6d6   :  { %3887 = vmatprep.subr.bf16.mxu1 %v10602_v59 }
 0x6d9   :  { %3888 = vmatpush1.bf16.msra.mxu1 %v10600_v61 }
 0x6da   :  { %3889 = vmatprep.subr.bf16.mxu1 %v10608_v0 }
 0x6dd   :  { %3890 = vmatpush1.bf16.msra.mxu1 %v10606_v45 }
 0x6de   :  { %9541 = vmatprep.subr.bf16.mxu1 %v12588_v25 }
 0x763   :  { %v3418_v2 = vpop.f32.mrb[68].mxu1  ;;  %v3459_v1 = vpop.f32.mrb[64].mxu0 }
 0x764   :  { %v13096_v32 = vadd.f32 %v3418_v2, %v12934_v53  ;;  %v13099_v3 = vadd.f32 %v3459_v1, %v12937_v44  ;;  %v3420_v4 = vpop.f32.mrb[69].mxu1  ;;  %v3461_v5 = vpop.f32.mrb[65].mxu0 }
 0x765   :  { %v13102_v19 = vadd.f32 %v3420_v4, %v12940_v42  ;;  %v13105_v38 = vadd.f32 %v3461_v5, %v12943_v58  ;;  %v3422_v39 = vpop.f32.mrb[70].mxu1  ;;  %v3463_v37 = vpop.f32.mrb[66].mxu0  ;;  %v8557_v58 = vld [vmem:[%s14951_s0 + $0x28] sm:$0x1f] }
 0x766   :  { %v3423_v56 = vpop.f32.mrb[71].mxu1  ;;  %v3464_v47 = vpop.f32.mrb[67].mxu0  ;;  %v3930_v4 = vrot.slane %v8557_v58, %v11472_v40 }
 0x768   :  { %v3938_v5 = vcombine.high %v3930_v4, %v3930_v4 }
 0x783   :  { %v9486_v59 = vpop.f32.mrb[72].mxu1  ;;  %v9508_v60 = vpop.f32.mrb[68].mxu0 }
 0x784   :  { %v9487_v61 = vpop.f32.mrb[73].mxu1  ;;  %v9509_v53 = vpop.f32.mrb[69].mxu0 }
 0x785   :  { %v9488_v62 = vadd.f32 %v9487_v61, %v9486_v59  ;;  %v9489_v63 = vpop.f32.mrb[74].mxu1  ;;  %v9510_v44 = vadd.f32 %v9509_v53, %v9508_v60  ;;  %v9511_v0 = vpop.f32.mrb[70].mxu0  ;;  %v3959_v59 = vrot.slane %v3938_v5, %v11472_v40  ;;  %v10621_v5 = vld [vmem:[%s14954_s3 + $0x82c] ss:$16 sps:$4 sm:$0xff]  }
 0x786   :  { %v9490_v45 = vpop.f32.mrb[75].mxu1  ;;  %v9512_v2 = vpop.f32.mrb[71].mxu0 }
 0x787   :  { %v3554_v42 = vadd.f32 %v12429_v14, %v9488_v62  ;;  %v3961_v63 = vcombine.high %v3959_v59, %v3959_v59  ;;  %v3945_v14 = vrot.slane %v3930_v4, %v11472_v40  ;;  %v10610_v2 = vld [vmem:[%s14954_s3 + $0x800] ss:$16 sps:$4 sm:$0xff]   ;;  %v10618_v4 = vld [vmem:[%s14954_s3 + $0x824] ss:$16 sps:$4 sm:$0xff]  }
 0x789   :  { %v3594_v1 = vadd.f32 %v9510_v44, %v3554_v42  ;;  %v3960_v62 = vcombine.high %v3945_v14, %v3945_v14  ;;  %v3923_v44 = vcombine.high %v8557_v58, %v8557_v58  ;;  %v10612_v42 = vld [vmem:[%s14954_s3 + $0x804] ss:$16 sps:$4 sm:$0xff]   ;;  %v10615_v58 = vld [vmem:[%s14954_s3 + $0x80c] ss:$16 sps:$4 sm:$0xff]  }
 0x78b   :  { %v3937_v0 = vrot.slane %v3923_v44, %v11472_v40  ;;  %v10636_v44 = vld [vmem:[%s14954_s3 + $0x884] ss:$16 sps:$4 sm:$0xff]  }
 0x78d   :  { %v3952_v45 = vrot.slane %v3937_v0, %v11472_v40  ;;  %v10637_v0 = vld [vmem:[%s14954_s3 + $0x888] ss:$16 sps:$4 sm:$0xff]  }
 0x793   :  { %v3633_v39 = vpop.f32.mrb[76].mxu1 }
 0x794   :  { %v3634_v37 = vadd.f32 %v3633_v39, %v3594_v1  ;;  %v10058_v56 = vpop.f32.mrb[77].mxu1  ;;  %v10613_v1 = vld [vmem:[%s14954_s3 + $0x808] ss:$16 sps:$4 sm:$0xff]   ;;  %v10616_v39 = vld [vmem:[%s14954_s3 + $0x820] ss:$16 sps:$4 sm:$0xff]  }
 0x795   :  { %v3636_v47 = vpop.f32.mrb[78].mxu1  ;;  %v10624_v56 = vld [vmem:[%s14954_s3 + $0x844] ss:$16 sps:$4 sm:$0xff]  }
 0x796   :  { %v3639_v60 = vmax.f32 %v3634_v37, 0.0  ;;  %v10059_v61 = vpop.f32.mrb[79].mxu1  ;;  %v10619_v37 = vld [vmem:[%s14954_s3 + $0x828] ss:$16 sps:$4 sm:$0xff]   ;;  %v10627_v47 = vld [vmem:[%s14954_s3 + $0x84c] ss:$16 sps:$4 sm:$0xff]  }
 0x797   :  { %v10630_v61 = vld [vmem:[%s14954_s3 + $0x864] ss:$16 sps:$4 sm:$0xff]  }
 0x798   :  { %v3640_v53 = vpack.c.bf16 %v3639_v60, %v3639_v60  ;;  %v10625_v60 = vld [vmem:[%s14954_s3 + $0x848] ss:$16 sps:$4 sm:$0xff]  }
 0x79a   :  { %3867 = vmatmul.mubr.bf16.vlgmr.msra.gmra.mrb[72].mxu0 %v3640_v53  ;;  %3908 = vmatmul.mubr.bf16.vlgmr.msra.gmra.mrb[80].mxu1 %v3640_v53  ;;  %v10628_v53 = vld [vmem:[%s14954_s3 + $0x860] ss:$16 sps:$4 sm:$0xff]  }
 0x79b   :  { %9520 = vmatpush3.bf16.msra.mxu0 %v12619_v6  ;;  %9542 = vmatpush3.bf16.msra.mxu1 %v12625_v7 }
 0x79c   :  { %9521 = vmatprep.subr.bf16.mxu0 %v12631_v8  ;;  %9543 = vmatprep.subr.bf16.mxu1 %v12637_v9 }
 0x79d   :  { %4001 = vmatprep.mubr.bf16.mxu0 %v3959_v59  ;;  %4041 = vmatprep.mubr.bf16.mxu1 %v3961_v63  ;;  %v10622_v59 = vld [vmem:[%s14954_s3 + $0x840] ss:$16 sps:$4 sm:$0xff]   ;;  %v10633_v63 = vld [vmem:[%s14954_s3 + $0x86c] ss:$16 sps:$4 sm:$0xff]  }
 0x79f   :  { %9522 = vmatpush3.bf16.msra.mxu0 %v12643_v10  ;;  %9544 = vmatpush3.bf16.msra.mxu1 %v12649_v11 }
 0x7a0   :  { %9523 = vmatprep.subr.bf16.mxu0 %v12655_v12  ;;  %9545 = vmatprep.subr.bf16.mxu1 %v12661_v13 }
 0x7a3   :  { %9524 = vmatpush3.bf16.msra.mxu0 %v12667_v15  ;;  %9546 = vmatpush3.bf16.msra.mxu1 %v12673_v16 }
 0x7a4   :  { %9525 = vmatprep.subr.bf16.mxu0 %v12679_v17  ;;  %9547 = vmatprep.subr.bf16.mxu1 %v12685_v18 }
 0x7a7   :  { %9526 = vmatpush3.bf16.msra.mxu0 %v12691_v20  ;;  %9548 = vmatpush3.bf16.msra.mxu1 %v12697_v21 }
 0x7a8   :  { %9527 = vmatprep.subr.bf16.mxu0 %v12703_v22  ;;  %9549 = vmatprep.subr.bf16.mxu1 %v12709_v24 }
 0x7ab   :  { %9528 = vmatpush3.bf16.msra.mxu0 %v12715_v26  ;;  %9550 = vmatpush3.bf16.msra.mxu1 %v12721_v28 }
 0x7ac   :  { %9529 = vmatprep.subr.bf16.mxu0 %v12727_v43  ;;  %9551 = vmatprep.subr.bf16.mxu1 %v12733_v51 }
 0x7af   :  { %9530 = vmatpush3.bf16.msra.mxu0 %v12739_v46  ;;  %9552 = vmatpush3.bf16.msra.mxu1 %v12745_v27 }
 0x7b0   :  { %9531 = vmatprep.subr.bf16.mxu0 %v12751_v31  ;;  %9553 = vmatprep.subr.bf16.mxu1 %v12757_v34 }
 0x7b3   :  { %9532 = vmatpush3.bf16.msra.mxu0 %v12765_v23  ;;  %9554 = vmatpush3.bf16.msra.mxu1 %v12771_v49 }
 0x7b4   :  { %9533 = vmatprep.subr.bf16.mxu0 %v12777_v52  ;;  %9555 = vmatprep.subr.bf16.mxu1 %v12783_v29 }
 0x7b7   :  { %9534 = vmatpush3.bf16.msra.mxu0 %v12789_v48  ;;  %9556 = vmatpush3.bf16.msra.mxu1 %v12795_v30 }
 0x7b8   :  { %10060 = vmatprep.subr.bf16.mxu0 %v11213_v36  ;;  %4284 = vmatprep.subr.bf16.mxu1 %v10612_v42  ;;  %v10645_v42 = vld [vmem:[%s14954_s3 + $0x8ac] ss:$16 sps:$4 sm:$0xff]  }
 0x7ba   :  { %4002 = vmatmul.mubr.bf16.vlgmr.msra.gmra.mrb[76].mxu0 %v3945_v14  ;;  %4042 = vmatmul.mubr.bf16.vlgmr.msra.gmra.mrb[84].mxu1 %v3960_v62  ;;  %v10631_v14 = vld [vmem:[%s14954_s3 + $0x868] ss:$16 sps:$4 sm:$0xff]   ;;  %v10634_v62 = vld [vmem:[%s14954_s3 + $0x880] ss:$16 sps:$4 sm:$0xff]  }
 0x7bb   :  { %10061 = vmatpush3.bf16.msra.mxu0 %v12802_v41  ;;  %10068 = vmatprep.mubr.msk.bf16.mxu0 %vm11214_vm0, %v11213_v36 }
 0x7bc   :  { %10062 = vmatprep.subr.bf16.mxu0 %v11213_v36  ;;  %4316 = vmatprep.mubr.bf16.mxu1 %v11215_v33 }
 0x7bd   :  { %4285 = vmatpush1.bf16.msra.mxu1 %v10610_v2  ;;  %v10642_v2 = vld [vmem:[%s14954_s3 + $0x8a4] ss:$16 sps:$4 sm:$0xff]  }
 0x7be   :  { %4286 = vmatprep.subr.bf16.mxu1 %v10618_v4  ;;  %v10648_v4 = vld [vmem:[%s14954_s3 + $0x8c4] ss:$16 sps:$4 sm:$0xff]  }
 0x7bf   :  { %10063 = vmatpush3.bf16.msra.mxu0 %v12814_v54 }
 0x7c0   :  { %10064 = vmatprep.subr.bf16.mxu0 %v11213_v36 }
 0x7c1   :  { %4287 = vmatpush1.bf16.msra.mxu1 %v10616_v39  ;;  %v10646_v39 = vld [vmem:[%s14954_s3 + $0x8c0] ss:$16 sps:$4 sm:$0xff]  }
 0x7c2   :  { %4288 = vmatprep.subr.bf16.mxu1 %v10624_v56  ;;  %v10654_v56 = vld [vmem:[%s14954_s3 + $0x8e4] ss:$16 sps:$4 sm:$0xff]  }
 0x7c3   :  { %10065 = vmatpush3.bf16.msra.mxu0 %v12822_v55 }
 0x7c4   :  { %10066 = vmatprep.subr.bf16.mxu0 %v11213_v36 }
 0x7c5   :  { %4289 = vmatpush1.bf16.msra.mxu1 %v10622_v59  ;;  %v10657_v59 = vld [vmem:[%s14954_s3 + $0x8ec] ss:$16 sps:$4 sm:$0xff]  }
 0x7c6   :  { %4290 = vmatprep.subr.bf16.mxu1 %v10630_v61 }
 0x7c7   :  { %10067 = vmatpush3.bf16.msra.mxu0 %v12830_v57 }
 0x7c8   :  { %4325 = vmatprep.subr.bf16.mxu0 %v10615_v58  ;;  %v10643_v58 = vld [vmem:[%s14954_s3 + $0x8a8] ss:$16 sps:$4 sm:$0xff]  }
 0x7c9   :  { %4291 = vmatpush1.bf16.msra.mxu1 %v10628_v53 }
 0x7ca   :  { %10069 = vmatmul.mubr.msk.bf16.vlgmr.msra.gmra.mrb[80].mxu0 %vm374_vm1, %v3952_v45  ;;  %v10639_v45 = vld [vmem:[%s14954_s3 + $0x88c] ss:$16 sps:$4 sm:$0xff]   ;;  %4292 = vmatprep.subr.bf16.mxu1 %v10636_v44 }
 0x7cb   :  { %4357 = vmatprep.mubr.bf16.mxu0 %v11215_v33  ;;  %4326 = vmatpush1.bf16.msra.mxu0 %v10613_v1  ;;  %v10640_v1 = vld [vmem:[%s14954_s3 + $0x8a0] ss:$16 sps:$4 sm:$0xff]  }
 0x7cc   :  { %4327 = vmatprep.subr.bf16.mxu0 %v10621_v5  ;;  %v10651_v5 = vld [vmem:[%s14954_s3 + $0x8cc] ss:$16 sps:$4 sm:$0xff]  }
 0x7cd   :  { %4293 = vmatpush1.bf16.msra.mxu1 %v10634_v62 }
 0x7ce   :  { %4294 = vmatprep.subr.bf16.mxu1 %v10642_v2 }
 0x7cf   :  { %4328 = vmatpush1.bf16.msra.mxu0 %v10619_v37  ;;  %v10649_v37 = vld [vmem:[%s14954_s3 + $0x8c8] ss:$16 sps:$4 sm:$0xff]  }
 0x7d0   :  { %4329 = vmatprep.subr.bf16.mxu0 %v10627_v47  ;;  %v10652_v47 = vld [vmem:[%s14954_s3 + $0x8e0] ss:$16 sps:$4 sm:$0xff]  }
 0x7d1   :  { %4295 = vmatpush1.bf16.msra.mxu1 %v10640_v1 }
 0x7d2   :  { %4296 = vmatprep.subr.bf16.mxu1 %v10648_v4 }
 0x7d3   :  { %4330 = vmatpush1.bf16.msra.mxu0 %v10625_v60  ;;  %v10655_v60 = vld [vmem:[%s14954_s3 + $0x8e8] ss:$16 sps:$4 sm:$0xff]  }
 0x7d4   :  { %4331 = vmatprep.subr.bf16.mxu0 %v10633_v63 }
 0x7d5   :  { %4297 = vmatpush1.bf16.msra.mxu1 %v10646_v39 }
 0x7d6   :  { %4298 = vmatprep.subr.bf16.mxu1 %v10654_v56 }
 0x7d7   :  { %4332 = vmatpush1.bf16.msra.mxu0 %v10631_v14 }
 0x7d8   :  { %4333 = vmatprep.subr.bf16.mxu0 %v10639_v45 }
 0x7d9   :  { %4299 = vmatpush1.bf16.msra.mxu1 %v10652_v47 }
 0x7da   :  { %9568 = vmatprep.subr.bf16.mxu1 %v12582_v50 }
 0x7db   :  { %4334 = vmatpush1.bf16.msra.mxu0 %v10637_v0 }
 0x7dc   :  { %4335 = vmatprep.subr.bf16.mxu0 %v10645_v42 }
 0x7df   :  { %4336 = vmatpush1.bf16.msra.mxu0 %v10643_v58 }
 0x7e0   :  { %4337 = vmatprep.subr.bf16.mxu0 %v10651_v5 }
 0x7e3   :  { %4338 = vmatpush1.bf16.msra.mxu0 %v10649_v37 }
 0x7e4   :  { %4339 = vmatprep.subr.bf16.mxu0 %v10657_v59 }
 0x7e7   :  { %4340 = vmatpush1.bf16.msra.mxu0 %v10655_v60  ;;  %v8623_v60 = vld [vmem:[%s14951_s0 + $0x2d] sm:$0x1f] }
 0x7e8   :  { %9590 = vmatprep.subr.bf16.mxu0 %v12588_v25 }
 0x86d   :  { %v3868_v61 = vpop.f32.mrb[72].mxu0  ;;  %v3909_v53 = vpop.f32.mrb[80].mxu1 }
 0x86e   :  { %v13258_v63 = vadd.f32 %v3868_v61, %v13096_v32  ;;  %v13261_v14 = vadd.f32 %v3909_v53, %v13099_v3  ;;  %v3870_v62 = vpop.f32.mrb[73].mxu0  ;;  %v3911_v44 = vpop.f32.mrb[81].mxu1  ;;  %v4380_v61 = vrot.slane %v8623_v60, %v11472_v40 }
 0x86f   :  { %v13264_v0 = vadd.f32 %v3870_v62, %v13102_v19  ;;  %v13267_v45 = vadd.f32 %v3911_v44, %v13105_v38  ;;  %v3872_v2 = vpop.f32.mrb[74].mxu0  ;;  %v3913_v50 = vpop.f32.mrb[82].mxu1  ;;  %v13272_v19 = vld [vmem:[%s14953_s2] ss:$0 sm:$0xff] }
 0x870   :  { %v3873_v42 = vpop.f32.mrb[75].mxu0  ;;  %v3914_v25 = vpop.f32.mrb[83].mxu1  ;;  %v4388_v53 = vcombine.high %v4380_v61, %v4380_v61 }
 0x872   :  { %v4409_v42 = vrot.slane %v4388_v53, %v11472_v40 }
 0x88d   :  { %v9535_v1 = vpop.f32.mrb[76].mxu0  ;;  %v9557_v58 = vpop.f32.mrb[84].mxu1 }
 0x88e   :  { %v9536_v4 = vpop.f32.mrb[77].mxu0  ;;  %v9558_v32 = vpop.f32.mrb[85].mxu1 }
 0x88f   :  { %v9537_v5 = vadd.f32 %v9536_v4, %v9535_v1  ;;  %v9538_v39 = vpop.f32.mrb[78].mxu0  ;;  %v9559_v3 = vadd.f32 %v9558_v32, %v9557_v58  ;;  %v9560_v37 = vpop.f32.mrb[86].mxu1  ;;  %v4411_v4 = vcombine.high %v4409_v42, %v4409_v42  ;;  %v10701_v32 = vld [vmem:[%s14954_s3 + $0x9e0] ss:$16 sps:$4 sm:$0xff]  }
 0x890   :  { %v9539_v56 = vpop.f32.mrb[79].mxu0  ;;  %v9561_v47 = vpop.f32.mrb[87].mxu1  ;;  %v10704_v39 = vld [vmem:[%s14954_s3 + $0x9e8] ss:$16 sps:$4 sm:$0xff]   ;;  %v13431_v37 = vld [vmem:[%s14952_s1 + $0xc0] sm:$0xff]  }
 0x891   :  { %v4004_v38 = vadd.f32 %v13272_v19, %v9537_v5  ;;  %v10706_v5 = vld [vmem:[%s14954_s3 + $0x9ec] ss:$16 sps:$4 sm:$0xff]  }
 0x893   :  { %v4044_v59 = vadd.f32 %v9559_v3, %v4004_v38  ;;  %v13425_v3 = vld [vmem:[%s14952_s1 + $0x40] sm:$0xff]  }
 0x89d   :  { %v4083_v62 = vpop.f32.mrb[80].mxu0 }
 0x89e   :  { %v4084_v44 = vadd.f32 %v4083_v62, %v4044_v59  ;;  %v10070_v2 = vpop.f32.mrb[81].mxu0 }
 0x89f   :  { %v4086_v50 = vpop.f32.mrb[82].mxu0 }
 0x8a0   :  { %v4089_v25 = vmax.f32 %v4084_v44, 0.0  ;;  %v10071_v1 = vpop.f32.mrb[83].mxu0 }
 0x8a2   :  { %v4090_v58 = vpack.c.bf16 %v4089_v25, %v4089_v25 }
 0x8a4   :  { %4317 = vmatmul.mubr.bf16.vlgmr.msra.gmra.mrb[88].mxu1 %v4090_v58  ;;  %4358 = vmatmul.mubr.bf16.vlgmr.msra.gmra.mrb[84].mxu0 %v4090_v58 }
 0x8a5   :  { %9569 = vmatpush3.bf16.msra.mxu1 %v12619_v6  ;;  %9591 = vmatpush3.bf16.msra.mxu0 %v12625_v7  ;;  %v4395_v6 = vrot.slane %v4380_v61, %v11472_v40 }
 0x8a6   :  { %9570 = vmatprep.subr.bf16.mxu1 %v12631_v8  ;;  %9592 = vmatprep.subr.bf16.mxu0 %v12637_v9  ;;  %v4373_v8 = vcombine.high %v8623_v60, %v8623_v60 }
 0x8a7   :  { %4451 = vmatprep.mubr.bf16.mxu1 %v4409_v42  ;;  %4491 = vmatprep.mubr.bf16.mxu0 %v4411_v4  ;;  %v4410_v7 = vcombine.high %v4395_v6, %v4395_v6 }
 0x8a8   :  { %v4387_v9 = vrot.slane %v4373_v8, %v11472_v40 }
 0x8a9   :  { %9571 = vmatpush3.bf16.msra.mxu1 %v12643_v10  ;;  %9593 = vmatpush3.bf16.msra.mxu0 %v12649_v11  ;;  %v10659_v11 = vld [vmem:[%s14954_s3 + $0x900] ss:$16 sps:$4 sm:$0xff]  }
 0x8aa   :  { %9572 = vmatprep.subr.bf16.mxu1 %v12655_v12  ;;  %9594 = vmatprep.subr.bf16.mxu0 %v12661_v13  ;;  %v4402_v10 = vrot.slane %v4387_v9, %v11472_v40  ;;  %v10661_v12 = vld [vmem:[%s14954_s3 + $0x904] ss:$16 sps:$4 sm:$0xff]   ;;  %v10662_v13 = vld [vmem:[%s14954_s3 + $0x908] ss:$16 sps:$4 sm:$0xff]  }
 0x8ad   :  { %9573 = vmatpush3.bf16.msra.mxu1 %v12667_v15  ;;  %9595 = vmatpush3.bf16.msra.mxu0 %v12673_v16  ;;  %v10664_v15 = vld [vmem:[%s14954_s3 + $0x90c] ss:$16 sps:$4 sm:$0xff]   ;;  %v10667_v16 = vld [vmem:[%s14954_s3 + $0x924] ss:$16 sps:$4 sm:$0xff]  }
 0x8ae   :  { %9574 = vmatprep.subr.bf16.mxu1 %v12679_v17  ;;  %9596 = vmatprep.subr.bf16.mxu0 %v12685_v18  ;;  %v10670_v17 = vld [vmem:[%s14954_s3 + $0x92c] ss:$16 sps:$4 sm:$0xff]   ;;  %v10665_v18 = vld [vmem:[%s14954_s3 + $0x920] ss:$16 sps:$4 sm:$0xff]  }
 0x8b1   :  { %9575 = vmatpush3.bf16.msra.mxu1 %v12691_v20  ;;  %9597 = vmatpush3.bf16.msra.mxu0 %v12697_v21  ;;  %v10668_v20 = vld [vmem:[%s14954_s3 + $0x928] ss:$16 sps:$4 sm:$0xff]   ;;  %v10673_v21 = vld [vmem:[%s14954_s3 + $0x944] ss:$16 sps:$4 sm:$0xff]  }
 0x8b2   :  { %9576 = vmatprep.subr.bf16.mxu1 %v12703_v22  ;;  %9598 = vmatprep.subr.bf16.mxu0 %v12709_v24  ;;  %v10676_v22 = vld [vmem:[%s14954_s3 + $0x94c] ss:$16 sps:$4 sm:$0xff]   ;;  %v10671_v24 = vld [vmem:[%s14954_s3 + $0x940] ss:$16 sps:$4 sm:$0xff]  }
 0x8b5   :  { %9577 = vmatpush3.bf16.msra.mxu1 %v12715_v26  ;;  %9599 = vmatpush3.bf16.msra.mxu0 %v12721_v28  ;;  %v10674_v26 = vld [vmem:[%s14954_s3 + $0x948] ss:$16 sps:$4 sm:$0xff]   ;;  %v10679_v28 = vld [vmem:[%s14954_s3 + $0x964] ss:$16 sps:$4 sm:$0xff]  }
 0x8b6   :  { %9578 = vmatprep.subr.bf16.mxu1 %v12727_v43  ;;  %9600 = vmatprep.subr.bf16.mxu0 %v12733_v51  ;;  %v10677_v43 = vld [vmem:[%s14954_s3 + $0x960] ss:$16 sps:$4 sm:$0xff]   ;;  %v10682_v51 = vld [vmem:[%s14954_s3 + $0x96c] ss:$16 sps:$4 sm:$0xff]  }
 0x8b9   :  { %9579 = vmatpush3.bf16.msra.mxu1 %v12739_v46  ;;  %9601 = vmatpush3.bf16.msra.mxu0 %v12745_v27  ;;  %v10680_v46 = vld [vmem:[%s14954_s3 + $0x968] ss:$16 sps:$4 sm:$0xff]   ;;  %v10683_v27 = vld [vmem:[%s14954_s3 + $0x980] ss:$16 sps:$4 sm:$0xff]  }
 0x8ba   :  { %9580 = vmatprep.subr.bf16.mxu1 %v12751_v31  ;;  %9602 = vmatprep.subr.bf16.mxu0 %v12757_v34  ;;  %v10685_v31 = vld [vmem:[%s14954_s3 + $0x984] ss:$16 sps:$4 sm:$0xff]   ;;  %v10686_v34 = vld [vmem:[%s14954_s3 + $0x988] ss:$16 sps:$4 sm:$0xff]  }
 0x8bd   :  { %9581 = vmatpush3.bf16.msra.mxu1 %v12765_v23  ;;  %9603 = vmatpush3.bf16.msra.mxu0 %v12771_v49  ;;  %v10688_v23 = vld [vmem:[%s14954_s3 + $0x98c] ss:$16 sps:$4 sm:$0xff]   ;;  %v10691_v49 = vld [vmem:[%s14954_s3 + $0x9a4] ss:$16 sps:$4 sm:$0xff]  }
 0x8be   :  { %9582 = vmatprep.subr.bf16.mxu1 %v12777_v52  ;;  %9604 = vmatprep.subr.bf16.mxu0 %v12783_v29  ;;  %v10694_v52 = vld [vmem:[%s14954_s3 + $0x9ac] ss:$16 sps:$4 sm:$0xff]   ;;  %v10689_v29 = vld [vmem:[%s14954_s3 + $0x9a0] ss:$16 sps:$4 sm:$0xff]  }
 0x8c1   :  { %9583 = vmatpush3.bf16.msra.mxu1 %v12789_v48  ;;  %9605 = vmatpush3.bf16.msra.mxu0 %v12795_v30  ;;  %v10692_v48 = vld [vmem:[%s14954_s3 + $0x9a8] ss:$16 sps:$4 sm:$0xff]   ;;  %v10697_v30 = vld [vmem:[%s14954_s3 + $0x9c4] ss:$16 sps:$4 sm:$0xff]  }
 0x8c2   :  { %10072 = vmatprep.subr.bf16.mxu1 %v11213_v36  ;;  %4734 = vmatprep.subr.bf16.mxu0 %v10661_v12 }
 0x8c4   :  { %4452 = vmatmul.mubr.bf16.vlgmr.msra.gmra.mrb[92].mxu1 %v4395_v6  ;;  %4492 = vmatmul.mubr.bf16.vlgmr.msra.gmra.mrb[88].mxu0 %v4410_v7 }
 0x8c5   :  { %10073 = vmatpush3.bf16.msra.mxu1 %v12802_v41  ;;  %10080 = vmatprep.mubr.msk.bf16.mxu1 %vm11214_vm0, %v11213_v36  ;;  %v10700_v41 = vld [vmem:[%s14954_s3 + $0x9cc] ss:$16 sps:$4 sm:$0xff]  }
 0x8c6   :  { %10074 = vmatprep.subr.bf16.mxu1 %v11213_v36  ;;  %4766 = vmatprep.mubr.bf16.mxu0 %v11215_v33 }
 0x8c7   :  { %4735 = vmatpush1.bf16.msra.mxu0 %v10659_v11 }
 0x8c8   :  { %4736 = vmatprep.subr.bf16.mxu0 %v10667_v16 }
 0x8c9   :  { %10075 = vmatpush3.bf16.msra.mxu1 %v12814_v54  ;;  %v10695_v54 = vld [vmem:[%s14954_s3 + $0x9c0] ss:$16 sps:$4 sm:$0xff]  }
 0x8ca   :  { %10076 = vmatprep.subr.bf16.mxu1 %v11213_v36 }
 0x8cb   :  { %4737 = vmatpush1.bf16.msra.mxu0 %v10665_v18 }
 0x8cc   :  { %4738 = vmatprep.subr.bf16.mxu0 %v10673_v21 }
 0x8cd   :  { %10077 = vmatpush3.bf16.msra.mxu1 %v12822_v55  ;;  %v10698_v55 = vld [vmem:[%s14954_s3 + $0x9c8] ss:$16 sps:$4 sm:$0xff]  }
 0x8ce   :  { %10078 = vmatprep.subr.bf16.mxu1 %v11213_v36 }
 0x8cf   :  { %4739 = vmatpush1.bf16.msra.mxu0 %v10671_v24 }
 0x8d0   :  { %4740 = vmatprep.subr.bf16.mxu0 %v10679_v28  ;;  %v13468_v28 = vld [vmem:[%s14952_s1 + $0x80] sm:$0xff]  }
 0x8d1   :  { %10079 = vmatpush3.bf16.msra.mxu1 %v12830_v57  ;;  %v10703_v57 = vld [vmem:[%s14954_s3 + $0x9e4] ss:$16 sps:$4 sm:$0xff]  }
 0x8d2   :  { %4775 = vmatprep.subr.bf16.mxu1 %v10664_v15 }
 0x8d3   :  { %4741 = vmatpush1.bf16.msra.mxu0 %v10677_v43  ;;  %v13474_v43 = vld [vmem:[%s14952_s1 + $0x48] sm:$0xff]  }
 0x8d4   :  { %10081 = vmatmul.mubr.msk.bf16.vlgmr.msra.gmra.mrb[96].mxu1 %vm374_vm1, %v4402_v10  ;;  %4742 = vmatprep.subr.bf16.mxu0 %v10685_v31  ;;  %v13498_v31 = vld [vmem:[%s14952_s1 + $0x50] sm:$0xff]  }
 0x8d5   :  { %4807 = vmatprep.mubr.bf16.mxu1 %v11215_v33  ;;  %4776 = vmatpush1.bf16.msra.mxu1 %v10662_v13 }
 0x8d6   :  { %4777 = vmatprep.subr.bf16.mxu1 %v10670_v17 }
 0x8d7   :  { %4743 = vmatpush1.bf16.msra.mxu0 %v10683_v27  ;;  %v13492_v27 = vld [vmem:[%s14952_s1 + $0x88] sm:$0xff]  }
 0x8d8   :  { %4744 = vmatprep.subr.bf16.mxu0 %v10691_v49  ;;  %v13516_v49 = vld [vmem:[%s14952_s1 + $0x90] sm:$0xff]  }
 0x8d9   :  { %4778 = vmatpush1.bf16.msra.mxu1 %v10668_v20 }
 0x8da   :  { %4779 = vmatprep.subr.bf16.mxu1 %v10676_v22 }
 0x8db   :  { %4745 = vmatpush1.bf16.msra.mxu0 %v10689_v29  ;;  %v13528_v29 = vld [vmem:[%s14952_s1 + $0xd8] sm:$0xff]  }
 0x8dc   :  { %4746 = vmatprep.subr.bf16.mxu0 %v10697_v30  ;;  %v13540_v30 = vld [vmem:[%s14952_s1 + $0x98] sm:$0xff]  }
 0x8dd   :  { %4780 = vmatpush1.bf16.msra.mxu1 %v10674_v26  ;;  %v13462_v26 = vld [vmem:[%s14952_s1] sm:$0xff]  }
 0x8de   :  { %4781 = vmatprep.subr.bf16.mxu1 %v10682_v51  ;;  %v13480_v51 = vld [vmem:[%s14952_s1 + $0xc8] sm:$0xff]  }
 0x8df   :  { %4747 = vmatpush1.bf16.msra.mxu0 %v10695_v54  ;;  %v13552_v54 = vld [vmem:[%s14952_s1 + $0xe0] sm:$0xff]  }
 0x8e0   :  { %4748 = vmatprep.subr.bf16.mxu0 %v10703_v57  ;;  %v13564_v57 = vld [vmem:[%s14952_s1 + $0xa0] sm:$0xff]  }
 0x8e1   :  { %4782 = vmatpush1.bf16.msra.mxu1 %v10680_v46  ;;  %v13486_v46 = vld [vmem:[%s14952_s1 + $0x8] sm:$0xff]  }
 0x8e2   :  { %4783 = vmatprep.subr.bf16.mxu1 %v10688_v23  ;;  %v13510_v23 = vld [vmem:[%s14952_s1 + $0x10] sm:$0xff]  }
 0x8e3   :  { %4749 = vmatpush1.bf16.msra.mxu0 %v10701_v32  ;;  %v13570_v32 = vld [vmem:[%s14952_s1 + $0x68] sm:$0xff]  }
 0x8e4   :  { %9617 = vmatprep.subr.bf16.mxu0 %v13425_v3 }
 0x8e5   :  { %4784 = vmatpush1.bf16.msra.mxu1 %v10686_v34  ;;  %v13504_v34 = vld [vmem:[%s14952_s1 + $0xd0] sm:$0xff]  }
 0x8e6   :  { %4785 = vmatprep.subr.bf16.mxu1 %v10694_v52  ;;  %v13522_v52 = vld [vmem:[%s14952_s1 + $0x58] sm:$0xff]  }
 0x8e9   :  { %4786 = vmatpush1.bf16.msra.mxu1 %v10692_v48  ;;  %v13534_v48 = vld [vmem:[%s14952_s1 + $0x18] sm:$0xff]  }
 0x8ea   :  { %4787 = vmatprep.subr.bf16.mxu1 %v10700_v41  ;;  %v13546_v41 = vld [vmem:[%s14952_s1 + $0x60] sm:$0xff]  }
 0x8ed   :  { %4788 = vmatpush1.bf16.msra.mxu1 %v10698_v55  ;;  %v13558_v55 = vld [vmem:[%s14952_s1 + $0x20] sm:$0xff]  }
 0x8ee   :  { %4789 = vmatprep.subr.bf16.mxu1 %v10706_v5  ;;  %v13576_v5 = vld [vmem:[%s14952_s1 + $0xe8] sm:$0xff]  }
 0x8f1   :  { %4790 = vmatpush1.bf16.msra.mxu1 %v10704_v39  ;;  %v13582_v39 = vld [vmem:[%s14952_s1 + $0x28] sm:$0xff]  }
 0x8f2   :  { %9639 = vmatprep.subr.bf16.mxu1 %v13431_v37 }
 0x977   :  { %v4318_v56 = vpop.f32.mrb[88].mxu1  ;;  %v4359_v47 = vpop.f32.mrb[84].mxu0 }
 0x978   :  { %v13435_v38 = vadd.f32 %v4318_v56, %v13258_v63  ;;  %v13438_v59 = vadd.f32 %v4359_v47, %v13261_v14  ;;  %v4320_v60 = vpop.f32.mrb[89].mxu1  ;;  %v4361_v61 = vpop.f32.mrb[85].mxu0  ;;  %v13588_v56 = vld [vmem:[%s14952_s1 + $0xa8] sm:$0xff]   ;;  %v13594_v47 = vld [vmem:[%s14952_s1 + $0x70] sm:$0xff]  }
 0x979   :  { %v13441_v53 = vadd.f32 %v4320_v60, %v13264_v0  ;;  %v13444_v62 = vadd.f32 %v4361_v61, %v13267_v45  ;;  %v4322_v44 = vpop.f32.mrb[90].mxu1  ;;  %v4363_v2 = vpop.f32.mrb[86].mxu0  ;;  %v13450_v45 = vld [vmem:[%s14951_s0 + $0x32] sm:$0x1f] }
 0x97a   :  { %v4323_v50 = vpop.f32.mrb[91].mxu1  ;;  %v4364_v42 = vpop.f32.mrb[87].mxu0  ;;  %v13454_v11 = vrot.slane %v13450_v45, %v11472_v40  ;;  %v13600_v60 = vld [vmem:[%s14952_s1 + $0xf0] sm:$0xff]  }
 0x97b   :  { %v13608_v44 = vld [vmem:[%s14952_s1 + $0x30] sm:$0xff]   ;;  %v13620_v50 = vld [vmem:[%s14952_s1 + $0x78] sm:$0xff]  }
 0x97c   :  { %v4838_v12 = vcombine.high %v13454_v11, %v13454_v11  ;;  %v4845_v61 = vrot.slane %v13454_v11, %v11472_v40  ;;  %v13614_v2 = vld [vmem:[%s14952_s1 + $0xb0] sm:$0xff]   ;;  %v13626_v42 = vld [vmem:[%s14952_s1 + $0xf8] sm:$0xff]  }
 0x97d   :  { %v10713_v11 = vld [vmem:[%s14954_s3 + $0xa0c] ss:$16 sps:$4 sm:$0xff]  }
 0x97e   :  { %v4859_v18 = vrot.slane %v4838_v12, %v11472_v40  ;;  %v10716_v12 = vld [vmem:[%s14954_s3 + $0xa24] ss:$16 sps:$4 sm:$0xff]  }
 0x980   :  { %v4861_v24 = vcombine.high %v4859_v18, %v4859_v18 }
 0x997   :  { %v9584_v25 = vpop.f32.mrb[92].mxu1  ;;  %v9606_v1 = vpop.f32.mrb[88].mxu0 }
 0x998   :  { %v9585_v58 = vpop.f32.mrb[93].mxu1  ;;  %v9607_v63 = vpop.f32.mrb[89].mxu0 }
 0x999   :  { %v9586_v4 = vadd.f32 %v9585_v58, %v9584_v25  ;;  %v9587_v6 = vpop.f32.mrb[94].mxu1  ;;  %v9608_v14 = vadd.f32 %v9607_v63, %v9606_v1  ;;  %v9609_v7 = vpop.f32.mrb[90].mxu0  ;;  %v4860_v25 = vcombine.high %v4845_v61, %v4845_v61  ;;  %v13632_v1 = vld [vmem:[%s14952_s1 + $0x38] sm:$0xff]   ;;  %v13645_v63 = vld [vmem:[%s14952_s1 + $0x100] sm:$0xff]  }
 0x99a   :  { %v9588_v8 = vpop.f32.mrb[95].mxu1  ;;  %v9610_v9 = vpop.f32.mrb[91].mxu0  ;;  %v13638_v58 = vld [vmem:[%s14952_s1 + $0xb8] sm:$0xff]   ;;  %v13657_v6 = vld [vmem:[%s14952_s1 + $0x108] sm:$0xff]   ;;  %v13665_v7 = vld [vmem:[%s14952_s1 + $0x110] sm:$0xff]  }
 0x99b   :  { %v4454_v0 = vadd.f32 %v13272_v19, %v9586_v4  ;;  %v4823_v4 = vcombine.high %v13450_v45, %v13450_v45  ;;  %v13673_v9 = vld [vmem:[%s14952_s1 + $0x118] sm:$0xff]  }
 0x99c   :  { %v10711_v45 = vld [vmem:[%s14954_s3 + $0xa08] ss:$16 sps:$4 sm:$0xff]  }
 0x99d   :  { %v4494_v10 = vadd.f32 %v9608_v14, %v4454_v0  ;;  %v4837_v14 = vrot.slane %v4823_v4, %v11472_v40  ;;  %v10708_v0 = vld [vmem:[%s14954_s3 + $0xa00] ss:$16 sps:$4 sm:$0xff]  }
 0x99e   :  { %v10732_v4 = vld [vmem:[%s14954_s3 + $0xa80] ss:$16 sps:$4 sm:$0xff]  }
 0x99f   :  { %v4852_v8 = vrot.slane %v4837_v14, %v11472_v40  ;;  %v10734_v14 = vld [vmem:[%s14954_s3 + $0xa84] ss:$16 sps:$4 sm:$0xff]  }
 0x9a7   :  { %v4533_v13 = vpop.f32.mrb[96].mxu1 }
 0x9a8   :  { %v4534_v15 = vadd.f32 %v4533_v13, %v4494_v10  ;;  %v10082_v16 = vpop.f32.mrb[97].mxu1  ;;  %v10710_v10 = vld [vmem:[%s14954_s3 + $0xa04] ss:$16 sps:$4 sm:$0xff]   ;;  %v10719_v13 = vld [vmem:[%s14954_s3 + $0xa2c] ss:$16 sps:$4 sm:$0xff]  }
 0x9a9   :  { %v4536_v17 = vpop.f32.mrb[98].mxu1  ;;  %v10717_v16 = vld [vmem:[%s14954_s3 + $0xa28] ss:$16 sps:$4 sm:$0xff]  }
 0x9aa   :  { %v4539_v20 = vmax.f32 %v4534_v15, 0.0  ;;  %v10083_v21 = vpop.f32.mrb[99].mxu1  ;;  %v10714_v15 = vld [vmem:[%s14954_s3 + $0xa20] ss:$16 sps:$4 sm:$0xff]   ;;  %v10722_v17 = vld [vmem:[%s14954_s3 + $0xa44] ss:$16 sps:$4 sm:$0xff]  }
 0x9ab   :  { %v10723_v21 = vld [vmem:[%s14954_s3 + $0xa48] ss:$16 sps:$4 sm:$0xff]  }
 0x9ac   :  { %v4540_v22 = vpack.c.bf16 %v4539_v20, %v4539_v20  ;;  %v10720_v20 = vld [vmem:[%s14954_s3 + $0xa40] ss:$16 sps:$4 sm:$0xff]  }
 0x9ae   :  { %4767 = vmatmul.mubr.bf16.vlgmr.msra.gmra.mrb[92].mxu0 %v4540_v22  ;;  %4808 = vmatmul.mubr.bf16.vlgmr.msra.gmra.mrb[100].mxu1 %v4540_v22  ;;  %v10728_v22 = vld [vmem:[%s14954_s3 + $0xa64] ss:$16 sps:$4 sm:$0xff]  }
 0x9af   :  { %9618 = vmatpush3.bf16.msra.mxu0 %v13462_v26  ;;  %9640 = vmatpush3.bf16.msra.mxu1 %v13468_v28 }
 0x9b0   :  { %9619 = vmatprep.subr.bf16.mxu0 %v13474_v43  ;;  %9641 = vmatprep.subr.bf16.mxu1 %v13480_v51 }
 0x9b1   :  { %4901 = vmatprep.mubr.bf16.mxu0 %v4859_v18  ;;  %4941 = vmatprep.mubr.bf16.mxu1 %v4861_v24  ;;  %v10725_v18 = vld [vmem:[%s14954_s3 + $0xa4c] ss:$16 sps:$4 sm:$0xff]   ;;  %v10726_v24 = vld [vmem:[%s14954_s3 + $0xa60] ss:$16 sps:$4 sm:$0xff]  }
 0x9b3   :  { %9620 = vmatpush3.bf16.msra.mxu0 %v13486_v46  ;;  %9642 = vmatpush3.bf16.msra.mxu1 %v13492_v27 }
 0x9b4   :  { %9621 = vmatprep.subr.bf16.mxu0 %v13498_v31  ;;  %9643 = vmatprep.subr.bf16.mxu1 %v13504_v34 }
 0x9b7   :  { %9622 = vmatpush3.bf16.msra.mxu0 %v13510_v23  ;;  %9644 = vmatpush3.bf16.msra.mxu1 %v13516_v49 }
 0x9b8   :  { %9623 = vmatprep.subr.bf16.mxu0 %v13522_v52  ;;  %9645 = vmatprep.subr.bf16.mxu1 %v13528_v29 }
 0x9bb   :  { %9624 = vmatpush3.bf16.msra.mxu0 %v13534_v48  ;;  %9646 = vmatpush3.bf16.msra.mxu1 %v13540_v30 }
 0x9bc   :  { %9625 = vmatprep.subr.bf16.mxu0 %v13546_v41  ;;  %9647 = vmatprep.subr.bf16.mxu1 %v13552_v54 }
 0x9bf   :  { %9626 = vmatpush3.bf16.msra.mxu0 %v13558_v55  ;;  %9648 = vmatpush3.bf16.msra.mxu1 %v13564_v57 }
 0x9c0   :  { %9627 = vmatprep.subr.bf16.mxu0 %v13570_v32  ;;  %9649 = vmatprep.subr.bf16.mxu1 %v13576_v5 }
 0x9c3   :  { %9628 = vmatpush3.bf16.msra.mxu0 %v13582_v39  ;;  %9650 = vmatpush3.bf16.msra.mxu1 %v13588_v56 }
 0x9c4   :  { %9629 = vmatprep.subr.bf16.mxu0 %v13594_v47  ;;  %9651 = vmatprep.subr.bf16.mxu1 %v13600_v60 }
 0x9c7   :  { %9630 = vmatpush3.bf16.msra.mxu0 %v13608_v44  ;;  %9652 = vmatpush3.bf16.msra.mxu1 %v13614_v2 }
 0x9c8   :  { %9631 = vmatprep.subr.bf16.mxu0 %v13620_v50  ;;  %9653 = vmatprep.subr.bf16.mxu1 %v13626_v42 }
 0x9cb   :  { %9632 = vmatpush3.bf16.msra.mxu0 %v13632_v1  ;;  %9654 = vmatpush3.bf16.msra.mxu1 %v13638_v58 }
 0x9cc   :  { %10084 = vmatprep.subr.bf16.mxu0 %v11213_v36  ;;  %5184 = vmatprep.subr.bf16.mxu1 %v10710_v10  ;;  %v10740_v10 = vld [vmem:[%s14954_s3 + $0xaa4] ss:$16 sps:$4 sm:$0xff]  }
 0x9ce   :  { %4902 = vmatmul.mubr.bf16.vlgmr.msra.gmra.mrb[96].mxu0 %v4845_v61  ;;  %4942 = vmatmul.mubr.bf16.vlgmr.msra.gmra.mrb[104].mxu1 %v4860_v25  ;;  %v10731_v61 = vld [vmem:[%s14954_s3 + $0xa6c] ss:$16 sps:$4 sm:$0xff]   ;;  %v10729_v25 = vld [vmem:[%s14954_s3 + $0xa68] ss:$16 sps:$4 sm:$0xff]  }
 0x9cf   :  { %10085 = vmatpush3.bf16.msra.mxu0 %v13645_v63  ;;  %10092 = vmatprep.mubr.msk.bf16.mxu0 %vm11214_vm0, %v11213_v36 }
 0x9d0   :  { %10086 = vmatprep.subr.bf16.mxu0 %v11213_v36  ;;  %5216 = vmatprep.mubr.bf16.mxu1 %v11215_v33 }
 0x9d1   :  { %5185 = vmatpush1.bf16.msra.mxu1 %v10708_v0  ;;  %v10737_v0 = vld [vmem:[%s14954_s3 + $0xa8c] ss:$16 sps:$4 sm:$0xff]  }
 0x9d2   :  { %5186 = vmatprep.subr.bf16.mxu1 %v10716_v12  ;;  %v10741_v12 = vld [vmem:[%s14954_s3 + $0xaa8] ss:$16 sps:$4 sm:$0xff]  }
 0x9d3   :  { %10087 = vmatpush3.bf16.msra.mxu0 %v13657_v6 }
 0x9d4   :  { %10088 = vmatprep.subr.bf16.mxu0 %v11213_v36 }
 0x9d5   :  { %5187 = vmatpush1.bf16.msra.mxu1 %v10714_v15  ;;  %v10749_v15 = vld [vmem:[%s14954_s3 + $0xacc] ss:$16 sps:$4 sm:$0xff]  }
 0x9d6   :  { %5188 = vmatprep.subr.bf16.mxu1 %v10722_v17  ;;  %v10747_v17 = vld [vmem:[%s14954_s3 + $0xac8] ss:$16 sps:$4 sm:$0xff]  }
 0x9d7   :  { %10089 = vmatpush3.bf16.msra.mxu0 %v13665_v7 }
 0x9d8   :  { %10090 = vmatprep.subr.bf16.mxu0 %v11213_v36 }
 0x9d9   :  { %5189 = vmatpush1.bf16.msra.mxu1 %v10720_v20  ;;  %v10750_v20 = vld [vmem:[%s14954_s3 + $0xae0] ss:$16 sps:$4 sm:$0xff]  }
 0x9da   :  { %5190 = vmatprep.subr.bf16.mxu1 %v10728_v22  ;;  %v10753_v22 = vld [vmem:[%s14954_s3 + $0xae8] ss:$16 sps:$4 sm:$0xff]  }
 0x9db   :  { %10091 = vmatpush3.bf16.msra.mxu0 %v13673_v9 }
 0x9dc   :  { %5225 = vmatprep.subr.bf16.mxu0 %v10713_v11  ;;  %v10738_v11 = vld [vmem:[%s14954_s3 + $0xaa0] ss:$16 sps:$4 sm:$0xff]  }
 0x9dd   :  { %5191 = vmatpush1.bf16.msra.mxu1 %v10726_v24 }
 0x9de   :  { %10093 = vmatmul.mubr.msk.bf16.vlgmr.msra.gmra.mrb[100].mxu0 %vm374_vm1, %v4852_v8  ;;  %v10735_v8 = vld [vmem:[%s14954_s3 + $0xa88] ss:$16 sps:$4 sm:$0xff]   ;;  %5192 = vmatprep.subr.bf16.mxu1 %v10734_v14 }
 0x9df   :  { %5257 = vmatprep.mubr.bf16.mxu0 %v11215_v33  ;;  %5226 = vmatpush1.bf16.msra.mxu0 %v10711_v45  ;;  %v10743_v45 = vld [vmem:[%s14954_s3 + $0xaac] ss:$16 sps:$4 sm:$0xff]  }
 0x9e0   :  { %5227 = vmatprep.subr.bf16.mxu0 %v10719_v13  ;;  %v10746_v13 = vld [vmem:[%s14954_s3 + $0xac4] ss:$16 sps:$4 sm:$0xff]  }
 0x9e1   :  { %5193 = vmatpush1.bf16.msra.mxu1 %v10732_v4 }
 0x9e2   :  { %5194 = vmatprep.subr.bf16.mxu1 %v10740_v10 }
 0x9e3   :  { %5228 = vmatpush1.bf16.msra.mxu0 %v10717_v16  ;;  %v10744_v16 = vld [vmem:[%s14954_s3 + $0xac0] ss:$16 sps:$4 sm:$0xff]  }
 0x9e4   :  { %5229 = vmatprep.subr.bf16.mxu0 %v10725_v18  ;;  %v10752_v18 = vld [vmem:[%s14954_s3 + $0xae4] ss:$16 sps:$4 sm:$0xff]  }
 0x9e5   :  { %5195 = vmatpush1.bf16.msra.mxu1 %v10738_v11 }
 0x9e6   :  { %5196 = vmatprep.subr.bf16.mxu1 %v10746_v13 }
 0x9e7   :  { %5230 = vmatpush1.bf16.msra.mxu0 %v10723_v21  ;;  %v10755_v21 = vld [vmem:[%s14954_s3 + $0xaec] ss:$16 sps:$4 sm:$0xff]  }
 0x9e8   :  { %5231 = vmatprep.subr.bf16.mxu0 %v10731_v61 }
 0x9e9   :  { %5197 = vmatpush1.bf16.msra.mxu1 %v10744_v16 }
 0x9ea   :  { %5198 = vmatprep.subr.bf16.mxu1 %v10752_v18 }
 0x9eb   :  { %5232 = vmatpush1.bf16.msra.mxu0 %v10729_v25 }
 0x9ec   :  { %5233 = vmatprep.subr.bf16.mxu0 %v10737_v0 }
 0x9ed   :  { %5199 = vmatpush1.bf16.msra.mxu1 %v10750_v20 }
 0x9ee   :  { %9666 = vmatprep.subr.bf16.mxu1 %v13425_v3 }
 0x9ef   :  { %5234 = vmatpush1.bf16.msra.mxu0 %v10735_v8 }
 0x9f0   :  { %5235 = vmatprep.subr.bf16.mxu0 %v10743_v45 }
 0x9f3   :  { %5236 = vmatpush1.bf16.msra.mxu0 %v10741_v12 }
 0x9f4   :  { %5237 = vmatprep.subr.bf16.mxu0 %v10749_v15 }
 0x9f7   :  { %5238 = vmatpush1.bf16.msra.mxu0 %v10747_v17 }
 0x9f8   :  { %5239 = vmatprep.subr.bf16.mxu0 %v10755_v21 }
 0x9fb   :  { %5240 = vmatpush1.bf16.msra.mxu0 %v10753_v22 }
 0x9fc   :  { %9688 = vmatprep.subr.bf16.mxu0 %v13431_v37 }
 0xa81   :  { %v4768_v24 = vpop.f32.mrb[92].mxu0  ;;  %v4809_v61 = vpop.f32.mrb[100].mxu1 }
 0xa82   :  { %v13777_v25 = vadd.f32 %v4768_v24, %v13435_v38  ;;  %v13780_v4 = vadd.f32 %v4809_v61, %v13438_v59  ;;  %v4770_v14 = vpop.f32.mrb[93].mxu0  ;;  %v4811_v8 = vpop.f32.mrb[101].mxu1 }
 0xa83   :  { %v13783_v0 = vadd.f32 %v4770_v14, %v13441_v53  ;;  %v13786_v10 = vadd.f32 %v4811_v8, %v13444_v62  ;;  %v4772_v45 = vpop.f32.mrb[94].mxu0  ;;  %v4813_v11 = vpop.f32.mrb[102].mxu1  ;;  %v8755_v62 = vld [vmem:[%s14951_s0 + $0x37] sm:$0x1f] }
 0xa84   :  { %v4773_v12 = vpop.f32.mrb[95].mxu0  ;;  %v4814_v13 = vpop.f32.mrb[103].mxu1  ;;  %v5280_v14 = vrot.slane %v8755_v62, %v11472_v40 }
 0xa86   :  { %v5288_v8 = vcombine.high %v5280_v14, %v5280_v14 }
 0xaa1   :  { %v9633_v15 = vpop.f32.mrb[96].mxu0  ;;  %v9655_v16 = vpop.f32.mrb[104].mxu1 }
 0xaa2   :  { %v9634_v17 = vpop.f32.mrb[97].mxu0  ;;  %v9656_v38 = vpop.f32.mrb[105].mxu1 }
 0xaa3   :  { %v9635_v18 = vadd.f32 %v9634_v17, %v9633_v15  ;;  %v9636_v20 = vpop.f32.mrb[98].mxu0  ;;  %v9657_v59 = vadd.f32 %v9656_v38, %v9655_v16  ;;  %v9658_v21 = vpop.f32.mrb[106].mxu1  ;;  %v5309_v15 = vrot.slane %v5288_v8, %v11472_v40  ;;  %v10765_v8 = vld [vmem:[%s14954_s3 + $0xb24] ss:$16 sps:$4 sm:$0xff]  }
 0xaa4   :  { %v9637_v22 = vpop.f32.mrb[99].mxu0  ;;  %v9659_v24 = vpop.f32.mrb[107].mxu1  ;;  %v5273_v21 = vcombine.high %v8755_v62, %v8755_v62  ;;  %v10760_v62 = vld [vmem:[%s14954_s3 + $0xb08] ss:$16 sps:$4 sm:$0xff]  }
 0xaa5   :  { %v4904_v53 = vadd.f32 %v13272_v19, %v9635_v18  ;;  %v5311_v20 = vcombine.high %v5309_v15, %v5309_v15  ;;  %v5295_v18 = vrot.slane %v5280_v14, %v11472_v40  ;;  %v10762_v14 = vld [vmem:[%s14954_s3 + $0xb0c] ss:$16 sps:$4 sm:$0xff]  }
 0xaa6   :  { %v5287_v22 = vrot.slane %v5273_v21, %v11472_v40  ;;  %v10781_v21 = vld [vmem:[%s14954_s3 + $0xb80] ss:$16 sps:$4 sm:$0xff]  }
 0xaa7   :  { %v4944_v61 = vadd.f32 %v9657_v59, %v4904_v53  ;;  %v5310_v59 = vcombine.high %v5295_v18, %v5295_v18  ;;  %v10757_v53 = vld [vmem:[%s14954_s3 + $0xb00] ss:$16 sps:$4 sm:$0xff]  }
 0xaa8   :  { %v5302_v24 = vrot.slane %v5287_v22, %v11472_v40  ;;  %v10783_v22 = vld [vmem:[%s14954_s3 + $0xb84] ss:$16 sps:$4 sm:$0xff]  }
 0xab1   :  { %v4983_v45 = vpop.f32.mrb[100].mxu0 }
 0xab2   :  { %v4984_v11 = vadd.f32 %v4983_v45, %v4944_v61  ;;  %v10094_v12 = vpop.f32.mrb[101].mxu0  ;;  %v10759_v61 = vld [vmem:[%s14954_s3 + $0xb04] ss:$16 sps:$4 sm:$0xff]   ;;  %v10768_v45 = vld [vmem:[%s14954_s3 + $0xb2c] ss:$16 sps:$4 sm:$0xff]  }
 0xab3   :  { %v4986_v13 = vpop.f32.mrb[102].mxu0  ;;  %v10766_v12 = vld [vmem:[%s14954_s3 + $0xb28] ss:$16 sps:$4 sm:$0xff]  }
 0xab4   :  { %v4989_v16 = vmax.f32 %v4984_v11, 0.0  ;;  %v10095_v17 = vpop.f32.mrb[103].mxu0  ;;  %v10763_v11 = vld [vmem:[%s14954_s3 + $0xb20] ss:$16 sps:$4 sm:$0xff]   ;;  %v10771_v13 = vld [vmem:[%s14954_s3 + $0xb44] ss:$16 sps:$4 sm:$0xff]  }
 0xab5   :  { %v10772_v17 = vld [vmem:[%s14954_s3 + $0xb48] ss:$16 sps:$4 sm:$0xff]  }
 0xab6   :  { %v4990_v38 = vpack.c.bf16 %v4989_v16, %v4989_v16  ;;  %v10769_v16 = vld [vmem:[%s14954_s3 + $0xb40] ss:$16 sps:$4 sm:$0xff]  }
 0xab8   :  { %5217 = vmatmul.mubr.bf16.vlgmr.msra.gmra.mrb[108].mxu1 %v4990_v38  ;;  %5258 = vmatmul.mubr.bf16.vlgmr.msra.gmra.mrb[104].mxu0 %v4990_v38  ;;  %v10777_v38 = vld [vmem:[%s14954_s3 + $0xb64] ss:$16 sps:$4 sm:$0xff]  }
 0xab9   :  { %9667 = vmatpush3.bf16.msra.mxu1 %v13462_v26  ;;  %9689 = vmatpush3.bf16.msra.mxu0 %v13468_v28 }
 0xaba   :  { %9668 = vmatprep.subr.bf16.mxu1 %v13474_v43  ;;  %9690 = vmatprep.subr.bf16.mxu0 %v13480_v51 }
 0xabb   :  { %5351 = vmatprep.mubr.bf16.mxu1 %v5309_v15  ;;  %5391 = vmatprep.mubr.bf16.mxu0 %v5311_v20  ;;  %v10774_v15 = vld [vmem:[%s14954_s3 + $0xb4c] ss:$16 sps:$4 sm:$0xff]   ;;  %v10775_v20 = vld [vmem:[%s14954_s3 + $0xb60] ss:$16 sps:$4 sm:$0xff]  }
 0xabd   :  { %9669 = vmatpush3.bf16.msra.mxu1 %v13486_v46  ;;  %9691 = vmatpush3.bf16.msra.mxu0 %v13492_v27 }
 0xabe   :  { %9670 = vmatprep.subr.bf16.mxu1 %v13498_v31  ;;  %9692 = vmatprep.subr.bf16.mxu0 %v13504_v34 }
 0xac1   :  { %9671 = vmatpush3.bf16.msra.mxu1 %v13510_v23  ;;  %9693 = vmatpush3.bf16.msra.mxu0 %v13516_v49 }
 0xac2   :  { %9672 = vmatprep.subr.bf16.mxu1 %v13522_v52  ;;  %9694 = vmatprep.subr.bf16.mxu0 %v13528_v29 }
 0xac5   :  { %9673 = vmatpush3.bf16.msra.mxu1 %v13534_v48  ;;  %9695 = vmatpush3.bf16.msra.mxu0 %v13540_v30 }
 0xac6   :  { %9674 = vmatprep.subr.bf16.mxu1 %v13546_v41  ;;  %9696 = vmatprep.subr.bf16.mxu0 %v13552_v54 }
 0xac9   :  { %9675 = vmatpush3.bf16.msra.mxu1 %v13558_v55  ;;  %9697 = vmatpush3.bf16.msra.mxu0 %v13564_v57 }
 0xaca   :  { %9676 = vmatprep.subr.bf16.mxu1 %v13570_v32  ;;  %9698 = vmatprep.subr.bf16.mxu0 %v13576_v5 }
 0xacd   :  { %9677 = vmatpush3.bf16.msra.mxu1 %v13582_v39  ;;  %9699 = vmatpush3.bf16.msra.mxu0 %v13588_v56 }
 0xace   :  { %9678 = vmatprep.subr.bf16.mxu1 %v13594_v47  ;;  %9700 = vmatprep.subr.bf16.mxu0 %v13600_v60 }
 0xad1   :  { %9679 = vmatpush3.bf16.msra.mxu1 %v13608_v44  ;;  %9701 = vmatpush3.bf16.msra.mxu0 %v13614_v2 }
 0xad2   :  { %9680 = vmatprep.subr.bf16.mxu1 %v13620_v50  ;;  %9702 = vmatprep.subr.bf16.mxu0 %v13626_v42 }
 0xad5   :  { %9681 = vmatpush3.bf16.msra.mxu1 %v13632_v1  ;;  %9703 = vmatpush3.bf16.msra.mxu0 %v13638_v58 }
 0xad6   :  { %10096 = vmatprep.subr.bf16.mxu1 %v11213_v36  ;;  %5634 = vmatprep.subr.bf16.mxu0 %v10759_v61  ;;  %v10789_v61 = vld [vmem:[%s14954_s3 + $0xba4] ss:$16 sps:$4 sm:$0xff]  }
 0xad8   :  { %5352 = vmatmul.mubr.bf16.vlgmr.msra.gmra.mrb[112].mxu1 %v5295_v18  ;;  %5392 = vmatmul.mubr.bf16.vlgmr.msra.gmra.mrb[108].mxu0 %v5310_v59  ;;  %v10780_v18 = vld [vmem:[%s14954_s3 + $0xb6c] ss:$16 sps:$4 sm:$0xff]   ;;  %v10778_v59 = vld [vmem:[%s14954_s3 + $0xb68] ss:$16 sps:$4 sm:$0xff]  }
 0xad9   :  { %10097 = vmatpush3.bf16.msra.mxu1 %v13645_v63  ;;  %10104 = vmatprep.mubr.msk.bf16.mxu1 %vm11214_vm0, %v11213_v36 }
 0xada   :  { %10098 = vmatprep.subr.bf16.mxu1 %v11213_v36  ;;  %5666 = vmatprep.mubr.bf16.mxu0 %v11215_v33 }
 0xadb   :  { %5635 = vmatpush1.bf16.msra.mxu0 %v10757_v53  ;;  %v10786_v53 = vld [vmem:[%s14954_s3 + $0xb8c] ss:$16 sps:$4 sm:$0xff]  }
 0xadc   :  { %5636 = vmatprep.subr.bf16.mxu0 %v10765_v8  ;;  %v10790_v8 = vld [vmem:[%s14954_s3 + $0xba8] ss:$16 sps:$4 sm:$0xff]  }
 0xadd   :  { %10099 = vmatpush3.bf16.msra.mxu1 %v13657_v6 }
 0xade   :  { %10100 = vmatprep.subr.bf16.mxu1 %v11213_v36 }
 0xadf   :  { %5637 = vmatpush1.bf16.msra.mxu0 %v10763_v11  ;;  %v10798_v11 = vld [vmem:[%s14954_s3 + $0xbcc] ss:$16 sps:$4 sm:$0xff]  }
 0xae0   :  { %5638 = vmatprep.subr.bf16.mxu0 %v10771_v13  ;;  %v10796_v13 = vld [vmem:[%s14954_s3 + $0xbc8] ss:$16 sps:$4 sm:$0xff]  }
 0xae1   :  { %10101 = vmatpush3.bf16.msra.mxu1 %v13665_v7 }
 0xae2   :  { %10102 = vmatprep.subr.bf16.mxu1 %v11213_v36 }
 0xae3   :  { %5639 = vmatpush1.bf16.msra.mxu0 %v10769_v16  ;;  %v10799_v16 = vld [vmem:[%s14954_s3 + $0xbe0] ss:$16 sps:$4 sm:$0xff]  }
 0xae4   :  { %5640 = vmatprep.subr.bf16.mxu0 %v10777_v38  ;;  %v10802_v38 = vld [vmem:[%s14954_s3 + $0xbe8] ss:$16 sps:$4 sm:$0xff]  }
 0xae5   :  { %10103 = vmatpush3.bf16.msra.mxu1 %v13673_v9 }
 0xae6   :  { %5675 = vmatprep.subr.bf16.mxu1 %v10762_v14  ;;  %v10787_v14 = vld [vmem:[%s14954_s3 + $0xba0] ss:$16 sps:$4 sm:$0xff]  }
 0xae7   :  { %5641 = vmatpush1.bf16.msra.mxu0 %v10775_v20 }
 0xae8   :  { %10105 = vmatmul.mubr.msk.bf16.vlgmr.msra.gmra.mrb[116].mxu1 %vm374_vm1, %v5302_v24  ;;  %v10784_v24 = vld [vmem:[%s14954_s3 + $0xb88] ss:$16 sps:$4 sm:$0xff]   ;;  %5642 = vmatprep.subr.bf16.mxu0 %v10783_v22 }
 0xae9   :  { %5707 = vmatprep.mubr.bf16.mxu1 %v11215_v33  ;;  %5676 = vmatpush1.bf16.msra.mxu1 %v10760_v62  ;;  %v10792_v62 = vld [vmem:[%s14954_s3 + $0xbac] ss:$16 sps:$4 sm:$0xff]  }
 0xaea   :  { %5677 = vmatprep.subr.bf16.mxu1 %v10768_v45  ;;  %v10795_v45 = vld [vmem:[%s14954_s3 + $0xbc4] ss:$16 sps:$4 sm:$0xff]  }
 0xaeb   :  { %5643 = vmatpush1.bf16.msra.mxu0 %v10781_v21 }
 0xaec   :  { %5644 = vmatprep.subr.bf16.mxu0 %v10789_v61 }
 0xaed   :  { %5678 = vmatpush1.bf16.msra.mxu1 %v10766_v12  ;;  %v10793_v12 = vld [vmem:[%s14954_s3 + $0xbc0] ss:$16 sps:$4 sm:$0xff]  }
 0xaee   :  { %5679 = vmatprep.subr.bf16.mxu1 %v10774_v15  ;;  %v10801_v15 = vld [vmem:[%s14954_s3 + $0xbe4] ss:$16 sps:$4 sm:$0xff]  }
 0xaef   :  { %5645 = vmatpush1.bf16.msra.mxu0 %v10787_v14 }
 0xaf0   :  { %5646 = vmatprep.subr.bf16.mxu0 %v10795_v45 }
 0xaf1   :  { %5680 = vmatpush1.bf16.msra.mxu1 %v10772_v17  ;;  %v10804_v17 = vld [vmem:[%s14954_s3 + $0xbec] ss:$16 sps:$4 sm:$0xff]  }
 0xaf2   :  { %5681 = vmatprep.subr.bf16.mxu1 %v10780_v18 }
 0xaf3   :  { %5647 = vmatpush1.bf16.msra.mxu0 %v10793_v12 }
 0xaf4   :  { %5648 = vmatprep.subr.bf16.mxu0 %v10801_v15 }
 0xaf5   :  { %5682 = vmatpush1.bf16.msra.mxu1 %v10778_v59 }
 0xaf6   :  { %5683 = vmatprep.subr.bf16.mxu1 %v10786_v53 }
 0xaf7   :  { %5649 = vmatpush1.bf16.msra.mxu0 %v10799_v16 }
 0xaf8   :  { %9715 = vmatprep.subr.bf16.mxu0 %v13425_v3 }
 0xaf9   :  { %5684 = vmatpush1.bf16.msra.mxu1 %v10784_v24 }
 0xafa   :  { %5685 = vmatprep.subr.bf16.mxu1 %v10792_v62 }
 0xafd   :  { %5686 = vmatpush1.bf16.msra.mxu1 %v10790_v8 }
 0xafe   :  { %5687 = vmatprep.subr.bf16.mxu1 %v10798_v11 }
 0xb01   :  { %5688 = vmatpush1.bf16.msra.mxu1 %v10796_v13 }
 0xb02   :  { %5689 = vmatprep.subr.bf16.mxu1 %v10804_v17 }
 0xb05   :  { %5690 = vmatpush1.bf16.msra.mxu1 %v10802_v38 }
 0xb06   :  { %9737 = vmatprep.subr.bf16.mxu1 %v13431_v37 }
 0xb8b   :  { %v5218_v20 = vpop.f32.mrb[108].mxu1  ;;  %v5259_v18 = vpop.f32.mrb[104].mxu0 }
 0xb8c   :  { %v13939_v59 = vadd.f32 %v5218_v20, %v13777_v25  ;;  %v13942_v21 = vadd.f32 %v5259_v18, %v13780_v4  ;;  %v5220_v22 = vpop.f32.mrb[109].mxu1  ;;  %v5261_v24 = vpop.f32.mrb[105].mxu0 }
 0xb8d   :  { %v13945_v53 = vadd.f32 %v5220_v22, %v13783_v0  ;;  %v13948_v61 = vadd.f32 %v5261_v24, %v13786_v10  ;;  %v5222_v62 = vpop.f32.mrb[110].mxu1  ;;  %v5263_v14 = vpop.f32.mrb[106].mxu0  ;;  %v8821_v10 = vld [vmem:[%s14951_s0 + $0x3c] sm:$0x1f] }
 0xb8e   :  { %v5223_v8 = vpop.f32.mrb[111].mxu1  ;;  %v5264_v45 = vpop.f32.mrb[107].mxu0  ;;  %v5730_v22 = vrot.slane %v8821_v10, %v11472_v40 }
 0xb90   :  { %v5738_v24 = vcombine.high %v5730_v22, %v5730_v22 }
 0xbab   :  { %v9682_v11 = vpop.f32.mrb[112].mxu1  ;;  %v9704_v12 = vpop.f32.mrb[108].mxu0 }
 0xbac   :  { %v9683_v13 = vpop.f32.mrb[113].mxu1  ;;  %v9705_v25 = vpop.f32.mrb[109].mxu0 }
 0xbad   :  { %v9684_v15 = vadd.f32 %v9683_v13, %v9682_v11  ;;  %v9685_v16 = vpop.f32.mrb[114].mxu1  ;;  %v9706_v4 = vadd.f32 %v9705_v25, %v9704_v12  ;;  %v9707_v17 = vpop.f32.mrb[110].mxu0  ;;  %v5759_v11 = vrot.slane %v5738_v24, %v11472_v40  ;;  %v10817_v24 = vld [vmem:[%s14954_s3 + $0xc2c] ss:$16 sps:$4 sm:$0xff]  }
 0xbae   :  { %v9686_v38 = vpop.f32.mrb[115].mxu1  ;;  %v9708_v20 = vpop.f32.mrb[111].mxu0 }
 0xbaf   :  { %v5354_v0 = vadd.f32 %v13272_v19, %v9684_v15  ;;  %v5761_v16 = vcombine.high %v5759_v11, %v5759_v11  ;;  %v5745_v19 = vrot.slane %v5730_v22, %v11472_v40  ;;  %v10806_v20 = vld [vmem:[%s14954_s3 + $0xc00] ss:$16 sps:$4 sm:$0xff]   ;;  %v10814_v22 = vld [vmem:[%s14954_s3 + $0xc24] ss:$16 sps:$4 sm:$0xff]  }
 0xbb1   :  { %v5394_v18 = vadd.f32 %v9706_v4, %v5354_v0  ;;  %v5760_v15 = vcombine.high %v5745_v19, %v5745_v19  ;;  %v5723_v4 = vcombine.high %v8821_v10, %v8821_v10  ;;  %v10808_v0 = vld [vmem:[%s14954_s3 + $0xc04] ss:$16 sps:$4 sm:$0xff]   ;;  %v10811_v10 = vld [vmem:[%s14954_s3 + $0xc0c] ss:$16 sps:$4 sm:$0xff]  }
 0xbb3   :  { %v5737_v17 = vrot.slane %v5723_v4, %v11472_v40  ;;  %v10832_v4 = vld [vmem:[%s14954_s3 + $0xc84] ss:$16 sps:$4 sm:$0xff]  }
 0xbb5   :  { %v5752_v38 = vrot.slane %v5737_v17, %v11472_v40  ;;  %v10833_v17 = vld [vmem:[%s14954_s3 + $0xc88] ss:$16 sps:$4 sm:$0xff]  }
 0xbbb   :  { %v5433_v62 = vpop.f32.mrb[116].mxu1 }
 0xbbc   :  { %v5434_v14 = vadd.f32 %v5433_v62, %v5394_v18  ;;  %v10106_v8 = vpop.f32.mrb[117].mxu1  ;;  %v10809_v18 = vld [vmem:[%s14954_s3 + $0xc08] ss:$16 sps:$4 sm:$0xff]   ;;  %v10812_v62 = vld [vmem:[%s14954_s3 + $0xc20] ss:$16 sps:$4 sm:$0xff]  }
 0xbbd   :  { %v5436_v45 = vpop.f32.mrb[118].mxu1  ;;  %v10820_v8 = vld [vmem:[%s14954_s3 + $0xc44] ss:$16 sps:$4 sm:$0xff]  }
 0xbbe   :  { %v5439_v12 = vmax.f32 %v5434_v14, 0.0  ;;  %v10107_v13 = vpop.f32.mrb[119].mxu1  ;;  %v10815_v14 = vld [vmem:[%s14954_s3 + $0xc28] ss:$16 sps:$4 sm:$0xff]   ;;  %v10823_v45 = vld [vmem:[%s14954_s3 + $0xc4c] ss:$16 sps:$4 sm:$0xff]  }
 0xbbf   :  { %v10826_v13 = vld [vmem:[%s14954_s3 + $0xc64] ss:$16 sps:$4 sm:$0xff]  }
 0xbc0   :  { %v5440_v25 = vpack.c.bf16 %v5439_v12, %v5439_v12  ;;  %v10821_v12 = vld [vmem:[%s14954_s3 + $0xc48] ss:$16 sps:$4 sm:$0xff]  }
 0xbc2   :  { %5667 = vmatmul.mubr.bf16.vlgmr.msra.gmra.mrb[112].mxu0 %v5440_v25  ;;  %5708 = vmatmul.mubr.bf16.vlgmr.msra.gmra.mrb[120].mxu1 %v5440_v25  ;;  %v10824_v25 = vld [vmem:[%s14954_s3 + $0xc60] ss:$16 sps:$4 sm:$0xff]  }
 0xbc3   :  { %9716 = vmatpush3.bf16.msra.mxu0 %v13462_v26  ;;  %9738 = vmatpush3.bf16.msra.mxu1 %v13468_v28 }
 0xbc4   :  { %9717 = vmatprep.subr.bf16.mxu0 %v13474_v43  ;;  %9739 = vmatprep.subr.bf16.mxu1 %v13480_v51 }
 0xbc5   :  { %5801 = vmatprep.mubr.bf16.mxu0 %v5759_v11  ;;  %5841 = vmatprep.mubr.bf16.mxu1 %v5761_v16  ;;  %v10818_v11 = vld [vmem:[%s14954_s3 + $0xc40] ss:$16 sps:$4 sm:$0xff]   ;;  %v10829_v16 = vld [vmem:[%s14954_s3 + $0xc6c] ss:$16 sps:$4 sm:$0xff]  }
 0xbc7   :  { %9718 = vmatpush3.bf16.msra.mxu0 %v13486_v46  ;;  %9740 = vmatpush3.bf16.msra.mxu1 %v13492_v27 }
 0xbc8   :  { %9719 = vmatprep.subr.bf16.mxu0 %v13498_v31  ;;  %9741 = vmatprep.subr.bf16.mxu1 %v13504_v34 }
 0xbcb   :  { %9720 = vmatpush3.bf16.msra.mxu0 %v13510_v23  ;;  %9742 = vmatpush3.bf16.msra.mxu1 %v13516_v49 }
 0xbcc   :  { %9721 = vmatprep.subr.bf16.mxu0 %v13522_v52  ;;  %9743 = vmatprep.subr.bf16.mxu1 %v13528_v29 }
 0xbcf   :  { %9722 = vmatpush3.bf16.msra.mxu0 %v13534_v48  ;;  %9744 = vmatpush3.bf16.msra.mxu1 %v13540_v30 }
 0xbd0   :  { %9723 = vmatprep.subr.bf16.mxu0 %v13546_v41  ;;  %9745 = vmatprep.subr.bf16.mxu1 %v13552_v54 }
 0xbd3   :  { %9724 = vmatpush3.bf16.msra.mxu0 %v13558_v55  ;;  %9746 = vmatpush3.bf16.msra.mxu1 %v13564_v57 }
 0xbd4   :  { %9725 = vmatprep.subr.bf16.mxu0 %v13570_v32  ;;  %9747 = vmatprep.subr.bf16.mxu1 %v13576_v5 }
 0xbd7   :  { %9726 = vmatpush3.bf16.msra.mxu0 %v13582_v39  ;;  %9748 = vmatpush3.bf16.msra.mxu1 %v13588_v56 }
 0xbd8   :  { %9727 = vmatprep.subr.bf16.mxu0 %v13594_v47  ;;  %9749 = vmatprep.subr.bf16.mxu1 %v13600_v60 }
 0xbdb   :  { %9728 = vmatpush3.bf16.msra.mxu0 %v13608_v44  ;;  %9750 = vmatpush3.bf16.msra.mxu1 %v13614_v2 }
 0xbdc   :  { %9729 = vmatprep.subr.bf16.mxu0 %v13620_v50  ;;  %9751 = vmatprep.subr.bf16.mxu1 %v13626_v42 }
 0xbdf   :  { %9730 = vmatpush3.bf16.msra.mxu0 %v13632_v1  ;;  %9752 = vmatpush3.bf16.msra.mxu1 %v13638_v58 }
 0xbe0   :  { %10108 = vmatprep.subr.bf16.mxu0 %v11213_v36  ;;  %6084 = vmatprep.subr.bf16.mxu1 %v10808_v0  ;;  %v10841_v0 = vld [vmem:[%s14954_s3 + $0xcac] ss:$16 sps:$4 sm:$0xff]  }
 0xbe2   :  { %5802 = vmatmul.mubr.bf16.vlgmr.msra.gmra.mrb[116].mxu0 %v5745_v19  ;;  %5842 = vmatmul.mubr.bf16.vlgmr.msra.gmra.mrb[124].mxu1 %v5760_v15  ;;  %v10827_v19 = vld [vmem:[%s14954_s3 + $0xc68] ss:$16 sps:$4 sm:$0xff]   ;;  %v10830_v15 = vld [vmem:[%s14954_s3 + $0xc80] ss:$16 sps:$4 sm:$0xff]  }
 0xbe3   :  { %10109 = vmatpush3.bf16.msra.mxu0 %v13645_v63  ;;  %10116 = vmatprep.mubr.msk.bf16.mxu0 %vm11214_vm0, %v11213_v36 }
 0xbe4   :  { %10110 = vmatprep.subr.bf16.mxu0 %v11213_v36  ;;  %6116 = vmatprep.mubr.bf16.mxu1 %v11215_v33 }
 0xbe5   :  { %6085 = vmatpush1.bf16.msra.mxu1 %v10806_v20  ;;  %v10838_v20 = vld [vmem:[%s14954_s3 + $0xca4] ss:$16 sps:$4 sm:$0xff]  }
 0xbe6   :  { %6086 = vmatprep.subr.bf16.mxu1 %v10814_v22  ;;  %v10844_v22 = vld [vmem:[%s14954_s3 + $0xcc4] ss:$16 sps:$4 sm:$0xff]  }
 0xbe7   :  { %10111 = vmatpush3.bf16.msra.mxu0 %v13657_v6 }
 0xbe8   :  { %10112 = vmatprep.subr.bf16.mxu0 %v11213_v36 }
 0xbe9   :  { %6087 = vmatpush1.bf16.msra.mxu1 %v10812_v62  ;;  %v10842_v62 = vld [vmem:[%s14954_s3 + $0xcc0] ss:$16 sps:$4 sm:$0xff]  }
 0xbea   :  { %6088 = vmatprep.subr.bf16.mxu1 %v10820_v8  ;;  %v10850_v8 = vld [vmem:[%s14954_s3 + $0xce4] ss:$16 sps:$4 sm:$0xff]  }
 0xbeb   :  { %10113 = vmatpush3.bf16.msra.mxu0 %v13665_v7 }
 0xbec   :  { %10114 = vmatprep.subr.bf16.mxu0 %v11213_v36 }
 0xbed   :  { %6089 = vmatpush1.bf16.msra.mxu1 %v10818_v11  ;;  %v10853_v11 = vld [vmem:[%s14954_s3 + $0xcec] ss:$16 sps:$4 sm:$0xff]  }
 0xbee   :  { %6090 = vmatprep.subr.bf16.mxu1 %v10826_v13 }
 0xbef   :  { %10115 = vmatpush3.bf16.msra.mxu0 %v13673_v9 }
 0xbf0   :  { %6125 = vmatprep.subr.bf16.mxu0 %v10811_v10  ;;  %v10839_v10 = vld [vmem:[%s14954_s3 + $0xca8] ss:$16 sps:$4 sm:$0xff]  }
 0xbf1   :  { %6091 = vmatpush1.bf16.msra.mxu1 %v10824_v25 }
 0xbf2   :  { %10117 = vmatmul.mubr.msk.bf16.vlgmr.msra.gmra.mrb[120].mxu0 %vm374_vm1, %v5752_v38  ;;  %v10835_v38 = vld [vmem:[%s14954_s3 + $0xc8c] ss:$16 sps:$4 sm:$0xff]   ;;  %6092 = vmatprep.subr.bf16.mxu1 %v10832_v4 }
 0xbf3   :  { %6157 = vmatprep.mubr.bf16.mxu0 %v11215_v33  ;;  %6126 = vmatpush1.bf16.msra.mxu0 %v10809_v18  ;;  %v10836_v18 = vld [vmem:[%s14954_s3 + $0xca0] ss:$16 sps:$4 sm:$0xff]  }
 0xbf4   :  { %6127 = vmatprep.subr.bf16.mxu0 %v10817_v24  ;;  %v10847_v24 = vld [vmem:[%s14954_s3 + $0xccc] ss:$16 sps:$4 sm:$0xff]  }
 0xbf5   :  { %6093 = vmatpush1.bf16.msra.mxu1 %v10830_v15 }
 0xbf6   :  { %6094 = vmatprep.subr.bf16.mxu1 %v10838_v20 }
 0xbf7   :  { %6128 = vmatpush1.bf16.msra.mxu0 %v10815_v14  ;;  %v10845_v14 = vld [vmem:[%s14954_s3 + $0xcc8] ss:$16 sps:$4 sm:$0xff]  }
 0xbf8   :  { %6129 = vmatprep.subr.bf16.mxu0 %v10823_v45  ;;  %v10848_v45 = vld [vmem:[%s14954_s3 + $0xce0] ss:$16 sps:$4 sm:$0xff]  }
 0xbf9   :  { %6095 = vmatpush1.bf16.msra.mxu1 %v10836_v18 }
 0xbfa   :  { %6096 = vmatprep.subr.bf16.mxu1 %v10844_v22 }
 0xbfb   :  { %6130 = vmatpush1.bf16.msra.mxu0 %v10821_v12  ;;  %v10851_v12 = vld [vmem:[%s14954_s3 + $0xce8] ss:$16 sps:$4 sm:$0xff]  }
 0xbfc   :  { %6131 = vmatprep.subr.bf16.mxu0 %v10829_v16 }
 0xbfd   :  { %6097 = vmatpush1.bf16.msra.mxu1 %v10842_v62 }
 0xbfe   :  { %6098 = vmatprep.subr.bf16.mxu1 %v10850_v8 }
 0xbff   :  { %6132 = vmatpush1.bf16.msra.mxu0 %v10827_v19 }
 0xc00   :  { %6133 = vmatprep.subr.bf16.mxu0 %v10835_v38 }
 0xc01   :  { %6099 = vmatpush1.bf16.msra.mxu1 %v10848_v45 }
 0xc02   :  { %9764 = vmatprep.subr.bf16.mxu1 %v13425_v3 }
 0xc03   :  { %6134 = vmatpush1.bf16.msra.mxu0 %v10833_v17 }
 0xc04   :  { %6135 = vmatprep.subr.bf16.mxu0 %v10841_v0 }
 0xc07   :  { %6136 = vmatpush1.bf16.msra.mxu0 %v10839_v10 }
 0xc08   :  { %6137 = vmatprep.subr.bf16.mxu0 %v10847_v24 }
 0xc0b   :  { %6138 = vmatpush1.bf16.msra.mxu0 %v10845_v14 }
 0xc0c   :  { %6139 = vmatprep.subr.bf16.mxu0 %v10853_v11 }
 0xc0f   :  { %6140 = vmatpush1.bf16.msra.mxu0 %v10851_v12  ;;  %v8887_v12 = vld [vmem:[%s14951_s0 + $0x41] sm:$0x1f] }
 0xc10   :  { %9786 = vmatprep.subr.bf16.mxu0 %v13431_v37 }
 0xc95   :  { %v5668_v13 = vpop.f32.mrb[112].mxu0  ;;  %v5709_v25 = vpop.f32.mrb[120].mxu1 }
 0xc96   :  { %v14101_v16 = vadd.f32 %v5668_v13, %v13939_v59  ;;  %v14104_v19 = vadd.f32 %v5709_v25, %v13942_v21  ;;  %v5670_v15 = vpop.f32.mrb[113].mxu0  ;;  %v5711_v4 = vpop.f32.mrb[121].mxu1  ;;  %v6180_v13 = vrot.slane %v8887_v12, %v11472_v40 }
 0xc97   :  { %v14107_v17 = vadd.f32 %v5670_v15, %v13945_v53  ;;  %v14110_v38 = vadd.f32 %v5711_v4, %v13948_v61  ;;  %v5672_v20 = vpop.f32.mrb[114].mxu0  ;;  %v5713_v3 = vpop.f32.mrb[122].mxu1  ;;  %v14115_v53 = vld [vmem:[%s14953_s2] ss:$0 sm:$0xff] }
 0xc98   :  { %v5673_v0 = vpop.f32.mrb[115].mxu0  ;;  %v5714_v37 = vpop.f32.mrb[123].mxu1  ;;  %v6188_v25 = vcombine.high %v6180_v13, %v6180_v13 }
 0xc9a   :  { %v6209_v0 = vrot.slane %v6188_v25, %v11472_v40 }
 0xcb5   :  { %v9731_v18 = vpop.f32.mrb[116].mxu0  ;;  %v9753_v10 = vpop.f32.mrb[124].mxu1 }
 0xcb6   :  { %v9732_v22 = vpop.f32.mrb[117].mxu0  ;;  %v9754_v59 = vpop.f32.mrb[125].mxu1 }
 0xcb7   :  { %v9733_v24 = vadd.f32 %v9732_v22, %v9731_v18  ;;  %v9734_v62 = vpop.f32.mrb[118].mxu0  ;;  %v9755_v21 = vadd.f32 %v9754_v59, %v9753_v10  ;;  %v9756_v14 = vpop.f32.mrb[126].mxu1  ;;  %v6211_v22 = vcombine.high %v6209_v0, %v6209_v0  ;;  %v10897_v59 = vld [vmem:[%s14954_s3 + $0xde0] ss:$16 sps:$4 sm:$0xff]  }
 0xcb8   :  { %v9735_v8 = vpop.f32.mrb[119].mxu0  ;;  %v9757_v45 = vpop.f32.mrb[127].mxu1  ;;  %v10900_v62 = vld [vmem:[%s14954_s3 + $0xde8] ss:$16 sps:$4 sm:$0xff]   ;;  %v14274_v14 = vld [vmem:[%s14952_s1 + $0xc0] sm:$0xff]  }
 0xcb9   :  { %v5804_v61 = vadd.f32 %v14115_v53, %v9733_v24  ;;  %v10902_v24 = vld [vmem:[%s14954_s3 + $0xdec] ss:$16 sps:$4 sm:$0xff]  }
 0xcbb   :  { %v5844_v11 = vadd.f32 %v9755_v21, %v5804_v61  ;;  %v14268_v21 = vld [vmem:[%s14952_s1 + $0x40] sm:$0xff]  }
 0xcc5   :  { %v5883_v15 = vpop.f32.mrb[120].mxu0 }
 0xcc6   :  { %v5884_v4 = vadd.f32 %v5883_v15, %v5844_v11  ;;  %v10118_v20 = vpop.f32.mrb[121].mxu0 }
 0xcc7   :  { %v5886_v3 = vpop.f32.mrb[122].mxu0 }
 0xcc8   :  { %v5889_v37 = vmax.f32 %v5884_v4, 0.0  ;;  %v10119_v18 = vpop.f32.mrb[123].mxu0 }
 0xcca   :  { %v5890_v10 = vpack.c.bf16 %v5889_v37, %v5889_v37 }
 0xccc   :  { %6117 = vmatmul.mubr.bf16.vlgmr.msra.gmra.mrb[128].mxu1 %v5890_v10  ;;  %6158 = vmatmul.mubr.bf16.vlgmr.msra.gmra.mrb[124].mxu0 %v5890_v10 }
 0xccd   :  { %9765 = vmatpush3.bf16.msra.mxu1 %v13462_v26  ;;  %9787 = vmatpush3.bf16.msra.mxu0 %v13468_v28  ;;  %v6195_v26 = vrot.slane %v6180_v13, %v11472_v40 }
 0xcce   :  { %9766 = vmatprep.subr.bf16.mxu1 %v13474_v43  ;;  %9788 = vmatprep.subr.bf16.mxu0 %v13480_v51  ;;  %v6173_v43 = vcombine.high %v8887_v12, %v8887_v12 }
 0xccf   :  { %6251 = vmatprep.mubr.bf16.mxu1 %v6209_v0  ;;  %6291 = vmatprep.mubr.bf16.mxu0 %v6211_v22  ;;  %v6210_v28 = vcombine.high %v6195_v26, %v6195_v26 }
 0xcd0   :  { %v6187_v51 = vrot.slane %v6173_v43, %v11472_v40 }
 0xcd1   :  { %9767 = vmatpush3.bf16.msra.mxu1 %v13486_v46  ;;  %9789 = vmatpush3.bf16.msra.mxu0 %v13492_v27  ;;  %v10855_v27 = vld [vmem:[%s14954_s3 + $0xd00] ss:$16 sps:$4 sm:$0xff]  }
 0xcd2   :  { %9768 = vmatprep.subr.bf16.mxu1 %v13498_v31  ;;  %9790 = vmatprep.subr.bf16.mxu0 %v13504_v34  ;;  %v6202_v46 = vrot.slane %v6187_v51, %v11472_v40  ;;  %v10857_v31 = vld [vmem:[%s14954_s3 + $0xd04] ss:$16 sps:$4 sm:$0xff]   ;;  %v10858_v34 = vld [vmem:[%s14954_s3 + $0xd08] ss:$16 sps:$4 sm:$0xff]  }
 0xcd5   :  { %9769 = vmatpush3.bf16.msra.mxu1 %v13510_v23  ;;  %9791 = vmatpush3.bf16.msra.mxu0 %v13516_v49  ;;  %v10860_v23 = vld [vmem:[%s14954_s3 + $0xd0c] ss:$16 sps:$4 sm:$0xff]   ;;  %v10863_v49 = vld [vmem:[%s14954_s3 + $0xd24] ss:$16 sps:$4 sm:$0xff]  }
 0xcd6   :  { %9770 = vmatprep.subr.bf16.mxu1 %v13522_v52  ;;  %9792 = vmatprep.subr.bf16.mxu0 %v13528_v29  ;;  %v10866_v52 = vld [vmem:[%s14954_s3 + $0xd2c] ss:$16 sps:$4 sm:$0xff]   ;;  %v10861_v29 = vld [vmem:[%s14954_s3 + $0xd20] ss:$16 sps:$4 sm:$0xff]  }
 0xcd9   :  { %9771 = vmatpush3.bf16.msra.mxu1 %v13534_v48  ;;  %9793 = vmatpush3.bf16.msra.mxu0 %v13540_v30  ;;  %v10864_v48 = vld [vmem:[%s14954_s3 + $0xd28] ss:$16 sps:$4 sm:$0xff]   ;;  %v10869_v30 = vld [vmem:[%s14954_s3 + $0xd44] ss:$16 sps:$4 sm:$0xff]  }
 0xcda   :  { %9772 = vmatprep.subr.bf16.mxu1 %v13546_v41  ;;  %9794 = vmatprep.subr.bf16.mxu0 %v13552_v54  ;;  %v10872_v41 = vld [vmem:[%s14954_s3 + $0xd4c] ss:$16 sps:$4 sm:$0xff]   ;;  %v10867_v54 = vld [vmem:[%s14954_s3 + $0xd40] ss:$16 sps:$4 sm:$0xff]  }
 0xcdd   :  { %9773 = vmatpush3.bf16.msra.mxu1 %v13558_v55  ;;  %9795 = vmatpush3.bf16.msra.mxu0 %v13564_v57  ;;  %v10870_v55 = vld [vmem:[%s14954_s3 + $0xd48] ss:$16 sps:$4 sm:$0xff]   ;;  %v10875_v57 = vld [vmem:[%s14954_s3 + $0xd64] ss:$16 sps:$4 sm:$0xff]  }
 0xcde   :  { %9774 = vmatprep.subr.bf16.mxu1 %v13570_v32  ;;  %9796 = vmatprep.subr.bf16.mxu0 %v13576_v5  ;;  %v10873_v32 = vld [vmem:[%s14954_s3 + $0xd60] ss:$16 sps:$4 sm:$0xff]   ;;  %v10878_v5 = vld [vmem:[%s14954_s3 + $0xd6c] ss:$16 sps:$4 sm:$0xff]  }
 0xce1   :  { %9775 = vmatpush3.bf16.msra.mxu1 %v13582_v39  ;;  %9797 = vmatpush3.bf16.msra.mxu0 %v13588_v56  ;;  %v10876_v39 = vld [vmem:[%s14954_s3 + $0xd68] ss:$16 sps:$4 sm:$0xff]   ;;  %v10879_v56 = vld [vmem:[%s14954_s3 + $0xd80] ss:$16 sps:$4 sm:$0xff]  }
 0xce2   :  { %9776 = vmatprep.subr.bf16.mxu1 %v13594_v47  ;;  %9798 = vmatprep.subr.bf16.mxu0 %v13600_v60  ;;  %v10881_v47 = vld [vmem:[%s14954_s3 + $0xd84] ss:$16 sps:$4 sm:$0xff]   ;;  %v10882_v60 = vld [vmem:[%s14954_s3 + $0xd88] ss:$16 sps:$4 sm:$0xff]  }
 0xce5   :  { %9777 = vmatpush3.bf16.msra.mxu1 %v13608_v44  ;;  %9799 = vmatpush3.bf16.msra.mxu0 %v13614_v2  ;;  %v10884_v44 = vld [vmem:[%s14954_s3 + $0xd8c] ss:$16 sps:$4 sm:$0xff]   ;;  %v10887_v2 = vld [vmem:[%s14954_s3 + $0xda4] ss:$16 sps:$4 sm:$0xff]  }
 0xce6   :  { %9778 = vmatprep.subr.bf16.mxu1 %v13620_v50  ;;  %9800 = vmatprep.subr.bf16.mxu0 %v13626_v42  ;;  %v10890_v50 = vld [vmem:[%s14954_s3 + $0xdac] ss:$16 sps:$4 sm:$0xff]   ;;  %v10885_v42 = vld [vmem:[%s14954_s3 + $0xda0] ss:$16 sps:$4 sm:$0xff]  }
 0xce9   :  { %9779 = vmatpush3.bf16.msra.mxu1 %v13632_v1  ;;  %9801 = vmatpush3.bf16.msra.mxu0 %v13638_v58  ;;  %v10888_v1 = vld [vmem:[%s14954_s3 + $0xda8] ss:$16 sps:$4 sm:$0xff]   ;;  %v10893_v58 = vld [vmem:[%s14954_s3 + $0xdc4] ss:$16 sps:$4 sm:$0xff]  }
 0xcea   :  { %10120 = vmatprep.subr.bf16.mxu1 %v11213_v36  ;;  %6534 = vmatprep.subr.bf16.mxu0 %v10857_v31 }
 0xcec   :  { %6252 = vmatmul.mubr.bf16.vlgmr.msra.gmra.mrb[132].mxu1 %v6195_v26  ;;  %6292 = vmatmul.mubr.bf16.vlgmr.msra.gmra.mrb[128].mxu0 %v6210_v28 }
 0xced   :  { %10121 = vmatpush3.bf16.msra.mxu1 %v13645_v63  ;;  %10128 = vmatprep.mubr.msk.bf16.mxu1 %vm11214_vm0, %v11213_v36  ;;  %v10896_v63 = vld [vmem:[%s14954_s3 + $0xdcc] ss:$16 sps:$4 sm:$0xff]  }
 0xcee   :  { %10122 = vmatprep.subr.bf16.mxu1 %v11213_v36  ;;  %6566 = vmatprep.mubr.bf16.mxu0 %v11215_v33 }
 0xcef   :  { %6535 = vmatpush1.bf16.msra.mxu0 %v10855_v27 }
 0xcf0   :  { %6536 = vmatprep.subr.bf16.mxu0 %v10863_v49 }
 0xcf1   :  { %10123 = vmatpush3.bf16.msra.mxu1 %v13657_v6  ;;  %v10891_v6 = vld [vmem:[%s14954_s3 + $0xdc0] ss:$16 sps:$4 sm:$0xff]  }
 0xcf2   :  { %10124 = vmatprep.subr.bf16.mxu1 %v11213_v36 }
 0xcf3   :  { %6537 = vmatpush1.bf16.msra.mxu0 %v10861_v29 }
 0xcf4   :  { %6538 = vmatprep.subr.bf16.mxu0 %v10869_v30 }
 0xcf5   :  { %10125 = vmatpush3.bf16.msra.mxu1 %v13665_v7  ;;  %v10894_v7 = vld [vmem:[%s14954_s3 + $0xdc8] ss:$16 sps:$4 sm:$0xff]  }
 0xcf6   :  { %10126 = vmatprep.subr.bf16.mxu1 %v11213_v36 }
 0xcf7   :  { %6539 = vmatpush1.bf16.msra.mxu0 %v10867_v54 }
 0xcf8   :  { %6540 = vmatprep.subr.bf16.mxu0 %v10875_v57  ;;  %v14311_v57 = vld [vmem:[%s14952_s1 + $0x80] sm:$0xff]  }
 0xcf9   :  { %10127 = vmatpush3.bf16.msra.mxu1 %v13673_v9  ;;  %v10899_v9 = vld [vmem:[%s14954_s3 + $0xde4] ss:$16 sps:$4 sm:$0xff]  }
 0xcfa   :  { %6575 = vmatprep.subr.bf16.mxu1 %v10860_v23 }
 0xcfb   :  { %6541 = vmatpush1.bf16.msra.mxu0 %v10873_v32  ;;  %v14317_v32 = vld [vmem:[%s14952_s1 + $0x48] sm:$0xff]  }
 0xcfc   :  { %10129 = vmatmul.mubr.msk.bf16.vlgmr.msra.gmra.mrb[136].mxu1 %vm374_vm1, %v6202_v46  ;;  %6542 = vmatprep.subr.bf16.mxu0 %v10881_v47  ;;  %v14341_v47 = vld [vmem:[%s14952_s1 + $0x50] sm:$0xff]  }
 0xcfd   :  { %6607 = vmatprep.mubr.bf16.mxu1 %v11215_v33  ;;  %6576 = vmatpush1.bf16.msra.mxu1 %v10858_v34 }
 0xcfe   :  { %6577 = vmatprep.subr.bf16.mxu1 %v10866_v52 }
 0xcff   :  { %6543 = vmatpush1.bf16.msra.mxu0 %v10879_v56  ;;  %v14335_v56 = vld [vmem:[%s14952_s1 + $0x88] sm:$0xff]  }
 0xd00   :  { %6544 = vmatprep.subr.bf16.mxu0 %v10887_v2  ;;  %v14359_v2 = vld [vmem:[%s14952_s1 + $0x90] sm:$0xff]  }
 0xd01   :  { %6578 = vmatpush1.bf16.msra.mxu1 %v10864_v48 }
 0xd02   :  { %6579 = vmatprep.subr.bf16.mxu1 %v10872_v41 }
 0xd03   :  { %6545 = vmatpush1.bf16.msra.mxu0 %v10885_v42  ;;  %v14371_v42 = vld [vmem:[%s14952_s1 + $0xd8] sm:$0xff]  }
 0xd04   :  { %6546 = vmatprep.subr.bf16.mxu0 %v10893_v58  ;;  %v14383_v58 = vld [vmem:[%s14952_s1 + $0x98] sm:$0xff]  }
 0xd05   :  { %6580 = vmatpush1.bf16.msra.mxu1 %v10870_v55  ;;  %v14305_v55 = vld [vmem:[%s14952_s1] sm:$0xff]  }
 0xd06   :  { %6581 = vmatprep.subr.bf16.mxu1 %v10878_v5  ;;  %v14323_v5 = vld [vmem:[%s14952_s1 + $0xc8] sm:$0xff]  }
 0xd07   :  { %6547 = vmatpush1.bf16.msra.mxu0 %v10891_v6  ;;  %v14395_v6 = vld [vmem:[%s14952_s1 + $0xe0] sm:$0xff]  }
 0xd08   :  { %6548 = vmatprep.subr.bf16.mxu0 %v10899_v9  ;;  %v14407_v9 = vld [vmem:[%s14952_s1 + $0xa0] sm:$0xff]  }
 0xd09   :  { %6582 = vmatpush1.bf16.msra.mxu1 %v10876_v39  ;;  %v14329_v39 = vld [vmem:[%s14952_s1 + $0x8] sm:$0xff]  }
 0xd0a   :  { %6583 = vmatprep.subr.bf16.mxu1 %v10884_v44  ;;  %v14353_v44 = vld [vmem:[%s14952_s1 + $0x10] sm:$0xff]  }
 0xd0b   :  { %6549 = vmatpush1.bf16.msra.mxu0 %v10897_v59  ;;  %v14413_v59 = vld [vmem:[%s14952_s1 + $0x68] sm:$0xff]  }
 0xd0c   :  { %9813 = vmatprep.subr.bf16.mxu0 %v14268_v21 }
 0xd0d   :  { %6584 = vmatpush1.bf16.msra.mxu1 %v10882_v60  ;;  %v14347_v60 = vld [vmem:[%s14952_s1 + $0xd0] sm:$0xff]  }
 0xd0e   :  { %6585 = vmatprep.subr.bf16.mxu1 %v10890_v50  ;;  %v14365_v50 = vld [vmem:[%s14952_s1 + $0x58] sm:$0xff]  }
 0xd11   :  { %6586 = vmatpush1.bf16.msra.mxu1 %v10888_v1  ;;  %v14377_v1 = vld [vmem:[%s14952_s1 + $0x18] sm:$0xff]  }
 0xd12   :  { %6587 = vmatprep.subr.bf16.mxu1 %v10896_v63  ;;  %v14389_v63 = vld [vmem:[%s14952_s1 + $0x60] sm:$0xff]  }
 0xd15   :  { %6588 = vmatpush1.bf16.msra.mxu1 %v10894_v7  ;;  %v14401_v7 = vld [vmem:[%s14952_s1 + $0x20] sm:$0xff]  }
 0xd16   :  { %6589 = vmatprep.subr.bf16.mxu1 %v10902_v24  ;;  %v14419_v24 = vld [vmem:[%s14952_s1 + $0xe8] sm:$0xff]  }
 0xd19   :  { %6590 = vmatpush1.bf16.msra.mxu1 %v10900_v62  ;;  %v14425_v62 = vld [vmem:[%s14952_s1 + $0x28] sm:$0xff]  }
 0xd1a   :  { %9835 = vmatprep.subr.bf16.mxu1 %v14274_v14 }
 0xd9f   :  { %v6118_v8 = vpop.f32.mrb[128].mxu1  ;;  %v6159_v45 = vpop.f32.mrb[124].mxu0 }
 0xda0   :  { %v14278_v61 = vadd.f32 %v6118_v8, %v14101_v16  ;;  %v14281_v11 = vadd.f32 %v6159_v45, %v14104_v19  ;;  %v6120_v12 = vpop.f32.mrb[129].mxu1  ;;  %v6161_v13 = vpop.f32.mrb[125].mxu0  ;;  %v14431_v8 = vld [vmem:[%s14952_s1 + $0xa8] sm:$0xff]   ;;  %v14437_v45 = vld [vmem:[%s14952_s1 + $0x70] sm:$0xff]  }
 0xda1   :  { %v14284_v25 = vadd.f32 %v6120_v12, %v14107_v17  ;;  %v14287_v15 = vadd.f32 %v6161_v13, %v14110_v38  ;;  %v6122_v4 = vpop.f32.mrb[130].mxu1  ;;  %v6163_v20 = vpop.f32.mrb[126].mxu0  ;;  %v14293_v38 = vld [vmem:[%s14951_s0 + $0x46] sm:$0x1f]  ;;  %v14443_v12 = vld [vmem:[%s14952_s1 + $0xf0] sm:$0xff]  }
 0xda2   :  { %v6123_v3 = vpop.f32.mrb[131].mxu1  ;;  %v6164_v0 = vpop.f32.mrb[127].mxu0  ;;  %v14297_v27 = vrot.slane %v14293_v38, %v11472_v40  ;;  %v14451_v4 = vld [vmem:[%s14952_s1 + $0x30] sm:$0xff]  }
 0xda3   :  { %v14457_v20 = vld [vmem:[%s14952_s1 + $0xb0] sm:$0xff]   ;;  %v14463_v3 = vld [vmem:[%s14952_s1 + $0x78] sm:$0xff]  }
 0xda4   :  { %v6638_v31 = vcombine.high %v14297_v27, %v14297_v27  ;;  %v6645_v13 = vrot.slane %v14297_v27, %v11472_v40  ;;  %v14469_v0 = vld [vmem:[%s14952_s1 + $0xf8] sm:$0xff]  }
 0xda5   :  { %v10909_v27 = vld [vmem:[%s14954_s3 + $0xe0c] ss:$16 sps:$4 sm:$0xff]  }
 0xda6   :  { %v6659_v29 = vrot.slane %v6638_v31, %v11472_v40  ;;  %v10912_v31 = vld [vmem:[%s14954_s3 + $0xe24] ss:$16 sps:$4 sm:$0xff]  }
 0xda8   :  { %v6661_v54 = vcombine.high %v6659_v29, %v6659_v29 }
 0xdbf   :  { %v9780_v37 = vpop.f32.mrb[132].mxu1  ;;  %v9802_v18 = vpop.f32.mrb[128].mxu0 }
 0xdc0   :  { %v9781_v10 = vpop.f32.mrb[133].mxu1  ;;  %v9803_v16 = vpop.f32.mrb[129].mxu0 }
 0xdc1   :  { %v9782_v22 = vadd.f32 %v9781_v10, %v9780_v37  ;;  %v9783_v26 = vpop.f32.mrb[134].mxu1  ;;  %v9804_v19 = vadd.f32 %v9803_v16, %v9802_v18  ;;  %v9805_v28 = vpop.f32.mrb[130].mxu0  ;;  %v6660_v37 = vcombine.high %v6645_v13, %v6645_v13  ;;  %v14475_v18 = vld [vmem:[%s14952_s1 + $0x38] sm:$0xff]   ;;  %v14488_v16 = vld [vmem:[%s14952_s1 + $0x100] sm:$0xff]  }
 0xdc2   :  { %v9784_v43 = vpop.f32.mrb[135].mxu1  ;;  %v9806_v51 = vpop.f32.mrb[131].mxu0  ;;  %v14481_v10 = vld [vmem:[%s14952_s1 + $0xb8] sm:$0xff]   ;;  %v14500_v26 = vld [vmem:[%s14952_s1 + $0x108] sm:$0xff]   ;;  %v14508_v28 = vld [vmem:[%s14952_s1 + $0x110] sm:$0xff]  }
 0xdc3   :  { %v6254_v17 = vadd.f32 %v14115_v53, %v9782_v22  ;;  %v6623_v22 = vcombine.high %v14293_v38, %v14293_v38  ;;  %v14516_v51 = vld [vmem:[%s14952_s1 + $0x118] sm:$0xff]  }
 0xdc4   :  { %v10907_v38 = vld [vmem:[%s14954_s3 + $0xe08] ss:$16 sps:$4 sm:$0xff]  }
 0xdc5   :  { %v6294_v46 = vadd.f32 %v9804_v19, %v6254_v17  ;;  %v6637_v19 = vrot.slane %v6623_v22, %v11472_v40  ;;  %v10904_v17 = vld [vmem:[%s14954_s3 + $0xe00] ss:$16 sps:$4 sm:$0xff]  }
 0xdc6   :  { %v10928_v22 = vld [vmem:[%s14954_s3 + $0xe80] ss:$16 sps:$4 sm:$0xff]  }
 0xdc7   :  { %v6652_v43 = vrot.slane %v6637_v19, %v11472_v40  ;;  %v10930_v19 = vld [vmem:[%s14954_s3 + $0xe84] ss:$16 sps:$4 sm:$0xff]  }
 0xdcf   :  { %v6333_v34 = vpop.f32.mrb[136].mxu1 }
 0xdd0   :  { %v6334_v23 = vadd.f32 %v6333_v34, %v6294_v46  ;;  %v10130_v49 = vpop.f32.mrb[137].mxu1  ;;  %v10906_v46 = vld [vmem:[%s14954_s3 + $0xe04] ss:$16 sps:$4 sm:$0xff]   ;;  %v10915_v34 = vld [vmem:[%s14954_s3 + $0xe2c] ss:$16 sps:$4 sm:$0xff]  }
 0xdd1   :  { %v6336_v52 = vpop.f32.mrb[138].mxu1  ;;  %v10913_v49 = vld [vmem:[%s14954_s3 + $0xe28] ss:$16 sps:$4 sm:$0xff]  }
 0xdd2   :  { %v6339_v48 = vmax.f32 %v6334_v23, 0.0  ;;  %v10131_v30 = vpop.f32.mrb[139].mxu1  ;;  %v10910_v23 = vld [vmem:[%s14954_s3 + $0xe20] ss:$16 sps:$4 sm:$0xff]   ;;  %v10918_v52 = vld [vmem:[%s14954_s3 + $0xe44] ss:$16 sps:$4 sm:$0xff]  }
 0xdd3   :  { %v10919_v30 = vld [vmem:[%s14954_s3 + $0xe48] ss:$16 sps:$4 sm:$0xff]  }
 0xdd4   :  { %v6340_v41 = vpack.c.bf16 %v6339_v48, %v6339_v48  ;;  %v10916_v48 = vld [vmem:[%s14954_s3 + $0xe40] ss:$16 sps:$4 sm:$0xff]  }
 0xdd6   :  { %6567 = vmatmul.mubr.bf16.vlgmr.msra.gmra.mrb[132].mxu0 %v6340_v41  ;;  %6608 = vmatmul.mubr.bf16.vlgmr.msra.gmra.mrb[140].mxu1 %v6340_v41  ;;  %v10924_v41 = vld [vmem:[%s14954_s3 + $0xe64] ss:$16 sps:$4 sm:$0xff]  }
 0xdd7   :  { %9814 = vmatpush3.bf16.msra.mxu0 %v14305_v55  ;;  %9836 = vmatpush3.bf16.msra.mxu1 %v14311_v57 }
 0xdd8   :  { %9815 = vmatprep.subr.bf16.mxu0 %v14317_v32  ;;  %9837 = vmatprep.subr.bf16.mxu1 %v14323_v5 }
 0xdd9   :  { %6701 = vmatprep.mubr.bf16.mxu0 %v6659_v29  ;;  %6741 = vmatprep.mubr.bf16.mxu1 %v6661_v54  ;;  %v10921_v29 = vld [vmem:[%s14954_s3 + $0xe4c] ss:$16 sps:$4 sm:$0xff]   ;;  %v10922_v54 = vld [vmem:[%s14954_s3 + $0xe60] ss:$16 sps:$4 sm:$0xff]  }
 0xddb   :  { %9816 = vmatpush3.bf16.msra.mxu0 %v14329_v39  ;;  %9838 = vmatpush3.bf16.msra.mxu1 %v14335_v56 }
 0xddc   :  { %9817 = vmatprep.subr.bf16.mxu0 %v14341_v47  ;;  %9839 = vmatprep.subr.bf16.mxu1 %v14347_v60 }
 0xddf   :  { %9818 = vmatpush3.bf16.msra.mxu0 %v14353_v44  ;;  %9840 = vmatpush3.bf16.msra.mxu1 %v14359_v2 }
 0xde0   :  { %9819 = vmatprep.subr.bf16.mxu0 %v14365_v50  ;;  %9841 = vmatprep.subr.bf16.mxu1 %v14371_v42 }
 0xde3   :  { %9820 = vmatpush3.bf16.msra.mxu0 %v14377_v1  ;;  %9842 = vmatpush3.bf16.msra.mxu1 %v14383_v58 }
 0xde4   :  { %9821 = vmatprep.subr.bf16.mxu0 %v14389_v63  ;;  %9843 = vmatprep.subr.bf16.mxu1 %v14395_v6 }
 0xde7   :  { %9822 = vmatpush3.bf16.msra.mxu0 %v14401_v7  ;;  %9844 = vmatpush3.bf16.msra.mxu1 %v14407_v9 }
 0xde8   :  { %9823 = vmatprep.subr.bf16.mxu0 %v14413_v59  ;;  %9845 = vmatprep.subr.bf16.mxu1 %v14419_v24 }
 0xdeb   :  { %9824 = vmatpush3.bf16.msra.mxu0 %v14425_v62  ;;  %9846 = vmatpush3.bf16.msra.mxu1 %v14431_v8 }
 0xdec   :  { %9825 = vmatprep.subr.bf16.mxu0 %v14437_v45  ;;  %9847 = vmatprep.subr.bf16.mxu1 %v14443_v12 }
 0xdef   :  { %9826 = vmatpush3.bf16.msra.mxu0 %v14451_v4  ;;  %9848 = vmatpush3.bf16.msra.mxu1 %v14457_v20 }
 0xdf0   :  { %9827 = vmatprep.subr.bf16.mxu0 %v14463_v3  ;;  %9849 = vmatprep.subr.bf16.mxu1 %v14469_v0 }
 0xdf3   :  { %9828 = vmatpush3.bf16.msra.mxu0 %v14475_v18  ;;  %9850 = vmatpush3.bf16.msra.mxu1 %v14481_v10 }
 0xdf4   :  { %10132 = vmatprep.subr.bf16.mxu0 %v11213_v36  ;;  %6984 = vmatprep.subr.bf16.mxu1 %v10906_v46  ;;  %v10936_v46 = vld [vmem:[%s14954_s3 + $0xea4] ss:$16 sps:$4 sm:$0xff]  }
 0xdf6   :  { %6702 = vmatmul.mubr.bf16.vlgmr.msra.gmra.mrb[136].mxu0 %v6645_v13  ;;  %6742 = vmatmul.mubr.bf16.vlgmr.msra.gmra.mrb[144].mxu1 %v6660_v37  ;;  %v10927_v13 = vld [vmem:[%s14954_s3 + $0xe6c] ss:$16 sps:$4 sm:$0xff]   ;;  %v10925_v37 = vld [vmem:[%s14954_s3 + $0xe68] ss:$16 sps:$4 sm:$0xff]  }
 0xdf7   :  { %10133 = vmatpush3.bf16.msra.mxu0 %v14488_v16  ;;  %10140 = vmatprep.mubr.msk.bf16.mxu0 %vm11214_vm0, %v11213_v36 }
 0xdf8   :  { %10134 = vmatprep.subr.bf16.mxu0 %v11213_v36  ;;  %7016 = vmatprep.mubr.bf16.mxu1 %v11215_v33 }
 0xdf9   :  { %6985 = vmatpush1.bf16.msra.mxu1 %v10904_v17  ;;  %v10933_v17 = vld [vmem:[%s14954_s3 + $0xe8c] ss:$16 sps:$4 sm:$0xff]  }
 0xdfa   :  { %6986 = vmatprep.subr.bf16.mxu1 %v10912_v31  ;;  %v10937_v31 = vld [vmem:[%s14954_s3 + $0xea8] ss:$16 sps:$4 sm:$0xff]  }
 0xdfb   :  { %10135 = vmatpush3.bf16.msra.mxu0 %v14500_v26 }
 0xdfc   :  { %10136 = vmatprep.subr.bf16.mxu0 %v11213_v36 }
 0xdfd   :  { %6987 = vmatpush1.bf16.msra.mxu1 %v10910_v23  ;;  %v10945_v23 = vld [vmem:[%s14954_s3 + $0xecc] ss:$16 sps:$4 sm:$0xff]  }
 0xdfe   :  { %6988 = vmatprep.subr.bf16.mxu1 %v10918_v52  ;;  %v10943_v52 = vld [vmem:[%s14954_s3 + $0xec8] ss:$16 sps:$4 sm:$0xff]  }
 0xdff   :  { %10137 = vmatpush3.bf16.msra.mxu0 %v14508_v28 }
 0xe00   :  { %10138 = vmatprep.subr.bf16.mxu0 %v11213_v36 }
 0xe01   :  { %6989 = vmatpush1.bf16.msra.mxu1 %v10916_v48  ;;  %v10946_v48 = vld [vmem:[%s14954_s3 + $0xee0] ss:$16 sps:$4 sm:$0xff]  }
 0xe02   :  { %6990 = vmatprep.subr.bf16.mxu1 %v10924_v41  ;;  %v10949_v41 = vld [vmem:[%s14954_s3 + $0xee8] ss:$16 sps:$4 sm:$0xff]  }
 0xe03   :  { %10139 = vmatpush3.bf16.msra.mxu0 %v14516_v51 }
 0xe04   :  { %7025 = vmatprep.subr.bf16.mxu0 %v10909_v27  ;;  %v10934_v27 = vld [vmem:[%s14954_s3 + $0xea0] ss:$16 sps:$4 sm:$0xff]  }
 0xe05   :  { %6991 = vmatpush1.bf16.msra.mxu1 %v10922_v54 }
 0xe06   :  { %10141 = vmatmul.mubr.msk.bf16.vlgmr.msra.gmra.mrb[140].mxu0 %vm374_vm1, %v6652_v43  ;;  %v10931_v43 = vld [vmem:[%s14954_s3 + $0xe88] ss:$16 sps:$4 sm:$0xff]   ;;  %6992 = vmatprep.subr.bf16.mxu1 %v10930_v19 }
 0xe07   :  { %7057 = vmatprep.mubr.bf16.mxu0 %v11215_v33  ;;  %7026 = vmatpush1.bf16.msra.mxu0 %v10907_v38  ;;  %v10939_v38 = vld [vmem:[%s14954_s3 + $0xeac] ss:$16 sps:$4 sm:$0xff]  }
 0xe08   :  { %7027 = vmatprep.subr.bf16.mxu0 %v10915_v34  ;;  %v10942_v34 = vld [vmem:[%s14954_s3 + $0xec4] ss:$16 sps:$4 sm:$0xff]  }
 0xe09   :  { %6993 = vmatpush1.bf16.msra.mxu1 %v10928_v22 }
 0xe0a   :  { %6994 = vmatprep.subr.bf16.mxu1 %v10936_v46 }
 0xe0b   :  { %7028 = vmatpush1.bf16.msra.mxu0 %v10913_v49  ;;  %v10940_v49 = vld [vmem:[%s14954_s3 + $0xec0] ss:$16 sps:$4 sm:$0xff]  }
 0xe0c   :  { %7029 = vmatprep.subr.bf16.mxu0 %v10921_v29  ;;  %v10948_v29 = vld [vmem:[%s14954_s3 + $0xee4] ss:$16 sps:$4 sm:$0xff]  }
 0xe0d   :  { %6995 = vmatpush1.bf16.msra.mxu1 %v10934_v27 }
 0xe0e   :  { %6996 = vmatprep.subr.bf16.mxu1 %v10942_v34 }
 0xe0f   :  { %7030 = vmatpush1.bf16.msra.mxu0 %v10919_v30  ;;  %v10951_v30 = vld [vmem:[%s14954_s3 + $0xeec] ss:$16 sps:$4 sm:$0xff]  }
 0xe10   :  { %7031 = vmatprep.subr.bf16.mxu0 %v10927_v13 }
 0xe11   :  { %6997 = vmatpush1.bf16.msra.mxu1 %v10940_v49 }
 0xe12   :  { %6998 = vmatprep.subr.bf16.mxu1 %v10948_v29 }
 0xe13   :  { %7032 = vmatpush1.bf16.msra.mxu0 %v10925_v37 }
 0xe14   :  { %7033 = vmatprep.subr.bf16.mxu0 %v10933_v17 }
 0xe15   :  { %6999 = vmatpush1.bf16.msra.mxu1 %v10946_v48 }
 0xe16   :  { %9862 = vmatprep.subr.bf16.mxu1 %v14268_v21 }
 0xe17   :  { %7034 = vmatpush1.bf16.msra.mxu0 %v10931_v43 }
 0xe18   :  { %7035 = vmatprep.subr.bf16.mxu0 %v10939_v38 }
 0xe1b   :  { %7036 = vmatpush1.bf16.msra.mxu0 %v10937_v31 }
 0xe1c   :  { %7037 = vmatprep.subr.bf16.mxu0 %v10945_v23 }
 0xe1f   :  { %7038 = vmatpush1.bf16.msra.mxu0 %v10943_v52 }
 0xe20   :  { %7039 = vmatprep.subr.bf16.mxu0 %v10951_v30 }
 0xe23   :  { %7040 = vmatpush1.bf16.msra.mxu0 %v10949_v41 }
 0xe24   :  { %9884 = vmatprep.subr.bf16.mxu0 %v14274_v14 }
 0xea9   :  { %v6568_v54 = vpop.f32.mrb[132].mxu0  ;;  %v6609_v13 = vpop.f32.mrb[140].mxu1 }
 0xeaa   :  { %v14620_v37 = vadd.f32 %v6568_v54, %v14278_v61  ;;  %v14623_v22 = vadd.f32 %v6609_v13, %v14281_v11  ;;  %v6570_v19 = vpop.f32.mrb[133].mxu0  ;;  %v6611_v43 = vpop.f32.mrb[141].mxu1 }
 0xeab   :  { %v14626_v17 = vadd.f32 %v6570_v19, %v14284_v25  ;;  %v14629_v46 = vadd.f32 %v6611_v43, %v14287_v15  ;;  %v6572_v38 = vpop.f32.mrb[134].mxu0  ;;  %v6613_v21 = vpop.f32.mrb[142].mxu1  ;;  %v9019_v15 = vld [vmem:[%s14951_s0 + $0x4b] sm:$0x1f]  ;;  %s8017_s0 = sshll.u32 %s11216_s11, 4  ;;  %s8018_s0 = int_to_ptr.vmem [resolvable:$true] %s8017_s0 }
 0xeac   :  { %v6573_v27 = vpop.f32.mrb[135].mxu0  ;;  %v6614_v14 = vpop.f32.mrb[143].mxu1  ;;  %v7080_v54 = vrot.slane %v9019_v15, %v11472_v40  ;;  %p11193_p1 = scmp.lt.s32.totalorder %s8018_s0, %s8018_s0 }
 0xeae   :  { %v7088_v13 = vcombine.high %v7080_v54, %v7080_v54 }
 0xeb0   :  { %v7109_v27 = vrot.slane %v7088_v13, %v11472_v40 }
 0xec9   :  { %v9829_v31 = vpop.f32.mrb[136].mxu0  ;;  %v9851_v34 = vpop.f32.mrb[144].mxu1 }
 0xeca   :  { %v9830_v23 = vpop.f32.mrb[137].mxu0  ;;  %v9852_v61 = vpop.f32.mrb[145].mxu1 }
 0xecb   :  { %v9831_v49 = vadd.f32 %v9830_v23, %v9829_v31  ;;  %v9832_v52 = vpop.f32.mrb[138].mxu0  ;;  %v9853_v11 = vadd.f32 %v9852_v61, %v9851_v34  ;;  %v9854_v29 = vpop.f32.mrb[146].mxu1  ;;  %v7111_v23 = vcombine.high %v7109_v27, %v7109_v27  ;;  %v10998_v61 = vld [vmem:[%s14954_s3 + $0xfe8] ss:$16 sps:$4 sm:$0xff]  }
 0xecc   :  { %v9833_v48 = vpop.f32.mrb[139].mxu0  ;;  %v9855_v30 = vpop.f32.mrb[147].mxu1  ;;  %v11002_v52 = vld [vmem:[%s14956_s5 + $0xc0] sm:$0xff]  }
 0xecd   :  { %v6704_v25 = vadd.f32 %v14115_v53, %v9831_v49  ;;  %v11001_v49 = vld [vmem:[%s14956_s5 + $0x40] sm:$0xff]  }
 0xecf   :  { %v6744_v41 = vadd.f32 %v9853_v11, %v6704_v25 }
 0xed9   :  { %v6783_v19 = vpop.f32.mrb[140].mxu0 }
 0xeda   :  { %v6784_v43 = vadd.f32 %v6783_v19, %v6744_v41  ;;  %v10142_v38 = vpop.f32.mrb[141].mxu0 }
 0xedb   :  { %v6786_v21 = vpop.f32.mrb[142].mxu0 }
 0xedc   :  { %v6789_v14 = vmax.f32 %v6784_v43, 0.0  ;;  %v10143_v31 = vpop.f32.mrb[143].mxu0 }
 0xede   :  { %v6790_v34 = vpack.c.bf16 %v6789_v14, %v6789_v14 }
 0xee0   :  { %7017 = vmatmul.mubr.bf16.vlgmr.msra.gmra.mrb[148].mxu1 %v6790_v34  ;;  %7058 = vmatmul.mubr.bf16.vlgmr.msra.gmra.mrb[144].mxu0 %v6790_v34 }
 0xee1   :  { %9863 = vmatpush3.bf16.msra.mxu1 %v14305_v55  ;;  %9885 = vmatpush3.bf16.msra.mxu0 %v14311_v57  ;;  %v7095_v55 = vrot.slane %v7080_v54, %v11472_v40 }
 0xee2   :  { %9864 = vmatprep.subr.bf16.mxu1 %v14317_v32  ;;  %9886 = vmatprep.subr.bf16.mxu0 %v14323_v5  ;;  %v7073_v32 = vcombine.high %v9019_v15, %v9019_v15 }
 0xee3   :  { %7151 = vmatprep.mubr.bf16.mxu1 %v7109_v27  ;;  %7191 = vmatprep.mubr.bf16.mxu0 %v7111_v23  ;;  %v7110_v57 = vcombine.high %v7095_v55, %v7095_v55 }
 0xee4   :  { %v7087_v5 = vrot.slane %v7073_v32, %v11472_v40 }
 0xee5   :  { %9865 = vmatpush3.bf16.msra.mxu1 %v14329_v39  ;;  %9887 = vmatpush3.bf16.msra.mxu0 %v14335_v56  ;;  %v10953_v56 = vld [vmem:[%s14954_s3 + $0xf00] ss:$16 sps:$4 sm:$0xff]  }
 0xee6   :  { %9866 = vmatprep.subr.bf16.mxu1 %v14341_v47  ;;  %9888 = vmatprep.subr.bf16.mxu0 %v14347_v60  ;;  %v7102_v39 = vrot.slane %v7087_v5, %v11472_v40  ;;  %v10955_v47 = vld [vmem:[%s14954_s3 + $0xf04] ss:$16 sps:$4 sm:$0xff]   ;;  %v10956_v60 = vld [vmem:[%s14954_s3 + $0xf08] ss:$16 sps:$4 sm:$0xff]   ;;  %v10958_v40 = vld [vmem:[%s14954_s3 + $0xf0c] ss:$16 sps:$4 sm:$0xff]  }
 0xee9   :  { %9867 = vmatpush3.bf16.msra.mxu1 %v14353_v44  ;;  %9889 = vmatpush3.bf16.msra.mxu0 %v14359_v2  ;;  %v10964_v44 = vld [vmem:[%s14954_s3 + $0xf2c] ss:$16 sps:$4 sm:$0xff]   ;;  %v10959_v2 = vld [vmem:[%s14954_s3 + $0xf20] ss:$16 sps:$4 sm:$0xff]  }
 0xeea   :  { %9868 = vmatprep.subr.bf16.mxu1 %v14365_v50  ;;  %9890 = vmatprep.subr.bf16.mxu0 %v14371_v42  ;;  %v10962_v50 = vld [vmem:[%s14954_s3 + $0xf28] ss:$16 sps:$4 sm:$0xff]   ;;  %v10967_v42 = vld [vmem:[%s14954_s3 + $0xf44] ss:$16 sps:$4 sm:$0xff]  }
 0xeed   :  { %9869 = vmatpush3.bf16.msra.mxu1 %v14377_v1  ;;  %9891 = vmatpush3.bf16.msra.mxu0 %v14383_v58  ;;  %v10970_v1 = vld [vmem:[%s14954_s3 + $0xf4c] ss:$16 sps:$4 sm:$0xff]   ;;  %v10965_v58 = vld [vmem:[%s14954_s3 + $0xf40] ss:$16 sps:$4 sm:$0xff]  }
 0xeee   :  { %9870 = vmatprep.subr.bf16.mxu1 %v14389_v63  ;;  %9892 = vmatprep.subr.bf16.mxu0 %v14395_v6  ;;  %v10968_v63 = vld [vmem:[%s14954_s3 + $0xf48] ss:$16 sps:$4 sm:$0xff]   ;;  %v10973_v6 = vld [vmem:[%s14954_s3 + $0xf64] ss:$16 sps:$4 sm:$0xff]  }
 0xef1   :  { %9871 = vmatpush3.bf16.msra.mxu1 %v14401_v7  ;;  %9893 = vmatpush3.bf16.msra.mxu0 %v14407_v9  ;;  %v10976_v7 = vld [vmem:[%s14954_s3 + $0xf6c] ss:$16 sps:$4 sm:$0xff]   ;;  %v10971_v9 = vld [vmem:[%s14954_s3 + $0xf60] ss:$16 sps:$4 sm:$0xff]  }
 0xef2   :  { %9872 = vmatprep.subr.bf16.mxu1 %v14413_v59  ;;  %9894 = vmatprep.subr.bf16.mxu0 %v14419_v24  ;;  %v10974_v59 = vld [vmem:[%s14954_s3 + $0xf68] ss:$16 sps:$4 sm:$0xff]   ;;  %v10977_v24 = vld [vmem:[%s14954_s3 + $0xf80] ss:$16 sps:$4 sm:$0xff]  }
 0xef5   :  { %9873 = vmatpush3.bf16.msra.mxu1 %v14425_v62  ;;  %9895 = vmatpush3.bf16.msra.mxu0 %v14431_v8  ;;  %v10979_v62 = vld [vmem:[%s14954_s3 + $0xf84] ss:$16 sps:$4 sm:$0xff]   ;;  %v10980_v8 = vld [vmem:[%s14954_s3 + $0xf88] ss:$16 sps:$4 sm:$0xff]  }
 0xef6   :  { %9874 = vmatprep.subr.bf16.mxu1 %v14437_v45  ;;  %9896 = vmatprep.subr.bf16.mxu0 %v14443_v12  ;;  %v10982_v45 = vld [vmem:[%s14954_s3 + $0xf8c] ss:$16 sps:$4 sm:$0xff]   ;;  %v10985_v12 = vld [vmem:[%s14954_s3 + $0xfa4] ss:$16 sps:$4 sm:$0xff]  }
 0xef9   :  { %9875 = vmatpush3.bf16.msra.mxu1 %v14451_v4  ;;  %9897 = vmatpush3.bf16.msra.mxu0 %v14457_v20  ;;  %v10988_v4 = vld [vmem:[%s14954_s3 + $0xfac] ss:$16 sps:$4 sm:$0xff]   ;;  %v10983_v20 = vld [vmem:[%s14954_s3 + $0xfa0] ss:$16 sps:$4 sm:$0xff]  }
 0xefa   :  { %9876 = vmatprep.subr.bf16.mxu1 %v14463_v3  ;;  %9898 = vmatprep.subr.bf16.mxu0 %v14469_v0  ;;  %v10986_v3 = vld [vmem:[%s14954_s3 + $0xfa8] ss:$16 sps:$4 sm:$0xff]   ;;  %v10991_v0 = vld [vmem:[%s14954_s3 + $0xfc4] ss:$16 sps:$4 sm:$0xff]  }
 0xefd   :  { %9877 = vmatpush3.bf16.msra.mxu1 %v14475_v18  ;;  %9899 = vmatpush3.bf16.msra.mxu0 %v14481_v10  ;;  %v10994_v18 = vld [vmem:[%s14954_s3 + $0xfcc] ss:$16 sps:$4 sm:$0xff]   ;;  %v10989_v10 = vld [vmem:[%s14954_s3 + $0xfc0] ss:$16 sps:$4 sm:$0xff]  }
 0xefe   :  { %10144 = vmatprep.subr.bf16.mxu1 %v11213_v36  ;;  %7434 = vmatprep.subr.bf16.mxu0 %v10955_v47 }
 0xf00   :  { %7152 = vmatmul.mubr.bf16.vlgmr.msra.gmra.mrb[152].mxu1 %v7095_v55  ;;  %7192 = vmatmul.mubr.bf16.vlgmr.msra.gmra.mrb[148].mxu0 %v7110_v57 }
 0xf01   :  { %10145 = vmatpush3.bf16.msra.mxu1 %v14488_v16  ;;  %10152 = vmatprep.mubr.msk.bf16.mxu1 %vm11214_vm0, %v11213_v36  ;;  %v10992_v16 = vld [vmem:[%s14954_s3 + $0xfc8] ss:$16 sps:$4 sm:$0xff]  }
 0xf02   :  { %10146 = vmatprep.subr.bf16.mxu1 %v11213_v36  ;;  %7466 = vmatprep.mubr.bf16.mxu0 %v11215_v33 }
 0xf03   :  { %7435 = vmatpush1.bf16.msra.mxu0 %v10953_v56 }
 0xf05   :  { %10147 = vmatpush3.bf16.msra.mxu1 %v14500_v26  ;;  %v10997_v26 = vld [vmem:[%s14954_s3 + $0xfe4] ss:$16 sps:$4 sm:$0xff]  }
 0xf06   :  { %10148 = vmatprep.subr.bf16.mxu1 %v11213_v36 }
 0xf09   :  { %10149 = vmatpush3.bf16.msra.mxu1 %v14508_v28  ;;  %v11000_v28 = vld [vmem:[%s14954_s3 + $0xfec] ss:$16 sps:$4 sm:$0xff]  }
 0xf0a   :  { %10150 = vmatprep.subr.bf16.mxu1 %v11213_v36 }
 0xf0d   :  { %10151 = vmatpush3.bf16.msra.mxu1 %v14516_v51  ;;  %v10995_v51 = vld [vmem:[%s14954_s3 + $0xfe0] ss:$16 sps:$4 sm:$0xff]  }
 0xf0e   :  { %7475 = vmatprep.subr.bf16.mxu1 %v10958_v40  ;;  %v11003_v40 = vld [vmem:[%s14956_s5] sm:$0xff]  }
 0xf10   :  { %10153 = vmatmul.mubr.msk.bf16.vlgmr.msra.gmra.mrb[156].mxu1 %vm374_vm1, %v7102_v39 }
 0xf11   :  { %7507 = vmatprep.mubr.bf16.mxu1 %v11215_v33  ;;  %v10961_v33 = vld [vmem:[%s14954_s3 + $0xf24] ss:$16 sps:$4 sm:$0xff]   ;;  %7476 = vmatpush1.bf16.msra.mxu1 %v10956_v60 }
 0xf12   :  { %7436 = vmatprep.subr.bf16.mxu0 %v10961_v33  ;;  %7477 = vmatprep.subr.bf16.mxu1 %v10964_v44  ;;  %v11004_v33 = vld [vmem:[%s14956_s5 + $0x80] sm:$0xff]  }
 0xf13   :  { %7437 = vmatpush1.bf16.msra.mxu0 %v10959_v2  ;;  %v11006_v2 = vld [vmem:[%s14956_s5 + $0xc8] sm:$0xff]  }
 0xf14   :  { %7438 = vmatprep.subr.bf16.mxu0 %v10967_v42  ;;  %v11008_v42 = vld [vmem:[%s14956_s5 + $0x88] sm:$0xff]  }
 0xf15   :  { %7478 = vmatpush1.bf16.msra.mxu1 %v10962_v50  ;;  %v11007_v50 = vld [vmem:[%s14956_s5 + $0x8] sm:$0xff]  }
 0xf16   :  { %7479 = vmatprep.subr.bf16.mxu1 %v10970_v1  ;;  %v11009_v1 = vld [vmem:[%s14956_s5 + $0x50] sm:$0xff]  }
 0xf17   :  { %7439 = vmatpush1.bf16.msra.mxu0 %v10965_v58  ;;  %v11010_v58 = vld [vmem:[%s14956_s5 + $0xd0] sm:$0xff]  }
 0xf18   :  { %7440 = vmatprep.subr.bf16.mxu0 %v10973_v6  ;;  %v11012_v6 = vld [vmem:[%s14956_s5 + $0x90] sm:$0xff]  }
 0xf19   :  { %7480 = vmatpush1.bf16.msra.mxu1 %v10968_v63  ;;  %v11011_v63 = vld [vmem:[%s14956_s5 + $0x10] sm:$0xff]  }
 0xf1a   :  { %7481 = vmatprep.subr.bf16.mxu1 %v10976_v7  ;;  %v11013_v7 = vld [vmem:[%s14956_s5 + $0x58] sm:$0xff]  }
 0xf1b   :  { %7441 = vmatpush1.bf16.msra.mxu0 %v10971_v9  ;;  %v11014_v9 = vld [vmem:[%s14956_s5 + $0xd8] sm:$0xff]  }
 0xf1c   :  { %7442 = vmatprep.subr.bf16.mxu0 %v10979_v62  ;;  %v11017_v62 = vld [vmem:[%s14956_s5 + $0x60] sm:$0xff]  }
 0xf1d   :  { %7482 = vmatpush1.bf16.msra.mxu1 %v10974_v59  ;;  %v11015_v59 = vld [vmem:[%s14956_s5 + $0x18] sm:$0xff]  }
 0xf1e   :  { %7483 = vmatprep.subr.bf16.mxu1 %v10982_v45  ;;  %v11019_v45 = vld [vmem:[%s14956_s5 + $0x20] sm:$0xff]  }
 0xf1f   :  { %7443 = vmatpush1.bf16.msra.mxu0 %v10977_v24  ;;  %v11016_v24 = vld [vmem:[%s14956_s5 + $0x98] sm:$0xff]  }
 0xf20   :  { %7444 = vmatprep.subr.bf16.mxu0 %v10985_v12  ;;  %v11020_v12 = vld [vmem:[%s14956_s5 + $0xa0] sm:$0xff]  }
 0xf21   :  { %7484 = vmatpush1.bf16.msra.mxu1 %v10980_v8  ;;  %v11018_v8 = vld [vmem:[%s14956_s5 + $0xe0] sm:$0xff]  }
 0xf22   :  { %7485 = vmatprep.subr.bf16.mxu1 %v10988_v4  ;;  %v11021_v4 = vld [vmem:[%s14956_s5 + $0x68] sm:$0xff]  }
 0xf23   :  { %7445 = vmatpush1.bf16.msra.mxu0 %v10983_v20  ;;  %v11022_v20 = vld [vmem:[%s14956_s5 + $0xe8] sm:$0xff]  }
 0xf24   :  { %7446 = vmatprep.subr.bf16.mxu0 %v10991_v0  ;;  %v11024_v0 = vld [vmem:[%s14956_s5 + $0xa8] sm:$0xff]  }
 0xf25   :  { %7486 = vmatpush1.bf16.msra.mxu1 %v10986_v3  ;;  %v11023_v3 = vld [vmem:[%s14956_s5 + $0x28] sm:$0xff]  }
 0xf26   :  { %7487 = vmatprep.subr.bf16.mxu1 %v10994_v18  ;;  %v11025_v18 = vld [vmem:[%s14956_s5 + $0x70] sm:$0xff]  }
 0xf27   :  { %7447 = vmatpush1.bf16.msra.mxu0 %v10989_v10  ;;  %v11026_v10 = vld [vmem:[%s14956_s5 + $0xf0] sm:$0xff]  }
 0xf28   :  { %7448 = vmatprep.subr.bf16.mxu0 %v10997_v26  ;;  %v11028_v26 = vld [vmem:[%s14956_s5 + $0xb0] sm:$0xff]  }
 0xf29   :  { %7488 = vmatpush1.bf16.msra.mxu1 %v10992_v16  ;;  %v11027_v16 = vld [vmem:[%s14956_s5 + $0x30] sm:$0xff]  }
 0xf2a   :  { %7489 = vmatprep.subr.bf16.mxu1 %v11000_v28  ;;  %v11029_v28 = vld [vmem:[%s14956_s5 + $0x78] sm:$0xff]  }
 0xf2b   :  { %7449 = vmatpush1.bf16.msra.mxu0 %v10995_v51  ;;  %v11030_v51 = vld [vmem:[%s14956_s5 + $0xf8] sm:$0xff]  }
 0xf2c   :  { %9911 = vmatprep.subr.bf16.mxu0 %v11001_v49  ;;  %v11032_v49 = vld [vmem:[%s14956_s5 + $0xb8] sm:$0xff]  }
 0xf2d   :  { %7490 = vmatpush1.bf16.msra.mxu1 %v10998_v61  ;;  %v11031_v61 = vld [vmem:[%s14956_s5 + $0x38] sm:$0xff]  }
 0xf2e   :  { %9933 = vmatprep.subr.bf16.mxu1 %v11002_v52  ;;  %v7524_v52 = vsub.s32 0, %v11459_v35 }
 0xfb3   :  { %v7018_v11 = vpop.f32.mrb[148].mxu1  ;;  %v7059_v29 = vpop.f32.mrb[144].mxu0 }
 0xfb4   :  { %v14786_v48 = vadd.f32 %v7018_v11, %v14620_v37  ;;  %v14789_v30 = vadd.f32 %v7059_v29, %v14623_v22  ;;  %v7020_v25 = vpop.f32.mrb[149].mxu1  ;;  %v7061_v41 = vpop.f32.mrb[145].mxu0  ;;  %v7532_v11 = vsub.s32 2, %v11459_v35  ;;  %v7520_v29 = vld [vmem:[%s14955_s4] sm:$0xf] }
 0xfb5   :  { %v14792_v15 = vadd.f32 %v7020_v25, %v14626_v17  ;;  %v14795_v54 = vadd.f32 %v7061_v41, %v14629_v46  ;;  %v7022_v13 = vpop.f32.mrb[150].mxu1  ;;  %v7063_v19 = vpop.f32.mrb[146].mxu0  ;;  %v7528_v25 = vsub.s32 1, %v11459_v35  ;;  %v7536_v41 = vsub.s32 3, %v11459_v35 }
 0xfb6   :  { %v7023_v43 = vpop.f32.mrb[151].mxu1  ;;  %v7064_v38 = vpop.f32.mrb[147].mxu0  ;;  %v7525_v13 = vrot.slane %v7520_v29, %v7524_v52  ;;  %v7533_v19 = vrot.slane %v7520_v29, %v7532_v11 }
 0xfd3   :  { %v9878_v21 = vpop.f32.mrb[152].mxu1  ;;  %v9900_v27 = vpop.f32.mrb[148].mxu0 }
 0xfd4   :  { %v9879_v14 = vpop.f32.mrb[153].mxu1  ;;  %v9901_v37 = vpop.f32.mrb[149].mxu0 }
 0xfd5   :  { %v9880_v31 = vadd.f32 %v9879_v14, %v9878_v21  ;;  %v9881_v34 = vpop.f32.mrb[154].mxu1  ;;  %v9902_v22 = vadd.f32 %v9901_v37, %v9900_v27  ;;  %v9903_v23 = vpop.f32.mrb[150].mxu0  ;;  %v7529_v21 = vrot.slane %v7520_v29, %v7528_v25  ;;  %v7537_v27 = vrot.slane %v7520_v29, %v7536_v41 }
 0xfd6   :  { %v9882_v55 = vpop.f32.mrb[155].mxu1  ;;  %v9904_v57 = vpop.f32.mrb[151].mxu0 }
 0xfd7   :  { %v7154_v17 = vadd.f32 %v14115_v53, %v9880_v31  ;;  %v11005_v53 = vld [vmem:[%s14956_s5 + $0x48] sm:$0xff]  }
 0xfd9   :  { %v7194_v32 = vadd.f32 %v9902_v22, %v7154_v17 }
 0xfe3   :  { %v7233_v5 = vpop.f32.mrb[156].mxu1 }
 0xfe4   :  { %v7234_v46 = vadd.f32 %v7233_v5, %v7194_v32  ;;  %v10154_v39 = vpop.f32.mrb[157].mxu1 }
 0xfe5   :  { %v7236_v56 = vpop.f32.mrb[158].mxu1 }
 0xfe6   :  { %v7239_v47 = vmax.f32 %v7234_v46, 0.0  ;;  %v10155_v60 = vpop.f32.mrb[159].mxu1 }
 0xfe8   :  { %v7240_v44 = vpack.c.bf16 %v7239_v47, %v7239_v47 }
 0xfea   :  { %7467 = vmatmul.mubr.bf16.vlgmr.msra.gmra.mrb[152].mxu0 %v7240_v44  ;;  %7508 = vmatmul.mubr.bf16.vlgmr.msra.gmra.mrb[160].mxu1 %v7240_v44  ;;  %v11034_v44 = vld [vmem:[%s14958_s7 + $0x8] sm:$0xff]  }
 0xfeb   :  { %9912 = vmatpush3.bf16.msra.mxu0 %v11003_v40  ;;  %9934 = vmatpush3.bf16.msra.mxu1 %v11004_v33 }
 0xfec   :  { %9913 = vmatprep.subr.bf16.mxu0 %v11005_v53  ;;  %9935 = vmatprep.subr.bf16.mxu1 %v11006_v2  ;;  %v11035_v53 = vld [vmem:[%s14958_s7 + $0x10] sm:$0xff]   ;;  %v11036_v2 = vld [vmem:[%s14958_s7 + $0x18] sm:$0xff]  }
 0xfef   :  { %9914 = vmatpush3.bf16.msra.mxu0 %v11007_v50  ;;  %9936 = vmatpush3.bf16.msra.mxu1 %v11008_v42  ;;  %v11037_v50 = vld [vmem:[%s14958_s7 + $0x20] sm:$0xff]   ;;  %v11038_v42 = vld [vmem:[%s14958_s7 + $0x28] sm:$0xff]  }
 0xff0   :  { %9915 = vmatprep.subr.bf16.mxu0 %v11009_v1  ;;  %9937 = vmatprep.subr.bf16.mxu1 %v11010_v58  ;;  %v11039_v1 = vld [vmem:[%s14958_s7 + $0x30] sm:$0xff]   ;;  %v11040_v58 = vld [vmem:[%s14958_s7 + $0x38] sm:$0xff]  }
 0xff3   :  { %9916 = vmatpush3.bf16.msra.mxu0 %v11011_v63  ;;  %9938 = vmatpush3.bf16.msra.mxu1 %v11012_v6 }
 0xff4   :  { %9917 = vmatprep.subr.bf16.mxu0 %v11013_v7  ;;  %9939 = vmatprep.subr.bf16.mxu1 %v11014_v9  ;;  %v9085_v7 = vld [vmem:[%s14957_s6] ss:$0 sm:$0xff]  ;;  %s11188_s6 = scalar_lea.vmem %s8018_s0, 32 }
 0xff5   :  { %p11189_p0 = scmp.ne.s32.totalorder %s8018_s0, %s11188_s6  ;;  %p11194_p2 = scmp.lt.s32.totalorder %s11188_s6, %s11188_s6 }
 0xff7   :  { %9918 = vmatpush3.bf16.msra.mxu0 %v11015_v59  ;;  %9940 = vmatpush3.bf16.msra.mxu1 %v11016_v24  ;;  %p11195_p3 = por %p11194_p2, %p11193_p1 }
 0xff8   :  { %9919 = vmatprep.subr.bf16.mxu0 %v11017_v62  ;;  %9941 = vmatprep.subr.bf16.mxu1 %v11018_v8 }
 0xff9   :  { %p11196_p4 = pnand %p11195_p3, %p11189_p0 }
 0xffb   :  { %9920 = vmatpush3.bf16.msra.mxu0 %v11019_v45  ;;  %9942 = vmatpush3.bf16.msra.mxu1 %v11020_v12 }
 0xffc   :  { %9921 = vmatprep.subr.bf16.mxu0 %v11021_v4  ;;  %9943 = vmatprep.subr.bf16.mxu1 %v11022_v20 }
 0xfff   :  { %9922 = vmatpush3.bf16.msra.mxu0 %v11023_v3  ;;  %9944 = vmatpush3.bf16.msra.mxu1 %v11024_v0 }
0x1000   :  { %9923 = vmatprep.subr.bf16.mxu0 %v11025_v18  ;;  %9945 = vmatprep.subr.bf16.mxu1 %v11026_v10  ;;  %v9118_v18 = vld [vmem:[%s14959_s8] ss:$0 sm:$0xff] }
0x1003   :  { %9924 = vmatpush3.bf16.msra.mxu0 %v11027_v16  ;;  %9946 = vmatpush3.bf16.msra.mxu1 %v11028_v26 }
0x1004   :  { %9925 = vmatprep.subr.bf16.mxu0 %v11029_v28  ;;  %9947 = vmatprep.subr.bf16.mxu1 %v11030_v51 }
0x1007   :  { %9926 = vmatpush3.bf16.msra.mxu0 %v11031_v61  ;;  %9948 = vmatpush3.bf16.msra.mxu1 %v11032_v49 }
0x1008   :  { %10156 = vmatprep.subr.bf16.mxu0 %v11213_v36 }
0x10bd   :  { %v7468_v43 = vpop.f32.mrb[152].mxu0  ;;  %v7509_v38 = vpop.f32.mrb[160].mxu1 }
0x10be   :  { %v7516_v14 = vadd.f32 %v7468_v43, %v14786_v48  ;;  %v7518_v37 = vadd.f32 %v7509_v38, %v14789_v30  ;;  %v7470_v31 = vpop.f32.mrb[153].mxu0  ;;  %v7511_v34 = vpop.f32.mrb[161].mxu1 }
0x10bf   :  { %v7517_v22 = vadd.f32 %v7470_v31, %v14792_v15  ;;  %v7519_v23 = vadd.f32 %v7511_v34, %v14795_v54  ;;  %v7472_v55 = vpop.f32.mrb[154].mxu0  ;;  %v7513_v57 = vpop.f32.mrb[162].mxu1  ;;  %v11033_v15 = vld [vmem:[%s14958_s7] sm:$0xff]  }
0x10c0   :  { %v7542_v17 = vadd.f32 %v7525_v13, %v7516_v14  ;;  %v7544_v35 = vadd.f32 %v7533_v19, %v7518_v37  ;;  %v7473_v32 = vpop.f32.mrb[155].mxu0  ;;  %v7514_v5 = vpop.f32.mrb[163].mxu1 }
0x10c1   :  { %v7543_v46 = vadd.f32 %v7529_v21, %v7517_v22  ;;  %v7545_v39 = vadd.f32 %v7537_v27, %v7519_v23 }
0x10c2   :  { %v7546_v56 = vmax.f32 %v7542_v17, 0.0  ;;  %v7548_v47 = vmax.f32 %v7544_v35, 0.0 }
0x10c3   :  { %v7547_v60 = vmax.f32 %v7543_v46, 0.0  ;;  %v7549_v48 = vmax.f32 %v7545_v39, 0.0 }
0x10c4   :  { %v7550_v33 = vpack.c.bf16 %v7546_v56, %v7546_v56  ;;  %v7552_v54 = vpack.c.bf16 %v7548_v47, %v7548_v47 }
0x10c5   :  { %v7551_v40 = vpack.c.bf16 %v7547_v60, %v7547_v60  ;;  %v7553_v30 = vpack.c.bf16 %v7549_v48, %v7549_v48 }
0x10c7   :  { %7849 = vmatprep.mubr.bf16.mxu0 %v7551_v40  ;;  %7889 = vmatprep.mubr.bf16.mxu1 %v7553_v30 }
0x10c8   :  { %7850 = vmatmul.mubr.bf16.vlgmr.msra.gmra.mrb[156].mxu0 %v7550_v33  ;;  %7890 = vmatmul.mubr.bf16.vlgmr.msra.gmra.mrb[164].mxu1 %v7552_v54 }
0x10c9   :  { %10157 = vmatpush3.bf16.msra.mxu0 %v11033_v15  ;;  %10172 = vmatprep.mubr.msk.bf16.mxu0 %vm11214_vm0, %v11213_v36 }
0x10ca   :  { %10158 = vmatprep.subr.bf16.mxu0 %v11213_v36 }
0x10cd   :  { %10159 = vmatpush3.bf16.msra.mxu0 %v11034_v44 }
0x10ce   :  { %10160 = vmatprep.subr.bf16.mxu0 %v11213_v36 }
0x10d1   :  { %10161 = vmatpush3.bf16.msra.mxu0 %v11035_v53 }
0x10d2   :  { %10162 = vmatprep.subr.bf16.mxu0 %v11213_v36 }
0x10d5   :  { %10163 = vmatpush3.bf16.msra.mxu0 %v11036_v2 }
0x10d6   :  { %10164 = vmatprep.subr.bf16.mxu0 %v11213_v36 }
0x10d9   :  { %10165 = vmatpush3.bf16.msra.mxu0 %v11037_v50 }
0x10da   :  { %10166 = vmatprep.subr.bf16.mxu0 %v11213_v36 }
0x10dd   :  { %10167 = vmatpush3.bf16.msra.mxu0 %v11038_v42 }
0x10de   :  { %10168 = vmatprep.subr.bf16.mxu0 %v11213_v36 }
0x10e1   :  { %10169 = vmatpush3.bf16.msra.mxu0 %v11039_v1 }
0x10e2   :  { %10170 = vmatprep.subr.bf16.mxu0 %v11213_v36 }
0x10e5   :  { %10171 = vmatpush3.bf16.msra.mxu0 %v11040_v58 }
0x119b   :  { %v9927_v63 = vpop.f32.mrb[156].mxu0  ;;  %v9949_v6 = vpop.f32.mrb[164].mxu1 }
0x119c   :  { %v9928_v9 = vpop.f32.mrb[157].mxu0  ;;  %v9950_v59 = vpop.f32.mrb[165].mxu1 }
0x119d   :  { %v9929_v24 = vadd.f32 %v9928_v9, %v9927_v63  ;;  %v9951_v62 = vadd.f32 %v9950_v59, %v9949_v6  ;;  %v9930_v8 = vpop.f32.mrb[158].mxu0  ;;  %v9952_v45 = vpop.f32.mrb[166].mxu1 }
0x119e   :  { %v9931_v12 = vpop.f32.mrb[159].mxu0  ;;  %v9953_v4 = vpop.f32.mrb[167].mxu1 }
0x119f   :  { %v7852_v36 = vadd.f32 %v9929_v24, %v9085_v7 }
0x11a1   :  { %v7892_v20 = vadd.f32 %v9951_v62, %v7852_v36 }
0x11a3   :  { %v7897_v3 = vmax.f32 %v7892_v20, 0.0 }
0x11a5   :  { %v7898_v0 = vpack.c.bf16 %v7897_v3, %v7897_v3 }
0x11a7   :  { %10173 = vmatmul.mubr.bf16.vlgmr.msra.gmra.mrb[160].mxu0 %v7898_v0 }
0x127a   :  { %v8004_v10 = vpop.f32.mrb[160].mxu0 }
0x127b   :  { %v8005_v16 = vadd.f32 %v9118_v18, %v8004_v10  ;;  %v10174_v26 = vpop.f32.mrb[161].mxu0 }
0x127c   :  { %v8007_v28 = vpop.f32.mrb[162].mxu0 }
0x127d   :  { %8010 = vst [vmem:[#allocation2] sm:$0x3] %v8005_v16  ;;  %v10175_v51 = vpop.f32.mrb[163].mxu0 }
0x127e   :  { %11199 = shalt.err (!%p11196_p4)
}
0x127f   :  { %s11200_s8 = scalar_lea.hbm %s14960_s9, 32 }
0x1280   :  { %p11201_p5 = scmp.ne.s32.totalorder %s14960_s9, %s11200_s8  ;;  %p11204_p6 = scmp.lt.u32.totalorder %s11200_s8, %s14960_s9 }
0x1282   :  { %p11206_p7 = pnand %p11204_p6, %p11201_p5 }
0x1284   :  { %11209 = shalt.err (!%p11206_p7)
}
0x1285   :  { %8020 = dma.vmem_to_hbm [thread:$0]  %s8018_s0, 32, %s14960_s9, [#allocation3]  }
0x1286   :  { %11210 = dma.done.wait [#allocation3], 32  }
0x1287   :  { %11211 = vsyncadd [#allocation3], 4294967264 }
0x1288   :  { %8024 = vsyncpa [#allocation3], 1 }

</bundles_post_ra>
